<compile_context>
chip_gen: v7x
topology: tpu7x:2x2x1
jax: 0.10.0
libtpu: 0.0.40
codegen_flags: <defaults>
</compile_context>

<pallas_src>
import math

import numpy as np
import jax
import jax.numpy as jnp
from jax import lax
from jax.experimental import pallas as pl
from jax.experimental.pallas import tpu as pltpu

_EPS = 1e-5


def _round_up(x, m):
    return ((x + m - 1) // m) * m


def _default_vmem_limit():
    """Generation-aware scoped-VMEM cap (v5e/v6e: 128 MiB -> 64 MiB, v7x: 64 MiB -> 32 MiB)."""
    try:
        cap = int(pltpu.get_tpu_info().vmem_capacity_bytes)
    except Exception:                      # conservative fallback
        cap = 128 * 1024 * 1024
    return max(32 * 1024 * 1024, min(64 * 1024 * 1024, cap // 2))


_VMEM_LIMIT = _default_vmem_limit()


def _cparams(n_parallel):
    return pltpu.CompilerParams(
        dimension_semantics=("parallel",) * n_parallel,
        vmem_limit_bytes=_VMEM_LIMIT)


def _ln(x, g, b):
    """LayerNorm over the last axis (f32, biased variance, eps=1e-5)."""
    mu = jnp.mean(x, axis=-1, keepdims=True)
    var = jnp.mean(jnp.square(x - mu), axis=-1, keepdims=True)
    return (x - mu) * lax.rsqrt(var + _EPS) * g + b


# ---------------------------------------------------------------------------
# Row-wise (optionally masked) affine map:  (M, d_in) -> (M, d_out)
# Used for the 1x1 MaskedConv embedder, up_embedder and the decoder head.
# ---------------------------------------------------------------------------
def _linear_kernel(do_mask):
    def kernel(*refs):
        idx = 0
        x_ref = refs[idx]; idx += 1
        if do_mask:
            m_ref = refs[idx]; idx += 1
        w_ref, b_ref, o_ref = refs[idx], refs[idx + 1], refs[idx + 2]
        x = x_ref[...].astype(jnp.float32)
        if do_mask:
            x = x * m_ref[...]
        o_ref[...] = (jnp.dot(x.astype(jnp.bfloat16), w_ref[...],
                              preferred_element_type=jnp.float32)
                      + b_ref[...]).astype(o_ref.dtype)
    return kernel


def linear_rows(x, w, b, mask=None, tile=1024):
    m, d_in = x.shape
    d_out = w.shape[1]
    if m <= tile:
        tm, mp = m, m
    else:                                   # pad + cdiv grid keeps pipelining alive
        tm = tile
        mp = _round_up(m, tm)
    if mp != m:
        x = jnp.pad(x, ((0, mp - m), (0, 0)))
        if mask is not None:
            mask = jnp.pad(mask, ((0, mp - m), (0, 0)))

    inputs = [x]
    in_specs = [pl.BlockSpec((tm, d_in), lambda i: (i, 0))]
    if mask is not None:
        inputs.append(mask)
        in_specs.append(pl.BlockSpec((tm, 1), lambda i: (i, 0)))
    inputs += [w.astype(jnp.bfloat16), b.reshape(1, d_out)]
    in_specs += [pl.BlockSpec((d_in, d_out), lambda i: (0, 0)),
                 pl.BlockSpec((1, d_out), lambda i: (0, 0))]

    out = pl.pallas_call(
        _linear_kernel(mask is not None),
        out_shape=jax.ShapeDtypeStruct((mp, d_out), jnp.float32),
        grid=(mp // tm,),
        in_specs=in_specs,
        out_specs=pl.BlockSpec((tm, d_out), lambda i: (i, 0)),
        compiler_params=_cparams(1),
    )(*inputs)
    return out[:m] if mp != m else out


# ---------------------------------------------------------------------------
# Fused ByteNet block (1-D sequence conv, or 2-D conv on the flattened
# row-major spatial layout).  One grid step per batch element; the whole
# layer (LN->ReLU->PFF->LN->ReLU->mask->dilated conv->LN->ReLU->PFF->+res)
# runs off a single HBM read/write of the un-padded residual stream.
# ---------------------------------------------------------------------------
def _layer_weight_args(lp, conv_w_flat):
    return [lp["ln1_g"].reshape(1, -1), lp["ln1_b"].reshape(1, -1),
            lp["pff1_w"].astype(jnp.bfloat16), lp["pff1_b"].reshape(1, -1),
            lp["ln2_g"].reshape(1, -1), lp["ln2_b"].reshape(1, -1),
            conv_w_flat.astype(jnp.bfloat16), lp["conv_b"].reshape(1, -1),
            lp["ln3_g"].reshape(1, -1), lp["ln3_b"].reshape(1, -1),
            lp["pff2_w"].astype(jnp.bfloat16), lp["pff2_b"].reshape(1, -1)]


def _block_kernel(n_rows, d_h, tap_offsets, use_colmask, use_accum, halo_l):
    def kernel(*refs):
        idx = 0
        e_ref = refs[idx]; idx += 1
        m_ref = refs[idx]; idx += 1
        cm_ref = None
        if use_colmask:
            cm_ref = refs[idx]; idx += 1
        (g1, b1, w1, c1, g2, b2, cw, cb, g3, b3, w2, c2) = refs[idx:idx + 12]
        o_ref = refs[idx + 12]
        h_ref = refs[idx + 13]                       # (halo_l + n_rows + halo_r, d_h) f32
        col_ref = None if use_accum else refs[idx + 14]

        x = e_ref[0].astype(jnp.float32)             # (n_rows, d_model)
        # sequence1: LN -> ReLU -> PFF -> LN -> ReLU, then the MaskedConv mask
        h = jnp.maximum(_ln(x, g1[...], b1[...]), 0.0)
        h = jnp.dot(h.astype(jnp.bfloat16), w1[...],
                    preferred_element_type=jnp.float32) + c1[...]
        h = jnp.maximum(_ln(h, g2[...], b2[...]), 0.0) * m_ref[0]

        # Stage h into the halo-padded scratch.  Halo rows are zeroed every
        # step (cheap; safe under megacore sharding of the "parallel" grid).
        halo_len = h_ref.shape[0]
        if halo_l > 0:
            h_ref[0:halo_l, :] = jnp.zeros((halo_l, d_h), jnp.float32)
        tail = halo_len - (halo_l + n_rows)
        if tail > 0:
            h_ref[halo_l + n_rows:halo_len, :] = jnp.zeros((tail, d_h), jnp.float32)
        h_ref[halo_l:halo_l + n_rows, :] = h

        def tap_value(t, off):
            v = h_ref[halo_l + off:halo_l + off + n_rows, :]
            if use_colmask:                          # remove column wrap-around
                v = v * cm_ref[t]
            return v.astype(jnp.bfloat16)

        if use_accum:
            # d_h >= 128: K already fills the MXU -> accumulate k(*k) matmuls,
            # no im2col staging traffic (v5e single-vst-slot relief).
            acc = None
            for t, off in enumerate(tap_offsets):
                p = jnp.dot(tap_value(t, off), cw[t * d_h:(t + 1) * d_h, :],
                            preferred_element_type=jnp.float32)
                acc = p if acc is None else acc + p
            c = acc + cb[...]
        else:
            # Densely packed bf16 im2col -> single wide-K MXU matmul.
            for t, off in enumerate(tap_offsets):
                col_ref[:, t * d_h:(t + 1) * d_h] = tap_value(t, off)
            c = jnp.dot(col_ref[...], cw[...],
                        preferred_element_type=jnp.float32) + cb[...]

        # sequence2: LN -> ReLU -> PFF, + residual (single HBM writeback)
        c = jnp.maximum(_ln(c, g3[...], b3[...]), 0.0)
        c = jnp.dot(c.astype(jnp.bfloat16), w2[...],
                    preferred_element_type=jnp.float32) + c2[...]
        o_ref[0] = (c + x).astype(o_ref.dtype)

    return kernel


def bytenet_block(e, mask, lp, dil, k, *, ell=None, col_mask=None):
    """e: (N, P, d_model) un-padded stream, mask: (N, P, 1).  P = L or ell*ell."""
    n, n_rows, d_model = e.shape
    d_h = lp["pff1_w"].shape[1]
    pad = dil * (k - 1) // 2
    if ell is None:                                   # 1-D sequence conv
        tap_offsets = tuple(t * dil - pad for t in range(k))
        cw = lp["conv_w"].reshape(k * d_h, d_h)
    else:                                             # 2-D conv on row-major flat layout
        tap_offsets = tuple((i * ell + j) * dil - pad * (ell + 1)
                            for i in range(k) for j in range(k))
        cw = lp["conv_w"].reshape(k * k * d_h, d_h)
    n_taps = len(tap_offsets)
    use_colmask = col_mask is not None
    use_accum = d_h >= 128

    halo_l = _round_up(max(0, -min(tap_offsets)), 8)  # sublane-aligned interior start
    halo_r = _round_up(max(0, max(tap_offsets)), 8)
    scratch = [pltpu.VMEM((halo_l + n_rows + halo_r, d_h), jnp.float32)]
    if not use_accum:
        scratch.append(pltpu.VMEM((n_rows, n_taps * d_h), jnp.bfloat16))

    weights = _layer_weight_args(lp, cw)
    inputs = [e, mask]
    in_specs = [pl.BlockSpec((1, n_rows, d_model), lambda i: (i, 0, 0)),
                pl.BlockSpec((1, n_rows, 1), lambda i: (i, 0, 0))]
    if use_colmask:
        inputs.append(col_mask)
        in_specs.append(pl.BlockSpec(col_mask.shape, lambda i: (0, 0, 0)))
    inputs += weights
    in_specs += [pl.BlockSpec(w.shape, lambda i: (0, 0)) for w in weights]

    return pl.pallas_call(
        _block_kernel(n_rows, d_h, tap_offsets, use_colmask, use_accum, halo_l),
        out_shape=jax.ShapeDtypeStruct((n, n_rows, d_model), jnp.float32),
        grid=(n,),
        in_specs=in_specs,
        out_specs=pl.BlockSpec((1, n_rows, d_model), lambda i: (i, 0, 0)),
        scratch_shapes=scratch,
        compiler_params=_cparams(1),
    )(*inputs)


def _col_masks(ell, dil, k):
    """(k*k, ell*ell, 1) masks removing the column wrap-around of the flattened
    row-shift formulation of the 2-D dilated conv (indexed by output column)."""
    pad = dil * (k - 1) // 2
    x_idx = np.arange(ell * ell) % ell
    masks = []
    for _i in range(k):
        for j in range(k):
            ox = j * dil - pad
            masks.append(((x_idx + ox >= 0) & (x_idx + ox < ell)).astype(np.float32))
    return jnp.asarray(np.stack(masks)[:, :, None])


# ---------------------------------------------------------------------------
# Attention2d: VPU logits -> masked softmax over positions -> weighted sum
# ---------------------------------------------------------------------------
def _attention_pool_kernel(x_ref, m_ref, w_ref, b_ref, o_ref):
    xv = x_ref[0]                                                 # (P, d)
    logits = jnp.sum(xv * w_ref[...], axis=-1, keepdims=True) + b_ref[...]
    logits = jnp.where(m_ref[0] > 0, logits, jnp.full_like(logits, -1e30))
    mx = jnp.max(logits, axis=0, keepdims=True)
    pe = jnp.exp(logits - mx)
    z = jnp.sum(pe, axis=0, keepdims=True)
    attn = pe * pl.reciprocal(z, approx=True)
    o_ref[0] = jnp.sum(attn * xv, axis=0, keepdims=True).astype(o_ref.dtype)


def attention2d_pool(x, mask, w, b):
    """x: (N, P, d), mask: (N, P, 1), w: (d, 1) -> (N, d)."""
    n, p_len, d = x.shape
    out = pl.pallas_call(
        _attention_pool_kernel,
        out_shape=jax.ShapeDtypeStruct((n, 1, d), jnp.float32),
        grid=(n,),
        in_specs=[pl.BlockSpec((1, p_len, d), lambda i: (i, 0, 0)),
                  pl.BlockSpec((1, p_len, 1), lambda i: (i, 0, 0)),
                  pl.BlockSpec((1, d), lambda i: (0, 0)),
                  pl.BlockSpec((1, 1), lambda i: (0, 0))],
        out_specs=pl.BlockSpec((1, 1, d), lambda i: (i, 0, 0)),
        compiler_params=_cparams(1),
    )(x, mask, w.reshape(1, d), b.reshape(1, 1))
    return out.reshape(n, d)


# ---------------------------------------------------------------------------
# Parameter initialization (deterministic, synthetic)
# ---------------------------------------------------------------------------
def _dilations(n_layers, r):
    log2 = int(math.log2(r)) + 1
    return [2 ** (l % log2) for l in range(n_layers)]


def init_params(key, cfg):
    d_c = cfg["d_conditioning"]
    d_model = cfg["d_model"]
    d_hc = d_c // 2
    d_hb = d_model // 2
    keys = iter(jax.random.split(key, 512))

    def nrm(shape, scale):
        return jax.random.normal(next(keys), shape, jnp.float32) * scale

    def dense(d_in, d_out):
        return nrm((d_in, d_out), 1.0 / math.sqrt(d_in)), nrm((d_out,), 0.02)

    params = {}
    # ---- StructureConditioner: ByteNet2d ----
    params["c_emb_w"], params["c_emb_b"] = dense(cfg["d_structure"], d_c)
    c_layers = []
    for _ in range(cfg["n_c_layers"]):
        lp = {}
        lp["ln1_g"] = jnp.ones((d_c,), jnp.float32)
        lp["ln1_b"] = jnp.zeros((d_c,), jnp.float32)
        lp["pff1_w"], lp["pff1_b"] = dense(d_c, d_hc)
        lp["ln2_g"] = jnp.ones((d_hc,), jnp.float32)
        lp["ln2_b"] = jnp.zeros((d_hc,), jnp.float32)
        lp["conv_w"] = nrm((cfg["k_c"], cfg["k_c"], d_hc, d_hc),
                           1.0 / math.sqrt(d_hc * cfg["k_c"] ** 2))
        lp["conv_b"] = nrm((d_hc,), 0.02)
        lp["ln3_g"] = jnp.ones((d_hc,), jnp.float32)
        lp["ln3_b"] = jnp.zeros((d_hc,), jnp.float32)
        lp["pff2_w"], lp["pff2_b"] = dense(d_hc, d_c)
        c_layers.append(lp)
    params["c_layers"] = c_layers
    params["attn_w"], params["attn_b"] = dense(d_c, 1)

    # ---- ConditionedByteNetDecoder ----
    params["emb_table"] = nrm((cfg["n_tokens"], cfg["d_embedding"]), 1.0)
    params["up_w"], params["up_b"] = dense(cfg["d_embedding"], d_model - d_c)
    b_layers = []
    for _ in range(cfg["n_layers"]):
        lp = {}
        lp["ln1_g"] = jnp.ones((d_model,), jnp.float32)
        lp["ln1_b"] = jnp.zeros((d_model,), jnp.float32)
        lp["pff1_w"], lp["pff1_b"] = dense(d_model, d_hb)
        lp["ln2_g"] = jnp.ones((d_hb,), jnp.float32)
        lp["ln2_b"] = jnp.zeros((d_hb,), jnp.float32)
        lp["conv_w"] = nrm((cfg["k_b"], d_hb, d_hb),
                           1.0 / math.sqrt(d_hb * cfg["k_b"]))
        lp["conv_b"] = nrm((d_hb,), 0.02)
        lp["ln3_g"] = jnp.ones((d_hb,), jnp.float32)
        lp["ln3_b"] = jnp.zeros((d_hb,), jnp.float32)
        lp["pff2_w"], lp["pff2_b"] = dense(d_hb, d_model)
        b_layers.append(lp)
    params["b_layers"] = b_layers
    params["dec_w"], params["dec_b"] = dense(d_model, cfg["n_tokens"])
    return params


# ---------------------------------------------------------------------------
# Full forward pass
# ---------------------------------------------------------------------------
def make_forward(c_dilations, b_dilations):
    def forward(params, src, struc, src_mask, str_mask):
        n, seq_len = src.shape
        _, ell, _, d_str = struc.shape
        d_c = params["c_emb_w"].shape[1]
        n_tokens = params["dec_b"].shape[0]
        k_c = params["c_layers"][0]["conv_w"].shape[0]
        k_b = params["b_layers"][0]["conv_w"].shape[0]

        # ===== StructureConditioner: ByteNet2d + Attention2d =====
        n_pos = ell * ell
        x2 = struc.reshape(n, n_pos, d_str).astype(jnp.float32)
        m2 = str_mask.reshape(n, n_pos, 1).astype(jnp.float32)
        # embedder = MaskedConv2d(d_structure, d_conditioning, 1): mask, 1x1 conv
        e = linear_rows(x2.reshape(n * n_pos, d_str), params["c_emb_w"],
                        params["c_emb_b"], mask=m2.reshape(n * n_pos, 1))
        e = e.reshape(n, n_pos, d_c)
        for layer, dil in zip(params["c_layers"], c_dilations):
            e = bytenet_block(e, m2, layer, dil, k_c,
                              ell=ell, col_mask=_col_masks(ell, dil, k_c))
        c = attention2d_pool(e, m2, params["attn_w"], params["attn_b"])   # (N, d_c)

        # ===== ConditionedByteNetDecoder =====
        m1 = src_mask.reshape(n, seq_len, 1).astype(jnp.float32)
        emb = jnp.take(params["emb_table"], src, axis=0)      # glue: table lookup
        eu = linear_rows(emb.reshape(n * seq_len, -1), params["up_w"], params["up_b"])
        e1 = jnp.concatenate(
            [eu.reshape(n, seq_len, -1),
             jnp.broadcast_to(c[:, None, :], (n, seq_len, d_c))], axis=-1)
        for layer, dil in zip(params["b_layers"], b_dilations):
            e1 = bytenet_block(e1, m1, layer, dil, k_b)

        # decoder head: pad d_out to a lane-dense multiple of 128, slice after
        d_model = e1.shape[-1]
        d_pad = _round_up(n_tokens, 128)
        dec_w = jnp.pad(params["dec_w"], ((0, 0), (0, d_pad - n_tokens)))
        dec_b = jnp.pad(params["dec_b"], ((0, d_pad - n_tokens),))
        out = linear_rows(e1.reshape(n * seq_len, d_model), dec_w, dec_b)[:, :n_tokens]
        return out.reshape(n, seq_len, n_tokens)

    return forward


# ---------------------------------------------------------------------------
if __name__ == "__main__":
    cfg = dict(n_tokens=16, d_embedding=8, d_conditioning=8, d_model=32,
               n_layers=2, k_b=3, r_b=4,
               d_structure=10, n_c_layers=2, k_c=3, r_c=2)
    N, L, ELL = 2, 16, 8

    key = jax.random.PRNGKey(0)
    kp, ks, kt, km1, km2 = jax.random.split(key, 5)
    params = init_params(kp, cfg)

    src = jax.random.randint(ks, (N, L), 0, cfg["n_tokens"], dtype=jnp.int32)
    struc = jax.random.normal(kt, (N, ELL, ELL, cfg["d_structure"]), jnp.float32)
    src_mask = (jax.random.uniform(km1, (N, L, 1)) > 0.2).astype(jnp.float32)
    str_mask = (jax.random.uniform(km2, (N, ELL, ELL, 1)) > 0.2).astype(jnp.float32)
    str_mask = str_mask.at[:, 0, 0, 0].set(1.0)   # at least one valid position / batch

    fwd = jax.jit(make_forward(_dilations(cfg["n_c_layers"], cfg["r_c"]),
                               _dilations(cfg["n_layers"], cfg["r_b"])))
    out = fwd(params, src, struc, src_mask, str_mask)
    out = jax.block_until_ready(out)

    assert out.shape == (N, L, cfg["n_tokens"]), out.shape
    assert bool(jnp.all(jnp.isfinite(out)))
    print("KERNEL_OK")
</pallas_src>

<mosaic_0001>
module attributes {stable_mosaic.version = 11 : i64} {
  func.func @kernel(%arg0: i32, %arg1: memref<128x10xf32, #tpu.memory_space<vmem>>, %arg2: memref<128x1xf32, #tpu.memory_space<vmem>>, %arg3: memref<10x8xbf16, #tpu.memory_space<vmem>>, %arg4: memref<1x8xf32, #tpu.memory_space<vmem>>, %arg5: memref<128x8xf32, #tpu.memory_space<vmem>>) attributes {dimension_semantics = [#tpu.dimension_semantics<parallel>], iteration_bounds = array<i64: 1>, scalar_prefetch = 0 : i64, scratch_operands = 0 : i64, tpu.core_type = #tpu.core_type<tc>, window_params = [{transform_indices = @transform_0, window_bounds = array<i64: 128, 10>}, {transform_indices = @transform_1, window_bounds = array<i64: 128, 1>}, {pipeline_mode = #tpu.pipeline_mode<synchronous>, transform_indices = @transform_2, window_bounds = array<i64: 10, 8>}, {pipeline_mode = #tpu.pipeline_mode<synchronous>, transform_indices = @transform_3, window_bounds = array<i64: 1, 8>}, {transform_indices = @transform_4, window_bounds = array<i64: 128, 8>}]} {
    %c0 = arith.constant 0 : index
    %c0_0 = arith.constant 0 : index
    %0 = vector.load %arg1[%c0, %c0_0] : memref<128x10xf32, #tpu.memory_space<vmem>>, vector<128x10xf32>
    %c0_1 = arith.constant 0 : index
    %c0_2 = arith.constant 0 : index
    %1 = vector.load %arg2[%c0_1, %c0_2] : memref<128x1xf32, #tpu.memory_space<vmem>>, vector<128x1xf32>
    %2 = vector.broadcast %1 : vector<128x1xf32> to vector<128x10xf32>
    %3 = arith.mulf %0, %2 : vector<128x10xf32>
    %4 = arith.truncf %3 : vector<128x10xf32> to vector<128x10xbf16>
    %c0_3 = arith.constant 0 : index
    %c0_4 = arith.constant 0 : index
    %5 = vector.load %arg3[%c0_3, %c0_4] : memref<10x8xbf16, #tpu.memory_space<vmem>>, vector<10x8xbf16>
    %cst = arith.constant dense<0.000000e+00> : vector<128x8xf32>
    %6 = tpu.matmul %4, %5, %cst {dimension_numbers = #tpu.dot_dimension_numbers<[1], [0], [0], [1], [0, 0, 1, 1], [], []>} : vector<128x10xbf16>, vector<10x8xbf16>, vector<128x8xf32> -> vector<128x8xf32>
    %c0_5 = arith.constant 0 : index
    %c0_6 = arith.constant 0 : index
    %7 = vector.load %arg4[%c0_5, %c0_6] : memref<1x8xf32, #tpu.memory_space<vmem>>, vector<1x8xf32>
    %8 = vector.broadcast %7 : vector<1x8xf32> to vector<128x8xf32>
    %9 = arith.addf %6, %8 : vector<128x8xf32>
    %c0_7 = arith.constant 0 : index
    %c0_8 = arith.constant 0 : index
    %10 = vector.load %arg5[%c0_7, %c0_8] : memref<128x8xf32, #tpu.memory_space<vmem>>, vector<128x8xf32>
    tpu.vector_store %arg5[%c0_7, %c0_8], %9 {strides = array<i32>} : memref<128x8xf32, #tpu.memory_space<vmem>>, vector<128x8xf32>,
    return
  }
  func.func @transform_0(%arg0: i32) -> (i32, i32) {
    %c0_i32 = arith.constant 0 : i32
    %c0_i32_0 = arith.constant 0 : i32
    return %arg0, %c0_i32 : i32, i32
  }
  func.func @transform_1(%arg0: i32) -> (i32, i32) {
    %c0_i32 = arith.constant 0 : i32
    %c0_i32_0 = arith.constant 0 : i32
    return %arg0, %c0_i32 : i32, i32
  }
  func.func @transform_2(%arg0: i32) -> (i32, i32) {
    %c0_i32 = arith.constant 0 : i32
    %c0_i32_0 = arith.constant 0 : i32
    %c0_i32_1 = arith.constant 0 : i32
    return %c0_i32, %c0_i32_0 : i32, i32
  }
  func.func @transform_3(%arg0: i32) -> (i32, i32) {
    %c0_i32 = arith.constant 0 : i32
    %c0_i32_0 = arith.constant 0 : i32
    %c0_i32_1 = arith.constant 0 : i32
    return %c0_i32, %c0_i32_0 : i32, i32
  }
  func.func @transform_4(%arg0: i32) -> (i32, i32) {
    %c0_i32 = arith.constant 0 : i32
    %c0_i32_0 = arith.constant 0 : i32
    return %arg0, %c0_i32 : i32, i32
  }
}

module attributes {stable_mosaic.version = 11 : i64} {
  func.func @_attention_pool_kernel(%arg0: i32, %arg1: memref<1x64x8xf32, #tpu.memory_space<vmem>>, %arg2: memref<1x64x1xf32, #tpu.memory_space<vmem>>, %arg3: memref<1x8xf32, #tpu.memory_space<vmem>>, %arg4: memref<1x1xf32, #tpu.memory_space<vmem>>, %arg5: memref<1x1x8xf32, #tpu.memory_space<vmem>>) attributes {dimension_semantics = [#tpu.dimension_semantics<parallel>], iteration_bounds = array<i64: 2>, scalar_prefetch = 0 : i64, scratch_operands = 0 : i64, tpu.core_type = #tpu.core_type<tc>, window_params = [{transform_indices = @transform_0, window_bounds = array<i64: 1, 64, 8>}, {transform_indices = @transform_1, window_bounds = array<i64: 1, 64, 1>}, {pipeline_mode = #tpu.pipeline_mode<synchronous>, transform_indices = @transform_2, window_bounds = array<i64: 1, 8>}, {pipeline_mode = #tpu.pipeline_mode<synchronous>, transform_indices = @transform_3, window_bounds = array<i64: 1, 1>}, {transform_indices = @transform_4, window_bounds = array<i64: 1, 1, 8>}]} {
    %c0 = arith.constant 0 : index
    %c0_0 = arith.constant 0 : index
    %c0_1 = arith.constant 0 : index
    %0 = vector.load %arg1[%c0, %c0_0, %c0_1] : memref<1x64x8xf32, #tpu.memory_space<vmem>>, vector<1x64x8xf32>
    %1 = vector.shape_cast %0 : vector<1x64x8xf32> to vector<64x8xf32>
    %c0_2 = arith.constant 0 : index
    %c0_3 = arith.constant 0 : index
    %2 = vector.load %arg3[%c0_2, %c0_3] : memref<1x8xf32, #tpu.memory_space<vmem>>, vector<1x8xf32>
    %3 = vector.broadcast %2 : vector<1x8xf32> to vector<64x8xf32>
    %4 = arith.mulf %1, %3 : vector<64x8xf32>
    %cst = arith.constant dense<0.000000e+00> : vector<64xf32>
    %5 = vector.multi_reduction <add>, %4, %cst [1] : vector<64x8xf32> to vector<64xf32>
    %6 = vector.shape_cast %5 : vector<64xf32> to vector<64x1xf32>
    %c0_4 = arith.constant 0 : index
    %c0_5 = arith.constant 0 : index
    %7 = vector.load %arg4[%c0_4, %c0_5] : memref<1x1xf32, #tpu.memory_space<vmem>>, vector<1x1xf32>
    %8 = vector.broadcast %7 : vector<1x1xf32> to vector<64x1xf32>
    %9 = arith.addf %6, %8 : vector<64x1xf32>
    %c0_6 = arith.constant 0 : index
    %c0_7 = arith.constant 0 : index
    %c0_8 = arith.constant 0 : index
    %10 = vector.load %arg2[%c0_6, %c0_7, %c0_8] : memref<1x64x1xf32, #tpu.memory_space<vmem>>, vector<1x64x1xf32>
    %11 = vector.shape_cast %10 : vector<1x64x1xf32> to vector<64x1xf32>
    %cst_9 = arith.constant 0.000000e+00 : f32
    %12 = vector.broadcast %cst_9 : f32 to vector<64x1xf32>
    %13 = arith.cmpf ogt, %11, %12 : vector<64x1xf32>
    %cst_10 = arith.constant -1.000000e+30 : f32
    %14 = vector.broadcast %cst_10 : f32 to vector<64x1xf32>
    %15 = arith.select %13, %9, %14 : vector<64x1xi1>, vector<64x1xf32>
    %cst_11 = arith.constant dense<0xFF800000> : vector<1xf32>
    %16 = vector.multi_reduction <maximumf>, %15, %cst_11 [0] : vector<64x1xf32> to vector<1xf32>
    %17 = vector.shape_cast %16 : vector<1xf32> to vector<1x1xf32>
    %18 = vector.broadcast %17 : vector<1x1xf32> to vector<64x1xf32>
    %19 = arith.subf %15, %18 : vector<64x1xf32>
    %20 = math.exp %19 : vector<64x1xf32>
    %cst_12 = arith.constant dense<0.000000e+00> : vector<1xf32>
    %21 = vector.multi_reduction <add>, %20, %cst_12 [0] : vector<64x1xf32> to vector<1xf32>
    %22 = vector.shape_cast %21 : vector<1xf32> to vector<1x1xf32>
    %23 = tpu.reciprocal %22 {approx = true} : vector<1x1xf32> -> vector<1x1xf32>
    %24 = vector.broadcast %23 : vector<1x1xf32> to vector<64x1xf32>
    %25 = arith.mulf %20, %24 : vector<64x1xf32>
    %26 = vector.broadcast %25 : vector<64x1xf32> to vector<64x8xf32>
    %27 = arith.mulf %26, %1 : vector<64x8xf32>
    %cst_13 = arith.constant dense<0.000000e+00> : vector<8xf32>
    %28 = vector.multi_reduction <add>, %27, %cst_13 [0] : vector<64x8xf32> to vector<8xf32>
    %29 = vector.shape_cast %28 : vector<8xf32> to vector<1x8xf32>
    %c0_14 = arith.constant 0 : index
    %c0_15 = arith.constant 0 : index
    %c0_16 = arith.constant 0 : index
    %30 = vector.load %arg5[%c0_14, %c0_15, %c0_16] : memref<1x1x8xf32, #tpu.memory_space<vmem>>, vector<1x1x8xf32>
    %31 = vector.shape_cast %30 : vector<1x1x8xf32> to vector<1x8xf32>
    %32 = vector.shape_cast %29 : vector<1x8xf32> to vector<1x1x8xf32>
    tpu.vector_store %arg5[%c0_14, %c0_15, %c0_16], %32 {strides = array<i32>} : memref<1x1x8xf32, #tpu.memory_space<vmem>>, vector<1x1x8xf32>,
    return
  }
  func.func @transform_0(%arg0: i32) -> (i32, i32, i32) {
    %c0_i32 = arith.constant 0 : i32
    %c0_i32_0 = arith.constant 0 : i32
    %c0_i32_1 = arith.constant 0 : i32
    return %arg0, %c0_i32, %c0_i32_0 : i32, i32, i32
  }
  func.func @transform_1(%arg0: i32) -> (i32, i32, i32) {
    %c0_i32 = arith.constant 0 : i32
    %c0_i32_0 = arith.constant 0 : i32
    %c0_i32_1 = arith.constant 0 : i32
    return %arg0, %c0_i32, %c0_i32_0 : i32, i32, i32
  }
  func.func @transform_2(%arg0: i32) -> (i32, i32) {
    %c0_i32 = arith.constant 0 : i32
    %c0_i32_0 = arith.constant 0 : i32
    %c0_i32_1 = arith.constant 0 : i32
    return %c0_i32, %c0_i32_0 : i32, i32
  }
  func.func @transform_3(%arg0: i32) -> (i32, i32) {
    %c0_i32 = arith.constant 0 : i32
    %c0_i32_0 = arith.constant 0 : i32
    %c0_i32_1 = arith.constant 0 : i32
    return %c0_i32, %c0_i32_0 : i32, i32
  }
  func.func @transform_4(%arg0: i32) -> (i32, i32, i32) {
    %c0_i32 = arith.constant 0 : i32
    %c0_i32_0 = arith.constant 0 : i32
    %c0_i32_1 = arith.constant 0 : i32
    return %arg0, %c0_i32, %c0_i32_0 : i32, i32, i32
  }
}

module attributes {stable_mosaic.version = 11 : i64} {
  func.func @kernel(%arg0: i32, %arg1: memref<1x64x8xf32, #tpu.memory_space<vmem>>, %arg2: memref<1x64x1xf32, #tpu.memory_space<vmem>>, %arg3: memref<9x64x1xf32, #tpu.memory_space<vmem>>, %arg4: memref<1x8xf32, #tpu.memory_space<vmem>>, %arg5: memref<1x8xf32, #tpu.memory_space<vmem>>, %arg6: memref<8x4xbf16, #tpu.memory_space<vmem>>, %arg7: memref<1x4xf32, #tpu.memory_space<vmem>>, %arg8: memref<1x4xf32, #tpu.memory_space<vmem>>, %arg9: memref<1x4xf32, #tpu.memory_space<vmem>>, %arg10: memref<36x4xbf16, #tpu.memory_space<vmem>>, %arg11: memref<1x4xf32, #tpu.memory_space<vmem>>, %arg12: memref<1x4xf32, #tpu.memory_space<vmem>>, %arg13: memref<1x4xf32, #tpu.memory_space<vmem>>, %arg14: memref<4x8xbf16, #tpu.memory_space<vmem>>, %arg15: memref<1x8xf32, #tpu.memory_space<vmem>>, %arg16: memref<1x64x8xf32, #tpu.memory_space<vmem>>, %arg17: memref<112x4xf32, #tpu.memory_space<vmem>>, %arg18: memref<64x36xbf16, #tpu.memory_space<vmem>>) attributes {dimension_semantics = [#tpu.dimension_semantics<parallel>], iteration_bounds = array<i64: 2>, scalar_prefetch = 0 : i64, scratch_operands = 2 : i64, tpu.core_type = #tpu.core_type<tc>, window_params = [{transform_indices = @transform_0, window_bounds = array<i64: 1, 64, 8>}, {transform_indices = @transform_1, window_bounds = array<i64: 1, 64, 1>}, {pipeline_mode = #tpu.pipeline_mode<synchronous>, transform_indices = @transform_2, window_bounds = array<i64: 9, 64, 1>}, {pipeline_mode = #tpu.pipeline_mode<synchronous>, transform_indices = @transform_3, window_bounds = array<i64: 1, 8>}, {pipeline_mode = #tpu.pipeline_mode<synchronous>, transform_indices = @transform_4, window_bounds = array<i64: 1, 8>}, {pipeline_mode = #tpu.pipeline_mode<synchronous>, transform_indices = @transform_5, window_bounds = array<i64: 8, 4>}, {pipeline_mode = #tpu.pipeline_mode<synchronous>, transform_indices = @transform_6, window_bounds = array<i64: 1, 4>}, {pipeline_mode = #tpu.pipeline_mode<synchronous>, transform_indices = @transform_7, window_bounds = array<i64: 1, 4>}, {pipeline_mode = #tpu.pipeline_mode<synchronous>, transform_indices = @transform_8, window_bounds = array<i64: 1, 4>}, {pipeline_mode = #tpu.pipeline_mode<synchronous>, transform_indices = @transform_9, window_bounds = array<i64: 36, 4>}, {pipeline_mode = #tpu.pipeline_mode<synchronous>, transform_indices = @transform_10, window_bounds = array<i64: 1, 4>}, {pipeline_mode = #tpu.pipeline_mode<synchronous>, transform_indices = @transform_11, window_bounds = array<i64: 1, 4>}, {pipeline_mode = #tpu.pipeline_mode<synchronous>, transform_indices = @transform_12, window_bounds = array<i64: 1, 4>}, {pipeline_mode = #tpu.pipeline_mode<synchronous>, transform_indices = @transform_13, window_bounds = array<i64: 4, 8>}, {pipeline_mode = #tpu.pipeline_mode<synchronous>, transform_indices = @transform_14, window_bounds = array<i64: 1, 8>}, {transform_indices = @transform_15, window_bounds = array<i64: 1, 64, 8>}]} {
    %c0 = arith.constant 0 : index
    %c0_0 = arith.constant 0 : index
    %c0_1 = arith.constant 0 : index
    %0 = vector.load %arg1[%c0, %c0_0, %c0_1] : memref<1x64x8xf32, #tpu.memory_space<vmem>>, vector<1x64x8xf32>
    %1 = vector.shape_cast %0 : vector<1x64x8xf32> to vector<64x8xf32>
    %c0_2 = arith.constant 0 : index
    %c0_3 = arith.constant 0 : index
    %2 = vector.load %arg4[%c0_2, %c0_3] : memref<1x8xf32, #tpu.memory_space<vmem>>, vector<1x8xf32>
    %c0_4 = arith.constant 0 : index
    %c0_5 = arith.constant 0 : index
    %3 = vector.load %arg5[%c0_4, %c0_5] : memref<1x8xf32, #tpu.memory_space<vmem>>, vector<1x8xf32>
    %cst = arith.constant dense<0.000000e+00> : vector<64xf32>
    %4 = vector.multi_reduction <add>, %1, %cst [1] : vector<64x8xf32> to vector<64xf32>
    %5 = vector.shape_cast %4 : vector<64xf32> to vector<64x1xf32>
    %cst_6 = arith.constant 8.000000e+00 : f32
    %6 = vector.broadcast %cst_6 : f32 to vector<64x1xf32>
    %7 = arith.divf %5, %6 : vector<64x1xf32>
    %8 = vector.broadcast %7 : vector<64x1xf32> to vector<64x8xf32>
    %9 = arith.subf %1, %8 : vector<64x8xf32>
    %10 = arith.mulf %9, %9 : vector<64x8xf32>
    %cst_7 = arith.constant dense<0.000000e+00> : vector<64xf32>
    %11 = vector.multi_reduction <add>, %10, %cst_7 [1] : vector<64x8xf32> to vector<64xf32>
    %12 = vector.shape_cast %11 : vector<64xf32> to vector<64x1xf32>
    %cst_8 = arith.constant 8.000000e+00 : f32
    %13 = vector.broadcast %cst_8 : f32 to vector<64x1xf32>
    %14 = arith.divf %12, %13 : vector<64x1xf32>
    %15 = vector.broadcast %7 : vector<64x1xf32> to vector<64x8xf32>
    %16 = arith.subf %1, %15 : vector<64x8xf32>
    %cst_9 = arith.constant 9.99999974E-6 : f32
    %17 = vector.broadcast %cst_9 : f32 to vector<64x1xf32>
    %18 = arith.addf %14, %17 : vector<64x1xf32>
    %19 = math.rsqrt %18 : vector<64x1xf32>
    %20 = vector.broadcast %19 : vector<64x1xf32> to vector<64x8xf32>
    %21 = arith.mulf %16, %20 : vector<64x8xf32>
    %22 = vector.broadcast %2 : vector<1x8xf32> to vector<64x8xf32>
    %23 = arith.mulf %21, %22 : vector<64x8xf32>
    %24 = vector.broadcast %3 : vector<1x8xf32> to vector<64x8xf32>
    %25 = arith.addf %23, %24 : vector<64x8xf32>
    %cst_10 = arith.constant 0.000000e+00 : f32
    %26 = vector.broadcast %cst_10 : f32 to vector<64x8xf32>
    %27 = arith.maximumf %25, %26 : vector<64x8xf32>
    %28 = arith.truncf %27 : vector<64x8xf32> to vector<64x8xbf16>
    %c0_11 = arith.constant 0 : index
    %c0_12 = arith.constant 0 : index
    %29 = vector.load %arg6[%c0_11, %c0_12] : memref<8x4xbf16, #tpu.memory_space<vmem>>, vector<8x4xbf16>
    %cst_13 = arith.constant dense<0.000000e+00> : vector<64x4xf32>
    %30 = tpu.matmul %28, %29, %cst_13 {dimension_numbers = #tpu.dot_dimension_numbers<[1], [0], [0], [1], [0, 0, 1, 1], [], []>} : vector<64x8xbf16>, vector<8x4xbf16>, vector<64x4xf32> -> vector<64x4xf32>
    %c0_14 = arith.constant 0 : index
    %c0_15 = arith.constant 0 : index
    %31 = vector.load %arg7[%c0_14, %c0_15] : memref<1x4xf32, #tpu.memory_space<vmem>>, vector<1x4xf32>
    %32 = vector.broadcast %31 : vector<1x4xf32> to vector<64x4xf32>
    %33 = arith.addf %30, %32 : vector<64x4xf32>
    %c0_16 = arith.constant 0 : index
    %c0_17 = arith.constant 0 : index
    %34 = vector.load %arg8[%c0_16, %c0_17] : memref<1x4xf32, #tpu.memory_space<vmem>>, vector<1x4xf32>
    %c0_18 = arith.constant 0 : index
    %c0_19 = arith.constant 0 : index
    %35 = vector.load %arg9[%c0_18, %c0_19] : memref<1x4xf32, #tpu.memory_space<vmem>>, vector<1x4xf32>
    %cst_20 = arith.constant dense<0.000000e+00> : vector<64xf32>
    %36 = vector.multi_reduction <add>, %33, %cst_20 [1] : vector<64x4xf32> to vector<64xf32>
    %37 = vector.shape_cast %36 : vector<64xf32> to vector<64x1xf32>
    %cst_21 = arith.constant 4.000000e+00 : f32
    %38 = vector.broadcast %cst_21 : f32 to vector<64x1xf32>
    %39 = arith.divf %37, %38 : vector<64x1xf32>
    %40 = vector.broadcast %39 : vector<64x1xf32> to vector<64x4xf32>
    %41 = arith.subf %33, %40 : vector<64x4xf32>
    %42 = arith.mulf %41, %41 : vector<64x4xf32>
    %cst_22 = arith.constant dense<0.000000e+00> : vector<64xf32>
    %43 = vector.multi_reduction <add>, %42, %cst_22 [1] : vector<64x4xf32> to vector<64xf32>
    %44 = vector.shape_cast %43 : vector<64xf32> to vector<64x1xf32>
    %cst_23 = arith.constant 4.000000e+00 : f32
    %45 = vector.broadcast %cst_23 : f32 to vector<64x1xf32>
    %46 = arith.divf %44, %45 : vector<64x1xf32>
    %47 = vector.broadcast %39 : vector<64x1xf32> to vector<64x4xf32>
    %48 = arith.subf %33, %47 : vector<64x4xf32>
    %cst_24 = arith.constant 9.99999974E-6 : f32
    %49 = vector.broadcast %cst_24 : f32 to vector<64x1xf32>
    %50 = arith.addf %46, %49 : vector<64x1xf32>
    %51 = math.rsqrt %50 : vector<64x1xf32>
    %52 = vector.broadcast %51 : vector<64x1xf32> to vector<64x4xf32>
    %53 = arith.mulf %48, %52 : vector<64x4xf32>
    %54 = vector.broadcast %34 : vector<1x4xf32> to vector<64x4xf32>
    %55 = arith.mulf %53, %54 : vector<64x4xf32>
    %56 = vector.broadcast %35 : vector<1x4xf32> to vector<64x4xf32>
    %57 = arith.addf %55, %56 : vector<64x4xf32>
    %cst_25 = arith.constant 0.000000e+00 : f32
    %58 = vector.broadcast %cst_25 : f32 to vector<64x4xf32>
    %59 = arith.maximumf %57, %58 : vector<64x4xf32>
    %c0_26 = arith.constant 0 : index
    %c0_27 = arith.constant 0 : index
    %c0_28 = arith.constant 0 : index
    %60 = vector.load %arg2[%c0_26, %c0_27, %c0_28] : memref<1x64x1xf32, #tpu.memory_space<vmem>>, vector<1x64x1xf32>
    %61 = vector.shape_cast %60 : vector<1x64x1xf32> to vector<64x1xf32>
    %62 = vector.broadcast %61 : vector<64x1xf32> to vector<64x4xf32>
    %63 = arith.mulf %59, %62 : vector<64x4xf32>
    %cst_29 = arith.constant 0.000000e+00 : f32
    %64 = vector.broadcast %cst_29 : f32 to vector<24x4xf32>
    %c0_30 = arith.constant 0 : index
    %c0_31 = arith.constant 0 : index
    %65 = vector.load %arg17[%c0_30, %c0_31] : memref<112x4xf32, #tpu.memory_space<vmem>>, vector<24x4xf32>
    tpu.vector_store %arg17[%c0_30, %c0_31], %64 {strides = array<i32>} : memref<112x4xf32, #tpu.memory_space<vmem>>, vector<24x4xf32>,
    %cst_32 = arith.constant 0.000000e+00 : f32
    %66 = vector.broadcast %cst_32 : f32 to vector<24x4xf32>
    %c88 = arith.constant 88 : index
    %c0_33 = arith.constant 0 : index
    %67 = vector.load %arg17[%c88, %c0_33] : memref<112x4xf32, #tpu.memory_space<vmem>>, vector<24x4xf32>
    tpu.vector_store %arg17[%c88, %c0_33], %66 {strides = array<i32>} : memref<112x4xf32, #tpu.memory_space<vmem>>, vector<24x4xf32>,
    %c24 = arith.constant 24 : index
    %c0_34 = arith.constant 0 : index
    %68 = vector.load %arg17[%c24, %c0_34] : memref<112x4xf32, #tpu.memory_space<vmem>>, vector<64x4xf32>
    tpu.vector_store %arg17[%c24, %c0_34], %63 {strides = array<i32>} : memref<112x4xf32, #tpu.memory_space<vmem>>, vector<64x4xf32>,
    %c6 = arith.constant 6 : index
    %c0_35 = arith.constant 0 : index
    %69 = vector.load %arg17[%c6, %c0_35] : memref<112x4xf32, #tpu.memory_space<vmem>>, vector<64x4xf32>
    %c0_36 = arith.constant 0 : index
    %c0_37 = arith.constant 0 : index
    %c0_38 = arith.constant 0 : index
    %70 = vector.load %arg3[%c0_36, %c0_37, %c0_38] : memref<9x64x1xf32, #tpu.memory_space<vmem>>, vector<1x64x1xf32>
    %71 = vector.shape_cast %70 : vector<1x64x1xf32> to vector<64x1xf32>
    %72 = vector.broadcast %71 : vector<64x1xf32> to vector<64x4xf32>
    %73 = arith.mulf %69, %72 : vector<64x4xf32>
    %74 = arith.truncf %73 : vector<64x4xf32> to vector<64x4xbf16>
    %c0_39 = arith.constant 0 : index
    %c0_40 = arith.constant 0 : index
    %75 = vector.load %arg18[%c0_39, %c0_40] : memref<64x36xbf16, #tpu.memory_space<vmem>>, vector<64x4xbf16>
    tpu.vector_store %arg18[%c0_39, %c0_40], %74 {strides = array<i32>} : memref<64x36xbf16, #tpu.memory_space<vmem>>, vector<64x4xbf16>,
    %c8 = arith.constant 8 : index
    %c0_41 = arith.constant 0 : index
    %76 = vector.load %arg17[%c8, %c0_41] : memref<112x4xf32, #tpu.memory_space<vmem>>, vector<64x4xf32>
    %c1 = arith.constant 1 : index
    %c0_42 = arith.constant 0 : index
    %c0_43 = arith.constant 0 : index
    %77 = vector.load %arg3[%c1, %c0_42, %c0_43] : memref<9x64x1xf32, #tpu.memory_space<vmem>>, vector<1x64x1xf32>
    %78 = vector.shape_cast %77 : vector<1x64x1xf32> to vector<64x1xf32>
    %79 = vector.broadcast %78 : vector<64x1xf32> to vector<64x4xf32>
    %80 = arith.mulf %76, %79 : vector<64x4xf32>
    %81 = arith.truncf %80 : vector<64x4xf32> to vector<64x4xbf16>
    %c0_44 = arith.constant 0 : index
    %c4 = arith.constant 4 : index
    %82 = vector.load %arg18[%c0_44, %c4] : memref<64x36xbf16, #tpu.memory_space<vmem>>, vector<64x4xbf16>
    tpu.vector_store %arg18[%c0_44, %c4], %81 {strides = array<i32>} : memref<64x36xbf16, #tpu.memory_space<vmem>>, vector<64x4xbf16>,
    %c10 = arith.constant 10 : index
    %c0_45 = arith.constant 0 : index
    %83 = vector.load %arg17[%c10, %c0_45] : memref<112x4xf32, #tpu.memory_space<vmem>>, vector<64x4xf32>
    %c2 = arith.constant 2 : index
    %c0_46 = arith.constant 0 : index
    %c0_47 = arith.constant 0 : index
    %84 = vector.load %arg3[%c2, %c0_46, %c0_47] : memref<9x64x1xf32, #tpu.memory_space<vmem>>, vector<1x64x1xf32>
    %85 = vector.shape_cast %84 : vector<1x64x1xf32> to vector<64x1xf32>
    %86 = vector.broadcast %85 : vector<64x1xf32> to vector<64x4xf32>
    %87 = arith.mulf %83, %86 : vector<64x4xf32>
    %88 = arith.truncf %87 : vector<64x4xf32> to vector<64x4xbf16>
    %c0_48 = arith.constant 0 : index
    %c8_49 = arith.constant 8 : index
    %89 = vector.load %arg18[%c0_48, %c8_49] : memref<64x36xbf16, #tpu.memory_space<vmem>>, vector<64x4xbf16>
    tpu.vector_store %arg18[%c0_48, %c8_49], %88 {strides = array<i32>} : memref<64x36xbf16, #tpu.memory_space<vmem>>, vector<64x4xbf16>,
    %c22 = arith.constant 22 : index
    %c0_50 = arith.constant 0 : index
    %90 = vector.load %arg17[%c22, %c0_50] : memref<112x4xf32, #tpu.memory_space<vmem>>, vector<64x4xf32>
    %c3 = arith.constant 3 : index
    %c0_51 = arith.constant 0 : index
    %c0_52 = arith.constant 0 : index
    %91 = vector.load %arg3[%c3, %c0_51, %c0_52] : memref<9x64x1xf32, #tpu.memory_space<vmem>>, vector<1x64x1xf32>
    %92 = vector.shape_cast %91 : vector<1x64x1xf32> to vector<64x1xf32>
    %93 = vector.broadcast %92 : vector<64x1xf32> to vector<64x4xf32>
    %94 = arith.mulf %90, %93 : vector<64x4xf32>
    %95 = arith.truncf %94 : vector<64x4xf32> to vector<64x4xbf16>
    %c0_53 = arith.constant 0 : index
    %c12 = arith.constant 12 : index
    %96 = vector.load %arg18[%c0_53, %c12] : memref<64x36xbf16, #tpu.memory_space<vmem>>, vector<64x4xbf16>
    tpu.vector_store %arg18[%c0_53, %c12], %95 {strides = array<i32>} : memref<64x36xbf16, #tpu.memory_space<vmem>>, vector<64x4xbf16>,
    %c24_54 = arith.constant 24 : index
    %c0_55 = arith.constant 0 : index
    %97 = vector.load %arg17[%c24_54, %c0_55] : memref<112x4xf32, #tpu.memory_space<vmem>>, vector<64x4xf32>
    %c4_56 = arith.constant 4 : index
    %c0_57 = arith.constant 0 : index
    %c0_58 = arith.constant 0 : index
    %98 = vector.load %arg3[%c4_56, %c0_57, %c0_58] : memref<9x64x1xf32, #tpu.memory_space<vmem>>, vector<1x64x1xf32>
    %99 = vector.shape_cast %98 : vector<1x64x1xf32> to vector<64x1xf32>
    %100 = vector.broadcast %99 : vector<64x1xf32> to vector<64x4xf32>
    %101 = arith.mulf %97, %100 : vector<64x4xf32>
    %102 = arith.truncf %101 : vector<64x4xf32> to vector<64x4xbf16>
    %c0_59 = arith.constant 0 : index
    %c16 = arith.constant 16 : index
    %103 = vector.load %arg18[%c0_59, %c16] : memref<64x36xbf16, #tpu.memory_space<vmem>>, vector<64x4xbf16>
    tpu.vector_store %arg18[%c0_59, %c16], %102 {strides = array<i32>} : memref<64x36xbf16, #tpu.memory_space<vmem>>, vector<64x4xbf16>,
    %c26 = arith.constant 26 : index
    %c0_60 = arith.constant 0 : index
    %104 = vector.load %arg17[%c26, %c0_60] : memref<112x4xf32, #tpu.memory_space<vmem>>, vector<64x4xf32>
    %c5 = arith.constant 5 : index
    %c0_61 = arith.constant 0 : index
    %c0_62 = arith.constant 0 : index
    %105 = vector.load %arg3[%c5, %c0_61, %c0_62] : memref<9x64x1xf32, #tpu.memory_space<vmem>>, vector<1x64x1xf32>
    %106 = vector.shape_cast %105 : vector<1x64x1xf32> to vector<64x1xf32>
    %107 = vector.broadcast %106 : vector<64x1xf32> to vector<64x4xf32>
    %108 = arith.mulf %104, %107 : vector<64x4xf32>
    %109 = arith.truncf %108 : vector<64x4xf32> to vector<64x4xbf16>
    %c0_63 = arith.constant 0 : index
    %c20 = arith.constant 20 : index
    %110 = vector.load %arg18[%c0_63, %c20] : memref<64x36xbf16, #tpu.memory_space<vmem>>, vector<64x4xbf16>
    tpu.vector_store %arg18[%c0_63, %c20], %109 {strides = array<i32>} : memref<64x36xbf16, #tpu.memory_space<vmem>>, vector<64x4xbf16>,
    %c38 = arith.constant 38 : index
    %c0_64 = arith.constant 0 : index
    %111 = vector.load %arg17[%c38, %c0_64] : memref<112x4xf32, #tpu.memory_space<vmem>>, vector<64x4xf32>
    %c6_65 = arith.constant 6 : index
    %c0_66 = arith.constant 0 : index
    %c0_67 = arith.constant 0 : index
    %112 = vector.load %arg3[%c6_65, %c0_66, %c0_67] : memref<9x64x1xf32, #tpu.memory_space<vmem>>, vector<1x64x1xf32>
    %113 = vector.shape_cast %112 : vector<1x64x1xf32> to vector<64x1xf32>
    %114 = vector.broadcast %113 : vector<64x1xf32> to vector<64x4xf32>
    %115 = arith.mulf %111, %114 : vector<64x4xf32>
    %116 = arith.truncf %115 : vector<64x4xf32> to vector<64x4xbf16>
    %c0_68 = arith.constant 0 : index
    %c24_69 = arith.constant 24 : index
    %117 = vector.load %arg18[%c0_68, %c24_69] : memref<64x36xbf16, #tpu.memory_space<vmem>>, vector<64x4xbf16>
    tpu.vector_store %arg18[%c0_68, %c24_69], %116 {strides = array<i32>} : memref<64x36xbf16, #tpu.memory_space<vmem>>, vector<64x4xbf16>,
    %c40 = arith.constant 40 : index
    %c0_70 = arith.constant 0 : index
    %118 = vector.load %arg17[%c40, %c0_70] : memref<112x4xf32, #tpu.memory_space<vmem>>, vector<64x4xf32>
    %c7 = arith.constant 7 : index
    %c0_71 = arith.constant 0 : index
    %c0_72 = arith.constant 0 : index
    %119 = vector.load %arg3[%c7, %c0_71, %c0_72] : memref<9x64x1xf32, #tpu.memory_space<vmem>>, vector<1x64x1xf32>
    %120 = vector.shape_cast %119 : vector<1x64x1xf32> to vector<64x1xf32>
    %121 = vector.broadcast %120 : vector<64x1xf32> to vector<64x4xf32>
    %122 = arith.mulf %118, %121 : vector<64x4xf32>
    %123 = arith.truncf %122 : vector<64x4xf32> to vector<64x4xbf16>
    %c0_73 = arith.constant 0 : index
    %c28 = arith.constant 28 : index
    %124 = vector.load %arg18[%c0_73, %c28] : memref<64x36xbf16, #tpu.memory_space<vmem>>, vector<64x4xbf16>
    tpu.vector_store %arg18[%c0_73, %c28], %123 {strides = array<i32>} : memref<64x36xbf16, #tpu.memory_space<vmem>>, vector<64x4xbf16>,
    %c42 = arith.constant 42 : index
    %c0_74 = arith.constant 0 : index
    %125 = vector.load %arg17[%c42, %c0_74] : memref<112x4xf32, #tpu.memory_space<vmem>>, vector<64x4xf32>
    %c8_75 = arith.constant 8 : index
    %c0_76 = arith.constant 0 : index
    %c0_77 = arith.constant 0 : index
    %126 = vector.load %arg3[%c8_75, %c0_76, %c0_77] : memref<9x64x1xf32, #tpu.memory_space<vmem>>, vector<1x64x1xf32>
    %127 = vector.shape_cast %126 : vector<1x64x1xf32> to vector<64x1xf32>
    %128 = vector.broadcast %127 : vector<64x1xf32> to vector<64x4xf32>
    %129 = arith.mulf %125, %128 : vector<64x4xf32>
    %130 = arith.truncf %129 : vector<64x4xf32> to vector<64x4xbf16>
    %c0_78 = arith.constant 0 : index
    %c32 = arith.constant 32 : index
    %131 = vector.load %arg18[%c0_78, %c32] : memref<64x36xbf16, #tpu.memory_space<vmem>>, vector<64x4xbf16>
    tpu.vector_store %arg18[%c0_78, %c32], %130 {strides = array<i32>} : memref<64x36xbf16, #tpu.memory_space<vmem>>, vector<64x4xbf16>,
    %c0_79 = arith.constant 0 : index
    %c0_80 = arith.constant 0 : index
    %132 = vector.load %arg18[%c0_79, %c0_80] : memref<64x36xbf16, #tpu.memory_space<vmem>>, vector<64x36xbf16>
    %c0_81 = arith.constant 0 : index
    %c0_82 = arith.constant 0 : index
    %133 = vector.load %arg10[%c0_81, %c0_82] : memref<36x4xbf16, #tpu.memory_space<vmem>>, vector<36x4xbf16>
    %cst_83 = arith.constant dense<0.000000e+00> : vector<64x4xf32>
    %134 = tpu.matmul %132, %133, %cst_83 {dimension_numbers = #tpu.dot_dimension_numbers<[1], [0], [0], [1], [0, 0, 1, 1], [], []>} : vector<64x36xbf16>, vector<36x4xbf16>, vector<64x4xf32> -> vector<64x4xf32>
    %c0_84 = arith.constant 0 : index
    %c0_85 = arith.constant 0 : index
    %135 = vector.load %arg11[%c0_84, %c0_85] : memref<1x4xf32, #tpu.memory_space<vmem>>, vector<1x4xf32>
    %136 = vector.broadcast %135 : vector<1x4xf32> to vector<64x4xf32>
    %137 = arith.addf %134, %136 : vector<64x4xf32>
    %c0_86 = arith.constant 0 : index
    %c0_87 = arith.constant 0 : index
    %138 = vector.load %arg12[%c0_86, %c0_87] : memref<1x4xf32, #tpu.memory_space<vmem>>, vector<1x4xf32>
    %c0_88 = arith.constant 0 : index
    %c0_89 = arith.constant 0 : index
    %139 = vector.load %arg13[%c0_88, %c0_89] : memref<1x4xf32, #tpu.memory_space<vmem>>, vector<1x4xf32>
    %cst_90 = arith.constant dense<0.000000e+00> : vector<64xf32>
    %140 = vector.multi_reduction <add>, %137, %cst_90 [1] : vector<64x4xf32> to vector<64xf32>
    %141 = vector.shape_cast %140 : vector<64xf32> to vector<64x1xf32>
    %cst_91 = arith.constant 4.000000e+00 : f32
    %142 = vector.broadcast %cst_91 : f32 to vector<64x1xf32>
    %143 = arith.divf %141, %142 : vector<64x1xf32>
    %144 = vector.broadcast %143 : vector<64x1xf32> to vector<64x4xf32>
    %145 = arith.subf %137, %144 : vector<64x4xf32>
    %146 = arith.mulf %145, %145 : vector<64x4xf32>
    %cst_92 = arith.constant dense<0.000000e+00> : vector<64xf32>
    %147 = vector.multi_reduction <add>, %146, %cst_92 [1] : vector<64x4xf32> to vector<64xf32>
    %148 = vector.shape_cast %147 : vector<64xf32> to vector<64x1xf32>
    %cst_93 = arith.constant 4.000000e+00 : f32
    %149 = vector.broadcast %cst_93 : f32 to vector<64x1xf32>
    %150 = arith.divf %148, %149 : vector<64x1xf32>
    %151 = vector.broadcast %143 : vector<64x1xf32> to vector<64x4xf32>
    %152 = arith.subf %137, %151 : vector<64x4xf32>
    %cst_94 = arith.constant 9.99999974E-6 : f32
    %153 = vector.broadcast %cst_94 : f32 to vector<64x1xf32>
    %154 = arith.addf %150, %153 : vector<64x1xf32>
    %155 = math.rsqrt %154 : vector<64x1xf32>
    %156 = vector.broadcast %155 : vector<64x1xf32> to vector<64x4xf32>
    %157 = arith.mulf %152, %156 : vector<64x4xf32>
    %158 = vector.broadcast %138 : vector<1x4xf32> to vector<64x4xf32>
    %159 = arith.mulf %157, %158 : vector<64x4xf32>
    %160 = vector.broadcast %139 : vector<1x4xf32> to vector<64x4xf32>
    %161 = arith.addf %159, %160 : vector<64x4xf32>
    %cst_95 = arith.constant 0.000000e+00 : f32
    %162 = vector.broadcast %cst_95 : f32 to vector<64x4xf32>
    %163 = arith.maximumf %161, %162 : vector<64x4xf32>
    %164 = arith.truncf %163 : vector<64x4xf32> to vector<64x4xbf16>
    %c0_96 = arith.constant 0 : index
    %c0_97 = arith.constant 0 : index
    %165 = vector.load %arg14[%c0_96, %c0_97] : memref<4x8xbf16, #tpu.memory_space<vmem>>, vector<4x8xbf16>
    %cst_98 = arith.constant dense<0.000000e+00> : vector<64x8xf32>
    %166 = tpu.matmul %164, %165, %cst_98 {dimension_numbers = #tpu.dot_dimension_numbers<[1], [0], [0], [1], [0, 0, 1, 1], [], []>} : vector<64x4xbf16>, vector<4x8xbf16>, vector<64x8xf32> -> vector<64x8xf32>
    %c0_99 = arith.constant 0 : index
    %c0_100 = arith.constant 0 : index
    %167 = vector.load %arg15[%c0_99, %c0_100] : memref<1x8xf32, #tpu.memory_space<vmem>>, vector<1x8xf32>
    %168 = vector.broadcast %167 : vector<1x8xf32> to vector<64x8xf32>
    %169 = arith.addf %166, %168 : vector<64x8xf32>
    %170 = arith.addf %169, %1 : vector<64x8xf32>
    %c0_101 = arith.constant 0 : index
    %c0_102 = arith.constant 0 : index
    %c0_103 = arith.constant 0 : index
    %171 = vector.load %arg16[%c0_101, %c0_102, %c0_103] : memref<1x64x8xf32, #tpu.memory_space<vmem>>, vector<1x64x8xf32>
    %172 = vector.shape_cast %171 : vector<1x64x8xf32> to vector<64x8xf32>
    %173 = vector.shape_cast %170 : vector<64x8xf32> to vector<1x64x8xf32>
    tpu.vector_store %arg16[%c0_101, %c0_102, %c0_103], %173 {strides = array<i32>} : memref<1x64x8xf32, #tpu.memory_space<vmem>>, vector<1x64x8xf32>,
    return
  }
  func.func @transform_0(%arg0: i32) -> (i32, i32, i32) {
    %c0_i32 = arith.constant 0 : i32
    %c0_i32_0 = arith.constant 0 : i32
    %c0_i32_1 = arith.constant 0 : i32
    return %arg0, %c0_i32, %c0_i32_0 : i32, i32, i32
  }
  func.func @transform_1(%arg0: i32) -> (i32, i32, i32) {
    %c0_i32 = arith.constant 0 : i32
    %c0_i32_0 = arith.constant 0 : i32
    %c0_i32_1 = arith.constant 0 : i32
    return %arg0, %c0_i32, %c0_i32_0 : i32, i32, i32
  }
  func.func @transform_2(%arg0: i32) -> (i32, i32, i32) {
    %c0_i32 = arith.constant 0 : i32
    %c0_i32_0 = arith.constant 0 : i32
    %c0_i32_1 = arith.constant 0 : i32
    %c0_i32_2 = arith.constant 0 : i32
    return %c0_i32, %c0_i32_0, %c0_i32_1 : i32, i32, i32
  }
  func.func @transform_3(%arg0: i32) -> (i32, i32) {
    %c0_i32 = arith.constant 0 : i32
    %c0_i32_0 = arith.constant 0 : i32
    %c0_i32_1 = arith.constant 0 : i32
    return %c0_i32, %c0_i32_0 : i32, i32
  }
  func.func @transform_4(%arg0: i32) -> (i32, i32) {
    %c0_i32 = arith.constant 0 : i32
    %c0_i32_0 = arith.constant 0 : i32
    %c0_i32_1 = arith.constant 0 : i32
    return %c0_i32, %c0_i32_0 : i32, i32
  }
  func.func @transform_5(%arg0: i32) -> (i32, i32) {
    %c0_i32 = arith.constant 0 : i32
    %c0_i32_0 = arith.constant 0 : i32
    %c0_i32_1 = arith.constant 0 : i32
    return %c0_i32, %c0_i32_0 : i32, i32
  }
  func.func @transform_6(%arg0: i32) -> (i32, i32) {
    %c0_i32 = arith.constant 0 : i32
    %c0_i32_0 = arith.constant 0 : i32
    %c0_i32_1 = arith.constant 0 : i32
    return %c0_i32, %c0_i32_0 : i32, i32
  }
  func.func @transform_7(%arg0: i32) -> (i32, i32) {
    %c0_i32 = arith.constant 0 : i32
    %c0_i32_0 = arith.constant 0 : i32
    %c0_i32_1 = arith.constant 0 : i32
    return %c0_i32, %c0_i32_0 : i32, i32
  }
  func.func @transform_8(%arg0: i32) -> (i32, i32) {
    %c0_i32 = arith.constant 0 : i32
    %c0_i32_0 = arith.constant 0 : i32
    %c0_i32_1 = arith.constant 0 : i32
    return %c0_i32, %c0_i32_0 : i32, i32
  }
  func.func @transform_9(%arg0: i32) -> (i32, i32) {
    %c0_i32 = arith.constant 0 : i32
    %c0_i32_0 = arith.constant 0 : i32
    %c0_i32_1 = arith.constant 0 : i32
    return %c0_i32, %c0_i32_0 : i32, i32
  }
  func.func @transform_10(%arg0: i32) -> (i32, i32) {
    %c0_i32 = arith.constant 0 : i32
    %c0_i32_0 = arith.constant 0 : i32
    %c0_i32_1 = arith.constant 0 : i32
    return %c0_i32, %c0_i32_0 : i32, i32
  }
  func.func @transform_11(%arg0: i32) -> (i32, i32) {
    %c0_i32 = arith.constant 0 : i32
    %c0_i32_0 = arith.constant 0 : i32
    %c0_i32_1 = arith.constant 0 : i32
    return %c0_i32, %c0_i32_0 : i32, i32
  }
  func.func @transform_12(%arg0: i32) -> (i32, i32) {
    %c0_i32 = arith.constant 0 : i32
    %c0_i32_0 = arith.constant 0 : i32
    %c0_i32_1 = arith.constant 0 : i32
    return %c0_i32, %c0_i32_0 : i32, i32
  }
  func.func @transform_13(%arg0: i32) -> (i32, i32) {
    %c0_i32 = arith.constant 0 : i32
    %c0_i32_0 = arith.constant 0 : i32
    %c0_i32_1 = arith.constant 0 : i32
    return %c0_i32, %c0_i32_0 : i32, i32
  }
  func.func @transform_14(%arg0: i32) -> (i32, i32) {
    %c0_i32 = arith.constant 0 : i32
    %c0_i32_0 = arith.constant 0 : i32
    %c0_i32_1 = arith.constant 0 : i32
    return %c0_i32, %c0_i32_0 : i32, i32
  }
  func.func @transform_15(%arg0: i32) -> (i32, i32, i32) {
    %c0_i32 = arith.constant 0 : i32
    %c0_i32_0 = arith.constant 0 : i32
    %c0_i32_1 = arith.constant 0 : i32
    return %arg0, %c0_i32, %c0_i32_0 : i32, i32, i32
  }
}

module attributes {stable_mosaic.version = 11 : i64} {
  func.func @kernel(%arg0: i32, %arg1: memref<1x64x8xf32, #tpu.memory_space<vmem>>, %arg2: memref<1x64x1xf32, #tpu.memory_space<vmem>>, %arg3: memref<9x64x1xf32, #tpu.memory_space<vmem>>, %arg4: memref<1x8xf32, #tpu.memory_space<vmem>>, %arg5: memref<1x8xf32, #tpu.memory_space<vmem>>, %arg6: memref<8x4xbf16, #tpu.memory_space<vmem>>, %arg7: memref<1x4xf32, #tpu.memory_space<vmem>>, %arg8: memref<1x4xf32, #tpu.memory_space<vmem>>, %arg9: memref<1x4xf32, #tpu.memory_space<vmem>>, %arg10: memref<36x4xbf16, #tpu.memory_space<vmem>>, %arg11: memref<1x4xf32, #tpu.memory_space<vmem>>, %arg12: memref<1x4xf32, #tpu.memory_space<vmem>>, %arg13: memref<1x4xf32, #tpu.memory_space<vmem>>, %arg14: memref<4x8xbf16, #tpu.memory_space<vmem>>, %arg15: memref<1x8xf32, #tpu.memory_space<vmem>>, %arg16: memref<1x64x8xf32, #tpu.memory_space<vmem>>, %arg17: memref<96x4xf32, #tpu.memory_space<vmem>>, %arg18: memref<64x36xbf16, #tpu.memory_space<vmem>>) attributes {dimension_semantics = [#tpu.dimension_semantics<parallel>], iteration_bounds = array<i64: 2>, scalar_prefetch = 0 : i64, scratch_operands = 2 : i64, tpu.core_type = #tpu.core_type<tc>, window_params = [{transform_indices = @transform_0, window_bounds = array<i64: 1, 64, 8>}, {transform_indices = @transform_1, window_bounds = array<i64: 1, 64, 1>}, {pipeline_mode = #tpu.pipeline_mode<synchronous>, transform_indices = @transform_2, window_bounds = array<i64: 9, 64, 1>}, {pipeline_mode = #tpu.pipeline_mode<synchronous>, transform_indices = @transform_3, window_bounds = array<i64: 1, 8>}, {pipeline_mode = #tpu.pipeline_mode<synchronous>, transform_indices = @transform_4, window_bounds = array<i64: 1, 8>}, {pipeline_mode = #tpu.pipeline_mode<synchronous>, transform_indices = @transform_5, window_bounds = array<i64: 8, 4>}, {pipeline_mode = #tpu.pipeline_mode<synchronous>, transform_indices = @transform_6, window_bounds = array<i64: 1, 4>}, {pipeline_mode = #tpu.pipeline_mode<synchronous>, transform_indices = @transform_7, window_bounds = array<i64: 1, 4>}, {pipeline_mode = #tpu.pipeline_mode<synchronous>, transform_indices = @transform_8, window_bounds = array<i64: 1, 4>}, {pipeline_mode = #tpu.pipeline_mode<synchronous>, transform_indices = @transform_9, window_bounds = array<i64: 36, 4>}, {pipeline_mode = #tpu.pipeline_mode<synchronous>, transform_indices = @transform_10, window_bounds = array<i64: 1, 4>}, {pipeline_mode = #tpu.pipeline_mode<synchronous>, transform_indices = @transform_11, window_bounds = array<i64: 1, 4>}, {pipeline_mode = #tpu.pipeline_mode<synchronous>, transform_indices = @transform_12, window_bounds = array<i64: 1, 4>}, {pipeline_mode = #tpu.pipeline_mode<synchronous>, transform_indices = @transform_13, window_bounds = array<i64: 4, 8>}, {pipeline_mode = #tpu.pipeline_mode<synchronous>, transform_indices = @transform_14, window_bounds = array<i64: 1, 8>}, {transform_indices = @transform_15, window_bounds = array<i64: 1, 64, 8>}]} {
    %c0 = arith.constant 0 : index
    %c0_0 = arith.constant 0 : index
    %c0_1 = arith.constant 0 : index
    %0 = vector.load %arg1[%c0, %c0_0, %c0_1] : memref<1x64x8xf32, #tpu.memory_space<vmem>>, vector<1x64x8xf32>
    %1 = vector.shape_cast %0 : vector<1x64x8xf32> to vector<64x8xf32>
    %c0_2 = arith.constant 0 : index
    %c0_3 = arith.constant 0 : index
    %2 = vector.load %arg4[%c0_2, %c0_3] : memref<1x8xf32, #tpu.memory_space<vmem>>, vector<1x8xf32>
    %c0_4 = arith.constant 0 : index
    %c0_5 = arith.constant 0 : index
    %3 = vector.load %arg5[%c0_4, %c0_5] : memref<1x8xf32, #tpu.memory_space<vmem>>, vector<1x8xf32>
    %cst = arith.constant dense<0.000000e+00> : vector<64xf32>
    %4 = vector.multi_reduction <add>, %1, %cst [1] : vector<64x8xf32> to vector<64xf32>
    %5 = vector.shape_cast %4 : vector<64xf32> to vector<64x1xf32>
    %cst_6 = arith.constant 8.000000e+00 : f32
    %6 = vector.broadcast %cst_6 : f32 to vector<64x1xf32>
    %7 = arith.divf %5, %6 : vector<64x1xf32>
    %8 = vector.broadcast %7 : vector<64x1xf32> to vector<64x8xf32>
    %9 = arith.subf %1, %8 : vector<64x8xf32>
    %10 = arith.mulf %9, %9 : vector<64x8xf32>
    %cst_7 = arith.constant dense<0.000000e+00> : vector<64xf32>
    %11 = vector.multi_reduction <add>, %10, %cst_7 [1] : vector<64x8xf32> to vector<64xf32>
    %12 = vector.shape_cast %11 : vector<64xf32> to vector<64x1xf32>
    %cst_8 = arith.constant 8.000000e+00 : f32
    %13 = vector.broadcast %cst_8 : f32 to vector<64x1xf32>
    %14 = arith.divf %12, %13 : vector<64x1xf32>
    %15 = vector.broadcast %7 : vector<64x1xf32> to vector<64x8xf32>
    %16 = arith.subf %1, %15 : vector<64x8xf32>
    %cst_9 = arith.constant 9.99999974E-6 : f32
    %17 = vector.broadcast %cst_9 : f32 to vector<64x1xf32>
    %18 = arith.addf %14, %17 : vector<64x1xf32>
    %19 = math.rsqrt %18 : vector<64x1xf32>
    %20 = vector.broadcast %19 : vector<64x1xf32> to vector<64x8xf32>
    %21 = arith.mulf %16, %20 : vector<64x8xf32>
    %22 = vector.broadcast %2 : vector<1x8xf32> to vector<64x8xf32>
    %23 = arith.mulf %21, %22 : vector<64x8xf32>
    %24 = vector.broadcast %3 : vector<1x8xf32> to vector<64x8xf32>
    %25 = arith.addf %23, %24 : vector<64x8xf32>
    %cst_10 = arith.constant 0.000000e+00 : f32
    %26 = vector.broadcast %cst_10 : f32 to vector<64x8xf32>
    %27 = arith.maximumf %25, %26 : vector<64x8xf32>
    %28 = arith.truncf %27 : vector<64x8xf32> to vector<64x8xbf16>
    %c0_11 = arith.constant 0 : index
    %c0_12 = arith.constant 0 : index
    %29 = vector.load %arg6[%c0_11, %c0_12] : memref<8x4xbf16, #tpu.memory_space<vmem>>, vector<8x4xbf16>
    %cst_13 = arith.constant dense<0.000000e+00> : vector<64x4xf32>
    %30 = tpu.matmul %28, %29, %cst_13 {dimension_numbers = #tpu.dot_dimension_numbers<[1], [0], [0], [1], [0, 0, 1, 1], [], []>} : vector<64x8xbf16>, vector<8x4xbf16>, vector<64x4xf32> -> vector<64x4xf32>
    %c0_14 = arith.constant 0 : index
    %c0_15 = arith.constant 0 : index
    %31 = vector.load %arg7[%c0_14, %c0_15] : memref<1x4xf32, #tpu.memory_space<vmem>>, vector<1x4xf32>
    %32 = vector.broadcast %31 : vector<1x4xf32> to vector<64x4xf32>
    %33 = arith.addf %30, %32 : vector<64x4xf32>
    %c0_16 = arith.constant 0 : index
    %c0_17 = arith.constant 0 : index
    %34 = vector.load %arg8[%c0_16, %c0_17] : memref<1x4xf32, #tpu.memory_space<vmem>>, vector<1x4xf32>
    %c0_18 = arith.constant 0 : index
    %c0_19 = arith.constant 0 : index
    %35 = vector.load %arg9[%c0_18, %c0_19] : memref<1x4xf32, #tpu.memory_space<vmem>>, vector<1x4xf32>
    %cst_20 = arith.constant dense<0.000000e+00> : vector<64xf32>
    %36 = vector.multi_reduction <add>, %33, %cst_20 [1] : vector<64x4xf32> to vector<64xf32>
    %37 = vector.shape_cast %36 : vector<64xf32> to vector<64x1xf32>
    %cst_21 = arith.constant 4.000000e+00 : f32
    %38 = vector.broadcast %cst_21 : f32 to vector<64x1xf32>
    %39 = arith.divf %37, %38 : vector<64x1xf32>
    %40 = vector.broadcast %39 : vector<64x1xf32> to vector<64x4xf32>
    %41 = arith.subf %33, %40 : vector<64x4xf32>
    %42 = arith.mulf %41, %41 : vector<64x4xf32>
    %cst_22 = arith.constant dense<0.000000e+00> : vector<64xf32>
    %43 = vector.multi_reduction <add>, %42, %cst_22 [1] : vector<64x4xf32> to vector<64xf32>
    %44 = vector.shape_cast %43 : vector<64xf32> to vector<64x1xf32>
    %cst_23 = arith.constant 4.000000e+00 : f32
    %45 = vector.broadcast %cst_23 : f32 to vector<64x1xf32>
    %46 = arith.divf %44, %45 : vector<64x1xf32>
    %47 = vector.broadcast %39 : vector<64x1xf32> to vector<64x4xf32>
    %48 = arith.subf %33, %47 : vector<64x4xf32>
    %cst_24 = arith.constant 9.99999974E-6 : f32
    %49 = vector.broadcast %cst_24 : f32 to vector<64x1xf32>
    %50 = arith.addf %46, %49 : vector<64x1xf32>
    %51 = math.rsqrt %50 : vector<64x1xf32>
    %52 = vector.broadcast %51 : vector<64x1xf32> to vector<64x4xf32>
    %53 = arith.mulf %48, %52 : vector<64x4xf32>
    %54 = vector.broadcast %34 : vector<1x4xf32> to vector<64x4xf32>
    %55 = arith.mulf %53, %54 : vector<64x4xf32>
    %56 = vector.broadcast %35 : vector<1x4xf32> to vector<64x4xf32>
    %57 = arith.addf %55, %56 : vector<64x4xf32>
    %cst_25 = arith.constant 0.000000e+00 : f32
    %58 = vector.broadcast %cst_25 : f32 to vector<64x4xf32>
    %59 = arith.maximumf %57, %58 : vector<64x4xf32>
    %c0_26 = arith.constant 0 : index
    %c0_27 = arith.constant 0 : index
    %c0_28 = arith.constant 0 : index
    %60 = vector.load %arg2[%c0_26, %c0_27, %c0_28] : memref<1x64x1xf32, #tpu.memory_space<vmem>>, vector<1x64x1xf32>
    %61 = vector.shape_cast %60 : vector<1x64x1xf32> to vector<64x1xf32>
    %62 = vector.broadcast %61 : vector<64x1xf32> to vector<64x4xf32>
    %63 = arith.mulf %59, %62 : vector<64x4xf32>
    %cst_29 = arith.constant 0.000000e+00 : f32
    %64 = vector.broadcast %cst_29 : f32 to vector<16x4xf32>
    %c0_30 = arith.constant 0 : index
    %c0_31 = arith.constant 0 : index
    %65 = vector.load %arg17[%c0_30, %c0_31] : memref<96x4xf32, #tpu.memory_space<vmem>>, vector<16x4xf32>
    tpu.vector_store %arg17[%c0_30, %c0_31], %64 {strides = array<i32>} : memref<96x4xf32, #tpu.memory_space<vmem>>, vector<16x4xf32>,
    %cst_32 = arith.constant 0.000000e+00 : f32
    %66 = vector.broadcast %cst_32 : f32 to vector<16x4xf32>
    %c80 = arith.constant 80 : index
    %c0_33 = arith.constant 0 : index
    %67 = vector.load %arg17[%c80, %c0_33] : memref<96x4xf32, #tpu.memory_space<vmem>>, vector<16x4xf32>
    tpu.vector_store %arg17[%c80, %c0_33], %66 {strides = array<i32>} : memref<96x4xf32, #tpu.memory_space<vmem>>, vector<16x4xf32>,
    %c16 = arith.constant 16 : index
    %c0_34 = arith.constant 0 : index
    %68 = vector.load %arg17[%c16, %c0_34] : memref<96x4xf32, #tpu.memory_space<vmem>>, vector<64x4xf32>
    tpu.vector_store %arg17[%c16, %c0_34], %63 {strides = array<i32>} : memref<96x4xf32, #tpu.memory_space<vmem>>, vector<64x4xf32>,
    %c7 = arith.constant 7 : index
    %c0_35 = arith.constant 0 : index
    %69 = vector.load %arg17[%c7, %c0_35] : memref<96x4xf32, #tpu.memory_space<vmem>>, vector<64x4xf32>
    %c0_36 = arith.constant 0 : index
    %c0_37 = arith.constant 0 : index
    %c0_38 = arith.constant 0 : index
    %70 = vector.load %arg3[%c0_36, %c0_37, %c0_38] : memref<9x64x1xf32, #tpu.memory_space<vmem>>, vector<1x64x1xf32>
    %71 = vector.shape_cast %70 : vector<1x64x1xf32> to vector<64x1xf32>
    %72 = vector.broadcast %71 : vector<64x1xf32> to vector<64x4xf32>
    %73 = arith.mulf %69, %72 : vector<64x4xf32>
    %74 = arith.truncf %73 : vector<64x4xf32> to vector<64x4xbf16>
    %c0_39 = arith.constant 0 : index
    %c0_40 = arith.constant 0 : index
    %75 = vector.load %arg18[%c0_39, %c0_40] : memref<64x36xbf16, #tpu.memory_space<vmem>>, vector<64x4xbf16>
    tpu.vector_store %arg18[%c0_39, %c0_40], %74 {strides = array<i32>} : memref<64x36xbf16, #tpu.memory_space<vmem>>, vector<64x4xbf16>,
    %c8 = arith.constant 8 : index
    %c0_41 = arith.constant 0 : index
    %76 = vector.load %arg17[%c8, %c0_41] : memref<96x4xf32, #tpu.memory_space<vmem>>, vector<64x4xf32>
    %c1 = arith.constant 1 : index
    %c0_42 = arith.constant 0 : index
    %c0_43 = arith.constant 0 : index
    %77 = vector.load %arg3[%c1, %c0_42, %c0_43] : memref<9x64x1xf32, #tpu.memory_space<vmem>>, vector<1x64x1xf32>
    %78 = vector.shape_cast %77 : vector<1x64x1xf32> to vector<64x1xf32>
    %79 = vector.broadcast %78 : vector<64x1xf32> to vector<64x4xf32>
    %80 = arith.mulf %76, %79 : vector<64x4xf32>
    %81 = arith.truncf %80 : vector<64x4xf32> to vector<64x4xbf16>
    %c0_44 = arith.constant 0 : index
    %c4 = arith.constant 4 : index
    %82 = vector.load %arg18[%c0_44, %c4] : memref<64x36xbf16, #tpu.memory_space<vmem>>, vector<64x4xbf16>
    tpu.vector_store %arg18[%c0_44, %c4], %81 {strides = array<i32>} : memref<64x36xbf16, #tpu.memory_space<vmem>>, vector<64x4xbf16>,
    %c9 = arith.constant 9 : index
    %c0_45 = arith.constant 0 : index
    %83 = vector.load %arg17[%c9, %c0_45] : memref<96x4xf32, #tpu.memory_space<vmem>>, vector<64x4xf32>
    %c2 = arith.constant 2 : index
    %c0_46 = arith.constant 0 : index
    %c0_47 = arith.constant 0 : index
    %84 = vector.load %arg3[%c2, %c0_46, %c0_47] : memref<9x64x1xf32, #tpu.memory_space<vmem>>, vector<1x64x1xf32>
    %85 = vector.shape_cast %84 : vector<1x64x1xf32> to vector<64x1xf32>
    %86 = vector.broadcast %85 : vector<64x1xf32> to vector<64x4xf32>
    %87 = arith.mulf %83, %86 : vector<64x4xf32>
    %88 = arith.truncf %87 : vector<64x4xf32> to vector<64x4xbf16>
    %c0_48 = arith.constant 0 : index
    %c8_49 = arith.constant 8 : index
    %89 = vector.load %arg18[%c0_48, %c8_49] : memref<64x36xbf16, #tpu.memory_space<vmem>>, vector<64x4xbf16>
    tpu.vector_store %arg18[%c0_48, %c8_49], %88 {strides = array<i32>} : memref<64x36xbf16, #tpu.memory_space<vmem>>, vector<64x4xbf16>,
    %c15 = arith.constant 15 : index
    %c0_50 = arith.constant 0 : index
    %90 = vector.load %arg17[%c15, %c0_50] : memref<96x4xf32, #tpu.memory_space<vmem>>, vector<64x4xf32>
    %c3 = arith.constant 3 : index
    %c0_51 = arith.constant 0 : index
    %c0_52 = arith.constant 0 : index
    %91 = vector.load %arg3[%c3, %c0_51, %c0_52] : memref<9x64x1xf32, #tpu.memory_space<vmem>>, vector<1x64x1xf32>
    %92 = vector.shape_cast %91 : vector<1x64x1xf32> to vector<64x1xf32>
    %93 = vector.broadcast %92 : vector<64x1xf32> to vector<64x4xf32>
    %94 = arith.mulf %90, %93 : vector<64x4xf32>
    %95 = arith.truncf %94 : vector<64x4xf32> to vector<64x4xbf16>
    %c0_53 = arith.constant 0 : index
    %c12 = arith.constant 12 : index
    %96 = vector.load %arg18[%c0_53, %c12] : memref<64x36xbf16, #tpu.memory_space<vmem>>, vector<64x4xbf16>
    tpu.vector_store %arg18[%c0_53, %c12], %95 {strides = array<i32>} : memref<64x36xbf16, #tpu.memory_space<vmem>>, vector<64x4xbf16>,
    %c16_54 = arith.constant 16 : index
    %c0_55 = arith.constant 0 : index
    %97 = vector.load %arg17[%c16_54, %c0_55] : memref<96x4xf32, #tpu.memory_space<vmem>>, vector<64x4xf32>
    %c4_56 = arith.constant 4 : index
    %c0_57 = arith.constant 0 : index
    %c0_58 = arith.constant 0 : index
    %98 = vector.load %arg3[%c4_56, %c0_57, %c0_58] : memref<9x64x1xf32, #tpu.memory_space<vmem>>, vector<1x64x1xf32>
    %99 = vector.shape_cast %98 : vector<1x64x1xf32> to vector<64x1xf32>
    %100 = vector.broadcast %99 : vector<64x1xf32> to vector<64x4xf32>
    %101 = arith.mulf %97, %100 : vector<64x4xf32>
    %102 = arith.truncf %101 : vector<64x4xf32> to vector<64x4xbf16>
    %c0_59 = arith.constant 0 : index
    %c16_60 = arith.constant 16 : index
    %103 = vector.load %arg18[%c0_59, %c16_60] : memref<64x36xbf16, #tpu.memory_space<vmem>>, vector<64x4xbf16>
    tpu.vector_store %arg18[%c0_59, %c16_60], %102 {strides = array<i32>} : memref<64x36xbf16, #tpu.memory_space<vmem>>, vector<64x4xbf16>,
    %c17 = arith.constant 17 : index
    %c0_61 = arith.constant 0 : index
    %104 = vector.load %arg17[%c17, %c0_61] : memref<96x4xf32, #tpu.memory_space<vmem>>, vector<64x4xf32>
    %c5 = arith.constant 5 : index
    %c0_62 = arith.constant 0 : index
    %c0_63 = arith.constant 0 : index
    %105 = vector.load %arg3[%c5, %c0_62, %c0_63] : memref<9x64x1xf32, #tpu.memory_space<vmem>>, vector<1x64x1xf32>
    %106 = vector.shape_cast %105 : vector<1x64x1xf32> to vector<64x1xf32>
    %107 = vector.broadcast %106 : vector<64x1xf32> to vector<64x4xf32>
    %108 = arith.mulf %104, %107 : vector<64x4xf32>
    %109 = arith.truncf %108 : vector<64x4xf32> to vector<64x4xbf16>
    %c0_64 = arith.constant 0 : index
    %c20 = arith.constant 20 : index
    %110 = vector.load %arg18[%c0_64, %c20] : memref<64x36xbf16, #tpu.memory_space<vmem>>, vector<64x4xbf16>
    tpu.vector_store %arg18[%c0_64, %c20], %109 {strides = array<i32>} : memref<64x36xbf16, #tpu.memory_space<vmem>>, vector<64x4xbf16>,
    %c23 = arith.constant 23 : index
    %c0_65 = arith.constant 0 : index
    %111 = vector.load %arg17[%c23, %c0_65] : memref<96x4xf32, #tpu.memory_space<vmem>>, vector<64x4xf32>
    %c6 = arith.constant 6 : index
    %c0_66 = arith.constant 0 : index
    %c0_67 = arith.constant 0 : index
    %112 = vector.load %arg3[%c6, %c0_66, %c0_67] : memref<9x64x1xf32, #tpu.memory_space<vmem>>, vector<1x64x1xf32>
    %113 = vector.shape_cast %112 : vector<1x64x1xf32> to vector<64x1xf32>
    %114 = vector.broadcast %113 : vector<64x1xf32> to vector<64x4xf32>
    %115 = arith.mulf %111, %114 : vector<64x4xf32>
    %116 = arith.truncf %115 : vector<64x4xf32> to vector<64x4xbf16>
    %c0_68 = arith.constant 0 : index
    %c24 = arith.constant 24 : index
    %117 = vector.load %arg18[%c0_68, %c24] : memref<64x36xbf16, #tpu.memory_space<vmem>>, vector<64x4xbf16>
    tpu.vector_store %arg18[%c0_68, %c24], %116 {strides = array<i32>} : memref<64x36xbf16, #tpu.memory_space<vmem>>, vector<64x4xbf16>,
    %c24_69 = arith.constant 24 : index
    %c0_70 = arith.constant 0 : index
    %118 = vector.load %arg17[%c24_69, %c0_70] : memref<96x4xf32, #tpu.memory_space<vmem>>, vector<64x4xf32>
    %c7_71 = arith.constant 7 : index
    %c0_72 = arith.constant 0 : index
    %c0_73 = arith.constant 0 : index
    %119 = vector.load %arg3[%c7_71, %c0_72, %c0_73] : memref<9x64x1xf32, #tpu.memory_space<vmem>>, vector<1x64x1xf32>
    %120 = vector.shape_cast %119 : vector<1x64x1xf32> to vector<64x1xf32>
    %121 = vector.broadcast %120 : vector<64x1xf32> to vector<64x4xf32>
    %122 = arith.mulf %118, %121 : vector<64x4xf32>
    %123 = arith.truncf %122 : vector<64x4xf32> to vector<64x4xbf16>
    %c0_74 = arith.constant 0 : index
    %c28 = arith.constant 28 : index
    %124 = vector.load %arg18[%c0_74, %c28] : memref<64x36xbf16, #tpu.memory_space<vmem>>, vector<64x4xbf16>
    tpu.vector_store %arg18[%c0_74, %c28], %123 {strides = array<i32>} : memref<64x36xbf16, #tpu.memory_space<vmem>>, vector<64x4xbf16>,
    %c25 = arith.constant 25 : index
    %c0_75 = arith.constant 0 : index
    %125 = vector.load %arg17[%c25, %c0_75] : memref<96x4xf32, #tpu.memory_space<vmem>>, vector<64x4xf32>
    %c8_76 = arith.constant 8 : index
    %c0_77 = arith.constant 0 : index
    %c0_78 = arith.constant 0 : index
    %126 = vector.load %arg3[%c8_76, %c0_77, %c0_78] : memref<9x64x1xf32, #tpu.memory_space<vmem>>, vector<1x64x1xf32>
    %127 = vector.shape_cast %126 : vector<1x64x1xf32> to vector<64x1xf32>
    %128 = vector.broadcast %127 : vector<64x1xf32> to vector<64x4xf32>
    %129 = arith.mulf %125, %128 : vector<64x4xf32>
    %130 = arith.truncf %129 : vector<64x4xf32> to vector<64x4xbf16>
    %c0_79 = arith.constant 0 : index
    %c32 = arith.constant 32 : index
    %131 = vector.load %arg18[%c0_79, %c32] : memref<64x36xbf16, #tpu.memory_space<vmem>>, vector<64x4xbf16>
    tpu.vector_store %arg18[%c0_79, %c32], %130 {strides = array<i32>} : memref<64x36xbf16, #tpu.memory_space<vmem>>, vector<64x4xbf16>,
    %c0_80 = arith.constant 0 : index
    %c0_81 = arith.constant 0 : index
    %132 = vector.load %arg18[%c0_80, %c0_81] : memref<64x36xbf16, #tpu.memory_space<vmem>>, vector<64x36xbf16>
    %c0_82 = arith.constant 0 : index
    %c0_83 = arith.constant 0 : index
    %133 = vector.load %arg10[%c0_82, %c0_83] : memref<36x4xbf16, #tpu.memory_space<vmem>>, vector<36x4xbf16>
    %cst_84 = arith.constant dense<0.000000e+00> : vector<64x4xf32>
    %134 = tpu.matmul %132, %133, %cst_84 {dimension_numbers = #tpu.dot_dimension_numbers<[1], [0], [0], [1], [0, 0, 1, 1], [], []>} : vector<64x36xbf16>, vector<36x4xbf16>, vector<64x4xf32> -> vector<64x4xf32>
    %c0_85 = arith.constant 0 : index
    %c0_86 = arith.constant 0 : index
    %135 = vector.load %arg11[%c0_85, %c0_86] : memref<1x4xf32, #tpu.memory_space<vmem>>, vector<1x4xf32>
    %136 = vector.broadcast %135 : vector<1x4xf32> to vector<64x4xf32>
    %137 = arith.addf %134, %136 : vector<64x4xf32>
    %c0_87 = arith.constant 0 : index
    %c0_88 = arith.constant 0 : index
    %138 = vector.load %arg12[%c0_87, %c0_88] : memref<1x4xf32, #tpu.memory_space<vmem>>, vector<1x4xf32>
    %c0_89 = arith.constant 0 : index
    %c0_90 = arith.constant 0 : index
    %139 = vector.load %arg13[%c0_89, %c0_90] : memref<1x4xf32, #tpu.memory_space<vmem>>, vector<1x4xf32>
    %cst_91 = arith.constant dense<0.000000e+00> : vector<64xf32>
    %140 = vector.multi_reduction <add>, %137, %cst_91 [1] : vector<64x4xf32> to vector<64xf32>
    %141 = vector.shape_cast %140 : vector<64xf32> to vector<64x1xf32>
    %cst_92 = arith.constant 4.000000e+00 : f32
    %142 = vector.broadcast %cst_92 : f32 to vector<64x1xf32>
    %143 = arith.divf %141, %142 : vector<64x1xf32>
    %144 = vector.broadcast %143 : vector<64x1xf32> to vector<64x4xf32>
    %145 = arith.subf %137, %144 : vector<64x4xf32>
    %146 = arith.mulf %145, %145 : vector<64x4xf32>
    %cst_93 = arith.constant dense<0.000000e+00> : vector<64xf32>
    %147 = vector.multi_reduction <add>, %146, %cst_93 [1] : vector<64x4xf32> to vector<64xf32>
    %148 = vector.shape_cast %147 : vector<64xf32> to vector<64x1xf32>
    %cst_94 = arith.constant 4.000000e+00 : f32
    %149 = vector.broadcast %cst_94 : f32 to vector<64x1xf32>
    %150 = arith.divf %148, %149 : vector<64x1xf32>
    %151 = vector.broadcast %143 : vector<64x1xf32> to vector<64x4xf32>
    %152 = arith.subf %137, %151 : vector<64x4xf32>
    %cst_95 = arith.constant 9.99999974E-6 : f32
    %153 = vector.broadcast %cst_95 : f32 to vector<64x1xf32>
    %154 = arith.addf %150, %153 : vector<64x1xf32>
    %155 = math.rsqrt %154 : vector<64x1xf32>
    %156 = vector.broadcast %155 : vector<64x1xf32> to vector<64x4xf32>
    %157 = arith.mulf %152, %156 : vector<64x4xf32>
    %158 = vector.broadcast %138 : vector<1x4xf32> to vector<64x4xf32>
    %159 = arith.mulf %157, %158 : vector<64x4xf32>
    %160 = vector.broadcast %139 : vector<1x4xf32> to vector<64x4xf32>
    %161 = arith.addf %159, %160 : vector<64x4xf32>
    %cst_96 = arith.constant 0.000000e+00 : f32
    %162 = vector.broadcast %cst_96 : f32 to vector<64x4xf32>
    %163 = arith.maximumf %161, %162 : vector<64x4xf32>
    %164 = arith.truncf %163 : vector<64x4xf32> to vector<64x4xbf16>
    %c0_97 = arith.constant 0 : index
    %c0_98 = arith.constant 0 : index
    %165 = vector.load %arg14[%c0_97, %c0_98] : memref<4x8xbf16, #tpu.memory_space<vmem>>, vector<4x8xbf16>
    %cst_99 = arith.constant dense<0.000000e+00> : vector<64x8xf32>
    %166 = tpu.matmul %164, %165, %cst_99 {dimension_numbers = #tpu.dot_dimension_numbers<[1], [0], [0], [1], [0, 0, 1, 1], [], []>} : vector<64x4xbf16>, vector<4x8xbf16>, vector<64x8xf32> -> vector<64x8xf32>
    %c0_100 = arith.constant 0 : index
    %c0_101 = arith.constant 0 : index
    %167 = vector.load %arg15[%c0_100, %c0_101] : memref<1x8xf32, #tpu.memory_space<vmem>>, vector<1x8xf32>
    %168 = vector.broadcast %167 : vector<1x8xf32> to vector<64x8xf32>
    %169 = arith.addf %166, %168 : vector<64x8xf32>
    %170 = arith.addf %169, %1 : vector<64x8xf32>
    %c0_102 = arith.constant 0 : index
    %c0_103 = arith.constant 0 : index
    %c0_104 = arith.constant 0 : index
    %171 = vector.load %arg16[%c0_102, %c0_103, %c0_104] : memref<1x64x8xf32, #tpu.memory_space<vmem>>, vector<1x64x8xf32>
    %172 = vector.shape_cast %171 : vector<1x64x8xf32> to vector<64x8xf32>
    %173 = vector.shape_cast %170 : vector<64x8xf32> to vector<1x64x8xf32>
    tpu.vector_store %arg16[%c0_102, %c0_103, %c0_104], %173 {strides = array<i32>} : memref<1x64x8xf32, #tpu.memory_space<vmem>>, vector<1x64x8xf32>,
    return
  }
  func.func @transform_0(%arg0: i32) -> (i32, i32, i32) {
    %c0_i32 = arith.constant 0 : i32
    %c0_i32_0 = arith.constant 0 : i32
    %c0_i32_1 = arith.constant 0 : i32
    return %arg0, %c0_i32, %c0_i32_0 : i32, i32, i32
  }
  func.func @transform_1(%arg0: i32) -> (i32, i32, i32) {
    %c0_i32 = arith.constant 0 : i32
    %c0_i32_0 = arith.constant 0 : i32
    %c0_i32_1 = arith.constant 0 : i32
    return %arg0, %c0_i32, %c0_i32_0 : i32, i32, i32
  }
  func.func @transform_2(%arg0: i32) -> (i32, i32, i32) {
    %c0_i32 = arith.constant 0 : i32
    %c0_i32_0 = arith.constant 0 : i32
    %c0_i32_1 = arith.constant 0 : i32
    %c0_i32_2 = arith.constant 0 : i32
    return %c0_i32, %c0_i32_0, %c0_i32_1 : i32, i32, i32
  }
  func.func @transform_3(%arg0: i32) -> (i32, i32) {
    %c0_i32 = arith.constant 0 : i32
    %c0_i32_0 = arith.constant 0 : i32
    %c0_i32_1 = arith.constant 0 : i32
    return %c0_i32, %c0_i32_0 : i32, i32
  }
  func.func @transform_4(%arg0: i32) -> (i32, i32) {
    %c0_i32 = arith.constant 0 : i32
    %c0_i32_0 = arith.constant 0 : i32
    %c0_i32_1 = arith.constant 0 : i32
    return %c0_i32, %c0_i32_0 : i32, i32
  }
  func.func @transform_5(%arg0: i32) -> (i32, i32) {
    %c0_i32 = arith.constant 0 : i32
    %c0_i32_0 = arith.constant 0 : i32
    %c0_i32_1 = arith.constant 0 : i32
    return %c0_i32, %c0_i32_0 : i32, i32
  }
  func.func @transform_6(%arg0: i32) -> (i32, i32) {
    %c0_i32 = arith.constant 0 : i32
    %c0_i32_0 = arith.constant 0 : i32
    %c0_i32_1 = arith.constant 0 : i32
    return %c0_i32, %c0_i32_0 : i32, i32
  }
  func.func @transform_7(%arg0: i32) -> (i32, i32) {
    %c0_i32 = arith.constant 0 : i32
    %c0_i32_0 = arith.constant 0 : i32
    %c0_i32_1 = arith.constant 0 : i32
    return %c0_i32, %c0_i32_0 : i32, i32
  }
  func.func @transform_8(%arg0: i32) -> (i32, i32) {
    %c0_i32 = arith.constant 0 : i32
    %c0_i32_0 = arith.constant 0 : i32
    %c0_i32_1 = arith.constant 0 : i32
    return %c0_i32, %c0_i32_0 : i32, i32
  }
  func.func @transform_9(%arg0: i32) -> (i32, i32) {
    %c0_i32 = arith.constant 0 : i32
    %c0_i32_0 = arith.constant 0 : i32
    %c0_i32_1 = arith.constant 0 : i32
    return %c0_i32, %c0_i32_0 : i32, i32
  }
  func.func @transform_10(%arg0: i32) -> (i32, i32) {
    %c0_i32 = arith.constant 0 : i32
    %c0_i32_0 = arith.constant 0 : i32
    %c0_i32_1 = arith.constant 0 : i32
    return %c0_i32, %c0_i32_0 : i32, i32
  }
  func.func @transform_11(%arg0: i32) -> (i32, i32) {
    %c0_i32 = arith.constant 0 : i32
    %c0_i32_0 = arith.constant 0 : i32
    %c0_i32_1 = arith.constant 0 : i32
    return %c0_i32, %c0_i32_0 : i32, i32
  }
  func.func @transform_12(%arg0: i32) -> (i32, i32) {
    %c0_i32 = arith.constant 0 : i32
    %c0_i32_0 = arith.constant 0 : i32
    %c0_i32_1 = arith.constant 0 : i32
    return %c0_i32, %c0_i32_0 : i32, i32
  }
  func.func @transform_13(%arg0: i32) -> (i32, i32) {
    %c0_i32 = arith.constant 0 : i32
    %c0_i32_0 = arith.constant 0 : i32
    %c0_i32_1 = arith.constant 0 : i32
    return %c0_i32, %c0_i32_0 : i32, i32
  }
  func.func @transform_14(%arg0: i32) -> (i32, i32) {
    %c0_i32 = arith.constant 0 : i32
    %c0_i32_0 = arith.constant 0 : i32
    %c0_i32_1 = arith.constant 0 : i32
    return %c0_i32, %c0_i32_0 : i32, i32
  }
  func.func @transform_15(%arg0: i32) -> (i32, i32, i32) {
    %c0_i32 = arith.constant 0 : i32
    %c0_i32_0 = arith.constant 0 : i32
    %c0_i32_1 = arith.constant 0 : i32
    return %arg0, %c0_i32, %c0_i32_0 : i32, i32, i32
  }
}

module attributes {stable_mosaic.version = 11 : i64} {
  func.func @kernel(%arg0: i32, %arg1: memref<32x8xf32, #tpu.memory_space<vmem>>, %arg2: memref<8x24xbf16, #tpu.memory_space<vmem>>, %arg3: memref<1x24xf32, #tpu.memory_space<vmem>>, %arg4: memref<32x24xf32, #tpu.memory_space<vmem>>) attributes {dimension_semantics = [#tpu.dimension_semantics<parallel>], iteration_bounds = array<i64: 1>, scalar_prefetch = 0 : i64, scratch_operands = 0 : i64, tpu.core_type = #tpu.core_type<tc>, window_params = [{transform_indices = @transform_0, window_bounds = array<i64: 32, 8>}, {pipeline_mode = #tpu.pipeline_mode<synchronous>, transform_indices = @transform_1, window_bounds = array<i64: 8, 24>}, {pipeline_mode = #tpu.pipeline_mode<synchronous>, transform_indices = @transform_2, window_bounds = array<i64: 1, 24>}, {transform_indices = @transform_3, window_bounds = array<i64: 32, 24>}]} {
    %c0 = arith.constant 0 : index
    %c0_0 = arith.constant 0 : index
    %0 = vector.load %arg1[%c0, %c0_0] : memref<32x8xf32, #tpu.memory_space<vmem>>, vector<32x8xf32>
    %1 = arith.truncf %0 : vector<32x8xf32> to vector<32x8xbf16>
    %c0_1 = arith.constant 0 : index
    %c0_2 = arith.constant 0 : index
    %2 = vector.load %arg2[%c0_1, %c0_2] : memref<8x24xbf16, #tpu.memory_space<vmem>>, vector<8x24xbf16>
    %cst = arith.constant dense<0.000000e+00> : vector<32x24xf32>
    %3 = tpu.matmul %1, %2, %cst {dimension_numbers = #tpu.dot_dimension_numbers<[1], [0], [0], [1], [0, 0, 1, 1], [], []>} : vector<32x8xbf16>, vector<8x24xbf16>, vector<32x24xf32> -> vector<32x24xf32>
    %c0_3 = arith.constant 0 : index
    %c0_4 = arith.constant 0 : index
    %4 = vector.load %arg3[%c0_3, %c0_4] : memref<1x24xf32, #tpu.memory_space<vmem>>, vector<1x24xf32>
    %5 = vector.broadcast %4 : vector<1x24xf32> to vector<32x24xf32>
    %6 = arith.addf %3, %5 : vector<32x24xf32>
    %c0_5 = arith.constant 0 : index
    %c0_6 = arith.constant 0 : index
    %7 = vector.load %arg4[%c0_5, %c0_6] : memref<32x24xf32, #tpu.memory_space<vmem>>, vector<32x24xf32>
    tpu.vector_store %arg4[%c0_5, %c0_6], %6 {strides = array<i32>} : memref<32x24xf32, #tpu.memory_space<vmem>>, vector<32x24xf32>,
    return
  }
  func.func @transform_0(%arg0: i32) -> (i32, i32) {
    %c0_i32 = arith.constant 0 : i32
    %c0_i32_0 = arith.constant 0 : i32
    return %arg0, %c0_i32 : i32, i32
  }
  func.func @transform_1(%arg0: i32) -> (i32, i32) {
    %c0_i32 = arith.constant 0 : i32
    %c0_i32_0 = arith.constant 0 : i32
    %c0_i32_1 = arith.constant 0 : i32
    return %c0_i32, %c0_i32_0 : i32, i32
  }
  func.func @transform_2(%arg0: i32) -> (i32, i32) {
    %c0_i32 = arith.constant 0 : i32
    %c0_i32_0 = arith.constant 0 : i32
    %c0_i32_1 = arith.constant 0 : i32
    return %c0_i32, %c0_i32_0 : i32, i32
  }
  func.func @transform_3(%arg0: i32) -> (i32, i32) {
    %c0_i32 = arith.constant 0 : i32
    %c0_i32_0 = arith.constant 0 : i32
    return %arg0, %c0_i32 : i32, i32
  }
}

module attributes {stable_mosaic.version = 11 : i64} {
  func.func @kernel(%arg0: i32, %arg1: memref<1x16x32xf32, #tpu.memory_space<vmem>>, %arg2: memref<1x16x1xf32, #tpu.memory_space<vmem>>, %arg3: memref<1x32xf32, #tpu.memory_space<vmem>>, %arg4: memref<1x32xf32, #tpu.memory_space<vmem>>, %arg5: memref<32x16xbf16, #tpu.memory_space<vmem>>, %arg6: memref<1x16xf32, #tpu.memory_space<vmem>>, %arg7: memref<1x16xf32, #tpu.memory_space<vmem>>, %arg8: memref<1x16xf32, #tpu.memory_space<vmem>>, %arg9: memref<48x16xbf16, #tpu.memory_space<vmem>>, %arg10: memref<1x16xf32, #tpu.memory_space<vmem>>, %arg11: memref<1x16xf32, #tpu.memory_space<vmem>>, %arg12: memref<1x16xf32, #tpu.memory_space<vmem>>, %arg13: memref<16x32xbf16, #tpu.memory_space<vmem>>, %arg14: memref<1x32xf32, #tpu.memory_space<vmem>>, %arg15: memref<1x16x32xf32, #tpu.memory_space<vmem>>, %arg16: memref<32x16xf32, #tpu.memory_space<vmem>>, %arg17: memref<16x48xbf16, #tpu.memory_space<vmem>>) attributes {dimension_semantics = [#tpu.dimension_semantics<parallel>], iteration_bounds = array<i64: 2>, scalar_prefetch = 0 : i64, scratch_operands = 2 : i64, tpu.core_type = #tpu.core_type<tc>, window_params = [{transform_indices = @transform_0, window_bounds = array<i64: 1, 16, 32>}, {transform_indices = @transform_1, window_bounds = array<i64: 1, 16, 1>}, {pipeline_mode = #tpu.pipeline_mode<synchronous>, transform_indices = @transform_2, window_bounds = array<i64: 1, 32>}, {pipeline_mode = #tpu.pipeline_mode<synchronous>, transform_indices = @transform_3, window_bounds = array<i64: 1, 32>}, {pipeline_mode = #tpu.pipeline_mode<synchronous>, transform_indices = @transform_4, window_bounds = array<i64: 32, 16>}, {pipeline_mode = #tpu.pipeline_mode<synchronous>, transform_indices = @transform_5, window_bounds = array<i64: 1, 16>}, {pipeline_mode = #tpu.pipeline_mode<synchronous>, transform_indices = @transform_6, window_bounds = array<i64: 1, 16>}, {pipeline_mode = #tpu.pipeline_mode<synchronous>, transform_indices = @transform_7, window_bounds = array<i64: 1, 16>}, {pipeline_mode = #tpu.pipeline_mode<synchronous>, transform_indices = @transform_8, window_bounds = array<i64: 48, 16>}, {pipeline_mode = #tpu.pipeline_mode<synchronous>, transform_indices = @transform_9, window_bounds = array<i64: 1, 16>}, {pipeline_mode = #tpu.pipeline_mode<synchronous>, transform_indices = @transform_10, window_bounds = array<i64: 1, 16>}, {pipeline_mode = #tpu.pipeline_mode<synchronous>, transform_indices = @transform_11, window_bounds = array<i64: 1, 16>}, {pipeline_mode = #tpu.pipeline_mode<synchronous>, transform_indices = @transform_12, window_bounds = array<i64: 16, 32>}, {pipeline_mode = #tpu.pipeline_mode<synchronous>, transform_indices = @transform_13, window_bounds = array<i64: 1, 32>}, {transform_indices = @transform_14, window_bounds = array<i64: 1, 16, 32>}]} {
    %c0 = arith.constant 0 : index
    %c0_0 = arith.constant 0 : index
    %c0_1 = arith.constant 0 : index
    %0 = vector.load %arg1[%c0, %c0_0, %c0_1] : memref<1x16x32xf32, #tpu.memory_space<vmem>>, vector<1x16x32xf32>
    %1 = vector.shape_cast %0 : vector<1x16x32xf32> to vector<16x32xf32>
    %c0_2 = arith.constant 0 : index
    %c0_3 = arith.constant 0 : index
    %2 = vector.load %arg3[%c0_2, %c0_3] : memref<1x32xf32, #tpu.memory_space<vmem>>, vector<1x32xf32>
    %c0_4 = arith.constant 0 : index
    %c0_5 = arith.constant 0 : index
    %3 = vector.load %arg4[%c0_4, %c0_5] : memref<1x32xf32, #tpu.memory_space<vmem>>, vector<1x32xf32>
    %cst = arith.constant dense<0.000000e+00> : vector<16xf32>
    %4 = vector.multi_reduction <add>, %1, %cst [1] : vector<16x32xf32> to vector<16xf32>
    %5 = vector.shape_cast %4 : vector<16xf32> to vector<16x1xf32>
    %cst_6 = arith.constant 3.200000e+01 : f32
    %6 = vector.broadcast %cst_6 : f32 to vector<16x1xf32>
    %7 = arith.divf %5, %6 : vector<16x1xf32>
    %8 = vector.broadcast %7 : vector<16x1xf32> to vector<16x32xf32>
    %9 = arith.subf %1, %8 : vector<16x32xf32>
    %10 = arith.mulf %9, %9 : vector<16x32xf32>
    %cst_7 = arith.constant dense<0.000000e+00> : vector<16xf32>
    %11 = vector.multi_reduction <add>, %10, %cst_7 [1] : vector<16x32xf32> to vector<16xf32>
    %12 = vector.shape_cast %11 : vector<16xf32> to vector<16x1xf32>
    %cst_8 = arith.constant 3.200000e+01 : f32
    %13 = vector.broadcast %cst_8 : f32 to vector<16x1xf32>
    %14 = arith.divf %12, %13 : vector<16x1xf32>
    %15 = vector.broadcast %7 : vector<16x1xf32> to vector<16x32xf32>
    %16 = arith.subf %1, %15 : vector<16x32xf32>
    %cst_9 = arith.constant 9.99999974E-6 : f32
    %17 = vector.broadcast %cst_9 : f32 to vector<16x1xf32>
    %18 = arith.addf %14, %17 : vector<16x1xf32>
    %19 = math.rsqrt %18 : vector<16x1xf32>
    %20 = vector.broadcast %19 : vector<16x1xf32> to vector<16x32xf32>
    %21 = arith.mulf %16, %20 : vector<16x32xf32>
    %22 = vector.broadcast %2 : vector<1x32xf32> to vector<16x32xf32>
    %23 = arith.mulf %21, %22 : vector<16x32xf32>
    %24 = vector.broadcast %3 : vector<1x32xf32> to vector<16x32xf32>
    %25 = arith.addf %23, %24 : vector<16x32xf32>
    %cst_10 = arith.constant 0.000000e+00 : f32
    %26 = vector.broadcast %cst_10 : f32 to vector<16x32xf32>
    %27 = arith.maximumf %25, %26 : vector<16x32xf32>
    %28 = arith.truncf %27 : vector<16x32xf32> to vector<16x32xbf16>
    %c0_11 = arith.constant 0 : index
    %c0_12 = arith.constant 0 : index
    %29 = vector.load %arg5[%c0_11, %c0_12] : memref<32x16xbf16, #tpu.memory_space<vmem>>, vector<32x16xbf16>
    %cst_13 = arith.constant dense<0.000000e+00> : vector<16x16xf32>
    %30 = tpu.matmul %28, %29, %cst_13 {dimension_numbers = #tpu.dot_dimension_numbers<[1], [0], [0], [1], [0, 0, 1, 1], [], []>} : vector<16x32xbf16>, vector<32x16xbf16>, vector<16x16xf32> -> vector<16x16xf32>
    %c0_14 = arith.constant 0 : index
    %c0_15 = arith.constant 0 : index
    %31 = vector.load %arg6[%c0_14, %c0_15] : memref<1x16xf32, #tpu.memory_space<vmem>>, vector<1x16xf32>
    %32 = vector.broadcast %31 : vector<1x16xf32> to vector<16x16xf32>
    %33 = arith.addf %30, %32 : vector<16x16xf32>
    %c0_16 = arith.constant 0 : index
    %c0_17 = arith.constant 0 : index
    %34 = vector.load %arg7[%c0_16, %c0_17] : memref<1x16xf32, #tpu.memory_space<vmem>>, vector<1x16xf32>
    %c0_18 = arith.constant 0 : index
    %c0_19 = arith.constant 0 : index
    %35 = vector.load %arg8[%c0_18, %c0_19] : memref<1x16xf32, #tpu.memory_space<vmem>>, vector<1x16xf32>
    %cst_20 = arith.constant dense<0.000000e+00> : vector<16xf32>
    %36 = vector.multi_reduction <add>, %33, %cst_20 [1] : vector<16x16xf32> to vector<16xf32>
    %37 = vector.shape_cast %36 : vector<16xf32> to vector<16x1xf32>
    %cst_21 = arith.constant 1.600000e+01 : f32
    %38 = vector.broadcast %cst_21 : f32 to vector<16x1xf32>
    %39 = arith.divf %37, %38 : vector<16x1xf32>
    %40 = vector.broadcast %39 : vector<16x1xf32> to vector<16x16xf32>
    %41 = arith.subf %33, %40 : vector<16x16xf32>
    %42 = arith.mulf %41, %41 : vector<16x16xf32>
    %cst_22 = arith.constant dense<0.000000e+00> : vector<16xf32>
    %43 = vector.multi_reduction <add>, %42, %cst_22 [1] : vector<16x16xf32> to vector<16xf32>
    %44 = vector.shape_cast %43 : vector<16xf32> to vector<16x1xf32>
    %cst_23 = arith.constant 1.600000e+01 : f32
    %45 = vector.broadcast %cst_23 : f32 to vector<16x1xf32>
    %46 = arith.divf %44, %45 : vector<16x1xf32>
    %47 = vector.broadcast %39 : vector<16x1xf32> to vector<16x16xf32>
    %48 = arith.subf %33, %47 : vector<16x16xf32>
    %cst_24 = arith.constant 9.99999974E-6 : f32
    %49 = vector.broadcast %cst_24 : f32 to vector<16x1xf32>
    %50 = arith.addf %46, %49 : vector<16x1xf32>
    %51 = math.rsqrt %50 : vector<16x1xf32>
    %52 = vector.broadcast %51 : vector<16x1xf32> to vector<16x16xf32>
    %53 = arith.mulf %48, %52 : vector<16x16xf32>
    %54 = vector.broadcast %34 : vector<1x16xf32> to vector<16x16xf32>
    %55 = arith.mulf %53, %54 : vector<16x16xf32>
    %56 = vector.broadcast %35 : vector<1x16xf32> to vector<16x16xf32>
    %57 = arith.addf %55, %56 : vector<16x16xf32>
    %cst_25 = arith.constant 0.000000e+00 : f32
    %58 = vector.broadcast %cst_25 : f32 to vector<16x16xf32>
    %59 = arith.maximumf %57, %58 : vector<16x16xf32>
    %c0_26 = arith.constant 0 : index
    %c0_27 = arith.constant 0 : index
    %c0_28 = arith.constant 0 : index
    %60 = vector.load %arg2[%c0_26, %c0_27, %c0_28] : memref<1x16x1xf32, #tpu.memory_space<vmem>>, vector<1x16x1xf32>
    %61 = vector.shape_cast %60 : vector<1x16x1xf32> to vector<16x1xf32>
    %62 = vector.broadcast %61 : vector<16x1xf32> to vector<16x16xf32>
    %63 = arith.mulf %59, %62 : vector<16x16xf32>
    %cst_29 = arith.constant 0.000000e+00 : f32
    %64 = vector.broadcast %cst_29 : f32 to vector<8x16xf32>
    %c0_30 = arith.constant 0 : index
    %c0_31 = arith.constant 0 : index
    %65 = vector.load %arg16[%c0_30, %c0_31] : memref<32x16xf32, #tpu.memory_space<vmem>>, vector<8x16xf32>
    tpu.vector_store %arg16[%c0_30, %c0_31], %64 {strides = array<i32>} : memref<32x16xf32, #tpu.memory_space<vmem>>, vector<8x16xf32>,
    %cst_32 = arith.constant 0.000000e+00 : f32
    %66 = vector.broadcast %cst_32 : f32 to vector<8x16xf32>
    %c24 = arith.constant 24 : index
    %c0_33 = arith.constant 0 : index
    %67 = vector.load %arg16[%c24, %c0_33] : memref<32x16xf32, #tpu.memory_space<vmem>>, vector<8x16xf32>
    tpu.vector_store %arg16[%c24, %c0_33], %66 {strides = array<i32>} : memref<32x16xf32, #tpu.memory_space<vmem>>, vector<8x16xf32>,
    %c8 = arith.constant 8 : index
    %c0_34 = arith.constant 0 : index
    %68 = vector.load %arg16[%c8, %c0_34] : memref<32x16xf32, #tpu.memory_space<vmem>>, vector<16x16xf32>
    tpu.vector_store %arg16[%c8, %c0_34], %63 {strides = array<i32>} : memref<32x16xf32, #tpu.memory_space<vmem>>, vector<16x16xf32>,
    %c7 = arith.constant 7 : index
    %c0_35 = arith.constant 0 : index
    %69 = vector.load %arg16[%c7, %c0_35] : memref<32x16xf32, #tpu.memory_space<vmem>>, vector<16x16xf32>
    %70 = arith.truncf %69 : vector<16x16xf32> to vector<16x16xbf16>
    %c0_36 = arith.constant 0 : index
    %c0_37 = arith.constant 0 : index
    %71 = vector.load %arg17[%c0_36, %c0_37] : memref<16x48xbf16, #tpu.memory_space<vmem>>, vector<16x16xbf16>
    tpu.vector_store %arg17[%c0_36, %c0_37], %70 {strides = array<i32>} : memref<16x48xbf16, #tpu.memory_space<vmem>>, vector<16x16xbf16>,
    %c8_38 = arith.constant 8 : index
    %c0_39 = arith.constant 0 : index
    %72 = vector.load %arg16[%c8_38, %c0_39] : memref<32x16xf32, #tpu.memory_space<vmem>>, vector<16x16xf32>
    %73 = arith.truncf %72 : vector<16x16xf32> to vector<16x16xbf16>
    %c0_40 = arith.constant 0 : index
    %c16 = arith.constant 16 : index
    %74 = vector.load %arg17[%c0_40, %c16] : memref<16x48xbf16, #tpu.memory_space<vmem>>, vector<16x16xbf16>
    tpu.vector_store %arg17[%c0_40, %c16], %73 {strides = array<i32>} : memref<16x48xbf16, #tpu.memory_space<vmem>>, vector<16x16xbf16>,
    %c9 = arith.constant 9 : index
    %c0_41 = arith.constant 0 : index
    %75 = vector.load %arg16[%c9, %c0_41] : memref<32x16xf32, #tpu.memory_space<vmem>>, vector<16x16xf32>
    %76 = arith.truncf %75 : vector<16x16xf32> to vector<16x16xbf16>
    %c0_42 = arith.constant 0 : index
    %c32 = arith.constant 32 : index
    %77 = vector.load %arg17[%c0_42, %c32] : memref<16x48xbf16, #tpu.memory_space<vmem>>, vector<16x16xbf16>
    tpu.vector_store %arg17[%c0_42, %c32], %76 {strides = array<i32>} : memref<16x48xbf16, #tpu.memory_space<vmem>>, vector<16x16xbf16>,
    %c0_43 = arith.constant 0 : index
    %c0_44 = arith.constant 0 : index
    %78 = vector.load %arg17[%c0_43, %c0_44] : memref<16x48xbf16, #tpu.memory_space<vmem>>, vector<16x48xbf16>
    %c0_45 = arith.constant 0 : index
    %c0_46 = arith.constant 0 : index
    %79 = vector.load %arg9[%c0_45, %c0_46] : memref<48x16xbf16, #tpu.memory_space<vmem>>, vector<48x16xbf16>
    %cst_47 = arith.constant dense<0.000000e+00> : vector<16x16xf32>
    %80 = tpu.matmul %78, %79, %cst_47 {dimension_numbers = #tpu.dot_dimension_numbers<[1], [0], [0], [1], [0, 0, 1, 1], [], []>} : vector<16x48xbf16>, vector<48x16xbf16>, vector<16x16xf32> -> vector<16x16xf32>
    %c0_48 = arith.constant 0 : index
    %c0_49 = arith.constant 0 : index
    %81 = vector.load %arg10[%c0_48, %c0_49] : memref<1x16xf32, #tpu.memory_space<vmem>>, vector<1x16xf32>
    %82 = vector.broadcast %81 : vector<1x16xf32> to vector<16x16xf32>
    %83 = arith.addf %80, %82 : vector<16x16xf32>
    %c0_50 = arith.constant 0 : index
    %c0_51 = arith.constant 0 : index
    %84 = vector.load %arg11[%c0_50, %c0_51] : memref<1x16xf32, #tpu.memory_space<vmem>>, vector<1x16xf32>
    %c0_52 = arith.constant 0 : index
    %c0_53 = arith.constant 0 : index
    %85 = vector.load %arg12[%c0_52, %c0_53] : memref<1x16xf32, #tpu.memory_space<vmem>>, vector<1x16xf32>
    %cst_54 = arith.constant dense<0.000000e+00> : vector<16xf32>
    %86 = vector.multi_reduction <add>, %83, %cst_54 [1] : vector<16x16xf32> to vector<16xf32>
    %87 = vector.shape_cast %86 : vector<16xf32> to vector<16x1xf32>
    %cst_55 = arith.constant 1.600000e+01 : f32
    %88 = vector.broadcast %cst_55 : f32 to vector<16x1xf32>
    %89 = arith.divf %87, %88 : vector<16x1xf32>
    %90 = vector.broadcast %89 : vector<16x1xf32> to vector<16x16xf32>
    %91 = arith.subf %83, %90 : vector<16x16xf32>
    %92 = arith.mulf %91, %91 : vector<16x16xf32>
    %cst_56 = arith.constant dense<0.000000e+00> : vector<16xf32>
    %93 = vector.multi_reduction <add>, %92, %cst_56 [1] : vector<16x16xf32> to vector<16xf32>
    %94 = vector.shape_cast %93 : vector<16xf32> to vector<16x1xf32>
    %cst_57 = arith.constant 1.600000e+01 : f32
    %95 = vector.broadcast %cst_57 : f32 to vector<16x1xf32>
    %96 = arith.divf %94, %95 : vector<16x1xf32>
    %97 = vector.broadcast %89 : vector<16x1xf32> to vector<16x16xf32>
    %98 = arith.subf %83, %97 : vector<16x16xf32>
    %cst_58 = arith.constant 9.99999974E-6 : f32
    %99 = vector.broadcast %cst_58 : f32 to vector<16x1xf32>
    %100 = arith.addf %96, %99 : vector<16x1xf32>
    %101 = math.rsqrt %100 : vector<16x1xf32>
    %102 = vector.broadcast %101 : vector<16x1xf32> to vector<16x16xf32>
    %103 = arith.mulf %98, %102 : vector<16x16xf32>
    %104 = vector.broadcast %84 : vector<1x16xf32> to vector<16x16xf32>
    %105 = arith.mulf %103, %104 : vector<16x16xf32>
    %106 = vector.broadcast %85 : vector<1x16xf32> to vector<16x16xf32>
    %107 = arith.addf %105, %106 : vector<16x16xf32>
    %cst_59 = arith.constant 0.000000e+00 : f32
    %108 = vector.broadcast %cst_59 : f32 to vector<16x16xf32>
    %109 = arith.maximumf %107, %108 : vector<16x16xf32>
    %110 = arith.truncf %109 : vector<16x16xf32> to vector<16x16xbf16>
    %c0_60 = arith.constant 0 : index
    %c0_61 = arith.constant 0 : index
    %111 = vector.load %arg13[%c0_60, %c0_61] : memref<16x32xbf16, #tpu.memory_space<vmem>>, vector<16x32xbf16>
    %cst_62 = arith.constant dense<0.000000e+00> : vector<16x32xf32>
    %112 = tpu.matmul %110, %111, %cst_62 {dimension_numbers = #tpu.dot_dimension_numbers<[1], [0], [0], [1], [0, 0, 1, 1], [], []>} : vector<16x16xbf16>, vector<16x32xbf16>, vector<16x32xf32> -> vector<16x32xf32>
    %c0_63 = arith.constant 0 : index
    %c0_64 = arith.constant 0 : index
    %113 = vector.load %arg14[%c0_63, %c0_64] : memref<1x32xf32, #tpu.memory_space<vmem>>, vector<1x32xf32>
    %114 = vector.broadcast %113 : vector<1x32xf32> to vector<16x32xf32>
    %115 = arith.addf %112, %114 : vector<16x32xf32>
    %116 = arith.addf %115, %1 : vector<16x32xf32>
    %c0_65 = arith.constant 0 : index
    %c0_66 = arith.constant 0 : index
    %c0_67 = arith.constant 0 : index
    %117 = vector.load %arg15[%c0_65, %c0_66, %c0_67] : memref<1x16x32xf32, #tpu.memory_space<vmem>>, vector<1x16x32xf32>
    %118 = vector.shape_cast %117 : vector<1x16x32xf32> to vector<16x32xf32>
    %119 = vector.shape_cast %116 : vector<16x32xf32> to vector<1x16x32xf32>
    tpu.vector_store %arg15[%c0_65, %c0_66, %c0_67], %119 {strides = array<i32>} : memref<1x16x32xf32, #tpu.memory_space<vmem>>, vector<1x16x32xf32>,
    return
  }
  func.func @transform_0(%arg0: i32) -> (i32, i32, i32) {
    %c0_i32 = arith.constant 0 : i32
    %c0_i32_0 = arith.constant 0 : i32
    %c0_i32_1 = arith.constant 0 : i32
    return %arg0, %c0_i32, %c0_i32_0 : i32, i32, i32
  }
  func.func @transform_1(%arg0: i32) -> (i32, i32, i32) {
    %c0_i32 = arith.constant 0 : i32
    %c0_i32_0 = arith.constant 0 : i32
    %c0_i32_1 = arith.constant 0 : i32
    return %arg0, %c0_i32, %c0_i32_0 : i32, i32, i32
  }
  func.func @transform_2(%arg0: i32) -> (i32, i32) {
    %c0_i32 = arith.constant 0 : i32
    %c0_i32_0 = arith.constant 0 : i32
    %c0_i32_1 = arith.constant 0 : i32
    return %c0_i32, %c0_i32_0 : i32, i32
  }
  func.func @transform_3(%arg0: i32) -> (i32, i32) {
    %c0_i32 = arith.constant 0 : i32
    %c0_i32_0 = arith.constant 0 : i32
    %c0_i32_1 = arith.constant 0 : i32
    return %c0_i32, %c0_i32_0 : i32, i32
  }
  func.func @transform_4(%arg0: i32) -> (i32, i32) {
    %c0_i32 = arith.constant 0 : i32
    %c0_i32_0 = arith.constant 0 : i32
    %c0_i32_1 = arith.constant 0 : i32
    return %c0_i32, %c0_i32_0 : i32, i32
  }
  func.func @transform_5(%arg0: i32) -> (i32, i32) {
    %c0_i32 = arith.constant 0 : i32
    %c0_i32_0 = arith.constant 0 : i32
    %c0_i32_1 = arith.constant 0 : i32
    return %c0_i32, %c0_i32_0 : i32, i32
  }
  func.func @transform_6(%arg0: i32) -> (i32, i32) {
    %c0_i32 = arith.constant 0 : i32
    %c0_i32_0 = arith.constant 0 : i32
    %c0_i32_1 = arith.constant 0 : i32
    return %c0_i32, %c0_i32_0 : i32, i32
  }
  func.func @transform_7(%arg0: i32) -> (i32, i32) {
    %c0_i32 = arith.constant 0 : i32
    %c0_i32_0 = arith.constant 0 : i32
    %c0_i32_1 = arith.constant 0 : i32
    return %c0_i32, %c0_i32_0 : i32, i32
  }
  func.func @transform_8(%arg0: i32) -> (i32, i32) {
    %c0_i32 = arith.constant 0 : i32
    %c0_i32_0 = arith.constant 0 : i32
    %c0_i32_1 = arith.constant 0 : i32
    return %c0_i32, %c0_i32_0 : i32, i32
  }
  func.func @transform_9(%arg0: i32) -> (i32, i32) {
    %c0_i32 = arith.constant 0 : i32
    %c0_i32_0 = arith.constant 0 : i32
    %c0_i32_1 = arith.constant 0 : i32
    return %c0_i32, %c0_i32_0 : i32, i32
  }
  func.func @transform_10(%arg0: i32) -> (i32, i32) {
    %c0_i32 = arith.constant 0 : i32
    %c0_i32_0 = arith.constant 0 : i32
    %c0_i32_1 = arith.constant 0 : i32
    return %c0_i32, %c0_i32_0 : i32, i32
  }
  func.func @transform_11(%arg0: i32) -> (i32, i32) {
    %c0_i32 = arith.constant 0 : i32
    %c0_i32_0 = arith.constant 0 : i32
    %c0_i32_1 = arith.constant 0 : i32
    return %c0_i32, %c0_i32_0 : i32, i32
  }
  func.func @transform_12(%arg0: i32) -> (i32, i32) {
    %c0_i32 = arith.constant 0 : i32
    %c0_i32_0 = arith.constant 0 : i32
    %c0_i32_1 = arith.constant 0 : i32
    return %c0_i32, %c0_i32_0 : i32, i32
  }
  func.func @transform_13(%arg0: i32) -> (i32, i32) {
    %c0_i32 = arith.constant 0 : i32
    %c0_i32_0 = arith.constant 0 : i32
    %c0_i32_1 = arith.constant 0 : i32
    return %c0_i32, %c0_i32_0 : i32, i32
  }
  func.func @transform_14(%arg0: i32) -> (i32, i32, i32) {
    %c0_i32 = arith.constant 0 : i32
    %c0_i32_0 = arith.constant 0 : i32
    %c0_i32_1 = arith.constant 0 : i32
    return %arg0, %c0_i32, %c0_i32_0 : i32, i32, i32
  }
}

module attributes {stable_mosaic.version = 11 : i64} {
  func.func @kernel(%arg0: i32, %arg1: memref<1x16x32xf32, #tpu.memory_space<vmem>>, %arg2: memref<1x16x1xf32, #tpu.memory_space<vmem>>, %arg3: memref<1x32xf32, #tpu.memory_space<vmem>>, %arg4: memref<1x32xf32, #tpu.memory_space<vmem>>, %arg5: memref<32x16xbf16, #tpu.memory_space<vmem>>, %arg6: memref<1x16xf32, #tpu.memory_space<vmem>>, %arg7: memref<1x16xf32, #tpu.memory_space<vmem>>, %arg8: memref<1x16xf32, #tpu.memory_space<vmem>>, %arg9: memref<48x16xbf16, #tpu.memory_space<vmem>>, %arg10: memref<1x16xf32, #tpu.memory_space<vmem>>, %arg11: memref<1x16xf32, #tpu.memory_space<vmem>>, %arg12: memref<1x16xf32, #tpu.memory_space<vmem>>, %arg13: memref<16x32xbf16, #tpu.memory_space<vmem>>, %arg14: memref<1x32xf32, #tpu.memory_space<vmem>>, %arg15: memref<1x16x32xf32, #tpu.memory_space<vmem>>, %arg16: memref<32x16xf32, #tpu.memory_space<vmem>>, %arg17: memref<16x48xbf16, #tpu.memory_space<vmem>>) attributes {dimension_semantics = [#tpu.dimension_semantics<parallel>], iteration_bounds = array<i64: 2>, scalar_prefetch = 0 : i64, scratch_operands = 2 : i64, tpu.core_type = #tpu.core_type<tc>, window_params = [{transform_indices = @transform_0, window_bounds = array<i64: 1, 16, 32>}, {transform_indices = @transform_1, window_bounds = array<i64: 1, 16, 1>}, {pipeline_mode = #tpu.pipeline_mode<synchronous>, transform_indices = @transform_2, window_bounds = array<i64: 1, 32>}, {pipeline_mode = #tpu.pipeline_mode<synchronous>, transform_indices = @transform_3, window_bounds = array<i64: 1, 32>}, {pipeline_mode = #tpu.pipeline_mode<synchronous>, transform_indices = @transform_4, window_bounds = array<i64: 32, 16>}, {pipeline_mode = #tpu.pipeline_mode<synchronous>, transform_indices = @transform_5, window_bounds = array<i64: 1, 16>}, {pipeline_mode = #tpu.pipeline_mode<synchronous>, transform_indices = @transform_6, window_bounds = array<i64: 1, 16>}, {pipeline_mode = #tpu.pipeline_mode<synchronous>, transform_indices = @transform_7, window_bounds = array<i64: 1, 16>}, {pipeline_mode = #tpu.pipeline_mode<synchronous>, transform_indices = @transform_8, window_bounds = array<i64: 48, 16>}, {pipeline_mode = #tpu.pipeline_mode<synchronous>, transform_indices = @transform_9, window_bounds = array<i64: 1, 16>}, {pipeline_mode = #tpu.pipeline_mode<synchronous>, transform_indices = @transform_10, window_bounds = array<i64: 1, 16>}, {pipeline_mode = #tpu.pipeline_mode<synchronous>, transform_indices = @transform_11, window_bounds = array<i64: 1, 16>}, {pipeline_mode = #tpu.pipeline_mode<synchronous>, transform_indices = @transform_12, window_bounds = array<i64: 16, 32>}, {pipeline_mode = #tpu.pipeline_mode<synchronous>, transform_indices = @transform_13, window_bounds = array<i64: 1, 32>}, {transform_indices = @transform_14, window_bounds = array<i64: 1, 16, 32>}]} {
    %c0 = arith.constant 0 : index
    %c0_0 = arith.constant 0 : index
    %c0_1 = arith.constant 0 : index
    %0 = vector.load %arg1[%c0, %c0_0, %c0_1] : memref<1x16x32xf32, #tpu.memory_space<vmem>>, vector<1x16x32xf32>
    %1 = vector.shape_cast %0 : vector<1x16x32xf32> to vector<16x32xf32>
    %c0_2 = arith.constant 0 : index
    %c0_3 = arith.constant 0 : index
    %2 = vector.load %arg3[%c0_2, %c0_3] : memref<1x32xf32, #tpu.memory_space<vmem>>, vector<1x32xf32>
    %c0_4 = arith.constant 0 : index
    %c0_5 = arith.constant 0 : index
    %3 = vector.load %arg4[%c0_4, %c0_5] : memref<1x32xf32, #tpu.memory_space<vmem>>, vector<1x32xf32>
    %cst = arith.constant dense<0.000000e+00> : vector<16xf32>
    %4 = vector.multi_reduction <add>, %1, %cst [1] : vector<16x32xf32> to vector<16xf32>
    %5 = vector.shape_cast %4 : vector<16xf32> to vector<16x1xf32>
    %cst_6 = arith.constant 3.200000e+01 : f32
    %6 = vector.broadcast %cst_6 : f32 to vector<16x1xf32>
    %7 = arith.divf %5, %6 : vector<16x1xf32>
    %8 = vector.broadcast %7 : vector<16x1xf32> to vector<16x32xf32>
    %9 = arith.subf %1, %8 : vector<16x32xf32>
    %10 = arith.mulf %9, %9 : vector<16x32xf32>
    %cst_7 = arith.constant dense<0.000000e+00> : vector<16xf32>
    %11 = vector.multi_reduction <add>, %10, %cst_7 [1] : vector<16x32xf32> to vector<16xf32>
    %12 = vector.shape_cast %11 : vector<16xf32> to vector<16x1xf32>
    %cst_8 = arith.constant 3.200000e+01 : f32
    %13 = vector.broadcast %cst_8 : f32 to vector<16x1xf32>
    %14 = arith.divf %12, %13 : vector<16x1xf32>
    %15 = vector.broadcast %7 : vector<16x1xf32> to vector<16x32xf32>
    %16 = arith.subf %1, %15 : vector<16x32xf32>
    %cst_9 = arith.constant 9.99999974E-6 : f32
    %17 = vector.broadcast %cst_9 : f32 to vector<16x1xf32>
    %18 = arith.addf %14, %17 : vector<16x1xf32>
    %19 = math.rsqrt %18 : vector<16x1xf32>
    %20 = vector.broadcast %19 : vector<16x1xf32> to vector<16x32xf32>
    %21 = arith.mulf %16, %20 : vector<16x32xf32>
    %22 = vector.broadcast %2 : vector<1x32xf32> to vector<16x32xf32>
    %23 = arith.mulf %21, %22 : vector<16x32xf32>
    %24 = vector.broadcast %3 : vector<1x32xf32> to vector<16x32xf32>
    %25 = arith.addf %23, %24 : vector<16x32xf32>
    %cst_10 = arith.constant 0.000000e+00 : f32
    %26 = vector.broadcast %cst_10 : f32 to vector<16x32xf32>
    %27 = arith.maximumf %25, %26 : vector<16x32xf32>
    %28 = arith.truncf %27 : vector<16x32xf32> to vector<16x32xbf16>
    %c0_11 = arith.constant 0 : index
    %c0_12 = arith.constant 0 : index
    %29 = vector.load %arg5[%c0_11, %c0_12] : memref<32x16xbf16, #tpu.memory_space<vmem>>, vector<32x16xbf16>
    %cst_13 = arith.constant dense<0.000000e+00> : vector<16x16xf32>
    %30 = tpu.matmul %28, %29, %cst_13 {dimension_numbers = #tpu.dot_dimension_numbers<[1], [0], [0], [1], [0, 0, 1, 1], [], []>} : vector<16x32xbf16>, vector<32x16xbf16>, vector<16x16xf32> -> vector<16x16xf32>
    %c0_14 = arith.constant 0 : index
    %c0_15 = arith.constant 0 : index
    %31 = vector.load %arg6[%c0_14, %c0_15] : memref<1x16xf32, #tpu.memory_space<vmem>>, vector<1x16xf32>
    %32 = vector.broadcast %31 : vector<1x16xf32> to vector<16x16xf32>
    %33 = arith.addf %30, %32 : vector<16x16xf32>
    %c0_16 = arith.constant 0 : index
    %c0_17 = arith.constant 0 : index
    %34 = vector.load %arg7[%c0_16, %c0_17] : memref<1x16xf32, #tpu.memory_space<vmem>>, vector<1x16xf32>
    %c0_18 = arith.constant 0 : index
    %c0_19 = arith.constant 0 : index
    %35 = vector.load %arg8[%c0_18, %c0_19] : memref<1x16xf32, #tpu.memory_space<vmem>>, vector<1x16xf32>
    %cst_20 = arith.constant dense<0.000000e+00> : vector<16xf32>
    %36 = vector.multi_reduction <add>, %33, %cst_20 [1] : vector<16x16xf32> to vector<16xf32>
    %37 = vector.shape_cast %36 : vector<16xf32> to vector<16x1xf32>
    %cst_21 = arith.constant 1.600000e+01 : f32
    %38 = vector.broadcast %cst_21 : f32 to vector<16x1xf32>
    %39 = arith.divf %37, %38 : vector<16x1xf32>
    %40 = vector.broadcast %39 : vector<16x1xf32> to vector<16x16xf32>
    %41 = arith.subf %33, %40 : vector<16x16xf32>
    %42 = arith.mulf %41, %41 : vector<16x16xf32>
    %cst_22 = arith.constant dense<0.000000e+00> : vector<16xf32>
    %43 = vector.multi_reduction <add>, %42, %cst_22 [1] : vector<16x16xf32> to vector<16xf32>
    %44 = vector.shape_cast %43 : vector<16xf32> to vector<16x1xf32>
    %cst_23 = arith.constant 1.600000e+01 : f32
    %45 = vector.broadcast %cst_23 : f32 to vector<16x1xf32>
    %46 = arith.divf %44, %45 : vector<16x1xf32>
    %47 = vector.broadcast %39 : vector<16x1xf32> to vector<16x16xf32>
    %48 = arith.subf %33, %47 : vector<16x16xf32>
    %cst_24 = arith.constant 9.99999974E-6 : f32
    %49 = vector.broadcast %cst_24 : f32 to vector<16x1xf32>
    %50 = arith.addf %46, %49 : vector<16x1xf32>
    %51 = math.rsqrt %50 : vector<16x1xf32>
    %52 = vector.broadcast %51 : vector<16x1xf32> to vector<16x16xf32>
    %53 = arith.mulf %48, %52 : vector<16x16xf32>
    %54 = vector.broadcast %34 : vector<1x16xf32> to vector<16x16xf32>
    %55 = arith.mulf %53, %54 : vector<16x16xf32>
    %56 = vector.broadcast %35 : vector<1x16xf32> to vector<16x16xf32>
    %57 = arith.addf %55, %56 : vector<16x16xf32>
    %cst_25 = arith.constant 0.000000e+00 : f32
    %58 = vector.broadcast %cst_25 : f32 to vector<16x16xf32>
    %59 = arith.maximumf %57, %58 : vector<16x16xf32>
    %c0_26 = arith.constant 0 : index
    %c0_27 = arith.constant 0 : index
    %c0_28 = arith.constant 0 : index
    %60 = vector.load %arg2[%c0_26, %c0_27, %c0_28] : memref<1x16x1xf32, #tpu.memory_space<vmem>>, vector<1x16x1xf32>
    %61 = vector.shape_cast %60 : vector<1x16x1xf32> to vector<16x1xf32>
    %62 = vector.broadcast %61 : vector<16x1xf32> to vector<16x16xf32>
    %63 = arith.mulf %59, %62 : vector<16x16xf32>
    %cst_29 = arith.constant 0.000000e+00 : f32
    %64 = vector.broadcast %cst_29 : f32 to vector<8x16xf32>
    %c0_30 = arith.constant 0 : index
    %c0_31 = arith.constant 0 : index
    %65 = vector.load %arg16[%c0_30, %c0_31] : memref<32x16xf32, #tpu.memory_space<vmem>>, vector<8x16xf32>
    tpu.vector_store %arg16[%c0_30, %c0_31], %64 {strides = array<i32>} : memref<32x16xf32, #tpu.memory_space<vmem>>, vector<8x16xf32>,
    %cst_32 = arith.constant 0.000000e+00 : f32
    %66 = vector.broadcast %cst_32 : f32 to vector<8x16xf32>
    %c24 = arith.constant 24 : index
    %c0_33 = arith.constant 0 : index
    %67 = vector.load %arg16[%c24, %c0_33] : memref<32x16xf32, #tpu.memory_space<vmem>>, vector<8x16xf32>
    tpu.vector_store %arg16[%c24, %c0_33], %66 {strides = array<i32>} : memref<32x16xf32, #tpu.memory_space<vmem>>, vector<8x16xf32>,
    %c8 = arith.constant 8 : index
    %c0_34 = arith.constant 0 : index
    %68 = vector.load %arg16[%c8, %c0_34] : memref<32x16xf32, #tpu.memory_space<vmem>>, vector<16x16xf32>
    tpu.vector_store %arg16[%c8, %c0_34], %63 {strides = array<i32>} : memref<32x16xf32, #tpu.memory_space<vmem>>, vector<16x16xf32>,
    %c6 = arith.constant 6 : index
    %c0_35 = arith.constant 0 : index
    %69 = vector.load %arg16[%c6, %c0_35] : memref<32x16xf32, #tpu.memory_space<vmem>>, vector<16x16xf32>
    %70 = arith.truncf %69 : vector<16x16xf32> to vector<16x16xbf16>
    %c0_36 = arith.constant 0 : index
    %c0_37 = arith.constant 0 : index
    %71 = vector.load %arg17[%c0_36, %c0_37] : memref<16x48xbf16, #tpu.memory_space<vmem>>, vector<16x16xbf16>
    tpu.vector_store %arg17[%c0_36, %c0_37], %70 {strides = array<i32>} : memref<16x48xbf16, #tpu.memory_space<vmem>>, vector<16x16xbf16>,
    %c8_38 = arith.constant 8 : index
    %c0_39 = arith.constant 0 : index
    %72 = vector.load %arg16[%c8_38, %c0_39] : memref<32x16xf32, #tpu.memory_space<vmem>>, vector<16x16xf32>
    %73 = arith.truncf %72 : vector<16x16xf32> to vector<16x16xbf16>
    %c0_40 = arith.constant 0 : index
    %c16 = arith.constant 16 : index
    %74 = vector.load %arg17[%c0_40, %c16] : memref<16x48xbf16, #tpu.memory_space<vmem>>, vector<16x16xbf16>
    tpu.vector_store %arg17[%c0_40, %c16], %73 {strides = array<i32>} : memref<16x48xbf16, #tpu.memory_space<vmem>>, vector<16x16xbf16>,
    %c10 = arith.constant 10 : index
    %c0_41 = arith.constant 0 : index
    %75 = vector.load %arg16[%c10, %c0_41] : memref<32x16xf32, #tpu.memory_space<vmem>>, vector<16x16xf32>
    %76 = arith.truncf %75 : vector<16x16xf32> to vector<16x16xbf16>
    %c0_42 = arith.constant 0 : index
    %c32 = arith.constant 32 : index
    %77 = vector.load %arg17[%c0_42, %c32] : memref<16x48xbf16, #tpu.memory_space<vmem>>, vector<16x16xbf16>
    tpu.vector_store %arg17[%c0_42, %c32], %76 {strides = array<i32>} : memref<16x48xbf16, #tpu.memory_space<vmem>>, vector<16x16xbf16>,
    %c0_43 = arith.constant 0 : index
    %c0_44 = arith.constant 0 : index
    %78 = vector.load %arg17[%c0_43, %c0_44] : memref<16x48xbf16, #tpu.memory_space<vmem>>, vector<16x48xbf16>
    %c0_45 = arith.constant 0 : index
    %c0_46 = arith.constant 0 : index
    %79 = vector.load %arg9[%c0_45, %c0_46] : memref<48x16xbf16, #tpu.memory_space<vmem>>, vector<48x16xbf16>
    %cst_47 = arith.constant dense<0.000000e+00> : vector<16x16xf32>
    %80 = tpu.matmul %78, %79, %cst_47 {dimension_numbers = #tpu.dot_dimension_numbers<[1], [0], [0], [1], [0, 0, 1, 1], [], []>} : vector<16x48xbf16>, vector<48x16xbf16>, vector<16x16xf32> -> vector<16x16xf32>
    %c0_48 = arith.constant 0 : index
    %c0_49 = arith.constant 0 : index
    %81 = vector.load %arg10[%c0_48, %c0_49] : memref<1x16xf32, #tpu.memory_space<vmem>>, vector<1x16xf32>
    %82 = vector.broadcast %81 : vector<1x16xf32> to vector<16x16xf32>
    %83 = arith.addf %80, %82 : vector<16x16xf32>
    %c0_50 = arith.constant 0 : index
    %c0_51 = arith.constant 0 : index
    %84 = vector.load %arg11[%c0_50, %c0_51] : memref<1x16xf32, #tpu.memory_space<vmem>>, vector<1x16xf32>
    %c0_52 = arith.constant 0 : index
    %c0_53 = arith.constant 0 : index
    %85 = vector.load %arg12[%c0_52, %c0_53] : memref<1x16xf32, #tpu.memory_space<vmem>>, vector<1x16xf32>
    %cst_54 = arith.constant dense<0.000000e+00> : vector<16xf32>
    %86 = vector.multi_reduction <add>, %83, %cst_54 [1] : vector<16x16xf32> to vector<16xf32>
    %87 = vector.shape_cast %86 : vector<16xf32> to vector<16x1xf32>
    %cst_55 = arith.constant 1.600000e+01 : f32
    %88 = vector.broadcast %cst_55 : f32 to vector<16x1xf32>
    %89 = arith.divf %87, %88 : vector<16x1xf32>
    %90 = vector.broadcast %89 : vector<16x1xf32> to vector<16x16xf32>
    %91 = arith.subf %83, %90 : vector<16x16xf32>
    %92 = arith.mulf %91, %91 : vector<16x16xf32>
    %cst_56 = arith.constant dense<0.000000e+00> : vector<16xf32>
    %93 = vector.multi_reduction <add>, %92, %cst_56 [1] : vector<16x16xf32> to vector<16xf32>
    %94 = vector.shape_cast %93 : vector<16xf32> to vector<16x1xf32>
    %cst_57 = arith.constant 1.600000e+01 : f32
    %95 = vector.broadcast %cst_57 : f32 to vector<16x1xf32>
    %96 = arith.divf %94, %95 : vector<16x1xf32>
    %97 = vector.broadcast %89 : vector<16x1xf32> to vector<16x16xf32>
    %98 = arith.subf %83, %97 : vector<16x16xf32>
    %cst_58 = arith.constant 9.99999974E-6 : f32
    %99 = vector.broadcast %cst_58 : f32 to vector<16x1xf32>
    %100 = arith.addf %96, %99 : vector<16x1xf32>
    %101 = math.rsqrt %100 : vector<16x1xf32>
    %102 = vector.broadcast %101 : vector<16x1xf32> to vector<16x16xf32>
    %103 = arith.mulf %98, %102 : vector<16x16xf32>
    %104 = vector.broadcast %84 : vector<1x16xf32> to vector<16x16xf32>
    %105 = arith.mulf %103, %104 : vector<16x16xf32>
    %106 = vector.broadcast %85 : vector<1x16xf32> to vector<16x16xf32>
    %107 = arith.addf %105, %106 : vector<16x16xf32>
    %cst_59 = arith.constant 0.000000e+00 : f32
    %108 = vector.broadcast %cst_59 : f32 to vector<16x16xf32>
    %109 = arith.maximumf %107, %108 : vector<16x16xf32>
    %110 = arith.truncf %109 : vector<16x16xf32> to vector<16x16xbf16>
    %c0_60 = arith.constant 0 : index
    %c0_61 = arith.constant 0 : index
    %111 = vector.load %arg13[%c0_60, %c0_61] : memref<16x32xbf16, #tpu.memory_space<vmem>>, vector<16x32xbf16>
    %cst_62 = arith.constant dense<0.000000e+00> : vector<16x32xf32>
    %112 = tpu.matmul %110, %111, %cst_62 {dimension_numbers = #tpu.dot_dimension_numbers<[1], [0], [0], [1], [0, 0, 1, 1], [], []>} : vector<16x16xbf16>, vector<16x32xbf16>, vector<16x32xf32> -> vector<16x32xf32>
    %c0_63 = arith.constant 0 : index
    %c0_64 = arith.constant 0 : index
    %113 = vector.load %arg14[%c0_63, %c0_64] : memref<1x32xf32, #tpu.memory_space<vmem>>, vector<1x32xf32>
    %114 = vector.broadcast %113 : vector<1x32xf32> to vector<16x32xf32>
    %115 = arith.addf %112, %114 : vector<16x32xf32>
    %116 = arith.addf %115, %1 : vector<16x32xf32>
    %c0_65 = arith.constant 0 : index
    %c0_66 = arith.constant 0 : index
    %c0_67 = arith.constant 0 : index
    %117 = vector.load %arg15[%c0_65, %c0_66, %c0_67] : memref<1x16x32xf32, #tpu.memory_space<vmem>>, vector<1x16x32xf32>
    %118 = vector.shape_cast %117 : vector<1x16x32xf32> to vector<16x32xf32>
    %119 = vector.shape_cast %116 : vector<16x32xf32> to vector<1x16x32xf32>
    tpu.vector_store %arg15[%c0_65, %c0_66, %c0_67], %119 {strides = array<i32>} : memref<1x16x32xf32, #tpu.memory_space<vmem>>, vector<1x16x32xf32>,
    return
  }
  func.func @transform_0(%arg0: i32) -> (i32, i32, i32) {
    %c0_i32 = arith.constant 0 : i32
    %c0_i32_0 = arith.constant 0 : i32
    %c0_i32_1 = arith.constant 0 : i32
    return %arg0, %c0_i32, %c0_i32_0 : i32, i32, i32
  }
  func.func @transform_1(%arg0: i32) -> (i32, i32, i32) {
    %c0_i32 = arith.constant 0 : i32
    %c0_i32_0 = arith.constant 0 : i32
    %c0_i32_1 = arith.constant 0 : i32
    return %arg0, %c0_i32, %c0_i32_0 : i32, i32, i32
  }
  func.func @transform_2(%arg0: i32) -> (i32, i32) {
    %c0_i32 = arith.constant 0 : i32
    %c0_i32_0 = arith.constant 0 : i32
    %c0_i32_1 = arith.constant 0 : i32
    return %c0_i32, %c0_i32_0 : i32, i32
  }
  func.func @transform_3(%arg0: i32) -> (i32, i32) {
    %c0_i32 = arith.constant 0 : i32
    %c0_i32_0 = arith.constant 0 : i32
    %c0_i32_1 = arith.constant 0 : i32
    return %c0_i32, %c0_i32_0 : i32, i32
  }
  func.func @transform_4(%arg0: i32) -> (i32, i32) {
    %c0_i32 = arith.constant 0 : i32
    %c0_i32_0 = arith.constant 0 : i32
    %c0_i32_1 = arith.constant 0 : i32
    return %c0_i32, %c0_i32_0 : i32, i32
  }
  func.func @transform_5(%arg0: i32) -> (i32, i32) {
    %c0_i32 = arith.constant 0 : i32
    %c0_i32_0 = arith.constant 0 : i32
    %c0_i32_1 = arith.constant 0 : i32
    return %c0_i32, %c0_i32_0 : i32, i32
  }
  func.func @transform_6(%arg0: i32) -> (i32, i32) {
    %c0_i32 = arith.constant 0 : i32
    %c0_i32_0 = arith.constant 0 : i32
    %c0_i32_1 = arith.constant 0 : i32
    return %c0_i32, %c0_i32_0 : i32, i32
  }
  func.func @transform_7(%arg0: i32) -> (i32, i32) {
    %c0_i32 = arith.constant 0 : i32
    %c0_i32_0 = arith.constant 0 : i32
    %c0_i32_1 = arith.constant 0 : i32
    return %c0_i32, %c0_i32_0 : i32, i32
  }
  func.func @transform_8(%arg0: i32) -> (i32, i32) {
    %c0_i32 = arith.constant 0 : i32
    %c0_i32_0 = arith.constant 0 : i32
    %c0_i32_1 = arith.constant 0 : i32
    return %c0_i32, %c0_i32_0 : i32, i32
  }
  func.func @transform_9(%arg0: i32) -> (i32, i32) {
    %c0_i32 = arith.constant 0 : i32
    %c0_i32_0 = arith.constant 0 : i32
    %c0_i32_1 = arith.constant 0 : i32
    return %c0_i32, %c0_i32_0 : i32, i32
  }
  func.func @transform_10(%arg0: i32) -> (i32, i32) {
    %c0_i32 = arith.constant 0 : i32
    %c0_i32_0 = arith.constant 0 : i32
    %c0_i32_1 = arith.constant 0 : i32
    return %c0_i32, %c0_i32_0 : i32, i32
  }
  func.func @transform_11(%arg0: i32) -> (i32, i32) {
    %c0_i32 = arith.constant 0 : i32
    %c0_i32_0 = arith.constant 0 : i32
    %c0_i32_1 = arith.constant 0 : i32
    return %c0_i32, %c0_i32_0 : i32, i32
  }
  func.func @transform_12(%arg0: i32) -> (i32, i32) {
    %c0_i32 = arith.constant 0 : i32
    %c0_i32_0 = arith.constant 0 : i32
    %c0_i32_1 = arith.constant 0 : i32
    return %c0_i32, %c0_i32_0 : i32, i32
  }
  func.func @transform_13(%arg0: i32) -> (i32, i32) {
    %c0_i32 = arith.constant 0 : i32
    %c0_i32_0 = arith.constant 0 : i32
    %c0_i32_1 = arith.constant 0 : i32
    return %c0_i32, %c0_i32_0 : i32, i32
  }
  func.func @transform_14(%arg0: i32) -> (i32, i32, i32) {
    %c0_i32 = arith.constant 0 : i32
    %c0_i32_0 = arith.constant 0 : i32
    %c0_i32_1 = arith.constant 0 : i32
    return %arg0, %c0_i32, %c0_i32_0 : i32, i32, i32
  }
}

module attributes {stable_mosaic.version = 11 : i64} {
  func.func @kernel(%arg0: i32, %arg1: memref<32x32xf32, #tpu.memory_space<vmem>>, %arg2: memref<32x128xbf16, #tpu.memory_space<vmem>>, %arg3: memref<1x128xf32, #tpu.memory_space<vmem>>, %arg4: memref<32x128xf32, #tpu.memory_space<vmem>>) attributes {dimension_semantics = [#tpu.dimension_semantics<parallel>], iteration_bounds = array<i64: 1>, scalar_prefetch = 0 : i64, scratch_operands = 0 : i64, tpu.core_type = #tpu.core_type<tc>, window_params = [{transform_indices = @transform_0, window_bounds = array<i64: 32, 32>}, {pipeline_mode = #tpu.pipeline_mode<synchronous>, transform_indices = @transform_1, window_bounds = array<i64: 32, 128>}, {pipeline_mode = #tpu.pipeline_mode<synchronous>, transform_indices = @transform_2, window_bounds = array<i64: 1, 128>}, {transform_indices = @transform_3, window_bounds = array<i64: 32, 128>}]} {
    %c0 = arith.constant 0 : index
    %c0_0 = arith.constant 0 : index
    %0 = vector.load %arg1[%c0, %c0_0] : memref<32x32xf32, #tpu.memory_space<vmem>>, vector<32x32xf32>
    %1 = arith.truncf %0 : vector<32x32xf32> to vector<32x32xbf16>
    %c0_1 = arith.constant 0 : index
    %c0_2 = arith.constant 0 : index
    %2 = vector.load %arg2[%c0_1, %c0_2] : memref<32x128xbf16, #tpu.memory_space<vmem>>, vector<32x128xbf16>
    %cst = arith.constant dense<0.000000e+00> : vector<32x128xf32>
    %3 = tpu.matmul %1, %2, %cst {dimension_numbers = #tpu.dot_dimension_numbers<[1], [0], [0], [1], [0, 0, 1, 1], [], []>} : vector<32x32xbf16>, vector<32x128xbf16>, vector<32x128xf32> -> vector<32x128xf32>
    %c0_3 = arith.constant 0 : index
    %c0_4 = arith.constant 0 : index
    %4 = vector.load %arg3[%c0_3, %c0_4] : memref<1x128xf32, #tpu.memory_space<vmem>>, vector<1x128xf32>
    %5 = vector.broadcast %4 : vector<1x128xf32> to vector<32x128xf32>
    %6 = arith.addf %3, %5 : vector<32x128xf32>
    %c0_5 = arith.constant 0 : index
    %c0_6 = arith.constant 0 : index
    %7 = vector.load %arg4[%c0_5, %c0_6] : memref<32x128xf32, #tpu.memory_space<vmem>>, vector<32x128xf32>
    tpu.vector_store %arg4[%c0_5, %c0_6], %6 {strides = array<i32>} : memref<32x128xf32, #tpu.memory_space<vmem>>, vector<32x128xf32>,
    return
  }
  func.func @transform_0(%arg0: i32) -> (i32, i32) {
    %c0_i32 = arith.constant 0 : i32
    %c0_i32_0 = arith.constant 0 : i32
    return %arg0, %c0_i32 : i32, i32
  }
  func.func @transform_1(%arg0: i32) -> (i32, i32) {
    %c0_i32 = arith.constant 0 : i32
    %c0_i32_0 = arith.constant 0 : i32
    %c0_i32_1 = arith.constant 0 : i32
    return %c0_i32, %c0_i32_0 : i32, i32
  }
  func.func @transform_2(%arg0: i32) -> (i32, i32) {
    %c0_i32 = arith.constant 0 : i32
    %c0_i32_0 = arith.constant 0 : i32
    %c0_i32_1 = arith.constant 0 : i32
    return %c0_i32, %c0_i32_0 : i32, i32
  }
  func.func @transform_3(%arg0: i32) -> (i32, i32) {
    %c0_i32 = arith.constant 0 : i32
    %c0_i32_0 = arith.constant 0 : i32
    return %arg0, %c0_i32 : i32, i32
  }
}

</mosaic_0001>

<bundles_post_ra>
// kernel: forward.11
= control target key start
LH: loop header
LB: loop body
LE: loop exit
PB: predicated region body
PF: predicated region fallthrough
CT: control target
= control target key end

     0   :  { %s1254_s0 = inlined_call_operand.hbm [shape: f32[2,64,8], index: 0, kind: input, shape index: {}]   ;;  %s1255_s1 = inlined_call_operand.hbm [shape: f32[2,64,1], index: 1, kind: input, shape index: {}]   ;;  %s1256_s2 = inlined_call_operand.hbm [shape: f32[1,8], index: 2, kind: input, shape index: {}]   ;;  %s1257_s3 = inlined_call_operand.<no memory space> [shape: f32[1,1], index: 3, kind: input, shape index: {}]   ;;  %s1258_s4 = inlined_call_operand.hbm [shape: f32[2,1,8], index: 4, kind: output, shape index: {}]  }
   0x1   :  { %v9_v0 = vstv %s1257_s3 }
   0x2   :  { %10 = vst [vmem:[#allocation2] sm:$0x1] %v9_v0 }
   0x3   :  { %11 = vsyncpa [#allocation4], 0 }
   0x4   :  { %13 = vsyncpa [#allocation4 + $0x1], 0 }
   0x5   :  { %14 = vsyncpa [#allocation7], 0 }
   0x6   :  { %16 = vsyncpa [#allocation7 + $0x1], 0 }
   0x7   :  { %17 = vsyncpa [#allocation5], 0 }
   0x8   :  { %19 = vsyncpa [#allocation5 + $0x1], 0  ;;  %s919_s17 = smov 0   ;;  %s921_s18 = smov 0  }
   0x9   :  { %s923_s19 = smov 0   ;;  %s925_s20 = smov 0  }
   0xa LB: > { %s940_s3 = sadd.s32 4294967295, %s882_s20   ;;  %s614_s21 = sadd.s32 4294967294, %s882_s20   ;;  %s882_s20 = sphi %s925_s20, %s1283_s20   ;;  %s878_s19 = sphi %s923_s19, %s1282_s19   ;;  %s874_s18 = sphi %s921_s18, %s1281_s18   ;;  %s870_s17 = sphi %s919_s17, %s1280_s17  }
   0xb   : > { %s944_s22 = sadd.s32 1, %s882_s20   ;;  %s32_s23 = sadd.s32 1, %s878_s19 }
   0xc   : > { %s29_s24 = ssub.s32 %s882_s20, %s944_s22  ;;  %p39_p0 = scmp.ne.s32.totalorder %s878_s19, %s874_s18 }
   0xd   : > { %p30_p1 = scmp.eq.s32.totalorder %s29_s24, 0  ;;  %p40_p2 = scmp.eq.s32.totalorder %s882_s20, 0 }
   0xe   : > { %p45_p3 = scmp.ne.s32.totalorder %s874_s18, %s870_s17  ;;  %p1259_p4 = scmp.eq.s32.totalorder %s940_s3, 0 }
   0xf   : > { %s956_s25 = scalar_select %p30_p1, %s878_s19, %s32_s23  }
  0x10   : > { %p958_p5 = por %p40_p2, %p39_p0  ;;  %p964_p6 = por %p1259_p4, %p45_p3 }
  0x11   : > { %p137_p7 = scmp.eq.s32.totalorder %s940_s3, 1  ;;  %p143_p8 = scmp.eq.s32.totalorder %s614_s21, 1 }
  0x12   : > { %s1265_s27 = scalar_select %p964_p6, 1, 0 }
  0x13   : > { %p615_p9 = scmp.ge.s32.totalorder %s882_s20, 1  ;;  %p150_p10 = scmp.lt.s32.totalorder %s882_s20, 3 }
  0x14   : > { %p971_p11 = por %p137_p7, %p39_p0  ;;  %p975_p12 = por %p143_p8, %p45_p3 }
  0x15   : > { %p979_p13 = pnand %p615_p9, %p150_p10  ;;  %s884_s5 = smov [#allocation8]  }
  0x16   : > { %s1266_s28 = scalar_select %p971_p11, 1, 0 }
  0x17   : > { %s1267_s29 = scalar_select %p975_p12, 1, 0 }
  0x18   : > { %s1268_s30 = scalar_select %p979_p13, 1, 0 }
  0x19   : > { %p645_p2 = pneg %p979_p13  ;;  %s163_s6 = sshll.u32 %s884_s5, 4  ;;  %s164_s6 = int_to_ptr.vmem [resolvable:$true] %s163_s6 }
  0x1a   : > { %p661_p4 = scmp.lt.s32.totalorder %s882_s20, 2  ;;  %p1269_p0 = scmp.eq.s32.totalorder %s940_s3, 0 }
  0x1b   : > { %s177_s8 = sand.u32 1, %s878_s19   ;;  %s720_s13 = scalar_lea.hbm %s1256_s2, 16 }
  0x1c   : > { %p989_p7 = pnand %p645_p2, %p1269_p0  ;;  %p996_p3 = pnand %p661_p4, %p958_p5 }
  0x1d   : > { %s1000_s10 = sshll.u32 %s177_s8, 6  ;;  %p721_p8 = scmp.ne.s32.totalorder %s1256_s2, %s720_s13 }
  0x1e   : > { %s1271_s9 = scalar_select %p996_p3, 1, 0 }
  0x1f   : > { %p722_p9 = pneg %p989_p7  ;;  %p727_p4 = scmp.lt.u32.totalorder %s720_s13, %s1256_s2 }
  0x21   : > { %p723_p10 = pnand %p722_p9, %p721_p8 }
  0x23   : > { %p724_p2 = pneg %p723_p10 }
  0x25   : > { %p729_p5 = pnand %p727_p4, %p724_p2 }
  0x27   : > { %732 = shalt.err (!%p729_p5)
}
  0x28   : > { %s733_s23 = scalar_lea.vmem %s164_s6, 16  ;;  %s740_s24 = scalar_lea.vmem %s164_s6, 32 }
  0x29   : > { %p734_p0 = scmp.ne.s32.totalorder %s164_s6, %s733_s23  ;;  %p741_p11 = scmp.lt.s32.totalorder %s164_s6, %s164_s6 }
  0x2a   : > { %p742_p6 = scmp.lt.s32.totalorder %s740_s24, %s733_s23 }
  0x2b   : > { %p736_p1 = pnand %p734_p0, %p722_p9 }
  0x2c   : > { %p743_p13 = por %p742_p6, %p741_p11 }
  0x2d   : > { %p737_p12 = pneg %p736_p1 }
  0x2f   : > { %p744_p3 = pnand %p743_p13, %p737_p12 }
  0x31   : > { %747 = shalt.err (!%p744_p3)
}
  0x32   : > { %648 = dma.hbm_to_vmem [thread:$0]  (!%p989_p7), %s1256_s2, 16, %s164_s6, [#allocation7]  }
  0x33   : > { %s633_s11 = sshll.u32 %s882_s20, 10  ;;  %s181_s12 = scalar_lea.vmem [#allocation3], %s1000_s10 }
  0x34   : > { %s188_s13 = sshll.u32 %s181_s12, 4  ;;  %s1025_s16 = scalar_lea.hbm %s1254_s0, %s633_s11  ;;  %s1027_s13 = int_to_ptr.vmem [resolvable:$true] %s188_s13 }
  0x35   : > { %s1029_s7 = scalar_lea.sflag [#allocation4], %s177_s8  ;;  %s748_s21 = scalar_lea.hbm %s1025_s16, 1024 }
  0x36   : > { %p749_p6 = scmp.ne.s32.totalorder %s1025_s16, %s748_s21  ;;  %p1272_p11 = scmp.ne.s32.totalorder %s1271_s9, 0 }
  0x37   : > { %s753_s24 = scalar_lea.hbm %s1254_s0, 2048  ;;  %p754_p7 = scmp.lt.u32.totalorder %s1025_s16, %s1254_s0 }
  0x38   : > { %p750_p12 = pneg %p1272_p11  ;;  %p755_p3 = scmp.lt.u32.totalorder %s753_s24, %s748_s21 }
  0x39   : > { %p757_p9 = scmp.lt.u32.totalorder %s748_s21, %s1025_s16 }
  0x3a   : > { %p751_p13 = pnand %p750_p12, %p749_p6  ;;  %p756_p8 = por %p755_p3, %p754_p7 }
  0x3c   : > { %p752_p1 = pneg %p751_p13  ;;  %p758_p10 = por %p757_p9, %p756_p8 }
  0x3e   : > { %p759_p2 = pnand %p758_p10, %p752_p1 }
  0x40   : > { %762 = shalt.err (!%p759_p2)
}
  0x41   : > { %s763_s8 = scalar_lea.vmem %s1027_s13, 1024  ;;  %s885_s12 = smov [#allocation3]  }
  0x42   : > { %p764_p4 = scmp.ne.s32.totalorder %s1027_s13, %s763_s8  ;;  %s768_s14 = sshll.u32 %s885_s12, 4  ;;  %s769_s14 = int_to_ptr.vmem [resolvable:$false] %s768_s14 }
  0x43   : > { %s770_s15 = scalar_lea.vmem %s769_s14, 2048  ;;  %p771_p6 = scmp.lt.s32.totalorder %s1027_s13, %s769_s14 }
  0x44   : > { %p766_p5 = pnand %p764_p4, %p750_p12  ;;  %p772_p13 = scmp.lt.s32.totalorder %s770_s15, %s763_s8 }
  0x46   : > { %p767_p0 = pneg %p766_p5  ;;  %p773_p7 = por %p772_p13, %p771_p6 }
  0x48   : > { %p774_p3 = pnand %p773_p7, %p767_p0 }
  0x4a   : > { %777 = shalt.err (!%p774_p3)
}
  0x4b   : > { %s886_s21 = smov 128   ;;  %s887_s6 = smov 8  }
  0x4c   : > { %652 = dma.hbm_to_vmem [thread:$0]  (!%p1272_p11), %s1025_s16, 1024, %s1027_s13, %s1029_s7, %s886_s21, %s886_s21, %s887_s6  }
  0x4d   : > { %s1065_s26 = scalar_lea.hbm %s1255_s1, %s633_s11  ;;  %s202_s5 = scalar_lea.vmem [#allocation6], %s1000_s10 }
  0x4e   : > { %s209_s8 = sshll.u32 %s202_s5, 4  ;;  %s198_s12 = sand.u32 1, %s882_s20   ;;  %s1069_s8 = int_to_ptr.vmem [resolvable:$true] %s209_s8 }
  0x4f   : > { %s1071_s14 = scalar_lea.sflag [#allocation7], %s198_s12  ;;  %s778_s15 = scalar_lea.hbm %s1065_s26, 1024 }
  0x50   : > { %p779_p1 = scmp.ne.s32.totalorder %s1065_s26, %s778_s15  ;;  %s783_s16 = scalar_lea.hbm %s1255_s1, 2048 }
  0x51   : > { %p784_p10 = scmp.lt.u32.totalorder %s1065_s26, %s1255_s1  ;;  %p785_p2 = scmp.lt.u32.totalorder %s783_s16, %s778_s15 }
  0x52   : > { %p781_p8 = pnand %p779_p1, %p750_p12  ;;  %p787_p5 = scmp.lt.u32.totalorder %s778_s15, %s1065_s26 }
  0x53   : > { %p786_p4 = por %p785_p2, %p784_p10 }
  0x54   : > { %p782_p9 = pneg %p781_p8 }
  0x55   : > { %p788_p0 = por %p787_p5, %p786_p4 }
  0x57   : > { %p789_p6 = pnand %p788_p0, %p782_p9 }
  0x59   : > { %792 = shalt.err (!%p789_p6)
}
  0x5a   : > { %s793_s10 = scalar_lea.vmem %s1069_s8, 1024  ;;  %s888_s24 = smov [#allocation6]  }
  0x5b   : > { %p794_p13 = scmp.ne.s32.totalorder %s1069_s8, %s793_s10  ;;  %s798_s5 = sshll.u32 %s888_s24, 4  ;;  %s799_s5 = int_to_ptr.vmem [resolvable:$false] %s798_s5 }
  0x5c   : > { %s800_s12 = scalar_lea.vmem %s799_s5, 2048  ;;  %p801_p1 = scmp.lt.s32.totalorder %s1069_s8, %s799_s5 }
  0x5d   : > { %p796_p7 = pnand %p794_p13, %p750_p12  ;;  %p802_p8 = scmp.lt.s32.totalorder %s800_s12, %s793_s10 }
  0x5f   : > { %p797_p3 = pneg %p796_p7  ;;  %p803_p10 = por %p802_p8, %p801_p1 }
  0x61   : > { %p804_p2 = pnand %p803_p10, %p797_p3 }
  0x63   : > { %807 = shalt.err (!%p804_p2)
}
  0x64   : > { %655 = dma.hbm_to_vmem [thread:$0]  (!%p1272_p11), %s1065_s26, 1024, %s1069_s8, %s1071_s14, %s886_s21, %s886_s21, %s887_s6  }
  0x65   : > { %p1273_p12 = scmp.ne.s32.totalorder %s1268_s30, 0 }
  0x66   : > { %s1103_s15 = sand.u32 (!%p1273_p12), 1, %s874_s18   ;;  %p1274_p9 = scmp.ne.s32.totalorder (!%p1273_p12), %s1265_s27, 0 }
  0x67   : > { %221 = sbr.rel (%p1273_p12) target bundleno = 537 (0x219), region = 36  ;;  %s625_s13 = sshll.u32 (!%p1273_p12), %s1103_s15, 6 }
  0x68   : > { %s224_s11 = scalar_lea.sflag (!%p1273_p12), [#allocation4], %s1103_s15  ;;  %s1107_s16 = scalar_lea.vmem (!%p1273_p12), [#allocation3], %s625_s13 }
  0x6e   : > { %853 = dma.done.wait (%p1274_p9), %s224_s11, 1024  }
  0x6f   : > { %855 = vsyncadd (%p1274_p9), %s224_s11, 4294966272  ;;  %s232_s9 = sand.u32 1, %s940_s3   ;;  %s1114_s21 = scalar_lea.vmem [#allocation6], %s625_s13 }
  0x70   : > { %s233_s30 = scalar_lea.sflag [#allocation7], %s232_s9 }
  0x71   : > { %857 = dma.done.wait (%p1274_p9), %s233_s30, 1024  }
  0x72   : > { %859 = vsyncadd (%p1274_p9), %s233_s30, 4294966272  ;;  %p1275_p11 = scmp.eq.s32.totalorder %s940_s3, 0 }
  0x74   : > { %861 = dma.done.wait (%p1275_p11), [#allocation7], 16   ;;  %p1276_p4 = pmov %p1275_p11 }
  0x75   : > { %v1125_v1 = vld [vmem:[%s1107_s16 + $0x10] sm:$0xff]  ;;  %v628_v2 = vld [vmem:[#allocation8] ss:$0 sm:$0xff]  ;;  %vm292_vm0 = vcmask 64512   ;;  %v1133_v6 = vld [vmem:[%s1107_s16 + $0x18] sm:$0xff]  ;;  %v889_v26 = vmov 0  }
  0x76   : > { %863 = vsyncadd (%p1276_p4), [#allocation7], 4294967280  ;;  %v1128_v3 = vld [vmem:[%s1107_s16] sm:$0xff]  ;;  %v286_v4 = vmul.f32 %v628_v2, %v1125_v1  ;;  %v1136_v7 = vld [vmem:[%s1107_s16 + $0x8] sm:$0xff]  ;;  %v287_v8 = vmul.f32 %v628_v2, %v1133_v6  ;;  %701 = vset.pattern.permute.xlu1 %v889_v26  ;;  %700 = vset.pattern.permute.xlu0 %v889_v26  ;;  %vm356_vm6 = vcmask 7168   ;;  %s630_s27 = sshll.u32 %s940_s3, 4 }
  0x77   : > { %v284_v5 = vmul.f32 %v628_v2, %v1128_v3  ;;  %v285_v9 = vmul.f32 %v628_v2, %v1136_v7  ;;  %v1141_v10 = vld [vmem:[%s1107_s16 + $0x28] sm:$0xff]  ;;  %v1144_v11 = vld [vmem:[%s1107_s16 + $0x20] sm:$0xff]  ;;  %v1153_v18 = vld [vmem:[%s1107_s16 + $0x38] sm:$0xff]  ;;  %s268_s6 = scalar_lea.vmem [#allocation9], %s1103_s15  ;;  %vm501_vm10 = vcmask 57344   ;;  %s1210_s7 = scalar_lea.hbm %s1258_s4, %s630_s27 }
  0x78   : > { %v299_v12 = vsel %vm292_vm0, %v286_v4, 0.0  ;;  %v302_v14 = vsel %vm292_vm0, %v287_v8, 0.0  ;;  %v289_v16 = vmul.f32 %v628_v2, %v1141_v10  ;;  %v288_v17 = vmul.f32 %v628_v2, %v1144_v11  ;;  %v1156_v19 = vld [vmem:[%s1107_s16 + $0x30] sm:$0xff]  ;;  %v629_v29 = vld [vmem:[#allocation2] ss:$0 sm:$0xff]  ;;  %v332_v30 = vld [vmem:[%s1114_s21] sm:$0xff] }
  0x79   : > { %v293_v13 = vsel %vm292_vm0, %v284_v5, 0.0  ;;  %300 = vadd.xlane.f32.xlu1 %v299_v12  ;;  %v296_v15 = vsel %vm292_vm0, %v285_v9, 0.0  ;;  %v291_v22 = vmul.f32 %v628_v2, %v1153_v18  ;;  %v290_v23 = vmul.f32 %v628_v2, %v1156_v19  ;;  %v333_v33 = vld [vmem:[%s1114_s21 + $0x8] sm:$0xff]  ;;  %v336_v35 = vld [vmem:[%s1114_s21 + $0x20] sm:$0xff]  ;;  %v334_v37 = vld [vmem:[%s1114_s21 + $0x10] sm:$0xff]  ;;  %s516_s26 = sshll.u32 %s268_s6, 4  ;;  %s1212_s26 = int_to_ptr.vmem [resolvable:$true] %s516_s26 }
  0x7a   : > { %294 = vadd.xlane.f32.xlu0 %v293_v13  ;;  %v308_v20 = vsel %vm292_vm0, %v289_v16, 0.0  ;;  %v305_v21 = vsel %vm292_vm0, %v288_v17, 0.0  ;;  %v337_v34 = vld [vmem:[%s1114_s21 + $0x28] sm:$0xff]  ;;  %vm340_vm1 = vcmp.gt.f32.partialorder %v332_v30, 0.0  ;;  %v335_v38 = vld [vmem:[%s1114_s21 + $0x18] sm:$0xff]  ;;  %vm341_vm2 = vcmp.gt.f32.partialorder %v333_v33, 0.0 }
  0x7b   : > { %v314_v24 = vsel %vm292_vm0, %v291_v22, 0.0  ;;  %v311_v25 = vsel %vm292_vm0, %v290_v23, 0.0  ;;  %vm345_vm3 = vcmp.gt.f32.partialorder %v337_v34, 0.0  ;;  %vm344_vm4 = vcmp.gt.f32.partialorder %v336_v35, 0.0  ;;  %v339_v46 = vld [vmem:[%s1114_s21 + $0x38] sm:$0xff]  ;;  %v338_v47 = vld [vmem:[%s1114_s21 + $0x30] sm:$0xff] }
  0x7c   : > { %vm342_vm5 = vcmp.gt.f32.partialorder %v334_v37, 0.0  ;;  %vm343_vm7 = vcmp.gt.f32.partialorder %v335_v38, 0.0  ;;  %vm347_vm8 = vcmp.gt.f32.partialorder %v339_v46, 0.0  ;;  %vm346_vm9 = vcmp.gt.f32.partialorder %v338_v47, 0.0  ;;  %s504_s23 = scalar_lea.sflag [#allocation5], %s1103_s15  ;;  %s808_s10 = scalar_lea.vmem %s1212_s26, 16 }
  0x7d   : > { %303 = vadd.xlane.f32.xlu1 %v302_v14  ;;  %p809_p5 = scmp.ne.s32.totalorder %s1212_s26, %s808_s10  ;;  %p1277_p0 = scmp.ne.s32.totalorder %s1266_s28, 0 }
  0x7e   : > { %297 = vadd.xlane.f32.xlu0 %v296_v15  ;;  %s890_s3 = smov [#allocation9]  }
  0x7f   : > { %p810_p6 = pnand %p809_p5, %p1277_p0  ;;  %s812_s24 = sshll.u32 %s890_s3, 4  ;;  %s813_s24 = int_to_ptr.vmem [resolvable:$false] %s812_s24 }
  0x80   : > { %s814_s5 = scalar_lea.vmem %s813_s24, 32  ;;  %p815_p7 = scmp.lt.s32.totalorder %s1212_s26, %s813_s24 }
  0x81   : > { %309 = vadd.xlane.f32.xlu1 %v308_v20  ;;  %p811_p13 = pneg %p810_p6  ;;  %p816_p3 = scmp.lt.s32.totalorder %s814_s5, %s808_s10 }
  0x82   : > { %306 = vadd.xlane.f32.xlu0 %v305_v21 }
  0x83   : > { %p817_p1 = por %p816_p3, %p815_p7 }
  0x85   : > { %315 = vadd.xlane.f32.xlu1 %v314_v24  ;;  %p818_p8 = pnand %p817_p1, %p811_p13 }
  0x86   : > { %312 = vadd.xlane.f32.xlu0 %v311_v25 }
 0x106   : > { %v301_v27 = vpop.xlane.xlu1 %300 }
 0x107   : > { %v295_v28 = vpop.xlane.xlu0 %294  ;;  %v326_v42 = vadd.f32 %v629_v29, %v301_v27 }
 0x108   : > { %v324_v36 = vadd.f32 %v629_v29, %v295_v28 }
 0x109   : > { %v350_v56 = vsel %vm342_vm5, %v326_v42, -1e+30 }
 0x10a   : > { %v304_v31 = vpop.xlane.xlu1 %303  ;;  %v348_v48 = vsel %vm340_vm1, %v324_v36, -1e+30  ;;  %v359_v4 = vsel %vm356_vm6, %v350_v56, -inf }
 0x10b   : > { %v298_v32 = vpop.xlane.xlu0 %297  ;;  %v327_v43 = vadd.f32 %v629_v29, %v304_v31  ;;  %v357_v60 = vsel %vm356_vm6, %v348_v48, -inf }
 0x10c   : > { %v325_v39 = vadd.f32 %v629_v29, %v298_v32 }
 0x10d   : > { %v351_v57 = vsel %vm343_vm7, %v327_v43, -1e+30 }
 0x10e   : > { %v310_v40 = vpop.xlane.xlu1 %309  ;;  %v349_v49 = vsel %vm341_vm2, %v325_v39, -1e+30  ;;  %v360_v5 = vsel %vm356_vm6, %v351_v57, -inf }
 0x10f   : > { %v307_v41 = vpop.xlane.xlu0 %306  ;;  %v329_v44 = vadd.f32 %v629_v29, %v310_v40  ;;  %v358_v61 = vsel %vm356_vm6, %v349_v49, -inf }
 0x110   : > { %v328_v45 = vadd.f32 %v629_v29, %v307_v41 }
 0x111   : > { %v353_v50 = vsel %vm345_vm3, %v329_v44, -1e+30 }
 0x112   : > { %v352_v51 = vsel %vm344_vm4, %v328_v45, -1e+30  ;;  %v363_v52 = vsel %vm356_vm6, %v353_v50, -inf  ;;  %v316_v54 = vpop.xlane.xlu1 %315 }
 0x113   : > { %v361_v53 = vsel %vm356_vm6, %v352_v51, -inf  ;;  %v313_v55 = vpop.xlane.xlu0 %312  ;;  %v331_v58 = vadd.f32 %v629_v29, %v316_v54  ;;  %v364_v62 = vmax.f32 %v358_v61, %v363_v52 }
 0x114   : > { %v330_v59 = vadd.f32 %v629_v29, %v313_v55  ;;  %v362_v63 = vmax.f32 %v357_v60, %v361_v53 }
 0x115   : > { %v355_v0 = vsel %vm347_vm8, %v331_v58, -1e+30 }
 0x116   : > { %v354_v2 = vsel %vm346_vm9, %v330_v59, -1e+30  ;;  %v367_v8 = vsel %vm356_vm6, %v355_v0, -inf  ;;  %v369_v14 = vmax.f32 %v362_v63, %v364_v62 }
 0x117   : > { %v365_v9 = vsel %vm356_vm6, %v354_v2, -inf  ;;  %v368_v12 = vmax.f32 %v360_v5, %v367_v8 }
 0x118   : > { %v366_v13 = vmax.f32 %v359_v4, %v365_v9 }
 0x11a   : > { %v370_v15 = vmax.f32 %v366_v13, %v368_v12 }
 0x11c   : > { %v371_v16 = vmax.f32 %v369_v14, %v370_v15 }
 0x11e   : > { %v372_v17 = vrot.slane %v371_v16, 4 }
 0x120   : > { %v373_v20 = vmax.f32 %v371_v16, %v372_v17 }
 0x122   : > { %v374_v21 = vrot.slane %v373_v20, 2 }
 0x124   : > { %v375_v22 = vmax.f32 %v373_v20, %v374_v21 }
 0x126   : > { %v376_v23 = vrot.slane %v375_v22, 1 }
 0x128   : > { %v377_v24 = vmax.f32 %v375_v22, %v376_v23 }
 0x12a   : > { %v378_v25 = vsub.f32 %v348_v48, %v377_v24  ;;  %v379_v26 = vsub.f32 %v349_v49, %v377_v24  ;;  %v380_v27 = vsub.f32 %v350_v56, %v377_v24  ;;  %v381_v28 = vsub.f32 %v351_v57, %v377_v24 }
 0x12b   : > { %v382_v29 = vsub.f32 %v352_v51, %v377_v24  ;;  %v383_v33 = vsub.f32 %v353_v50, %v377_v24  ;;  %v384_v35 = vsub.f32 %v354_v2, %v377_v24  ;;  %v385_v37 = vsub.f32 %v355_v0, %v377_v24 }
 0x12c   : > { %v386_v30 = vmul.f32 1.442695, %v378_v25  ;;  %v388_v31 = vmul.f32 1.442695, %v379_v26  ;;  %v390_v32 = vmul.f32 1.442695, %v380_v27 }
 0x12d   : > { %v392_v34 = vmul.f32 1.442695, %v381_v28  ;;  %v394_v36 = vmul.f32 1.442695, %v382_v29  ;;  %v396_v38 = vmul.f32 1.442695, %v383_v33 }
 0x12e   : > { %702 = vpow2.f32 %v386_v30  ;;  %v398_v39 = vmul.f32 1.442695, %v384_v35  ;;  %v400_v40 = vmul.f32 1.442695, %v385_v37 }
 0x12f   : > { %704 = vpow2.f32 %v388_v31 }
 0x130   : > { %706 = vpow2.f32 %v390_v32 }
 0x131   : > { %708 = vpow2.f32 %v392_v34 }
 0x132   : > { %710 = vpow2.f32 %v394_v36 }
 0x133   : > { %712 = vpow2.f32 %v396_v38 }
 0x134   : > { %714 = vpow2.f32 %v398_v39 }
 0x135   : > { %716 = vpow2.f32 %v400_v40 }
 0x138   : > { %v703_v41 = vpop.eup %702 }
 0x139   : > { %v705_v42 = vpop.eup %704  ;;  %v402_v43 = vsel %vm356_vm6, %v703_v41, 0.0 }
 0x13a   : > { %v707_v44 = vpop.eup %706  ;;  %v403_v45 = vsel %vm356_vm6, %v705_v42, 0.0 }
 0x13b   : > { %v709_v46 = vpop.eup %708  ;;  %v404_v47 = vadd.f32 %v403_v45, %v402_v43  ;;  %v405_v48 = vsel %vm356_vm6, %v707_v44, 0.0 }
 0x13c   : > { %v711_v49 = vpop.eup %710  ;;  %v407_v51 = vsel %vm356_vm6, %v709_v46, 0.0 }
 0x13d   : > { %v406_v50 = vadd.f32 %v405_v48, %v404_v47  ;;  %v713_v52 = vpop.eup %712  ;;  %v409_v54 = vsel %vm356_vm6, %v711_v49, 0.0 }
 0x13e   : > { %v715_v55 = vpop.eup %714  ;;  %v411_v57 = vsel %vm356_vm6, %v713_v52, 0.0 }
 0x13f   : > { %v408_v53 = vadd.f32 %v407_v51, %v406_v50  ;;  %v717_v58 = vpop.eup %716  ;;  %v413_v60 = vsel %vm356_vm6, %v715_v55, 0.0 }
 0x140   : > { %v415_v62 = vsel %vm356_vm6, %v717_v58, 0.0 }
 0x141   : > { %v410_v56 = vadd.f32 %v409_v54, %v408_v53 }
 0x143   : > { %v412_v59 = vadd.f32 %v411_v57, %v410_v56 }
 0x145   : > { %v414_v61 = vadd.f32 %v413_v60, %v412_v59 }
 0x147   : > { %v416_v63 = vadd.f32 %v415_v62, %v414_v61 }
 0x149   : > { %v417_v0 = vrot.slane %v416_v63, 4 }
 0x14b   : > { %v418_v2 = vadd.f32 %v417_v0, %v416_v63 }
 0x14d   : > { %v419_v4 = vrot.slane %v418_v2, 2 }
 0x14f   : > { %v420_v5 = vadd.f32 %v419_v4, %v418_v2 }
 0x151   : > { %v421_v8 = vrot.slane %v420_v5, 1 }
 0x153   : > { %v422_v9 = vadd.f32 %v421_v8, %v420_v5 }
 0x155   : > { %718 = vrcp.f32 %v422_v9 }
 0x15f   : > { %v719_v12 = vpop.eup %718 }
 0x160   : > { %v425_v13 = vmul.f32 %v719_v12, %v705_v42  ;;  %v424_v14 = vmul.f32 %v719_v12, %v703_v41  ;;  %v426_v15 = vmul.f32 %v719_v12, %v707_v44  ;;  %v427_v16 = vmul.f32 %v719_v12, %v709_v46 }
 0x161   : > { %v428_v17 = vmul.f32 %v719_v12, %v711_v49  ;;  %v429_v20 = vmul.f32 %v719_v12, %v713_v52  ;;  %v430_v21 = vmul.f32 %v719_v12, %v715_v55  ;;  %v431_v22 = vmul.f32 %v719_v12, %v717_v58 }
 0x162   : > { %439 = vperm.xlu1 %701, %v425_v13   ;;  %434 = vperm.xlu0 %700, %v424_v14  }
 0x166   : > { %444 = vperm.xlu1 %701, %v426_v15  }
 0x16a   : > { %449 = vperm.xlu1 %701, %v427_v16  }
 0x16e   : > { %454 = vperm.xlu1 %701, %v428_v17  }
 0x172   : > { %459 = vperm.xlu1 %701, %v429_v20  }
 0x176   : > { %464 = vperm.xlu1 %701, %v430_v21  }
 0x17a   : > { %469 = vperm.xlu1 %701, %v431_v22  }
 0x1e1   : > { %v440_v23 = vpop.permute.xlu1 %439  ;;  %v435_v25 = vpop.permute.xlu0 %434 }
 0x1e2   : > { %v473_v27 = vmul.f32 %v440_v23, %v1136_v7  ;;  %v472_v28 = vmul.f32 %v435_v25, %v1128_v3 }
 0x1e4   : > { %v481_v31 = vsel %vm292_vm0, %v473_v27, 0.0  ;;  %v480_v32 = vsel %vm292_vm0, %v472_v28, 0.0 }
 0x1e5   : > { %v445_v24 = vpop.permute.xlu1 %444  ;;  %v482_v36 = vadd.f32 %v481_v31, %v480_v32 }
 0x1e6   : > { %v474_v29 = vmul.f32 %v445_v24, %v1125_v1 }
 0x1e8   : > { %v483_v34 = vsel %vm292_vm0, %v474_v29, 0.0 }
 0x1e9   : > { %v450_v26 = vpop.permute.xlu1 %449  ;;  %v484_v3 = vadd.f32 %v483_v34, %v482_v36 }
 0x1ea   : > { %v475_v33 = vmul.f32 %v450_v26, %v1133_v6 }
 0x1ec   : > { %v485_v38 = vsel %vm292_vm0, %v475_v33, 0.0 }
 0x1ed   : > { %v455_v30 = vpop.permute.xlu1 %454  ;;  %v486_v39 = vadd.f32 %v485_v38, %v484_v3 }
 0x1ee   : > { %v476_v35 = vmul.f32 %v455_v30, %v1144_v11 }
 0x1f0   : > { %v487_v1 = vsel %vm292_vm0, %v476_v35, 0.0 }
 0x1f1   : > { %v460_v37 = vpop.permute.xlu1 %459  ;;  %v488_v42 = vadd.f32 %v487_v1, %v486_v39 }
 0x1f2   : > { %v477_v7 = vmul.f32 %v460_v37, %v1141_v10 }
 0x1f4   : > { %v489_v41 = vsel %vm292_vm0, %v477_v7, 0.0 }
 0x1f5   : > { %v465_v40 = vpop.permute.xlu1 %464  ;;  %v490_v43 = vadd.f32 %v489_v41, %v488_v42 }
 0x1f6   : > { %v478_v6 = vmul.f32 %v465_v40, %v1156_v19 }
 0x1f8   : > { %v491_v11 = vsel %vm292_vm0, %v478_v6, 0.0 }
 0x1f9   : > { %v470_v44 = vpop.permute.xlu1 %469  ;;  %v492_v46 = vadd.f32 %v491_v11, %v490_v43 }
 0x1fa   : > { %v479_v45 = vmul.f32 %v470_v44, %v1153_v18 }
 0x1fc   : > { %v493_v10 = vsel %vm292_vm0, %v479_v45, 0.0 }
 0x1fd   : > { %v494_v47 = vadd.f32 %v493_v10, %v492_v46 }
 0x1ff   : > { %v495_v48 = vrot.slane %v494_v47, 4 }
 0x201   : > { %v496_v49 = vadd.f32 %v495_v48, %v494_v47 }
 0x203   : > { %v497_v50 = vrot.slane %v496_v49, 2 }
 0x205   : > { %v498_v51 = vadd.f32 %v497_v50, %v496_v49 }
 0x207   : > { %v499_v19 = vrot.slane %v498_v51, 1 }
 0x209   : > { %v500_v52 = vadd.f32 %v499_v19, %v498_v51 }
 0x20b   : > { %502 = vst.msk [vmem:[%s268_s6] sm:$0x1] %vm501_vm10, %v500_v52 }
 0x20c   : > { %821 = shalt.err (!%p818_p8)
}
 0x20d   : > { %s822_s12 = scalar_lea.hbm %s1210_s7, 16  ;;  %s826_s11 = scalar_lea.hbm %s1258_s4, 32 }
 0x20e   : > { %p823_p10 = scmp.ne.s32.totalorder %s1210_s7, %s822_s12  ;;  %p827_p9 = scmp.lt.u32.totalorder %s1210_s7, %s1258_s4 }
 0x20f   : > { %p828_p11 = scmp.lt.u32.totalorder %s826_s11, %s822_s12  ;;  %p830_p5 = scmp.lt.u32.totalorder %s822_s12, %s1210_s7 }
 0x210   : > { %p824_p2 = pnand %p823_p10, %p1277_p0 }
 0x211   : > { %p829_p4 = por %p828_p11, %p827_p9 }
 0x212   : > { %p825_p12 = pneg %p824_p2 }
 0x213   : > { %p831_p6 = por %p830_p5, %p829_p4 }
 0x215   : > { %p832_p13 = pnand %p831_p6, %p825_p12 }
 0x217   : > { %835 = shalt.err (!%p832_p13)
}
 0x218   : > { %643 = dma.vmem_to_hbm [thread:$0]  (%p1277_p0), %s1212_s26, 16, %s1210_s7, %s504_s23  }
 0x219 PF: > { %s528_s30 = sand.u32 1, %s870_s17   ;;  %p1278_p7 = scmp.ne.s32.totalorder %s1267_s29, 0 }
 0x21a   : > { %p1279_p3 = scmp.ge.s32.totalorder %s882_s20, 2  ;;  %s529_s21 = scalar_lea.sflag [#allocation5], %s528_s30 }
 0x21c   : > { %p657_p1 = pnand %p1279_p3, %p1278_p7 }
 0x21e   : > { %865 = dma.done.wait (!%p657_p1), %s529_s21, 16  }
 0x21f   : > { %867 = vsyncadd (!%p657_p1), %s529_s21, 4294967280  ;;  %p22_p8 = scmp.ge.s32.totalorder %s944_s22, 4   ;;  %s1280_s17 = smov %s874_s18 }
 0x220   : > { %s1281_s18 = smov %s878_s19  ;;  %s1282_s19 = smov %s956_s25 }
 0x221   : > { %s1283_s20 = smov %s944_s22  ;;  %24 = sbr.rel (!%p22_p8) target bundleno = 10 (0xa), region = 98 }
 0x228   :  { %533 = vsyncpa [#allocation4], 1 }
 0x229   :  { %535 = vsyncpa [#allocation4 + $0x1], 1 }
 0x22a   :  { %536 = vsyncpa [#allocation7], 1 }
 0x22b   :  { %538 = vsyncpa [#allocation7 + $0x1], 1 }
 0x22c   :  { %539 = vsyncpa [#allocation5], 1 }
 0x22d   :  { %541 = vsyncpa [#allocation5 + $0x1], 1 }

// kernel: forward.8
= control target key start
LH: loop header
LB: loop body
LE: loop exit
PB: predicated region body
PF: predicated region fallthrough
CT: control target
= control target key end

     0   :  { %9 = vsyncpa [#allocation3], 0  ;;  %s691_s0 = inlined_call_operand.hbm [shape: f32[128,10], index: 0, kind: input, shape index: {}]   ;;  %s692_s1 = inlined_call_operand.hbm [shape: f32[128,1], index: 1, kind: input, shape index: {}]   ;;  %s693_s2 = inlined_call_operand.hbm [shape: bf16[10,8], index: 2, kind: input, shape index: {}]   ;;  %s694_s3 = inlined_call_operand.hbm [shape: f32[1,8], index: 3, kind: input, shape index: {}]   ;;  %s695_s4 = inlined_call_operand.hbm [shape: f32[128,8], index: 4, kind: output, shape index: {}]  }
   0x1   :  { %10 = vsyncpa [#allocation6], 0 }
   0x2   :  { %11 = vsyncpa [#allocation9], 0 }
   0x3   :  { %12 = vsyncpa [#allocation4], 0  ;;  %s556_s15 = smov [#allocation5]   ;;  %s557_s17 = smov [#allocation2]  }
   0x4   :  { %s30_s16 = sshll.u32 %s556_s15, 4  ;;  %s18_s18 = sshll.u32 %s557_s17, 4  ;;  %s31_s16 = int_to_ptr.vmem [resolvable:$true] %s30_s16  ;;  %s591_s18 = int_to_ptr.vmem [resolvable:$true] %s18_s18 }
   0x5   :  { %s438_s21 = scalar_lea.hbm %s692_s1, 2048 }
   0x6   :  { %p439_p0 = scmp.ne.s32.totalorder %s692_s1, %s438_s21  ;;  %p442_p1 = scmp.lt.u32.totalorder %s438_s21, %s692_s1 }
   0x8   :  { %p444_p2 = pnand %p442_p1, %p439_p0 }
   0xa   :  { %447 = shalt.err (!%p444_p2)
}
   0xb   :  { %s448_s26 = scalar_lea.vmem %s31_s16, 2048  ;;  %p453_p4 = scmp.lt.s32.totalorder %s31_s16, %s31_s16 }
   0xc   :  { %p449_p3 = scmp.ne.s32.totalorder %s31_s16, %s448_s26  ;;  %p454_p5 = scmp.lt.s32.totalorder %s448_s26, %s448_s26 }
   0xe   :  { %p455_p6 = por %p454_p5, %p453_p4 }
  0x10   :  { %p456_p7 = pnand %p455_p6, %p449_p3 }
  0x12   :  { %459 = shalt.err (!%p456_p7)
}
  0x13   :  { %s558_s27 = smov 128   ;;  %s559_s28 = smov 8  }
  0x14   :  { %36 = dma.hbm_to_vmem [thread:$0]  %s692_s1, 2048, %s31_s16, [#allocation6], %s558_s27, %s558_s27, %s559_s28  }
  0x15   :  { %s460_s7 = scalar_lea.hbm %s691_s0, 2048 }
  0x16   :  { %p461_p8 = scmp.ne.s32.totalorder %s691_s0, %s460_s7  ;;  %p464_p9 = scmp.lt.u32.totalorder %s460_s7, %s691_s0 }
  0x18   :  { %p466_p10 = pnand %p464_p9, %p461_p8 }
  0x1a   :  { %469 = shalt.err (!%p466_p10)
}
  0x1b   :  { %s470_s12 = scalar_lea.vmem %s591_s18, 2048  ;;  %p475_p12 = scmp.lt.s32.totalorder %s591_s18, %s591_s18 }
  0x1c   :  { %p471_p11 = scmp.ne.s32.totalorder %s591_s18, %s470_s12  ;;  %p476_p13 = scmp.lt.s32.totalorder %s470_s12, %s470_s12 }
  0x1e   :  { %p477_p0 = por %p476_p13, %p475_p12 }
  0x20   :  { %p478_p1 = pnand %p477_p0, %p471_p11 }
  0x22   :  { %481 = shalt.err (!%p478_p1)
}
  0x23   :  { %24 = dma.hbm_to_vmem [thread:$0]  %s691_s0, 2048, %s591_s18, [#allocation3], %s558_s27, %s558_s27, %s559_s28  }
  0x24   :  { %s560_s14 = smov [#allocation7]   ;;  %s482_s19 = scalar_lea.hbm %s693_s2, 128 }
  0x25   :  { %s42_s15 = sshll.u32 %s560_s14, 4  ;;  %p483_p2 = scmp.ne.s32.totalorder %s693_s2, %s482_s19  ;;  %s43_s15 = int_to_ptr.vmem [resolvable:$true] %s42_s15 }
  0x26   :  { %p486_p3 = scmp.lt.u32.totalorder %s482_s19, %s693_s2 }
  0x28   :  { %p488_p4 = pnand %p486_p3, %p483_p2 }
  0x2a   :  { %491 = shalt.err (!%p488_p4)
}
  0x2b   :  { %s492_s24 = scalar_lea.vmem %s43_s15, 128  ;;  %p497_p6 = scmp.lt.s32.totalorder %s43_s15, %s43_s15 }
  0x2c   :  { %p493_p5 = scmp.ne.s32.totalorder %s43_s15, %s492_s24  ;;  %p498_p7 = scmp.lt.s32.totalorder %s492_s24, %s492_s24 }
  0x2e   :  { %p499_p8 = por %p498_p7, %p497_p6 }
  0x30   :  { %p500_p9 = pnand %p499_p8, %p493_p5 }
  0x32   :  { %503 = shalt.err (!%p500_p9)
}
  0x33   :  { %s561_s0 = smov 64   ;;  %s562_s18 = smov 4  }
  0x34   :  { %48 = dma.hbm_to_vmem [thread:$0]  %s693_s2, 128, %s43_s15, [#allocation6], %s561_s0, %s561_s0, %s562_s18  }
  0x35   :  { %s563_s29 = smov [#allocation8]   ;;  %s504_s7 = scalar_lea.hbm %s694_s3, 16 }
  0x36   :  { %s55_s30 = sshll.u32 %s563_s29, 4  ;;  %p505_p10 = scmp.ne.s32.totalorder %s694_s3, %s504_s7  ;;  %s56_s30 = int_to_ptr.vmem [resolvable:$true] %s55_s30 }
  0x37   :  { %p508_p11 = scmp.lt.u32.totalorder %s504_s7, %s694_s3 }
  0x39   :  { %p510_p12 = pnand %p508_p11, %p505_p10 }
  0x3b   :  { %513 = shalt.err (!%p510_p12)
}
  0x3c   :  { %s514_s12 = scalar_lea.vmem %s56_s30, 16  ;;  %s518_s2 = scalar_lea.vmem %s56_s30, 32 }
  0x3d   :  { %p515_p13 = scmp.ne.s32.totalorder %s56_s30, %s514_s12  ;;  %p519_p0 = scmp.lt.s32.totalorder %s56_s30, %s56_s30 }
  0x3e   :  { %p520_p1 = scmp.lt.s32.totalorder %s518_s2, %s514_s12 }
  0x40   :  { %p521_p2 = por %p520_p1, %p519_p0 }
  0x42   :  { %p522_p3 = pnand %p521_p2, %p515_p13 }
  0x44   :  { %525 = shalt.err (!%p522_p3)
}
  0x45   :  { %58 = dma.hbm_to_vmem [thread:$0]  %s694_s3, 16, %s56_s30, [#allocation9]  }
  0x46   :  { %548 = dma.done.wait [#allocation3], 2048  }
  0x47   :  { %549 = vsyncadd [#allocation3], 4294965248 }
  0x48   :  { %550 = dma.done.wait [#allocation6], 2176  }
  0x49   :  { %551 = vsyncadd [#allocation6], 4294965120 }
  0x4a   :  { %552 = dma.done.wait [#allocation9], 16  }
  0x4b   :  { %553 = vsyncadd [#allocation9], 4294967280  ;;  %v564_v0 = vmov 0   ;;  %v96_v1 = vld [vmem:[#allocation5 + $0x40] sm:$0xff]  ;;  %v97_v3 = vld [vmem:[#allocation5 + $0x48] sm:$0xff]  ;;  %vm247_vm0 = vcmask 1044480  }
  0x4c   :  { %436 = vset.pattern.permute.xlu1 %v564_v0  ;;  %435 = vset.pattern.permute.xlu0 %v564_v0  ;;  %v88_v2 = vld [vmem:[#allocation5] sm:$0xff]  ;;  %v89_v4 = vld [vmem:[#allocation5 + $0x8] sm:$0xff]  ;;  %v91_v5 = vld [vmem:[#allocation5 + $0x18] sm:$0xff]  ;;  %vm222_vm1 = vcmask 80896   ;;  %vm348_vm2 = vcmask 64512   ;;  %s565_s3 = smov [#allocation10]  }
  0x4d   :  { %146 = vperm.xlu1 %436, %v96_v1   ;;  %106 = vperm.xlu0 %435, %v88_v2   ;;  %v90_v6 = vld [vmem:[#allocation5 + $0x10] sm:$0xff]  ;;  %v437_v7 = vld [vmem:[#allocation7] sm:$0x1f]   ;;  %v99_v9 = vld [vmem:[#allocation5 + $0x58] sm:$0xff]  ;;  %s370_s14 = sshll.u32 %s565_s3, 4  ;;  %s371_s14 = int_to_ptr.vmem [resolvable:$true] %s370_s14 }
  0x4e   :  { %v249_v8 = vsel %vm247_vm0, %v437_v7, 0  ;;  %v98_v10 = vld [vmem:[#allocation5 + $0x50] sm:$0xff]  ;;  %423 = vmatprep.subr.msk.bf16.mxu0 %vm247_vm0, %v437_v7  ;;  %424 = vmatprep.subr.msk.bf16.mxu1 %vm247_vm0, %v437_v7  ;;  %v93_v11 = vld [vmem:[#allocation5 + $0x28] sm:$0xff]  ;;  %v92_v12 = vld [vmem:[#allocation5 + $0x20] sm:$0xff]  ;;  %s526_s15 = scalar_lea.vmem %s371_s14, 2048  ;;  %p531_p5 = scmp.lt.s32.totalorder %s371_s14, %s371_s14 }
  0x4f   :  { %404 = vmatpush3.bf16.msra.mxu0 %v249_v8  ;;  %422 = vmatpush3.bf16.msra.mxu1 %v249_v8  ;;  %v101_v13 = vld [vmem:[#allocation5 + $0x68] sm:$0xff]  ;;  %v100_v14 = vld [vmem:[#allocation5 + $0x60] sm:$0xff]  ;;  %v95_v15 = vld [vmem:[#allocation5 + $0x38] sm:$0xff]  ;;  %p527_p4 = scmp.ne.s32.totalorder %s371_s14, %s526_s15  ;;  %p532_p6 = scmp.lt.s32.totalorder %s526_s15, %s526_s15 }
  0x50   :  { %v94_v16 = vld [vmem:[#allocation5 + $0x30] sm:$0xff]  ;;  %v103_v17 = vld [vmem:[#allocation5 + $0x78] sm:$0xff]  ;;  %v80_v21 = vld [vmem:[#allocation2 + $0x40] sm:$0xff] }
  0x51   :  { %151 = vperm.xlu1 %436, %v97_v3   ;;  %111 = vperm.xlu0 %435, %v89_v4   ;;  %v102_v18 = vld [vmem:[#allocation5 + $0x70] sm:$0xff]  ;;  %v72_v22 = vld [vmem:[#allocation2] sm:$0xff]  ;;  %v81_v23 = vld [vmem:[#allocation2 + $0x48] sm:$0xff]  ;;  %p533_p7 = por %p532_p6, %p531_p5 }
  0x52   :  { %v73_v24 = vld [vmem:[#allocation2 + $0x8] sm:$0xff]  ;;  %v75_v31 = vld [vmem:[#allocation2 + $0x18] sm:$0xff]  ;;  %v74_v32 = vld [vmem:[#allocation2 + $0x10] sm:$0xff] }
  0x53   :  { %v83_v39 = vld [vmem:[#allocation2 + $0x58] sm:$0xff]  ;;  %v82_v40 = vld [vmem:[#allocation2 + $0x50] sm:$0xff]  ;;  %v77_v46 = vld [vmem:[#allocation2 + $0x28] sm:$0xff]  ;;  %p534_p8 = pnand %p533_p7, %p527_p4 }
  0x54   :  { %v76_v47 = vld [vmem:[#allocation2 + $0x20] sm:$0xff]  ;;  %v85_v53 = vld [vmem:[#allocation2 + $0x68] sm:$0xff]  ;;  %v79_v60 = vld [vmem:[#allocation2 + $0x38] sm:$0xff] }
  0x55   :  { %121 = vperm.xlu1 %436, %v91_v5   ;;  %116 = vperm.xlu0 %435, %v90_v6   ;;  %v84_v54 = vld [vmem:[#allocation2 + $0x60] sm:$0xff]  ;;  %v78_v61 = vld [vmem:[#allocation2 + $0x30] sm:$0xff]  ;;  %v87_v3 = vld [vmem:[#allocation2 + $0x78] sm:$0xff] }
  0x56   :  { %v86_v4 = vld [vmem:[#allocation2 + $0x70] sm:$0xff] }
  0x59   :  { %161 = vperm.xlu1 %436, %v99_v9   ;;  %156 = vperm.xlu0 %435, %v98_v10  }
  0x5d   :  { %131 = vperm.xlu1 %436, %v93_v11   ;;  %126 = vperm.xlu0 %435, %v92_v12   ;;  %v384_v11 = vld [vmem:[#allocation8] ss:$0 sm:$0xff] }
  0x61   :  { %171 = vperm.xlu1 %436, %v101_v13   ;;  %166 = vperm.xlu0 %435, %v100_v14  }
  0x65   :  { %141 = vperm.xlu1 %436, %v95_v15   ;;  %136 = vperm.xlu0 %435, %v94_v16  }
  0x69   :  { %181 = vperm.xlu1 %436, %v103_v17   ;;  %176 = vperm.xlu0 %435, %v102_v18  }
  0xcc   :  { %v147_v19 = vpop.permute.xlu1 %146  ;;  %v107_v20 = vpop.permute.xlu0 %106 }
  0xcd   :  { %v192_v27 = vmul.f32 %v147_v19, %v80_v21  ;;  %v184_v28 = vmul.f32 %v107_v20, %v72_v22 }
  0xd0   :  { %v152_v25 = vpop.permute.xlu1 %151  ;;  %v112_v26 = vpop.permute.xlu0 %111 }
  0xd1   :  { %v193_v29 = vmul.f32 %v152_v25, %v81_v23  ;;  %v185_v30 = vmul.f32 %v112_v26, %v73_v24 }
  0xd3   :  { %v200_v33 = vpack.c.bf16 %v185_v30, %v184_v28  ;;  %v204_v34 = vpack.c.bf16 %v193_v29, %v192_v27 }
  0xd4   :  { %v122_v35 = vpop.permute.xlu1 %121  ;;  %v117_v36 = vpop.permute.xlu0 %116 }
  0xd5   :  { %v187_v37 = vmul.f32 %v122_v35, %v75_v31  ;;  %v186_v38 = vmul.f32 %v117_v36, %v74_v32  ;;  %405 = vmatprep.mubr.msk.bf16.mxu0 %vm222_vm1, %v200_v33  ;;  %413 = vmatprep.mubr.msk.bf16.mxu1 %vm222_vm1, %v204_v34 }
  0xd7   :  { %v201_v41 = vpack.c.bf16 %v187_v37, %v186_v38 }
  0xd8   :  { %v162_v42 = vpop.permute.xlu1 %161  ;;  %v157_v43 = vpop.permute.xlu0 %156 }
  0xd9   :  { %v195_v44 = vmul.f32 %v162_v42, %v83_v39  ;;  %v194_v45 = vmul.f32 %v157_v43, %v82_v40  ;;  %406 = vmatmul.mubr.msk.bf16.vlgmr.msra.gmra.mrb[0].mxu0 %vm222_vm1, %v201_v41 }
  0xdb   :  { %v205_v48 = vpack.c.bf16 %v195_v44, %v194_v45 }
  0xdc   :  { %v132_v49 = vpop.permute.xlu1 %131  ;;  %v127_v50 = vpop.permute.xlu0 %126 }
  0xdd   :  { %v189_v51 = vmul.f32 %v132_v49, %v77_v46  ;;  %v188_v52 = vmul.f32 %v127_v50, %v76_v47  ;;  %414 = vmatmul.mubr.msk.bf16.vlgmr.msra.gmra.mrb[0].mxu1 %vm222_vm1, %v205_v48 }
  0xdf   :  { %v202_v55 = vpack.c.bf16 %v189_v51, %v188_v52 }
  0xe0   :  { %v172_v56 = vpop.permute.xlu1 %171  ;;  %v167_v57 = vpop.permute.xlu0 %166 }
  0xe1   :  { %v197_v58 = vmul.f32 %v172_v56, %v85_v53  ;;  %v196_v59 = vmul.f32 %v167_v57, %v84_v54  ;;  %409 = vmatprep.mubr.msk.bf16.mxu0 %vm222_vm1, %v202_v55 }
  0xe3   :  { %v206_v62 = vpack.c.bf16 %v197_v58, %v196_v59 }
  0xe4   :  { %v142_v63 = vpop.permute.xlu1 %141  ;;  %v137_v0 = vpop.permute.xlu0 %136 }
  0xe5   :  { %v191_v1 = vmul.f32 %v142_v63, %v79_v60  ;;  %v190_v2 = vmul.f32 %v137_v0, %v78_v61  ;;  %417 = vmatprep.mubr.msk.bf16.mxu1 %vm222_vm1, %v206_v62 }
  0xe7   :  { %v203_v5 = vpack.c.bf16 %v191_v1, %v190_v2 }
  0xe8   :  { %v182_v6 = vpop.permute.xlu1 %181  ;;  %v177_v7 = vpop.permute.xlu0 %176 }
  0xe9   :  { %v199_v8 = vmul.f32 %v182_v6, %v87_v3  ;;  %v198_v9 = vmul.f32 %v177_v7, %v86_v4  ;;  %410 = vmatmul.mubr.msk.bf16.gmra.mrb[4].mxu0 %vm222_vm1, %v203_v5 }
  0xeb   :  { %v207_v10 = vpack.c.bf16 %v199_v8, %v198_v9 }
  0xed   :  { %418 = vmatmul.mubr.msk.bf16.gmra.mrb[4].mxu1 %vm222_vm1, %v207_v10 }
 0x1ac   :  { %v407_v12 = vpop.f32.mrb[0].mxu0 }
 0x1ad   :  { %v294_v13 = vadd.f32 %v407_v12, %v384_v11  ;;  %v285_v14 = vpop.f32.mrb[1].mxu0 }
 0x1ae   :  { %v286_v15 = vadd.f32 %v384_v11, %v285_v14  ;;  %v408_v16 = vpop.f32.mrb[2].mxu0 }
 0x1af   :  { %351 = vst.msk [vmem:[#allocation10 + $0x10] sm:$0xff] %vm348_vm2, %v294_v13  ;;  %v297_v17 = vadd.f32 %v408_v16, %v384_v11  ;;  %v288_v18 = vpop.f32.mrb[3].mxu0 }
 0x1b0   :  { %349 = vst.msk [vmem:[#allocation10] sm:$0xff] %vm348_vm2, %v286_v15  ;;  %v289_v19 = vadd.f32 %v384_v11, %v288_v18  ;;  %v415_v20 = vpop.f32.mrb[0].mxu1 }
 0x1b1   :  { %352 = vst.msk [vmem:[#allocation10 + $0x18] sm:$0xff] %vm348_vm2, %v297_v17  ;;  %v326_v21 = vadd.f32 %v415_v20, %v384_v11  ;;  %v317_v22 = vpop.f32.mrb[1].mxu1 }
 0x1b2   :  { %350 = vst.msk [vmem:[#allocation10 + $0x8] sm:$0xff] %vm348_vm2, %v289_v19  ;;  %v318_v23 = vadd.f32 %v384_v11, %v317_v22  ;;  %v416_v24 = vpop.f32.mrb[2].mxu1 }
 0x1b3   :  { %359 = vst.msk [vmem:[#allocation10 + $0x50] sm:$0xff] %vm348_vm2, %v326_v21  ;;  %v329_v25 = vadd.f32 %v416_v24, %v384_v11  ;;  %v320_v26 = vpop.f32.mrb[3].mxu1 }
 0x1b4   :  { %357 = vst.msk [vmem:[#allocation10 + $0x40] sm:$0xff] %vm348_vm2, %v318_v23  ;;  %v321_v27 = vadd.f32 %v384_v11, %v320_v26 }
 0x1b5   :  { %360 = vst.msk [vmem:[#allocation10 + $0x58] sm:$0xff] %vm348_vm2, %v329_v25 }
 0x1b6   :  { %358 = vst.msk [vmem:[#allocation10 + $0x48] sm:$0xff] %vm348_vm2, %v321_v27 }
 0x1bc   :  { %v411_v28 = vpop.f32.mrb[4].mxu0 }
 0x1bd   :  { %v310_v29 = vadd.f32 %v411_v28, %v384_v11  ;;  %v301_v30 = vpop.f32.mrb[5].mxu0 }
 0x1be   :  { %v302_v31 = vadd.f32 %v384_v11, %v301_v30  ;;  %v412_v32 = vpop.f32.mrb[6].mxu0 }
 0x1bf   :  { %355 = vst.msk [vmem:[#allocation10 + $0x30] sm:$0xff] %vm348_vm2, %v310_v29  ;;  %v313_v33 = vadd.f32 %v412_v32, %v384_v11  ;;  %v304_v34 = vpop.f32.mrb[7].mxu0 }
 0x1c0   :  { %353 = vst.msk [vmem:[#allocation10 + $0x20] sm:$0xff] %vm348_vm2, %v302_v31  ;;  %v305_v35 = vadd.f32 %v384_v11, %v304_v34  ;;  %v419_v36 = vpop.f32.mrb[4].mxu1 }
 0x1c1   :  { %356 = vst.msk [vmem:[#allocation10 + $0x38] sm:$0xff] %vm348_vm2, %v313_v33  ;;  %v342_v37 = vadd.f32 %v419_v36, %v384_v11  ;;  %v333_v38 = vpop.f32.mrb[5].mxu1 }
 0x1c2   :  { %354 = vst.msk [vmem:[#allocation10 + $0x28] sm:$0xff] %vm348_vm2, %v305_v35  ;;  %v334_v39 = vadd.f32 %v384_v11, %v333_v38  ;;  %v420_v40 = vpop.f32.mrb[6].mxu1 }
 0x1c3   :  { %363 = vst.msk [vmem:[#allocation10 + $0x70] sm:$0xff] %vm348_vm2, %v342_v37  ;;  %v345_v41 = vadd.f32 %v420_v40, %v384_v11  ;;  %v336_v42 = vpop.f32.mrb[7].mxu1 }
 0x1c4   :  { %361 = vst.msk [vmem:[#allocation10 + $0x60] sm:$0xff] %vm348_vm2, %v334_v39  ;;  %v337_v43 = vadd.f32 %v384_v11, %v336_v42 }
 0x1c5   :  { %364 = vst.msk [vmem:[#allocation10 + $0x78] sm:$0xff] %vm348_vm2, %v345_v41 }
 0x1c6   :  { %362 = vst.msk [vmem:[#allocation10 + $0x68] sm:$0xff] %vm348_vm2, %v337_v43 }
 0x1c7   :  { %537 = shalt.err (!%p534_p8)
}
 0x1c8   :  { %s538_s19 = scalar_lea.hbm %s695_s4, 2048 }
 0x1c9   :  { %p539_p9 = scmp.ne.s32.totalorder %s695_s4, %s538_s19  ;;  %p542_p10 = scmp.lt.u32.totalorder %s538_s19, %s695_s4 }
 0x1cb   :  { %p544_p11 = pnand %p542_p10, %p539_p9 }
 0x1cd   :  { %547 = shalt.err (!%p544_p11)
}
 0x1ce   :  { %376 = dma.vmem_to_hbm [thread:$0]  %s371_s14, 2048, %s695_s4, [#allocation4], %s558_s27, %s558_s27, %s559_s28  }
 0x1cf   :  { %554 = dma.done.wait [#allocation4], 2048  }
 0x1d0   :  { %555 = vsyncadd [#allocation4], 4294965248 }
 0x1d1   :  { %380 = vsyncpa [#allocation3], 1 }
 0x1d2   :  { %381 = vsyncpa [#allocation6], 1 }
 0x1d3   :  { %382 = vsyncpa [#allocation9], 1 }
 0x1d4   :  { %383 = vsyncpa [#allocation4], 1 }

// kernel: forward.10
= control target key start
LH: loop header
LB: loop body
LE: loop exit
PB: predicated region body
PF: predicated region fallthrough
CT: control target
= control target key end

     0   :  { %s4705_s0 = inlined_call_operand.hbm [shape: f32[2,64,8], index: 0, kind: input, shape index: {}]   ;;  %s4706_s1 = inlined_call_operand.hbm [shape: f32[2,64,1], index: 1, kind: input, shape index: {}]   ;;  %s4707_s2 = inlined_call_operand.hbm [shape: f32[9,64,1], index: 2, kind: input, shape index: {}]   ;;  %s4708_s3 = inlined_call_operand.hbm [shape: f32[1,8], index: 3, kind: input, shape index: {}]   ;;  %s4709_s4 = inlined_call_operand.hbm [shape: f32[1,8], index: 4, kind: input, shape index: {}]   ;;  %s4710_s5 = inlined_call_operand.hbm [shape: bf16[8,4], index: 5, kind: input, shape index: {}]   ;;  %s4711_s6 = inlined_call_operand.hbm [shape: f32[1,4], index: 6, kind: input, shape index: {}]   ;;  %s4712_s7 = inlined_call_operand.hbm [shape: f32[1,4], index: 7, kind: input, shape index: {}]   ;;  %s4713_s8 = inlined_call_operand.hbm [shape: f32[1,4], index: 8, kind: input, shape index: {}]   ;;  %s4714_s9 = inlined_call_operand.hbm [shape: bf16[36,4], index: 9, kind: input, shape index: {}]   ;;  %s4715_s10 = inlined_call_operand.hbm [shape: f32[1,4], index: 10, kind: input, shape index: {}]   ;;  %s4716_s11 = inlined_call_operand.hbm [shape: f32[1,4], index: 11, kind: input, shape index: {}]   ;;  %s4717_s12 = inlined_call_operand.hbm [shape: f32[1,4], index: 12, kind: input, shape index: {}]   ;;  %s4718_s13 = inlined_call_operand.hbm [shape: bf16[4,8], index: 13, kind: input, shape index: {}]   ;;  %s4719_s14 = inlined_call_operand.hbm [shape: f32[1,8], index: 14, kind: input, shape index: {}]   ;;  %s4720_s15 = inlined_call_operand.hbm [shape: f32[2,64,8], index: 15, kind: output, shape index: {}]  }
   0x1   :  { %4737 = sst [smem:[#allocation69_spill]] %s4705_s0 }
   0x2   :  { %4738 = sst [smem:[#allocation70_spill]] %s4706_s1 }
   0x3   :  { %4739 = sst [smem:[#allocation71_spill]] %s4707_s2 }
   0x4   :  { %4740 = sst [smem:[#allocation72_spill]] %s4708_s3 }
   0x5   :  { %4741 = sst [smem:[#allocation73_spill]] %s4709_s4 }
   0x6   :  { %4742 = sst [smem:[#allocation74_spill]] %s4710_s5 }
   0x7   :  { %4743 = sst [smem:[#allocation75_spill]] %s4711_s6 }
   0x8   :  { %4744 = sst [smem:[#allocation76_spill]] %s4712_s7 }
   0x9   :  { %4745 = sst [smem:[#allocation77_spill]] %s4713_s8 }
   0xa   :  { %4746 = sst [smem:[#allocation78_spill]] %s4714_s9 }
   0xb   :  { %4747 = sst [smem:[#allocation79_spill]] %s4715_s10 }
   0xc   :  { %4748 = sst [smem:[#allocation80_spill]] %s4720_s15 }
   0xd   :  { %20 = vsyncpa [#allocation5], 0 }
   0xe   :  { %22 = vsyncpa [#allocation5 + $0x1], 0 }
   0xf   :  { %23 = vsyncpa [#allocation8], 0 }
  0x10   :  { %25 = vsyncpa [#allocation8 + $0x1], 0 }
  0x11   :  { %26 = vsyncpa [#allocation11], 0 }
  0x12   :  { %27 = vsyncpa [#allocation14], 0 }
  0x13   :  { %28 = vsyncpa [#allocation17], 0 }
  0x14   :  { %29 = vsyncpa [#allocation20], 0 }
  0x15   :  { %30 = vsyncpa [#allocation23], 0 }
  0x16   :  { %31 = vsyncpa [#allocation26], 0 }
  0x17   :  { %32 = vsyncpa [#allocation6], 0 }
  0x18   :  { %34 = vsyncpa [#allocation6 + $0x1], 0  ;;  %s3588_s18 = smov 0   ;;  %s3590_s19 = smov 0  }
  0x19   :  { %s3592_s20 = smov 0   ;;  %s3594_s21 = smov 0  }
  0x1a LB: > { %4749 = sst [smem:[#allocation39_spill]] %s3463_s18  ;;  %s3477_s22 = smov [#allocation9]   ;;  %s3475_s21 = sphi %s3594_s21, %s4856_s21   ;;  %s3471_s20 = sphi %s3592_s20, %s4855_s20   ;;  %s3467_s19 = sphi %s3590_s19, %s4854_s19   ;;  %s3463_s18 = sphi %s3588_s18, %s4853_s18  }
  0x1b   : > { %4750 = sst [smem:[#allocation40_spill]] %s3467_s19  ;;  %s408_s23 = sshll.u32 %s3477_s22, 4  ;;  %s3614_s23 = int_to_ptr.vmem [resolvable:$true] %s408_s23 }
  0x1c   : > { %s3609_s24 = sadd.s32 4294967295, %s3475_s21   ;;  %p2568_p0 = scmp.ge.s32.totalorder %s3475_s21, 1 }
  0x1d   : > { %4751 = sst [smem:[#allocation41_spill]] %s3609_s24  ;;  %p4731_p1 = scmp.eq.s32.totalorder %s3609_s24, 0 }
  0x1e   : > { %p396_p2 = scmp.lt.s32.totalorder %s3475_s21, 3  ;;  %s3478_s26 = smov [#allocation10]  }
  0x1f   : > { %s422_s27 = sshll.u32 %s3478_s26, 4  ;;  %s3479_s29 = smov [#allocation13]   ;;  %s3629_s27 = int_to_ptr.vmem [resolvable:$true] %s422_s27 }
  0x20   : > { %p3616_p3 = pnand %p2568_p0, %p396_p2  ;;  %s444_s30 = sshll.u32 %s3479_s29, 4  ;;  %s3631_s30 = int_to_ptr.vmem [resolvable:$true] %s444_s30 }
  0x21   : > { %s4755_s2 = sld [smem:[#allocation71_spill]] }
  0x22   : > { %s4752_s25 = scalar_select %p3616_p3, 1, 0 }
  0x23   : > { %p2753_p5 = pneg %p3616_p3 }
  0x24   : > { %4753 = sst [smem:[#allocation42_spill]] %s4752_s25 }
  0x25   : > { %p3625_p6 = pnand %p2753_p5, %p4731_p1 }
  0x27   : > { %s2953_s22 = scalar_lea.hbm %s4755_s2, 9216  ;;  %p3641_p8 = pneg %p3625_p6 }
  0x28   : > { %p2954_p7 = scmp.ne.s32.totalorder %s4755_s2, %s2953_s22  ;;  %p2960_p11 = scmp.lt.u32.totalorder %s2953_s22, %s4755_s2 }
  0x2a   : > { %p2956_p9 = pnand %p3641_p8, %p2954_p7 }
  0x2c   : > { %p2957_p10 = pneg %p2956_p9 }
  0x2e   : > { %p2962_p12 = pnand %p2960_p11, %p2957_p10 }
  0x30   : > { %2965 = shalt.err (!%p2962_p12)
}
  0x31   : > { %s2966_s15 = scalar_lea.vmem %s3614_s23, 9216  ;;  %p2974_p5 = scmp.lt.s32.totalorder %s3614_s23, %s3614_s23 }
  0x32   : > { %p2967_p13 = scmp.ne.s32.totalorder %s3614_s23, %s2966_s15  ;;  %p2975_p4 = scmp.lt.s32.totalorder %s2966_s15, %s2966_s15 }
  0x34   : > { %p2969_p0 = pnand %p2967_p13, %p3641_p8  ;;  %p2976_p7 = por %p2975_p4, %p2974_p5 }
  0x36   : > { %p2970_p2 = pneg %p2969_p0 }
  0x38   : > { %p2977_p9 = pnand %p2976_p7, %p2970_p2 }
  0x3a   : > { %2980 = shalt.err (!%p2977_p9)
}
  0x3b   : > { %s4729_s25 = smov 128   ;;  %s4733_s1 = smov 8  }
  0x3c   : > { %2756 = dma.hbm_to_vmem [thread:$0]  (!%p3625_p6), %s4755_s2, 9216, %s3614_s23, [#allocation8], %s4729_s25, %s4729_s25, %s4733_s1  }
  0x3d   : > { %s4757_s3 = sld [smem:[#allocation72_spill]] }
  0x43   : > { %s2981_s15 = scalar_lea.hbm %s4757_s3, 16 }
  0x44   : > { %p2982_p4 = scmp.ne.s32.totalorder %s4757_s3, %s2981_s15  ;;  %p2988_p12 = scmp.lt.u32.totalorder %s2981_s15, %s4757_s3 }
  0x46   : > { %p2984_p10 = pnand %p2982_p4, %p3641_p8 }
  0x48   : > { %p2985_p11 = pneg %p2984_p10 }
  0x4a   : > { %p2990_p13 = pnand %p2988_p12, %p2985_p11 }
  0x4c   : > { %2993 = shalt.err (!%p2990_p13)
}
  0x4d   : > { %s2994_s23 = scalar_lea.vmem %s3629_s27, 16  ;;  %s3001_s0 = scalar_lea.vmem %s3629_s27, 32 }
  0x4e   : > { %p2995_p0 = scmp.ne.s32.totalorder %s3629_s27, %s2994_s23  ;;  %p3002_p7 = scmp.lt.s32.totalorder %s3629_s27, %s3629_s27 }
  0x4f   : > { %p3003_p9 = scmp.lt.s32.totalorder %s3001_s0, %s2994_s23 }
  0x50   : > { %p2997_p2 = pnand %p2995_p0, %p3641_p8 }
  0x51   : > { %p3004_p4 = por %p3003_p9, %p3002_p7 }
  0x52   : > { %p2998_p5 = pneg %p2997_p2 }
  0x54   : > { %p3005_p10 = pnand %p3004_p4, %p2998_p5 }
  0x56   : > { %3008 = shalt.err (!%p3005_p10)
}
  0x57   : > { %2759 = dma.hbm_to_vmem [thread:$0]  (!%p3625_p6), %s4757_s3, 16, %s3629_s27, [#allocation11]  }
  0x58   : > { %s4758_s5 = sld [smem:[#allocation74_spill]] }
  0x5e   : > { %s3009_s17 = scalar_lea.hbm %s4758_s5, 64 }
  0x5f   : > { %p3010_p11 = scmp.ne.s32.totalorder %s4758_s5, %s3009_s17  ;;  %p3016_p0 = scmp.lt.u32.totalorder %s3009_s17, %s4758_s5 }
  0x61   : > { %p3012_p12 = pnand %p3010_p11, %p3641_p8 }
  0x63   : > { %p3013_p13 = pneg %p3012_p12 }
  0x65   : > { %p3018_p2 = pnand %p3016_p0, %p3013_p13 }
  0x67   : > { %3021 = shalt.err (!%p3018_p2)
}
  0x68   : > { %s3022_s27 = scalar_lea.vmem %s3631_s30, 64  ;;  %p3030_p4 = scmp.lt.s32.totalorder %s3631_s30, %s3631_s30 }
  0x69   : > { %p3023_p5 = scmp.ne.s32.totalorder %s3631_s30, %s3022_s27  ;;  %p3031_p10 = scmp.lt.s32.totalorder %s3022_s27, %s3022_s27 }
  0x6b   : > { %p3025_p7 = pnand %p3023_p5, %p3641_p8  ;;  %p3032_p11 = por %p3031_p10, %p3030_p4 }
  0x6d   : > { %p3026_p9 = pneg %p3025_p7 }
  0x6f   : > { %p3033_p12 = pnand %p3032_p11, %p3026_p9 }
  0x71   : > { %3036 = shalt.err (!%p3033_p12)
}
  0x72   : > { %2765 = dma.hbm_to_vmem [thread:$0]  (!%p3625_p6), %s4758_s5, 64, %s3631_s30, [#allocation14]  }
  0x73   : > { %s3482_s19 = smov [#allocation16]   ;;  %s3483_s16 = smov [#allocation19]  }
  0x74   : > { %s466_s24 = sshll.u32 %s3482_s19, 4  ;;  %s487_s17 = sshll.u32 %s3483_s16, 4  ;;  %s467_s24 = int_to_ptr.vmem [resolvable:$true] %s466_s24  ;;  %s488_s17 = int_to_ptr.vmem [resolvable:$true] %s487_s17 }
  0x75   : > { %s4759_s7 = sld [smem:[#allocation76_spill]] }
  0x7b   : > { %s3037_s15 = scalar_lea.hbm %s4759_s7, 16 }
  0x7c   : > { %p3038_p13 = scmp.ne.s32.totalorder %s4759_s7, %s3037_s15  ;;  %p3044_p5 = scmp.lt.u32.totalorder %s3037_s15, %s4759_s7 }
  0x7e   : > { %p3040_p0 = pnand %p3038_p13, %p3641_p8 }
  0x80   : > { %p3041_p2 = pneg %p3040_p0 }
  0x82   : > { %p3046_p7 = pnand %p3044_p5, %p3041_p2 }
  0x84   : > { %3049 = shalt.err (!%p3046_p7)
}
  0x85   : > { %s3050_s30 = scalar_lea.vmem %s467_s24, 16  ;;  %s3057_s18 = scalar_lea.vmem %s467_s24, 32 }
  0x86   : > { %p3051_p9 = scmp.ne.s32.totalorder %s467_s24, %s3050_s30  ;;  %p3058_p11 = scmp.lt.s32.totalorder %s467_s24, %s467_s24 }
  0x87   : > { %p3059_p12 = scmp.lt.s32.totalorder %s3057_s18, %s3050_s30 }
  0x88   : > { %p3053_p4 = pnand %p3051_p9, %p3641_p8 }
  0x89   : > { %p3060_p1 = por %p3059_p12, %p3058_p11 }
  0x8a   : > { %p3054_p10 = pneg %p3053_p4 }
  0x8c   : > { %p3061_p3 = pnand %p3060_p1, %p3054_p10 }
  0x8e   : > { %3064 = shalt.err (!%p3061_p3)
}
  0x8f   : > { %2771 = dma.hbm_to_vmem [thread:$0]  (!%p3625_p6), %s4759_s7, 16, %s467_s24, [#allocation17]  }
  0x90   : > { %s4760_s9 = sld [smem:[#allocation78_spill]] }
  0x96   : > { %s3065_s29 = scalar_lea.hbm %s4760_s9, 320 }
  0x97   : > { %p3066_p13 = scmp.ne.s32.totalorder %s4760_s9, %s3065_s29  ;;  %p3072_p3 = scmp.lt.u32.totalorder %s3065_s29, %s4760_s9 }
  0x99   : > { %p3068_p0 = pnand %p3066_p13, %p3641_p8 }
  0x9b   : > { %p3069_p1 = pneg %p3068_p0 }
  0x9d   : > { %p3074_p2 = pnand %p3072_p3, %p3069_p1 }
  0x9f   : > { %3077 = shalt.err (!%p3074_p2)
}
  0xa0   : > { %s3078_s30 = scalar_lea.vmem %s488_s17, 320  ;;  %p3086_p4 = scmp.lt.s32.totalorder %s488_s17, %s488_s17 }
  0xa1   : > { %p3079_p5 = scmp.ne.s32.totalorder %s488_s17, %s3078_s30  ;;  %p3087_p10 = scmp.lt.s32.totalorder %s3078_s30, %s3078_s30 }
  0xa3   : > { %p3081_p7 = pnand %p3079_p5, %p3641_p8  ;;  %p3088_p11 = por %p3087_p10, %p3086_p4 }
  0xa5   : > { %p3082_p9 = pneg %p3081_p7 }
  0xa7   : > { %p3089_p12 = pnand %p3088_p11, %p3082_p9 }
  0xa9   : > { %3092 = shalt.err (!%p3089_p12)
}
  0xaa   : > { %s3484_s24 = smov 64   ;;  %s3485_s18 = smov 4  }
  0xab   : > { %2777 = dma.hbm_to_vmem [thread:$0]  (!%p3625_p6), %s4760_s9, 320, %s488_s17, [#allocation20], %s3484_s24, %s3484_s24, %s3485_s18  }
  0xac   : > { %s3486_s25 = smov [#allocation22]   ;;  %s3487_s29 = smov [#allocation25]  }
  0xad   : > { %s512_s22 = sshll.u32 %s3486_s25, 4  ;;  %s534_s15 = sshll.u32 %s3487_s29, 4  ;;  %s513_s22 = int_to_ptr.vmem [resolvable:$true] %s512_s22  ;;  %s535_s15 = int_to_ptr.vmem [resolvable:$true] %s534_s15 }
  0xae   : > { %s3093_s0 = scalar_lea.hbm %s4716_s11, 16 }
  0xaf   : > { %p3094_p13 = scmp.ne.s32.totalorder %s4716_s11, %s3093_s0  ;;  %p3100_p3 = scmp.lt.u32.totalorder %s3093_s0, %s4716_s11 }
  0xb1   : > { %p3096_p0 = pnand %p3094_p13, %p3641_p8 }
  0xb3   : > { %p3097_p1 = pneg %p3096_p0 }
  0xb5   : > { %p3102_p2 = pnand %p3100_p3, %p3097_p1 }
  0xb7   : > { %3105 = shalt.err (!%p3102_p2)
}
  0xb8   : > { %s3106_s17 = scalar_lea.vmem %s513_s22, 16  ;;  %s3113_s24 = scalar_lea.vmem %s513_s22, 32 }
  0xb9   : > { %p3107_p5 = scmp.ne.s32.totalorder %s513_s22, %s3106_s17  ;;  %p3114_p4 = scmp.lt.s32.totalorder %s513_s22, %s513_s22 }
  0xba   : > { %p3115_p10 = scmp.lt.s32.totalorder %s3113_s24, %s3106_s17 }
  0xbb   : > { %p3109_p7 = pnand %p3107_p5, %p3641_p8 }
  0xbc   : > { %p3116_p11 = por %p3115_p10, %p3114_p4 }
  0xbd   : > { %p3110_p9 = pneg %p3109_p7 }
  0xbf   : > { %p3117_p12 = pnand %p3116_p11, %p3110_p9 }
  0xc1   : > { %3120 = shalt.err (!%p3117_p12)
}
  0xc2   : > { %2783 = dma.hbm_to_vmem [thread:$0]  (!%p3625_p6), %s4716_s11, 16, %s513_s22, [#allocation23]  }
  0xc3   : > { %s3121_s19 = scalar_lea.hbm %s4718_s13, 32 }
  0xc4   : > { %p3122_p13 = scmp.ne.s32.totalorder %s4718_s13, %s3121_s19  ;;  %p3128_p3 = scmp.lt.u32.totalorder %s3121_s19, %s4718_s13 }
  0xc6   : > { %p3124_p0 = pnand %p3122_p13, %p3641_p8 }
  0xc8   : > { %p3125_p1 = pneg %p3124_p0 }
  0xca   : > { %p3130_p2 = pnand %p3128_p3, %p3125_p1 }
  0xcc   : > { %3133 = shalt.err (!%p3130_p2)
}
  0xcd   : > { %s3134_s27 = scalar_lea.vmem %s535_s15, 32  ;;  %p3142_p4 = scmp.lt.s32.totalorder %s535_s15, %s535_s15 }
  0xce   : > { %p3135_p5 = scmp.ne.s32.totalorder %s535_s15, %s3134_s27  ;;  %p3143_p10 = scmp.lt.s32.totalorder %s3134_s27, %s3134_s27 }
  0xd0   : > { %p3137_p7 = pnand %p3135_p5, %p3641_p8  ;;  %p3144_p11 = por %p3143_p10, %p3142_p4 }
  0xd2   : > { %p3138_p9 = pneg %p3137_p7 }
  0xd4   : > { %p3145_p12 = pnand %p3144_p11, %p3138_p9 }
  0xd6   : > { %3148 = shalt.err (!%p3145_p12)
}
  0xd7   : > { %2789 = dma.hbm_to_vmem [thread:$0]  (!%p3625_p6), %s4718_s13, 32, %s535_s15, [#allocation26]  }
  0xd8   : > { %s3488_s30 = smov [#allocation12]   ;;  %s3489_s24 = smov [#allocation15]  }
  0xd9   : > { %s433_s17 = sshll.u32 %s3488_s30, 4  ;;  %s455_s1 = sshll.u32 %s3489_s24, 4  ;;  %s434_s17 = int_to_ptr.vmem [resolvable:$true] %s433_s17  ;;  %s456_s1 = int_to_ptr.vmem [resolvable:$true] %s455_s1 }
  0xda   : > { %s4761_s4 = sld [smem:[#allocation73_spill]] }
  0xe0   : > { %s3149_s3 = scalar_lea.hbm %s4761_s4, 16 }
  0xe1   : > { %p3150_p13 = scmp.ne.s32.totalorder %s4761_s4, %s3149_s3  ;;  %p3156_p3 = scmp.lt.u32.totalorder %s3149_s3, %s4761_s4 }
  0xe3   : > { %p3152_p0 = pnand %p3150_p13, %p3641_p8 }
  0xe5   : > { %p3153_p1 = pneg %p3152_p0 }
  0xe7   : > { %p3158_p2 = pnand %p3156_p3, %p3153_p1 }
  0xe9   : > { %3161 = shalt.err (!%p3158_p2)
}
  0xea   : > { %s3162_s15 = scalar_lea.vmem %s434_s17, 16  ;;  %s3169_s23 = scalar_lea.vmem %s434_s17, 32 }
  0xeb   : > { %p3163_p5 = scmp.ne.s32.totalorder %s434_s17, %s3162_s15  ;;  %p3170_p4 = scmp.lt.s32.totalorder %s434_s17, %s434_s17 }
  0xec   : > { %p3171_p10 = scmp.lt.s32.totalorder %s3169_s23, %s3162_s15 }
  0xed   : > { %p3165_p7 = pnand %p3163_p5, %p3641_p8 }
  0xee   : > { %p3172_p11 = por %p3171_p10, %p3170_p4 }
  0xef   : > { %p3166_p9 = pneg %p3165_p7 }
  0xf1   : > { %p3173_p12 = pnand %p3172_p11, %p3166_p9 }
  0xf3   : > { %3176 = shalt.err (!%p3173_p12)
}
  0xf4   : > { %2762 = dma.hbm_to_vmem [thread:$0]  (!%p3625_p6), %s4761_s4, 16, %s434_s17, [#allocation11]  }
  0xf5   : > { %s4762_s6 = sld [smem:[#allocation75_spill]] }
  0xfb   : > { %s3177_s24 = scalar_lea.hbm %s4762_s6, 16 }
  0xfc   : > { %p3178_p13 = scmp.ne.s32.totalorder %s4762_s6, %s3177_s24  ;;  %p3184_p3 = scmp.lt.u32.totalorder %s3177_s24, %s4762_s6 }
  0xfe   : > { %p3180_p0 = pnand %p3178_p13, %p3641_p8 }
 0x100   : > { %p3181_p1 = pneg %p3180_p0 }
 0x102   : > { %p3186_p2 = pnand %p3184_p3, %p3181_p1 }
 0x104   : > { %3189 = shalt.err (!%p3186_p2)
}
 0x105   : > { %s3190_s16 = scalar_lea.vmem %s456_s1, 16  ;;  %s3197_s17 = scalar_lea.vmem %s456_s1, 32 }
 0x106   : > { %p3191_p5 = scmp.ne.s32.totalorder %s456_s1, %s3190_s16  ;;  %p3198_p4 = scmp.lt.s32.totalorder %s456_s1, %s456_s1 }
 0x107   : > { %p3199_p10 = scmp.lt.s32.totalorder %s3197_s17, %s3190_s16 }
 0x108   : > { %p3193_p7 = pnand %p3191_p5, %p3641_p8 }
 0x109   : > { %p3200_p11 = por %p3199_p10, %p3198_p4 }
 0x10a   : > { %p3194_p9 = pneg %p3193_p7 }
 0x10c   : > { %p3201_p12 = pnand %p3200_p11, %p3194_p9 }
 0x10e   : > { %3204 = shalt.err (!%p3201_p12)
}
 0x10f   : > { %2768 = dma.hbm_to_vmem [thread:$0]  (!%p3625_p6), %s4762_s6, 16, %s456_s1, [#allocation14]  }
 0x110   : > { %s3490_s15 = smov [#allocation18]   ;;  %s3491_s27 = smov [#allocation21]  }
 0x111   : > { %s477_s23 = sshll.u32 %s3490_s15, 4  ;;  %s501_s22 = sshll.u32 %s3491_s27, 4  ;;  %s478_s23 = int_to_ptr.vmem [resolvable:$true] %s477_s23  ;;  %s502_s22 = int_to_ptr.vmem [resolvable:$true] %s501_s22 }
 0x112   : > { %s4763_s8 = sld [smem:[#allocation77_spill]] }
 0x118   : > { %s3205_s24 = scalar_lea.hbm %s4763_s8, 16 }
 0x119   : > { %p3206_p13 = scmp.ne.s32.totalorder %s4763_s8, %s3205_s24  ;;  %p3212_p3 = scmp.lt.u32.totalorder %s3205_s24, %s4763_s8 }
 0x11b   : > { %p3208_p0 = pnand %p3206_p13, %p3641_p8 }
 0x11d   : > { %p3209_p1 = pneg %p3208_p0 }
 0x11f   : > { %p3214_p2 = pnand %p3212_p3, %p3209_p1 }
 0x121   : > { %3217 = shalt.err (!%p3214_p2)
}
 0x122   : > { %s3218_s1 = scalar_lea.vmem %s478_s23, 16  ;;  %s3225_s16 = scalar_lea.vmem %s478_s23, 32 }
 0x123   : > { %p3219_p5 = scmp.ne.s32.totalorder %s478_s23, %s3218_s1  ;;  %p3226_p4 = scmp.lt.s32.totalorder %s478_s23, %s478_s23 }
 0x124   : > { %p3227_p10 = scmp.lt.s32.totalorder %s3225_s16, %s3218_s1 }
 0x125   : > { %p3221_p7 = pnand %p3219_p5, %p3641_p8 }
 0x126   : > { %p3228_p11 = por %p3227_p10, %p3226_p4 }
 0x127   : > { %p3222_p9 = pneg %p3221_p7 }
 0x129   : > { %p3229_p12 = pnand %p3228_p11, %p3222_p9 }
 0x12b   : > { %3232 = shalt.err (!%p3229_p12)
}
 0x12c   : > { %2774 = dma.hbm_to_vmem [thread:$0]  (!%p3625_p6), %s4763_s8, 16, %s478_s23, [#allocation17]  }
 0x12d   : > { %s4764_s10 = sld [smem:[#allocation79_spill]] }
 0x133   : > { %s3233_s27 = scalar_lea.hbm %s4764_s10, 16 }
 0x134   : > { %p3234_p13 = scmp.ne.s32.totalorder %s4764_s10, %s3233_s27  ;;  %p3240_p3 = scmp.lt.u32.totalorder %s3233_s27, %s4764_s10 }
 0x136   : > { %p3236_p0 = pnand %p3234_p13, %p3641_p8 }
 0x138   : > { %p3237_p1 = pneg %p3236_p0 }
 0x13a   : > { %p3242_p2 = pnand %p3240_p3, %p3237_p1 }
 0x13c   : > { %3245 = shalt.err (!%p3242_p2)
}
 0x13d   : > { %s3246_s2 = scalar_lea.vmem %s502_s22, 16  ;;  %s3253_s23 = scalar_lea.vmem %s502_s22, 32 }
 0x13e   : > { %p3247_p5 = scmp.ne.s32.totalorder %s502_s22, %s3246_s2  ;;  %p3254_p4 = scmp.lt.s32.totalorder %s502_s22, %s502_s22 }
 0x13f   : > { %p3255_p10 = scmp.lt.s32.totalorder %s3253_s23, %s3246_s2 }
 0x140   : > { %p3249_p7 = pnand %p3247_p5, %p3641_p8 }
 0x141   : > { %p3256_p11 = por %p3255_p10, %p3254_p4 }
 0x142   : > { %p3250_p9 = pneg %p3249_p7 }
 0x144   : > { %p3257_p12 = pnand %p3256_p11, %p3250_p9 }
 0x146   : > { %3260 = shalt.err (!%p3257_p12)
}
 0x147   : > { %2780 = dma.hbm_to_vmem [thread:$0]  (!%p3625_p6), %s4764_s10, 16, %s502_s22, [#allocation20]  }
 0x148   : > { %s3492_s1 = smov [#allocation24]   ;;  %s3493_s17 = smov [#allocation27]  }
 0x149   : > { %s523_s16 = sshll.u32 %s3492_s1, 4  ;;  %s545_s25 = sshll.u32 %s3493_s17, 4  ;;  %s524_s16 = int_to_ptr.vmem [resolvable:$true] %s523_s16  ;;  %s546_s25 = int_to_ptr.vmem [resolvable:$true] %s545_s25 }
 0x14a   : > { %s3261_s27 = scalar_lea.hbm %s4717_s12, 16 }
 0x14b   : > { %p3262_p13 = scmp.ne.s32.totalorder %s4717_s12, %s3261_s27  ;;  %p3268_p3 = scmp.lt.u32.totalorder %s3261_s27, %s4717_s12 }
 0x14d   : > { %p3264_p0 = pnand %p3262_p13, %p3641_p8 }
 0x14f   : > { %p3265_p1 = pneg %p3264_p0 }
 0x151   : > { %p3270_p2 = pnand %p3268_p3, %p3265_p1 }
 0x153   : > { %3273 = shalt.err (!%p3270_p2)
}
 0x154   : > { %s3274_s22 = scalar_lea.vmem %s524_s16, 16  ;;  %s3281_s2 = scalar_lea.vmem %s524_s16, 32 }
 0x155   : > { %p3275_p5 = scmp.ne.s32.totalorder %s524_s16, %s3274_s22  ;;  %p3282_p4 = scmp.lt.s32.totalorder %s524_s16, %s524_s16 }
 0x156   : > { %p3283_p10 = scmp.lt.s32.totalorder %s3281_s2, %s3274_s22 }
 0x157   : > { %p3277_p7 = pnand %p3275_p5, %p3641_p8 }
 0x158   : > { %p3284_p11 = por %p3283_p10, %p3282_p4 }
 0x159   : > { %p3278_p9 = pneg %p3277_p7 }
 0x15b   : > { %p3285_p12 = pnand %p3284_p11, %p3278_p9 }
 0x15d   : > { %3288 = shalt.err (!%p3285_p12)
}
 0x15e   : > { %2786 = dma.hbm_to_vmem [thread:$0]  (!%p3625_p6), %s4717_s12, 16, %s524_s16, [#allocation23]  }
 0x15f   : > { %s3289_s17 = scalar_lea.hbm %s4719_s14, 16 }
 0x160   : > { %p3290_p13 = scmp.ne.s32.totalorder %s4719_s14, %s3289_s17  ;;  %p3296_p3 = scmp.lt.u32.totalorder %s3289_s17, %s4719_s14 }
 0x162   : > { %p3292_p0 = pnand %p3290_p13, %p3641_p8 }
 0x164   : > { %p3293_p1 = pneg %p3292_p0 }
 0x166   : > { %p3298_p2 = pnand %p3296_p3, %p3293_p1 }
 0x168   : > { %3301 = shalt.err (!%p3298_p2)
}
 0x169   : > { %s3302_s30 = scalar_lea.vmem %s546_s25, 16  ;;  %s3309_s16 = scalar_lea.vmem %s546_s25, 32 }
 0x16a   : > { %p3303_p5 = scmp.ne.s32.totalorder %s546_s25, %s3302_s30  ;;  %p3310_p4 = scmp.lt.s32.totalorder %s546_s25, %s546_s25 }
 0x16b   : > { %p3311_p10 = scmp.lt.s32.totalorder %s3309_s16, %s3302_s30 }
 0x16c   : > { %p3305_p7 = pnand %p3303_p5, %p3641_p8 }
 0x16d   : > { %p3312_p11 = por %p3311_p10, %p3310_p4 }
 0x16e   : > { %p3306_p9 = pneg %p3305_p7 }
 0x170   : > { %p3313_p12 = pnand %p3312_p11, %p3306_p9 }
 0x172   : > { %3316 = shalt.err (!%p3313_p12)
}
 0x173   : > { %s4765_s22 = sld [smem:[#allocation40_spill]]  ;;  %s4766_s26 = sld [smem:[#allocation39_spill]] }
 0x174   : > { %s4767_s2 = sld [smem:[#allocation41_spill]]  ;;  %s2567_s23 = sadd.s32 4294967294, %s3475_s21  }
 0x175   : > { %2792 = dma.hbm_to_vmem [thread:$0]  (!%p3625_p6), %s4719_s14, 16, %s546_s25, [#allocation26]  }
 0x176   : > { %s3894_s28 = sadd.s32 1, %s3475_s21   ;;  %s47_s3 = sadd.s32 1, %s3471_s20 }
 0x177   : > { %s44_s19 = ssub.s32 %s3475_s21, %s3894_s28  ;;  %p55_p0 = scmp.eq.s32.totalorder %s3475_s21, 0 }
 0x178   : > { %p45_p13 = scmp.eq.s32.totalorder %s44_s19, 0  ;;  %p389_p9 = scmp.eq.s32.totalorder %s2567_s23, 1 }
 0x179   : > { %p54_p8 = scmp.ne.s32.totalorder %s3471_s20, %s4765_s22  ;;  %p60_p1 = scmp.ne.s32.totalorder %s4765_s22, %s4766_s26 }
 0x17a   : > { %p383_p3 = scmp.eq.s32.totalorder %s4767_s2, 1  ;;  %p4768_p5 = scmp.eq.s32.totalorder %s4767_s2, 0 }
 0x17b   : > { %s3906_s1 = scalar_select %p45_p13, %s3471_s20, %s47_s3  }
 0x17c   : > { %p56_p2 = por %p55_p0, %p54_p8  ;;  %p3910_p7 = por %p4768_p5, %p60_p1 }
 0x17d   : > { %p3914_p6 = por %p383_p3, %p54_p8  ;;  %p2817_p4 = scmp.lt.s32.totalorder %s3475_s21, 2 }
 0x17e   : > { %s556_s29 = sand.u32 1, %s3471_s20   ;;  %p3920_p10 = por %p389_p9, %p60_p1 }
 0x17f   : > { %s4770_s25 = scalar_select %p3914_p6, 1, 0 }
 0x180   : > { %s4771_s15 = scalar_select %p3920_p10, 1, 0 }
 0x181   : > { %s3924_s27 = sshll.u32 %s556_s29, 6  ;;  %s2635_s0 = sshll.u32 %s3475_s21, 10 }
 0x182   : > { %s4772_s24 = sld [smem:[#allocation69_spill]]  ;;  %s560_s22 = scalar_lea.vmem [#allocation4], %s3924_s27 }
 0x183   : > { %s567_s26 = sshll.u32 %s560_s22, 4  ;;  %p3933_p11 = pnand %p2817_p4, %p56_p2  ;;  %s3937_s26 = int_to_ptr.vmem [resolvable:$true] %s567_s26 }
 0x184   : > { %s4774_s19 = sld [smem:[#allocation70_spill]]  ;;  %s3944_s16 = scalar_lea.sflag [#allocation5], %s556_s29 }
 0x185   : > { %p3319_p8 = pneg %p3933_p11 }
 0x188   : > { %s3930_s18 = scalar_lea.hbm %s4772_s24, %s2635_s0  ;;  %s3322_s7 = scalar_lea.hbm %s4772_s24, 2048 }
 0x189   : > { %s3317_s5 = scalar_lea.hbm %s3930_s18, 1024  ;;  %p3323_p1 = scmp.lt.u32.totalorder %s3930_s18, %s4772_s24 }
 0x18a   : > { %s4775_s4 = smov %s4774_s19  ;;  %s3942_s30 = scalar_lea.hbm %s4774_s19, %s2635_s0 }
 0x18b   : > { %p3318_p12 = scmp.ne.s32.totalorder %s3930_s18, %s3317_s5  ;;  %p3324_p3 = scmp.lt.u32.totalorder %s3322_s7, %s3317_s5 }
 0x18c   : > { %p3326_p5 = scmp.lt.u32.totalorder %s3317_s5, %s3930_s18 }
 0x18d   : > { %p3320_p13 = pnand %p3319_p8, %p3318_p12  ;;  %p3325_p2 = por %p3324_p3, %p3323_p1 }
 0x18f   : > { %p3321_p0 = pneg %p3320_p13  ;;  %p3327_p9 = por %p3326_p5, %p3325_p2 }
 0x191   : > { %p3328_p4 = pnand %p3327_p9, %p3321_p0 }
 0x193   : > { %3331 = shalt.err (!%p3328_p4)
}
 0x194   : > { %s3332_s29 = scalar_lea.vmem %s3937_s26, 1024  ;;  %s3494_s6 = smov [#allocation4]  }
 0x195   : > { %p3333_p12 = scmp.ne.s32.totalorder %s3937_s26, %s3332_s29  ;;  %s3337_s0 = sshll.u32 %s3494_s6, 4  ;;  %s3338_s0 = int_to_ptr.vmem [resolvable:$false] %s3337_s0 }
 0x196   : > { %s3339_s8 = scalar_lea.vmem %s3338_s0, 2048  ;;  %p3340_p6 = scmp.lt.s32.totalorder %s3937_s26, %s3338_s0 }
 0x197   : > { %p3335_p13 = pnand %p3333_p12, %p3319_p8  ;;  %p3341_p1 = scmp.lt.s32.totalorder %s3339_s8, %s3332_s29 }
 0x199   : > { %p3336_p10 = pneg %p3335_p13  ;;  %p3342_p3 = por %p3341_p1, %p3340_p6 }
 0x19b   : > { %p3343_p2 = pnand %p3342_p3, %p3336_p10 }
 0x19d   : > { %3346 = shalt.err (!%p3343_p2)
}
 0x19e   : > { %s4776_s5 = smov 8   ;;  %s4777_s7 = smov 128  }
 0x19f   : > { %2796 = dma.hbm_to_vmem [thread:$0]  (!%p3933_p11), %s3930_s18, 1024, %s3937_s26, %s3944_s16, %s4777_s7, %s4777_s7, %s4776_s5  }
 0x1a0   : > { %s581_s9 = scalar_lea.vmem [#allocation7], %s3924_s27  ;;  %s577_s3 = sand.u32 1, %s3475_s21  }
 0x1a1   : > { %s588_s23 = sshll.u32 %s581_s9, 4  ;;  %s3979_s19 = scalar_lea.sflag [#allocation8], %s577_s3  ;;  %s3977_s23 = int_to_ptr.vmem [resolvable:$true] %s588_s23 }
 0x1a2   : > { %s3347_s22 = scalar_lea.hbm %s3942_s30, 1024  ;;  %s3352_s0 = scalar_lea.hbm %s4775_s4, 2048 }
 0x1a3   : > { %p3348_p6 = scmp.ne.s32.totalorder %s3942_s30, %s3347_s22  ;;  %p3353_p5 = scmp.lt.u32.totalorder %s3942_s30, %s4775_s4 }
 0x1a4   : > { %p3354_p9 = scmp.lt.u32.totalorder %s3352_s0, %s3347_s22  ;;  %p3356_p12 = scmp.lt.u32.totalorder %s3347_s22, %s3942_s30 }
 0x1a5   : > { %p3350_p10 = pnand %p3348_p6, %p3319_p8 }
 0x1a6   : > { %p3355_p4 = por %p3354_p9, %p3353_p5 }
 0x1a7   : > { %p3351_p0 = pneg %p3350_p10 }
 0x1a8   : > { %p3357_p13 = por %p3356_p12, %p3355_p4 }
 0x1aa   : > { %p3358_p1 = pnand %p3357_p13, %p3351_p0 }
 0x1ac   : > { %3361 = shalt.err (!%p3358_p1)
}
 0x1ad   : > { %s3362_s27 = scalar_lea.vmem %s3977_s23, 1024  ;;  %s3495_s18 = smov [#allocation7]  }
 0x1ae   : > { %p3363_p3 = scmp.ne.s32.totalorder %s3977_s23, %s3362_s27  ;;  %s3367_s26 = sshll.u32 %s3495_s18, 4  ;;  %s3368_s26 = int_to_ptr.vmem [resolvable:$false] %s3367_s26 }
 0x1af   : > { %s3369_s10 = scalar_lea.vmem %s3368_s26, 2048  ;;  %p3370_p10 = scmp.lt.s32.totalorder %s3977_s23, %s3368_s26 }
 0x1b0   : > { %p3365_p2 = pnand %p3363_p3, %p3319_p8  ;;  %p3371_p5 = scmp.lt.s32.totalorder %s3369_s10, %s3362_s27 }
 0x1b2   : > { %p3366_p6 = pneg %p3365_p2  ;;  %p3372_p9 = por %p3371_p5, %p3370_p10 }
 0x1b4   : > { %p3373_p4 = pnand %p3372_p9, %p3366_p6 }
 0x1b6   : > { %3376 = shalt.err (!%p3373_p4)
}
 0x1b7   : > { %2799 = dma.hbm_to_vmem [thread:$0]  (!%p3933_p11), %s3942_s30, 1024, %s3977_s23, %s3979_s19, %s4777_s7, %s4777_s7, %s4776_s5  }
 0x1b8   : > { %s4778_s16 = sld [smem:[#allocation42_spill]] }
 0x1be   : > { %p4779_p8 = scmp.ne.s32.totalorder %s4778_s16, 0 }
 0x1c0   : > { %600 = sbr.rel (%p4779_p8) target bundleno = 2351 (0x92f), region = 80 }
 0x1c7   : > { %s4780_s9 = sld [smem:[#allocation40_spill]] }
 0x1cd   : > { %s4011_s3 = sand.u32 1, %s4780_s9  }
 0x1ce   : > { %s4014_s22 = sshll.u32 %s4011_s3, 6  ;;  %s603_s2 = scalar_lea.sflag [#allocation5], %s4011_s3 }
 0x1cf   : > { %s4018_s29 = scalar_lea.vmem [#allocation4], %s4014_s22 }
 0x1d0   : > { %3422 = dma.done.wait (%p3910_p7), %s603_s2, 1024  }
 0x1d1   : > { %3424 = vsyncadd (%p3910_p7), %s603_s2, 4294966272  ;;  %s4781_s30 = sld [smem:[#allocation41_spill]]  ;;  %s4026_s23 = scalar_lea.vmem [#allocation7], %s4014_s22 }
 0x1d7   : > { %s611_s5 = sand.u32 1, %s4781_s30  }
 0x1d8   : > { %s612_s7 = scalar_lea.sflag [#allocation8], %s611_s5 }
 0x1d9   : > { %3426 = dma.done.wait (%p3910_p7), %s612_s7, 1024  }
 0x1da   : > { %3428 = vsyncadd (%p3910_p7), %s612_s7, 4294966272  ;;  %p4782_p11 = scmp.eq.s32.totalorder %s4781_s30, 0 }
 0x1dc   : > { %3430 = dma.done.wait (%p4782_p11), [#allocation8], 9216   ;;  %p4783_p0 = pmov %p4782_p11 }
 0x1de   : > { %3432 = vsyncadd (%p4783_p0), [#allocation8], 4294958080  ;;  %p4784_p12 = pmov %p4783_p0 }
 0x1df   : > { %p4785_p13 = pmov %p4783_p0 }
 0x1e0   : > { %3434 = dma.done.wait (%p4784_p12), [#allocation11], 32  }
 0x1e1   : > { %3436 = vsyncadd (%p4785_p13), [#allocation11], 4294967264  ;;  %p4786_p1 = pmov %p4783_p0 }
 0x1e2   : > { %p4787_p3 = pmov %p4783_p0 }
 0x1e3   : > { %3438 = dma.done.wait (%p4786_p1), [#allocation14], 80  }
 0x1e4   : > { %3440 = vsyncadd (%p4787_p3), [#allocation14], 4294967216  ;;  %p4788_p7 = pmov %p4783_p0 }
 0x1e5   : > { %p4789_p2 = pmov %p4783_p0 }
 0x1e6   : > { %3442 = dma.done.wait (%p4788_p7), [#allocation17], 32  }
 0x1e7   : > { %3444 = vsyncadd (%p4789_p2), [#allocation17], 4294967264  ;;  %p4790_p6 = pmov %p4783_p0 }
 0x1e8   : > { %p4791_p10 = pmov %p4783_p0 }
 0x1e9   : > { %3446 = dma.done.wait (%p4790_p6), [#allocation20], 336  }
 0x1ea   : > { %3448 = vsyncadd (%p4791_p10), [#allocation20], 4294966960  ;;  %p4792_p5 = pmov %p4783_p0 }
 0x1eb   : > { %p4793_p9 = pmov %p4783_p0 }
 0x1ec   : > { %3450 = dma.done.wait (%p4792_p5), [#allocation23], 32  }
 0x1ed   : > { %3452 = vsyncadd (%p4793_p9), [#allocation23], 4294967264  ;;  %p4794_p4 = pmov %p4783_p0 }
 0x1ee   : > { %p4795_p8 = pmov %p4783_p0 }
 0x1ef   : > { %3454 = dma.done.wait (%p4794_p4), [#allocation26], 48  }
 0x1f0   : > { %3456 = vsyncadd (%p4795_p8), [#allocation26], 4294967248  ;;  %vm730_vm0 = vcmask 64512   ;;  %v720_v0 = vld [vmem:[%s4018_s29] sm:$0xff]  ;;  %v722_v1 = vld [vmem:[%s4018_s29 + $0x10] sm:$0xff]  ;;  %v3496_v16 = vmov 0  }
 0x1f1   : > { %v721_v2 = vld [vmem:[%s4018_s29 + $0x8] sm:$0xff]  ;;  %v731_v3 = vsel %vm730_vm0, %v720_v0, 0.0  ;;  %v737_v4 = vsel %vm730_vm0, %v722_v1, 0.0  ;;  %v723_v5 = vld [vmem:[%s4018_s29 + $0x18] sm:$0xff]  ;;  %v724_v7 = vld [vmem:[%s4018_s29 + $0x20] sm:$0xff]  ;;  %2893 = vset.pattern.permute.xlu1 %v3496_v16  ;;  %2892 = vset.pattern.permute.xlu0 %v3496_v16  ;;  %vm896_vm1 = vcmask 1043456  }
 0x1f2   : > { %732 = vadd.xlane.f32.xlu0 %v731_v3  ;;  %738 = vadd.xlane.f32.xlu1 %v737_v4  ;;  %v734_v6 = vsel %vm730_vm0, %v721_v2, 0.0  ;;  %v740_v8 = vsel %vm730_vm0, %v723_v5, 0.0  ;;  %v725_v9 = vld [vmem:[%s4018_s29 + $0x28] sm:$0xff]  ;;  %v743_v10 = vsel %vm730_vm0, %v724_v7, 0.0  ;;  %v726_v12 = vld [vmem:[%s4018_s29 + $0x30] sm:$0xff]  ;;  %v727_v13 = vld [vmem:[%s4018_s29 + $0x38] sm:$0xff] }
 0x1f3   : > { %v746_v11 = vsel %vm730_vm0, %v725_v9, 0.0  ;;  %v749_v14 = vsel %vm730_vm0, %v726_v12, 0.0  ;;  %v752_v15 = vsel %vm730_vm0, %v727_v13, 0.0  ;;  %v1110_v57 = vld [vmem:[%s4026_s23 + $0x8] sm:$0xff]  ;;  %v1111_v58 = vld [vmem:[%s4026_s23 + $0x10] sm:$0xff]  ;;  %v1112_v59 = vld [vmem:[%s4026_s23 + $0x18] sm:$0xff] }
 0x1f4   : > { %v1113_v60 = vld [vmem:[%s4026_s23 + $0x20] sm:$0xff]  ;;  %v1114_v63 = vld [vmem:[%s4026_s23 + $0x28] sm:$0xff]  ;;  %v1116_v3 = vld [vmem:[%s4026_s23 + $0x38] sm:$0xff]  ;;  %vm967_vm2 = vcmask 31744   ;;  %v3497_v4 = vmov 0.0   ;;  %s3498_s17 = smov 4  }
 0x1f5   : > { %v876_v61 = vld [vmem:[#allocation13] sm:$0xf]  ;;  %1166 = vst.msk [vmem:[#allocation2 + $0x8] sm:$0xff] %vm967_vm2, %v3497_v4  ;;  %1165 = vst.msk [vmem:[#allocation2] sm:$0xff] %vm967_vm2, %v3497_v4  ;;  %v1442_v16 = vld [vmem:[#allocation9 + $0xd0] sm:$0xff]  ;;  %s3499_s19 = smov 16  }
 0x1f6   : > { %735 = vadd.xlane.f32.xlu0 %v734_v6  ;;  %741 = vadd.xlane.f32.xlu1 %v740_v8  ;;  %v898_v62 = vsel %vm896_vm1, %v876_v61, 0  ;;  %1167 = vst.msk [vmem:[#allocation2 + $0x10] sm:$0xff] %vm967_vm2, %v3497_v4  ;;  %1168 = vst.msk [vmem:[#allocation2 + $0x58] sm:$0xff] %vm967_vm2, %v3497_v4  ;;  %v1261_v6 = vld [vmem:[#allocation9 + $0x48] sm:$0xff]  ;;  %v1262_v8 = vld [vmem:[#allocation9 + $0x50] sm:$0xff]  ;;  %s3500_s6 = smov 8  }
 0x1f7   : > { %2691 = vmatprep.subr.msk.bf16.mxu0 %vm896_vm1, %v876_v61  ;;  %2692 = vmatprep.subr.msk.bf16.mxu1 %vm896_vm1, %v876_v61  ;;  %1169 = vst.msk [vmem:[#allocation2 + $0x60] sm:$0xff] %vm967_vm2, %v3497_v4  ;;  %1170 = vst.msk [vmem:[#allocation2 + $0x68] sm:$0xff] %vm967_vm2, %v3497_v4  ;;  %s3501_s0 = smov 28   ;;  %s3502_s8 = smov 20   ;;  %vm1336_vm3 = vcmask 64544   ;;  %vm2015_vm4 = vcmask 1041408  }
 0x1f8   : > { %2656 = vmatpush3.bf16.msra.mxu0 %v898_v62  ;;  %2690 = vmatpush3.bf16.msra.mxu1 %v898_v62  ;;  %v1537_v62 = vld [vmem:[#allocation9 + $0x138] sm:$0xff]  ;;  %s3503_s27 = smov 32   ;;  %s3504_s18 = smov 12   ;;  %vm1426_vm5 = vcmask 97344   ;;  %vm1516_vm6 = vcmask 130144   ;;  %vm1606_vm7 = vcmask 162944  }
 0x1f9   : > { %s3505_s26 = smov 24   ;;  %vm1696_vm8 = vcmask 195744   ;;  %vm1786_vm9 = vcmask 228544   ;;  %vm1876_vm10 = vcmask 261344   ;;  %vm1966_vm11 = vcmask 294144   ;;  %s4629_s10 = scalar_lea.vmem [#allocation28], %s4014_s22 }
 0x1fa   : > { %744 = vadd.xlane.f32.xlu0 %v743_v10  ;;  %747 = vadd.xlane.f32.xlu1 %v746_v11  ;;  %v1350_v10 = vld [vmem:[#allocation9 + $0x80] sm:$0xff]  ;;  %v1441_v11 = vld [vmem:[#allocation9 + $0xc8] sm:$0xff]  ;;  %vm2002_vm12 = vcmask 293888   ;;  %s2637_s16 = sshll.u32 %s4781_s30, 10  ;;  %s2348_s9 = sshll.u32 %s4629_s10, 4  ;;  %s4656_s9 = int_to_ptr.vmem [resolvable:$true] %s2348_s9 }
 0x1fb   : > { %s4848_s5 = sld [smem:[#allocation80_spill]]  ;;  %s2335_s7 = scalar_lea.sflag [#allocation6], %s4011_s3 }
 0x1fc   : > { %p4849_p0 = scmp.ne.s32.totalorder %s4770_s25, 0 }
 0x1fe   : > { %750 = vadd.xlane.f32.xlu0 %v749_v14  ;;  %753 = vadd.xlane.f32.xlu1 %v752_v15  ;;  %v1440_v14 = vld [vmem:[#allocation9 + $0xc0] sm:$0xff]  ;;  %v1531_v15 = vld [vmem:[#allocation9 + $0x108] sm:$0xff] }
 0x201   : > { %s4651_s30 = scalar_lea.hbm %s4848_s5, %s2637_s16 }
 0x27f   : > { %v733_v17 = vpop.xlane.xlu0 %732  ;;  %v739_v18 = vpop.xlane.xlu1 %738 }
 0x280   : > { %v756_v19 = vmul.f32 0.125, %v733_v17  ;;  %v758_v20 = vmul.f32 0.125, %v739_v18  ;;  %v1533_v17 = vld [vmem:[#allocation9 + $0x118] sm:$0xff]  ;;  %v1530_v18 = vld [vmem:[#allocation9 + $0x100] sm:$0xff] }
 0x282   : > { %v4076_v21 = vsub.f32 %v720_v0, %v756_v19  ;;  %v4078_v22 = vsub.f32 %v722_v1, %v758_v20  ;;  %v1115_v0 = vld [vmem:[%s4026_s23 + $0x30] sm:$0xff]  ;;  %v1109_v1 = vld [vmem:[%s4026_s23] sm:$0xff]  ;;  %v1621_v19 = vld [vmem:[#allocation9 + $0x148] sm:$0xff]  ;;  %s3377_s23 = scalar_lea.vmem %s4656_s9, 1024 }
 0x283   : > { %v736_v23 = vpop.xlane.xlu0 %735  ;;  %v742_v24 = vpop.xlane.xlu1 %741  ;;  %v1532_v20 = vld [vmem:[#allocation9 + $0x110] sm:$0xff]  ;;  %p3378_p11 = scmp.ne.s32.totalorder %s4656_s9, %s3377_s23 }
 0x284   : > { %v757_v25 = vmul.f32 0.125, %v736_v23  ;;  %v759_v26 = vmul.f32 0.125, %v742_v24  ;;  %v772_v27 = vmul.f32 %v4076_v21, %v4076_v21  ;;  %v774_v28 = vmul.f32 %v4078_v22, %v4078_v22  ;;  %v1623_v23 = vld [vmem:[#allocation9 + $0x158] sm:$0xff]  ;;  %v1620_v24 = vld [vmem:[#allocation9 + $0x140] sm:$0xff] }
 0x285   : > { %p3379_p12 = pnand %p3378_p11, %p4849_p0 }
 0x286   : > { %v4084_v29 = vsub.f32 %v721_v2, %v757_v25  ;;  %v4086_v30 = vsub.f32 %v723_v5, %v759_v26  ;;  %v780_v31 = vsel %vm730_vm0, %v772_v27, 0.0  ;;  %v786_v34 = vsel %vm730_vm0, %v774_v28, 0.0  ;;  %v1260_v2 = vld [vmem:[#allocation9 + $0x40] sm:$0xff]  ;;  %v1263_v5 = vld [vmem:[#allocation9 + $0x58] sm:$0xff]  ;;  %v1711_v25 = vld [vmem:[#allocation9 + $0x188] sm:$0xff] }
 0x287   : > { %781 = vadd.xlane.f32.xlu0 %v780_v31  ;;  %v745_v32 = vpop.xlane.xlu0 %744  ;;  %v748_v33 = vpop.xlane.xlu1 %747  ;;  %v1622_v26 = vld [vmem:[#allocation9 + $0x150] sm:$0xff]  ;;  %v1713_v27 = vld [vmem:[#allocation9 + $0x198] sm:$0xff]  ;;  %v1710_v28 = vld [vmem:[#allocation9 + $0x180] sm:$0xff]  ;;  %p3380_p13 = pneg %p3379_p12 }
 0x288   : > { %v760_v35 = vmul.f32 0.125, %v745_v32  ;;  %v761_v36 = vmul.f32 0.125, %v748_v33  ;;  %v773_v37 = vmul.f32 %v4084_v29, %v4084_v29  ;;  %v775_v38 = vmul.f32 %v4086_v30, %v4086_v30  ;;  %v1801_v31 = vld [vmem:[#allocation9 + $0x1c8] sm:$0xff]  ;;  %v1712_v32 = vld [vmem:[#allocation9 + $0x190] sm:$0xff]  ;;  %v1803_v33 = vld [vmem:[#allocation9 + $0x1d8] sm:$0xff] }
 0x28a   : > { %v4094_v39 = vsub.f32 %v724_v7, %v760_v35  ;;  %v4096_v40 = vsub.f32 %v725_v9, %v761_v36  ;;  %v783_v41 = vsel %vm730_vm0, %v773_v37, 0.0  ;;  %v789_v44 = vsel %vm730_vm0, %v775_v38, 0.0  ;;  %v1351_v7 = vld [vmem:[#allocation9 + $0x88] sm:$0xff]  ;;  %v1353_v9 = vld [vmem:[#allocation9 + $0x98] sm:$0xff]  ;;  %v1802_v36 = vld [vmem:[#allocation9 + $0x1d0] sm:$0xff] }
 0x28b   : > { %787 = vadd.xlane.f32.xlu0 %v786_v34  ;;  %784 = vadd.xlane.f32.xlu1 %v783_v41  ;;  %v751_v42 = vpop.xlane.xlu0 %750  ;;  %v754_v43 = vpop.xlane.xlu1 %753  ;;  %v1800_v34 = vld [vmem:[#allocation9 + $0x1c0] sm:$0xff]  ;;  %v1891_v35 = vld [vmem:[#allocation9 + $0x208] sm:$0xff]  ;;  %v1893_v41 = vld [vmem:[#allocation9 + $0x218] sm:$0xff] }
 0x28c   : > { %v762_v45 = vmul.f32 0.125, %v751_v42  ;;  %v763_v46 = vmul.f32 0.125, %v754_v43  ;;  %v776_v47 = vmul.f32 %v4094_v39, %v4094_v39  ;;  %v777_v48 = vmul.f32 %v4096_v40, %v4096_v40  ;;  %v1265_v37 = vld [vmem:[#allocation9 + $0x68] sm:$0xff]  ;;  %v1890_v38 = vld [vmem:[#allocation9 + $0x200] sm:$0xff]  ;;  %v1267_v43 = vld [vmem:[#allocation9 + $0x78] sm:$0xff] }
 0x28d   : > { %v1264_v42 = vld [vmem:[#allocation9 + $0x60] sm:$0xff] }
 0x28e   : > { %v4104_v49 = vsub.f32 %v726_v12, %v762_v45  ;;  %v4106_v50 = vsub.f32 %v727_v13, %v763_v46  ;;  %v792_v51 = vsel %vm730_vm0, %v776_v47, 0.0  ;;  %v795_v52 = vsel %vm730_vm0, %v777_v48, 0.0  ;;  %v1352_v12 = vld [vmem:[#allocation9 + $0x90] sm:$0xff]  ;;  %v1443_v13 = vld [vmem:[#allocation9 + $0xd8] sm:$0xff]  ;;  %v1355_v45 = vld [vmem:[#allocation9 + $0xa8] sm:$0xff] }
 0x28f   : > { %790 = vadd.xlane.f32.xlu1 %v789_v44  ;;  %793 = vadd.xlane.f32.xlu0 %v792_v51  ;;  %v1892_v44 = vld [vmem:[#allocation9 + $0x210] sm:$0xff]  ;;  %v1357_v47 = vld [vmem:[#allocation9 + $0xb8] sm:$0xff]  ;;  %v1354_v48 = vld [vmem:[#allocation9 + $0xa0] sm:$0xff] }
 0x290   : > { %v778_v53 = vmul.f32 %v4104_v49, %v4104_v49  ;;  %v779_v54 = vmul.f32 %v4106_v50, %v4106_v50  ;;  %v1266_v46 = vld [vmem:[#allocation9 + $0x70] sm:$0xff]  ;;  %v1445_v51 = vld [vmem:[#allocation9 + $0xe8] sm:$0xff] }
 0x292   : > { %v798_v55 = vsel %vm730_vm0, %v778_v53, 0.0  ;;  %v801_v56 = vsel %vm730_vm0, %v779_v54, 0.0  ;;  %v1447_v53 = vld [vmem:[#allocation9 + $0xf8] sm:$0xff]  ;;  %v1444_v54 = vld [vmem:[#allocation9 + $0xe0] sm:$0xff] }
 0x293   : > { %796 = vadd.xlane.f32.xlu1 %v795_v52  ;;  %799 = vadd.xlane.f32.xlu0 %v798_v55  ;;  %v1356_v52 = vld [vmem:[#allocation9 + $0xb0] sm:$0xff] }
 0x297   : > { %802 = vadd.xlane.f32.xlu1 %v801_v56  ;;  %v1535_v56 = vld [vmem:[#allocation9 + $0x128] sm:$0xff] }
 0x2a8   : > { %1124 = vperm.xlu1 %2893, %v1110_v57  }
 0x2a9   : > { %1119 = vperm.xlu0 %2892, %v1109_v1   ;;  %v1534_v1 = vld [vmem:[#allocation9 + $0x120] sm:$0xff] }
 0x2ac   : > { %1129 = vperm.xlu1 %2893, %v1111_v58   ;;  %v1446_v58 = vld [vmem:[#allocation9 + $0xf0] sm:$0xff] }
 0x2ad   : > { %1154 = vperm.xlu0 %2892, %v1116_v3  }
 0x2b0   : > { %1134 = vperm.xlu1 %2893, %v1112_v59  }
 0x2b1   : > { %1285 = vperm.xlu0 %2892, %v1263_v5  }
 0x2b4   : > { %1139 = vperm.xlu1 %2893, %v1113_v60  }
 0x2b5   : > { %1365 = vperm.xlu0 %2892, %v1351_v7  }
 0x2b8   : > { %1144 = vperm.xlu1 %2893, %v1114_v63  }
 0x2b9   : > { %1375 = vperm.xlu0 %2892, %v1353_v9   ;;  %v1536_v9 = vld [vmem:[#allocation9 + $0x130] sm:$0xff] }
 0x2bc   : > { %1149 = vperm.xlu1 %2893, %v1115_v0  }
 0x2bd   : > { %1455 = vperm.xlu0 %2892, %v1441_v11  }
 0x2c0   : > { %1270 = vperm.xlu1 %2893, %v1260_v2  }
 0x2c1   : > { %1465 = vperm.xlu0 %2892, %v1443_v13  }
 0x2c4   : > { %1275 = vperm.xlu1 %2893, %v1261_v6   ;;  %v1625_v6 = vld [vmem:[#allocation9 + $0x168] sm:$0xff] }
 0x2c5   : > { %1545 = vperm.xlu0 %2892, %v1531_v15  }
 0x2c8   : > { %1280 = vperm.xlu1 %2893, %v1262_v8  }
 0x2c9   : > { %1555 = vperm.xlu0 %2892, %v1533_v17  }
 0x2cc   : > { %1360 = vperm.xlu1 %2893, %v1350_v10  }
 0x2cd   : > { %1635 = vperm.xlu0 %2892, %v1621_v19  }
 0x2d0   : > { %1370 = vperm.xlu1 %2893, %v1352_v12  }
 0x2d1   : > { %1645 = vperm.xlu0 %2892, %v1623_v23  }
 0x2d4   : > { %1450 = vperm.xlu1 %2893, %v1440_v14  }
 0x2d5   : > { %1725 = vperm.xlu0 %2892, %v1711_v25  }
 0x2d8   : > { %1460 = vperm.xlu1 %2893, %v1442_v16   ;;  %v1624_v16 = vld [vmem:[#allocation9 + $0x160] sm:$0xff] }
 0x2d9   : > { %1735 = vperm.xlu0 %2892, %v1713_v27  }
 0x2dc   : > { %1540 = vperm.xlu1 %2893, %v1530_v18  }
 0x2dd   : > { %1815 = vperm.xlu0 %2892, %v1801_v31   ;;  %v2607_v31 = vld [vmem:[#allocation12] ss:$0 sm:$0xff] }
 0x2e0   : > { %1550 = vperm.xlu1 %2893, %v1532_v20   ;;  %v2606_v20 = vld [vmem:[#allocation10] ss:$0 sm:$0xff] }
 0x2e1   : > { %1825 = vperm.xlu0 %2892, %v1803_v33  }
 0x2e4   : > { %1630 = vperm.xlu1 %2893, %v1620_v24  }
 0x2e5   : > { %1905 = vperm.xlu0 %2892, %v1891_v35  }
 0x2e8   : > { %1640 = vperm.xlu1 %2893, %v1622_v26  }
 0x2e9   : > { %1295 = vperm.xlu0 %2892, %v1265_v37  }
 0x2ec   : > { %1720 = vperm.xlu1 %2893, %v1710_v28  }
 0x2ed   : > { %1915 = vperm.xlu0 %2892, %v1893_v41  }
 0x2f0   : > { %1730 = vperm.xlu1 %2893, %v1712_v32  }
 0x2f1   : > { %1305 = vperm.xlu0 %2892, %v1267_v43  }
 0x2f4   : > { %1810 = vperm.xlu1 %2893, %v1800_v34  }
 0x2f5   : > { %1385 = vperm.xlu0 %2892, %v1355_v45  }
 0x2f8   : > { %1820 = vperm.xlu1 %2893, %v1802_v36  }
 0x2f9   : > { %1395 = vperm.xlu0 %2892, %v1357_v47  }
 0x2fc   : > { %1900 = vperm.xlu1 %2893, %v1890_v38  }
 0x2fd   : > { %1475 = vperm.xlu0 %2892, %v1445_v51  }
 0x300   : > { %1290 = vperm.xlu1 %2893, %v1264_v42  }
 0x301   : > { %1485 = vperm.xlu0 %2892, %v1447_v53  }
 0x304   : > { %1910 = vperm.xlu1 %2893, %v1892_v44  }
 0x305   : > { %1565 = vperm.xlu0 %2892, %v1535_v56  }
 0x308   : > { %1300 = vperm.xlu1 %2893, %v1266_v46  }
 0x309   : > { %1575 = vperm.xlu0 %2892, %v1537_v62  }
 0x30c   : > { %1380 = vperm.xlu1 %2893, %v1354_v48  }
 0x30d   : > { %1655 = vperm.xlu0 %2892, %v1625_v6  }
 0x310   : > { %1390 = vperm.xlu1 %2893, %v1356_v52  }
 0x314   : > { %v782_v55 = vpop.xlane.xlu0 %781  ;;  %1470 = vperm.xlu1 %2893, %v1444_v54  }
 0x315   : > { %v804_v57 = vmul.f32 0.125, %v782_v55 }
 0x317   : > { %v812_v59 = vadd.f32 1e-05, %v804_v57 }
 0x318   : > { %v785_v60 = vpop.xlane.xlu1 %784  ;;  %v788_v61 = vpop.xlane.xlu0 %787  ;;  %1480 = vperm.xlu1 %2893, %v1446_v58  }
 0x319   : > { %2897 = vrsqrt.f32 %v812_v59  ;;  %v805_v63 = vmul.f32 0.125, %v785_v60  ;;  %v806_v0 = vmul.f32 0.125, %v788_v61 }
 0x31b   : > { %v813_v2 = vadd.f32 1e-05, %v805_v63  ;;  %v814_v3 = vadd.f32 1e-05, %v806_v0 }
 0x31c   : > { %v791_v4 = vpop.xlane.xlu1 %790  ;;  %v794_v5 = vpop.xlane.xlu0 %793  ;;  %1560 = vperm.xlu1 %2893, %v1534_v1  }
 0x31d   : > { %2899 = vrsqrt.f32 %v813_v2  ;;  %v807_v7 = vmul.f32 0.125, %v791_v4  ;;  %v808_v8 = vmul.f32 0.125, %v794_v5 }
 0x31e   : > { %2901 = vrsqrt.f32 %v814_v3 }
 0x31f   : > { %v815_v10 = vadd.f32 1e-05, %v807_v7  ;;  %v816_v11 = vadd.f32 1e-05, %v808_v8 }
 0x320   : > { %v797_v12 = vpop.xlane.xlu1 %796  ;;  %v800_v13 = vpop.xlane.xlu0 %799  ;;  %1570 = vperm.xlu1 %2893, %v1536_v9  }
 0x321   : > { %2903 = vrsqrt.f32 %v815_v10  ;;  %v809_v14 = vmul.f32 0.125, %v797_v12  ;;  %v810_v15 = vmul.f32 0.125, %v800_v13  ;;  %v2608_v13 = vld [vmem:[#allocation15] ss:$0 sm:$0xff] }
 0x322   : > { %2905 = vrsqrt.f32 %v816_v11 }
 0x323   : > { %v2898_v17 = vpop.eup %2897  ;;  %v817_v18 = vadd.f32 1e-05, %v809_v14  ;;  %v818_v19 = vadd.f32 1e-05, %v810_v15 }
 0x324   : > { %v803_v23 = vpop.xlane.xlu1 %802  ;;  %v828_v24 = vmul.f32 %v2898_v17, %v4076_v21  ;;  %1650 = vperm.xlu1 %2893, %v1624_v16  }
 0x325   : > { %2907 = vrsqrt.f32 %v817_v18  ;;  %v811_v25 = vmul.f32 0.125, %v803_v23 }
 0x326   : > { %2909 = vrsqrt.f32 %v818_v19  ;;  %v842_v26 = vmul.f32 %v2606_v20, %v828_v24 }
 0x327   : > { %v2900_v27 = vpop.eup %2899  ;;  %v819_v28 = vadd.f32 1e-05, %v811_v25 }
 0x328   : > { %v2902_v32 = vpop.eup %2901  ;;  %v829_v33 = vmul.f32 %v2900_v27, %v4084_v29  ;;  %v856_v36 = vadd.f32 %v2607_v31, %v842_v26  ;;  %v4142_v5 = vpop.permute.xlu1 %1124 }
 0x329   : > { %v830_v34 = vmul.f32 %v2902_v32, %v4078_v22  ;;  %2911 = vrsqrt.f32 %v819_v28  ;;  %v4154_v10 = vpop.permute.xlu0 %1119 }
 0x32a   : > { %v843_v35 = vmul.f32 %v2606_v20, %v829_v33  ;;  %v864_v44 = vmax.f32 %v856_v36, 0.0 }
 0x32b   : > { %v2904_v37 = vpop.eup %2903  ;;  %v844_v38 = vmul.f32 %v2606_v20, %v830_v34 }
 0x32c   : > { %v2906_v41 = vpop.eup %2905  ;;  %v831_v21 = vmul.f32 %v2904_v37, %v4086_v30  ;;  %v857_v42 = vadd.f32 %v2607_v31, %v843_v35 }
 0x32d   : > { %v832_v43 = vmul.f32 %v2906_v41, %v4094_v39  ;;  %v858_v47 = vadd.f32 %v2607_v31, %v844_v38  ;;  %v4158_v12 = vpop.permute.xlu0 %1154 }
 0x32e   : > { %v865_v45 = vmax.f32 %v857_v42, 0.0  ;;  %v845_v46 = vmul.f32 %v2606_v20, %v831_v21 }
 0x32f   : > { %v2908_v48 = vpop.eup %2907  ;;  %v846_v51 = vmul.f32 %v2606_v20, %v832_v43  ;;  %v866_v55 = vmax.f32 %v858_v47, 0.0 }
 0x330   : > { %v2910_v29 = vpop.eup %2909  ;;  %v872_v52 = vpack.c.bf16 %v865_v45, %v864_v44  ;;  %v859_v22 = vadd.f32 %v2607_v31, %v845_v46  ;;  %v833_v53 = vmul.f32 %v2908_v48, %v4096_v40 }
 0x331   : > { %v834_v54 = vmul.f32 %v2910_v29, %v4104_v49  ;;  %v860_v57 = vadd.f32 %v2607_v31, %v846_v51  ;;  %v4164_v19 = vpop.permute.xlu0 %1285 }
 0x332   : > { %2657 = vmatprep.mubr.msk.bf16.mxu0 %vm730_vm0, %v872_v52  ;;  %v867_v30 = vmax.f32 %v859_v22, 0.0  ;;  %v847_v56 = vmul.f32 %v2606_v20, %v833_v53  ;;  %v1626_v53 = vld [vmem:[#allocation9 + $0x170] sm:$0xff] }
 0x333   : > { %v2912_v39 = vpop.eup %2911  ;;  %v848_v58 = vmul.f32 %v2606_v20, %v834_v54  ;;  %v868_v62 = vmax.f32 %v860_v57, 0.0 }
 0x334   : > { %v835_v59 = vmul.f32 %v2912_v39, %v4106_v50  ;;  %v873_v60 = vpack.c.bf16 %v867_v30, %v866_v55  ;;  %v861_v61 = vadd.f32 %v2607_v31, %v847_v56  ;;  %v4144_v50 = vpop.permute.xlu1 %1129  ;;  %v1627_v56 = vld [vmem:[#allocation9 + $0x178] sm:$0xff]  ;;  %v1715_v39 = vld [vmem:[#allocation9 + $0x1a8] sm:$0xff] }
 0x335   : > { %v862_v40 = vadd.f32 %v2607_v31, %v848_v58  ;;  %v4174_v28 = vpop.permute.xlu0 %1365 }
 0x336   : > { %2658 = vmatmul.mubr.msk.bf16.vlgmr.msra.gmra.mrb[0].mxu0 %vm730_vm0, %v873_v60  ;;  %v869_v63 = vmax.f32 %v861_v61, 0.0  ;;  %v849_v0 = vmul.f32 %v2606_v20, %v835_v59  ;;  %v1717_v60 = vld [vmem:[#allocation9 + $0x1b8] sm:$0xff] }
 0x337   : > { %v870_v2 = vmax.f32 %v862_v40, 0.0 }
 0x338   : > { %v874_v1 = vpack.c.bf16 %v869_v63, %v868_v62  ;;  %v863_v49 = vadd.f32 %v2607_v31, %v849_v0  ;;  %v4146_v6 = vpop.permute.xlu1 %1134  ;;  %v1805_v62 = vld [vmem:[#allocation9 + $0x1e8] sm:$0xff] }
 0x339   : > { %v4192_v43 = vpop.permute.xlu0 %1375 }
 0x33a   : > { %2661 = vmatprep.mubr.msk.bf16.mxu1 %vm730_vm0, %v874_v1  ;;  %v871_v3 = vmax.f32 %v863_v49, 0.0 }
 0x33c   : > { %v875_v4 = vpack.c.bf16 %v871_v3, %v870_v2  ;;  %v4148_v7 = vpop.permute.xlu1 %1139 }
 0x33d   : > { %v4204_v51 = vpop.permute.xlu0 %1455 }
 0x33e   : > { %2662 = vmatmul.mubr.msk.bf16.vlgmr.msra.gmra.mrb[0].mxu1 %vm730_vm0, %v875_v4 }
 0x340   : > { %v4150_v8 = vpop.permute.xlu1 %1144 }
 0x341   : > { %4796 = vst [vmem:[#allocation43_spill] sm:$0xff] %v4150_v8  ;;  %v4208_v52 = vpop.permute.xlu0 %1465 }
 0x342   : > { %4797 = vst [vmem:[#allocation44_spill] sm:$0xff] %v4208_v52 }
 0x344   : > { %v4152_v9 = vpop.permute.xlu1 %1149 }
 0x345   : > { %v4212_v54 = vpop.permute.xlu0 %1545 }
 0x348   : > { %v4156_v11 = vpop.permute.xlu1 %1270 }
 0x349   : > { %v4216_v30 = vpop.permute.xlu0 %1555 }
 0x34c   : > { %v4160_v14 = vpop.permute.xlu1 %1275 }
 0x34d   : > { %v4220_v58 = vpop.permute.xlu0 %1635 }
 0x350   : > { %v4170_v25 = vpop.permute.xlu1 %1280 }
 0x351   : > { %v4224_v61 = vpop.permute.xlu0 %1645 }
 0x354   : > { %v4178_v34 = vpop.permute.xlu1 %1360 }
 0x355   : > { %v4228_v0 = vpop.permute.xlu0 %1725 }
 0x356   : > { %4799 = vst [vmem:[#allocation46_spill] sm:$0xff] %v4228_v0 }
 0x358   : > { %v4198_v46 = vpop.permute.xlu1 %1370 }
 0x359   : > { %v4232_v1 = vpop.permute.xlu0 %1735 }
 0x35a   : > { %4800 = vst [vmem:[#allocation47_spill] sm:$0xff] %v4232_v1 }
 0x35c   : > { %v4206_v29 = vpop.permute.xlu1 %1450 }
 0x35d   : > { %v4236_v2 = vpop.permute.xlu0 %1815 }
 0x360   : > { %v4210_v22 = vpop.permute.xlu1 %1460 }
 0x361   : > { %4798 = vst [vmem:[#allocation45_spill] sm:$0xff] %v4210_v22 }
 0x364   : > { %v4214_v55 = vpop.permute.xlu1 %1540 }
 0x368   : > { %v4218_v57 = vpop.permute.xlu1 %1550 }
 0x36c   : > { %v4222_v59 = vpop.permute.xlu1 %1630 }
 0x370   : > { %v4226_v63 = vpop.permute.xlu1 %1640 }
 0x374   : > { %v4230_v40 = vpop.permute.xlu1 %1720 }
 0x378   : > { %v4234_v49 = vpop.permute.xlu1 %1730 }
 0x379   : > { %4801 = vst [vmem:[#allocation48_spill] sm:$0xff] %v4234_v49 }
 0x37c   : > { %v4240_v4 = vpop.permute.xlu1 %1810 }
 0x409   : > { %v2659_v15 = vpop.f32.mrb[0].mxu0 }
 0x40a   : > { %v4162_v16 = vadd.f32 %v2659_v15, %v2608_v13  ;;  %v934_v17 = vpop.f32.mrb[1].mxu0  ;;  %v4244_v15 = vpop.permute.xlu1 %1820 }
 0x40b   : > { %v2660_v18 = vpop.f32.mrb[2].mxu0  ;;  %v4180_v35 = vadd.f32 %v2608_v13, %v934_v17  ;;  %4803 = vst [vmem:[#allocation50_spill] sm:$0xff] %v4244_v15 }
 0x40c   : > { %v4166_v20 = vadd.f32 %v2660_v18, %v2608_v13  ;;  %v937_v23 = vpop.f32.mrb[3].mxu0  ;;  %v974_v24 = vsel %vm967_vm2, %v4162_v16, 0.0 }
 0x40d   : > { %975 = vadd.xlane.f32.xlu0 %v974_v24  ;;  %v4188_v21 = vadd.f32 %v2608_v13, %v937_v23  ;;  %v968_v45 = vsel %vm967_vm2, %v4180_v35, 0.0  ;;  %v1714_v23 = vld [vmem:[#allocation9 + $0x1a0] sm:$0xff] }
 0x40e   : > { %v977_v26 = vsel %vm967_vm2, %v4166_v20, 0.0  ;;  %v4248_v18 = vpop.permute.xlu1 %1900 }
 0x40f   : > { %978 = vadd.xlane.f32.xlu1 %v977_v26  ;;  %v971_v47 = vsel %vm967_vm2, %v4188_v21, 0.0 }
 0x411   : > { %v2663_v27 = vpop.f32.mrb[0].mxu1 }
 0x412   : > { %v4176_v31 = vadd.f32 %v2663_v27, %v2608_v13  ;;  %v950_v32 = vpop.f32.mrb[1].mxu1  ;;  %v4252_v26 = vpop.permute.xlu1 %1290  ;;  %v1716_v27 = vld [vmem:[#allocation9 + $0x1b0] sm:$0xff] }
 0x413   : > { %v2664_v33 = vpop.f32.mrb[2].mxu1  ;;  %v4194_v44 = vadd.f32 %v2608_v13, %v950_v32 }
 0x414   : > { %v4182_v36 = vadd.f32 %v2664_v33, %v2608_v13  ;;  %v953_v37 = vpop.f32.mrb[3].mxu1  ;;  %v986_v38 = vsel %vm967_vm2, %v4176_v31, 0.0  ;;  %v1804_v33 = vld [vmem:[#allocation9 + $0x1e0] sm:$0xff] }
 0x415   : > { %v4186_v41 = vadd.f32 %v2608_v13, %v953_v37  ;;  %987 = vadd.xlane.f32.xlu0 %v986_v38  ;;  %v980_v48 = vsel %vm967_vm2, %v4194_v44, 0.0  ;;  %v4242_v13 = vpop.permute.xlu0 %1825  ;;  %v1806_v38 = vld [vmem:[#allocation9 + $0x1f0] sm:$0xff] }
 0x416   : > { %v989_v42 = vsel %vm967_vm2, %v4182_v36, 0.0  ;;  %4802 = vst [vmem:[#allocation49_spill] sm:$0xff] %v4242_v13  ;;  %v4256_v37 = vpop.permute.xlu1 %1910 }
 0x417   : > { %990 = vadd.xlane.f32.xlu1 %v989_v42  ;;  %v983_v3 = vsel %vm967_vm2, %v4186_v41, 0.0  ;;  %4805 = vst [vmem:[#allocation52_spill] sm:$0xff] %v4256_v37 }
 0x419   : > { %969 = vadd.xlane.f32.xlu0 %v968_v45  ;;  %v4246_v17 = vpop.permute.xlu0 %1905 }
 0x41a   : > { %v4260_v45 = vpop.permute.xlu1 %1300 }
 0x41b   : > { %972 = vadd.xlane.f32.xlu1 %v971_v47  ;;  %4807 = vst [vmem:[#allocation54_spill] sm:$0xff] %v4260_v45 }
 0x41d   : > { %981 = vadd.xlane.f32.xlu0 %v980_v48  ;;  %v4250_v24 = vpop.permute.xlu0 %1295 }
 0x41e   : > { %v4264_v48 = vpop.permute.xlu1 %1380 }
 0x421   : > { %v4254_v32 = vpop.permute.xlu0 %1915 }
 0x422   : > { %4804 = vst [vmem:[#allocation51_spill] sm:$0xff] %v4254_v32 }
 0x425   : > { %v4258_v42 = vpop.permute.xlu0 %1305 }
 0x426   : > { %4806 = vst [vmem:[#allocation53_spill] sm:$0xff] %v4258_v42 }
 0x429   : > { %v4262_v47 = vpop.permute.xlu0 %1385 }
 0x42c   : > { %1660 = vperm.xlu1 %2893, %v1626_v53  }
 0x42d   : > { %v4266_v53 = vpop.permute.xlu0 %1395 }
 0x42e   : > { %4808 = vst [vmem:[#allocation55_spill] sm:$0xff] %v4266_v53 }
 0x433   : > { %1665 = vperm.xlu0 %2892, %v1627_v56   ;;  %v4268_v56 = vpop.permute.xlu1 %1390 }
 0x434   : > { %4809 = vst [vmem:[#allocation56_spill] sm:$0xff] %v4268_v56 }
 0x437   : > { %1745 = vperm.xlu0 %2892, %v1715_v39   ;;  %v4270_v39 = vpop.permute.xlu0 %1475 }
 0x438   : > { %4810 = vst [vmem:[#allocation57_spill] sm:$0xff] %v4270_v39 }
 0x43b   : > { %1755 = vperm.xlu0 %2892, %v1717_v60   ;;  %v4272_v60 = vpop.permute.xlu1 %1470 }
 0x43c   : > { %4811 = vst [vmem:[#allocation58_spill] sm:$0xff] %v4272_v60 }
 0x43f   : > { %1835 = vperm.xlu0 %2892, %v1805_v62   ;;  %v4274_v62 = vpop.permute.xlu0 %1485 }
 0x440   : > { %4812 = vst [vmem:[#allocation59_spill] sm:$0xff] %v4274_v62 }
 0x450   : > { %984 = vadd.xlane.f32.xlu1 %v983_v3  ;;  %v4276_v3 = vpop.permute.xlu1 %1480 }
 0x451   : > { %4813 = vst [vmem:[#allocation60_spill] sm:$0xff] %v4276_v3 }
 0x461   : > { %1740 = vperm.xlu1 %2893, %v1714_v23   ;;  %v4278_v23 = vpop.permute.xlu0 %1565 }
 0x462   : > { %4814 = vst [vmem:[#allocation61_spill] sm:$0xff] %v4278_v23 }
 0x465   : > { %1750 = vperm.xlu1 %2893, %v1716_v27   ;;  %v4280_v27 = vpop.permute.xlu1 %1560 }
 0x466   : > { %4815 = vst [vmem:[#allocation62_spill] sm:$0xff] %v4280_v27 }
 0x469   : > { %1830 = vperm.xlu1 %2893, %v1804_v33   ;;  %v4282_v33 = vpop.permute.xlu0 %1575 }
 0x46d   : > { %1840 = vperm.xlu1 %2893, %v1806_v38   ;;  %v4284_v38 = vpop.permute.xlu1 %1570  ;;  %v4286_v45 = vpop.permute.xlu0 %1655 }
 0x46e   : > { %4816 = vst [vmem:[#allocation63_spill] sm:$0xff] %v4286_v45 }
 0x471   : > { %v4288_v53 = vpop.permute.xlu1 %1650 }
 0x472   : > { %4817 = vst [vmem:[#allocation64_spill] sm:$0xff] %v4288_v53 }
 0x49a   : > { %v976_v56 = vpop.xlane.xlu0 %975 }
 0x49b   : > { %v995_v42 = vmul.f32 0.25, %v976_v56 }
 0x49c   : > { %v979_v15 = vpop.xlane.xlu1 %978 }
 0x49d   : > { %v4291_v60 = vsub.f32 %v4162_v16, %v995_v42  ;;  %v996_v62 = vmul.f32 0.25, %v979_v15 }
 0x49f   : > { %v4294_v3 = vsub.f32 %v4166_v20, %v996_v62  ;;  %v1011_v27 = vmul.f32 %v4291_v60, %v4291_v60 }
 0x4a1   : > { %v1023_v23 = vsel %vm967_vm2, %v1011_v27, 0.0  ;;  %v1012_v45 = vmul.f32 %v4294_v3, %v4294_v3 }
 0x4a2   : > { %1024 = vadd.xlane.f32.xlu0 %v1023_v23  ;;  %v988_v53 = vpop.xlane.xlu0 %987 }
 0x4a3   : > { %v999_v39 = vmul.f32 0.25, %v988_v53  ;;  %v1026_v56 = vsel %vm967_vm2, %v1012_v45, 0.0 }
 0x4a4   : > { %v991_v13 = vpop.xlane.xlu1 %990  ;;  %1027 = vadd.xlane.f32.xlu1 %v1026_v56 }
 0x4a5   : > { %v4303_v16 = vsub.f32 %v4176_v31, %v999_v39  ;;  %v1000_v20 = vmul.f32 0.25, %v991_v13 }
 0x4a6   : > { %v970_v15 = vpop.xlane.xlu0 %969 }
 0x4a7   : > { %v4306_v42 = vsub.f32 %v4182_v36, %v1000_v20  ;;  %v993_v62 = vmul.f32 0.25, %v970_v15  ;;  %v1015_v27 = vmul.f32 %v4303_v16, %v4303_v16 }
 0x4a8   : > { %v973_v32 = vpop.xlane.xlu1 %972 }
 0x4a9   : > { %v4311_v23 = vsub.f32 %v4180_v35, %v993_v62  ;;  %v994_v53 = vmul.f32 0.25, %v973_v32  ;;  %v1035_v45 = vsel %vm967_vm2, %v1015_v27, 0.0  ;;  %v1016_v31 = vmul.f32 %v4306_v42, %v4306_v42 }
 0x4aa   : > { %1036 = vadd.xlane.f32.xlu0 %v1035_v45  ;;  %v982_v13 = vpop.xlane.xlu0 %981  ;;  %v1895_v45 = vld [vmem:[#allocation9 + $0x228] sm:$0xff] }
 0x4ab   : > { %v4317_v39 = vsub.f32 %v4188_v21, %v994_v53  ;;  %v997_v36 = vmul.f32 0.25, %v982_v13  ;;  %v1038_v56 = vsel %vm967_vm2, %v1016_v31, 0.0  ;;  %v1009_v20 = vmul.f32 %v4311_v23, %v4311_v23  ;;  %v1807_v53 = vld [vmem:[#allocation9 + $0x1f8] sm:$0xff]  ;;  %v1188_v31 = vld [vmem:[#allocation9 + $0x8] sm:$0xff] }
 0x4ac   : > { %1039 = vadd.xlane.f32.xlu1 %v1038_v56  ;;  %v1190_v13 = vld [vmem:[#allocation9 + $0x18] sm:$0xff]  ;;  %v1192_v56 = vld [vmem:[#allocation9 + $0x28] sm:$0xff] }
 0x4ad   : > { %v4323_v35 = vsub.f32 %v4194_v44, %v997_v36  ;;  %v1017_v32 = vsel %vm967_vm2, %v1009_v20, 0.0  ;;  %v1010_v15 = vmul.f32 %v4317_v39, %v4317_v39  ;;  %v1897_v44 = vld [vmem:[#allocation9 + $0x238] sm:$0xff]  ;;  %v4332_v36 = vpop.permute.xlu1 %1660 }
 0x4ae   : > { %1018 = vadd.xlane.f32.xlu0 %v1017_v32  ;;  %v1194_v32 = vld [vmem:[#allocation9 + $0x38] sm:$0xff] }
 0x4af   : > { %v1020_v62 = vsel %vm967_vm2, %v1010_v15, 0.0  ;;  %v1013_v21 = vmul.f32 %v4323_v35, %v4323_v35 }
 0x4b0   : > { %1021 = vadd.xlane.f32.xlu1 %v1020_v62 }
 0x4b1   : > { %v1029_v27 = vsel %vm967_vm2, %v1013_v21, 0.0 }
 0x4b2   : > { %1030 = vadd.xlane.f32.xlu0 %v1029_v27 }
 0x4c8   : > { %1845 = vperm.xlu0 %2892, %v1807_v53   ;;  %v1894_v53 = vld [vmem:[#allocation9 + $0x220] sm:$0xff] }
 0x4cc   : > { %1925 = vperm.xlu0 %2892, %v1895_v45   ;;  %v1896_v45 = vld [vmem:[#allocation9 + $0x230] sm:$0xff] }
 0x4d0   : > { %1935 = vperm.xlu0 %2892, %v1897_v44   ;;  %v1187_v44 = vld [vmem:[#allocation9] sm:$0xff] }
 0x4d4   : > { %1202 = vperm.xlu0 %2892, %v1188_v31   ;;  %v1189_v31 = vld [vmem:[#allocation9 + $0x10] sm:$0xff] }
 0x4d8   : > { %1212 = vperm.xlu0 %2892, %v1190_v13   ;;  %v1191_v13 = vld [vmem:[#allocation9 + $0x20] sm:$0xff] }
 0x4dc   : > { %1222 = vperm.xlu0 %2892, %v1192_v56   ;;  %v1251_v56 = vld [vmem:[#allocation2 + $0x8] sm:$0xff] }
 0x4dd   : > { %v985_v20 = vpop.xlane.xlu1 %984 }
 0x4de   : > { %v998_v15 = vmul.f32 0.25, %v985_v20  ;;  %v1252_v20 = vld [vmem:[#allocation2 + $0x10] sm:$0xff] }
 0x4e0   : > { %v4335_v62 = vsub.f32 %v4186_v41, %v998_v15  ;;  %1232 = vperm.xlu0 %2892, %v1194_v32   ;;  %v1193_v41 = vld [vmem:[#allocation9 + $0x30] sm:$0xff]  ;;  %v1308_v32 = vmul.f32 %v4156_v11, %v1251_v56  ;;  %v1309_v15 = vmul.f32 %v4160_v14, %v1252_v20 }
 0x4e2   : > { %4818 = vst [vmem:[#allocation65_spill] sm:$0xff] %v4335_v62  ;;  %v1014_v21 = vmul.f32 %v4335_v62, %v4335_v62 }
 0x4e4   : > { %v1032_v27 = vsel %vm967_vm2, %v1014_v21, 0.0  ;;  %v1316_v21 = vpack.c.bf16 %v1309_v15, %v1308_v32 }
 0x4e5   : > { %1033 = vadd.xlane.f32.xlu1 %v1032_v27  ;;  %v4343_v27 = vpop.permute.xlu0 %1665 }
 0x4f6   : > { %1920 = vperm.xlu1 %2893, %v1894_v53   ;;  %v4345_v53 = vpop.permute.xlu1 %1740 }
 0x4f7   : > { %4819 = vst [vmem:[#allocation66_spill] sm:$0xff] %v4345_v53 }
 0x4fa   : > { %1930 = vperm.xlu1 %2893, %v1896_v45   ;;  %v4347_v45 = vpop.permute.xlu0 %1745 }
 0x4fb   : > { %4820 = vst [vmem:[#allocation67_spill] sm:$0xff] %v4347_v45 }
 0x4fe   : > { %1197 = vperm.xlu1 %2893, %v1187_v44   ;;  %v4349_v44 = vpop.permute.xlu1 %1750 }
 0x502   : > { %1207 = vperm.xlu1 %2893, %v1189_v31   ;;  %v4351_v31 = vpop.permute.xlu0 %1755 }
 0x506   : > { %1217 = vperm.xlu1 %2893, %v1191_v13   ;;  %v4353_v13 = vpop.permute.xlu1 %1830  ;;  %v4355_v11 = vpop.permute.xlu0 %1835 }
 0x50a   : > { %1227 = vperm.xlu1 %2893, %v1193_v41   ;;  %v4357_v14 = vpop.permute.xlu1 %1840 }
 0x50b   : > { %4821 = vst [vmem:[#allocation68_spill] sm:$0xff] %v4357_v14  ;;  %v4359_v14 = vld [vmem:[#allocation16] ss:$0 sm:$0xff] }
 0x50e   : > { %1324 = vrot.lane.b32.xlu1 %v1316_v21, %s3498_s17 }
 0x52f   : > { %v1025_v56 = vpop.xlane.xlu0 %1024 }
 0x530   : > { %v1043_v20 = vmul.f32 0.25, %v1025_v56 }
 0x531   : > { %v1028_v41 = vpop.xlane.xlu1 %1027 }
 0x532   : > { %v1051_v32 = vadd.f32 1e-05, %v1043_v20  ;;  %v1044_v15 = vmul.f32 0.25, %v1028_v41 }
 0x534   : > { %2913 = vrsqrt.f32 %v1051_v32  ;;  %v1052_v21 = vadd.f32 1e-05, %v1044_v15 }
 0x536   : > { %2915 = vrsqrt.f32 %v1052_v21  ;;  %v4362_v21 = vld [vmem:[#allocation18] ss:$0 sm:$0xff] }
 0x537   : > { %v1037_v53 = vpop.xlane.xlu0 %1036 }
 0x538   : > { %v1047_v45 = vmul.f32 0.25, %v1037_v53 }
 0x539   : > { %v1040_v37 = vpop.xlane.xlu1 %1039 }
 0x53a   : > { %v1055_v1 = vadd.f32 1e-05, %v1047_v45  ;;  %v1048_v49 = vmul.f32 0.25, %v1040_v37 }
 0x53b   : > { %v1019_v8 = vpop.xlane.xlu0 %1018 }
 0x53c   : > { %2917 = vrsqrt.f32 %v1055_v1  ;;  %v1056_v62 = vadd.f32 1e-05, %v1048_v49  ;;  %v1041_v52 = vmul.f32 0.25, %v1019_v8 }
 0x53d   : > { %v1022_v0 = vpop.xlane.xlu1 %1021 }
 0x53e   : > { %v2914_v22 = vpop.eup %2913  ;;  %2919 = vrsqrt.f32 %v1056_v62  ;;  %v1049_v56 = vadd.f32 1e-05, %v1041_v52  ;;  %v1042_v20 = vmul.f32 0.25, %v1022_v0 }
 0x53f   : > { %v1067_v41 = vmul.f32 %v2914_v22, %v4291_v60  ;;  %v1031_v32 = vpop.xlane.xlu0 %1030 }
 0x540   : > { %v2916_v15 = vpop.eup %2915  ;;  %2921 = vrsqrt.f32 %v1049_v56  ;;  %v1050_v53 = vadd.f32 1e-05, %v1042_v20  ;;  %v1045_v37 = vmul.f32 0.25, %v1031_v32 }
 0x541   : > { %v1081_v1 = vmul.f32 %v4359_v14, %v1067_v41  ;;  %v1068_v8 = vmul.f32 %v2916_v15, %v4294_v3 }
 0x542   : > { %2923 = vrsqrt.f32 %v1050_v53  ;;  %v1053_v49 = vadd.f32 1e-05, %v1045_v37 }
 0x543   : > { %v1095_v45 = vadd.f32 %v4362_v21, %v1081_v1  ;;  %v1082_v52 = vmul.f32 %v4359_v14, %v1068_v8 }
 0x544   : > { %2925 = vrsqrt.f32 %v1053_v49 }
 0x545   : > { %v1103_v0 = vmax.f32 %v1095_v45, 0.0  ;;  %v1096_v22 = vadd.f32 %v4362_v21, %v1082_v52 }
 0x546   : > { %v2918_v60 = vpop.eup %2917 }
 0x547   : > { %v1159_v62 = vmul.f32 %v4144_v50, %v1103_v0  ;;  %v1104_v56 = vmax.f32 %v1096_v22, 0.0  ;;  %v1071_v20 = vmul.f32 %v2918_v60, %v4303_v16 }
 0x548   : > { %v2920_v32 = vpop.eup %2919 }
 0x549   : > { %1173 = vst.msk [vmem:[#allocation2 + $0x28] sm:$0xff] %vm967_vm2, %v1159_v62  ;;  %v1160_v3 = vmul.f32 %v4146_v6, %v1104_v56  ;;  %v1085_v41 = vmul.f32 %v4359_v14, %v1071_v20  ;;  %v1072_v15 = vmul.f32 %v2920_v32, %v4306_v42 }
 0x54a   : > { %v2922_v53 = vpop.eup %2921 }
 0x54b   : > { %1174 = vst.msk [vmem:[#allocation2 + $0x30] sm:$0xff] %vm967_vm2, %v1160_v3  ;;  %v1099_v37 = vadd.f32 %v4362_v21, %v1085_v41  ;;  %v1086_v1 = vmul.f32 %v4359_v14, %v1072_v15  ;;  %v1065_v50 = vmul.f32 %v2922_v53, %v4311_v23 }
 0x54c   : > { %v2924_v8 = vpop.eup %2923 }
 0x54d   : > { %v1107_v16 = vmax.f32 %v1099_v37, 0.0  ;;  %v1100_v49 = vadd.f32 %v4362_v21, %v1086_v1  ;;  %v1079_v45 = vmul.f32 %v4359_v14, %v1065_v50  ;;  %v1066_v6 = vmul.f32 %v2924_v8, %v4317_v39  ;;  %v1341_v8 = vld [vmem:[#allocation2 + $0xa] sm:$0xff] }
 0x54e   : > { %v2926_v52 = vpop.eup %2925 }
 0x54f   : > { %v1163_v42 = vmul.f32 %v4152_v9, %v1107_v16  ;;  %v1108_v0 = vmax.f32 %v1100_v49, 0.0  ;;  %v1093_v22 = vadd.f32 %v4362_v21, %v1079_v45  ;;  %v1080_v60 = vmul.f32 %v4359_v14, %v1066_v6 }
 0x550   : > { %v1069_v62 = vmul.f32 %v2926_v52, %v4323_v35  ;;  %v1523_v56 = vld [vmem:[#allocation2 + $0x28] sm:$0xff] }
 0x551   : > { %1177 = vst.msk [vmem:[#allocation2 + $0x48] sm:$0xff] %vm967_vm2, %v1163_v42  ;;  %v1164_v23 = vmul.f32 %v4158_v12, %v1108_v0  ;;  %v1101_v20 = vmax.f32 %v1093_v22, 0.0  ;;  %v1094_v32 = vadd.f32 %v4362_v21, %v1080_v60  ;;  %v1580_v15 = vmul.f32 %v4218_v57, %v1523_v56 }
 0x552   : > { %v1083_v39 = vmul.f32 %v4359_v14, %v1069_v62  ;;  %v1524_v3 = vld [vmem:[#allocation2 + $0x30] sm:$0xff] }
 0x553   : > { %1178 = vst.msk [vmem:[#allocation2 + $0x50] sm:$0xff] %vm967_vm2, %v1164_v23  ;;  %v1157_v9 = vmul.f32 %v4154_v10, %v1101_v20  ;;  %v1102_v41 = vmax.f32 %v1094_v32, 0.0  ;;  %v1581_v35 = vmul.f32 %v4216_v30, %v1524_v3  ;;  %v1849_v42 = vmul.f32 %v4236_v2, %v1524_v3  ;;  %v1613_v0 = vld [vmem:[#allocation2 + $0x2a] sm:$0xff]  ;;  %v4414_v23 = vpop.permute.xlu0 %1845 }
 0x554   : > { %v1097_v53 = vadd.f32 %v4362_v21, %v1083_v39  ;;  %v1670_v60 = vmul.f32 %v4226_v63, %v1613_v0  ;;  %v1938_v2 = vmul.f32 %v4248_v18, %v1613_v0  ;;  %v1312_v63 = vmul.f32 %v1523_v56, %v4252_v26 }
 0x555   : > { %1171 = vst.msk [vmem:[#allocation2 + $0x18] sm:$0xff] %vm967_vm2, %v1157_v9  ;;  %v1158_v12 = vmul.f32 %v4142_v5, %v1102_v41  ;;  %v1587_v37 = vpack.c.bf16 %v1581_v35, %v1580_v15  ;;  %v1398_v5 = vmul.f32 %v4178_v34, %v1341_v8  ;;  %v1402_v18 = vmul.f32 %v1613_v0, %v4264_v48 }
 0x556   : > { %v1105_v1 = vmax.f32 %v1097_v53, 0.0 }
 0x557   : > { %1172 = vst.msk [vmem:[#allocation2 + $0x20] sm:$0xff] %vm967_vm2, %v1158_v12  ;;  %1596 = vrot.lane.b32.xlu0 %v1587_v37, %s3499_s19 }
 0x558   : > { %v1161_v10 = vmul.f32 %v4148_v7, %v1105_v1  ;;  %v1527_v50 = vld [vmem:[#allocation2 + $0x48] sm:$0xff]  ;;  %v1848_v7 = vmul.f32 %v4240_v4, %v1523_v56  ;;  %v4428_v56 = vpop.permute.xlu0 %1925 }
 0x559   : > { %v1852_v16 = vmul.f32 %v4353_v13, %v1527_v50  ;;  %v1584_v39 = vmul.f32 %v4284_v38, %v1527_v50  ;;  %v1708_v38 = vld [vmem:[#allocation2 + $0x5e] sm:$0xff] }
 0x55a   : > { %1175 = vst.msk [vmem:[#allocation2 + $0x38] sm:$0xff] %vm967_vm2, %v1161_v10  ;;  %v1528_v30 = vld [vmem:[#allocation2 + $0x50] sm:$0xff] }
 0x55b   : > { %v1853_v49 = vmul.f32 %v4355_v11, %v1528_v30  ;;  %v1856_v11 = vpack.c.bf16 %v1849_v42, %v1848_v7  ;;  %v4420_v32 = vld [vmem:[#allocation2 + $0x52] sm:$0xff] }
 0x55c   : > { %v1342_v57 = vld [vmem:[#allocation2 + $0x12] sm:$0xff]  ;;  %v1675_v9 = vmul.f32 %v4420_v32, %v4343_v27  ;;  %v1765_v27 = vmul.f32 %v4351_v31, %v1708_v38  ;;  %v4447_v37 = vpop.permute.xlu0 %1935 }
 0x55d   : > { %v1399_v45 = vmul.f32 %v4174_v28, %v1342_v57  ;;  %v1858_v6 = vpack.c.bf16 %v1853_v49, %v1852_v16  ;;  %v1313_v28 = vmul.f32 %v1524_v3, %v4250_v24  ;;  %v4424_v24 = vld [vmem:[#allocation2 + $0x4a] sm:$0xff]  ;;  %v1707_v48 = vld [vmem:[#allocation2 + $0x56] sm:$0xff] }
 0x55e   : > { %v4438_v41 = vld [vmem:[#allocation2 + $0x16] sm:$0xff]  ;;  %v1764_v53 = vmul.f32 %v4349_v44, %v1707_v48  ;;  %v1254_v12 = vld [vmem:[#allocation2 + $0x20] sm:$0xff]  ;;  %v1184_v7 = vld [vmem:[#allocation2 + $0x2e] sm:$0xff] }
 0x55f   : > { %v1406_v52 = vpack.c.bf16 %v1399_v45, %v1398_v5  ;;  %v1318_v20 = vpack.c.bf16 %v1313_v28, %v1312_v63  ;;  %v1253_v10 = vld [vmem:[#allocation2 + $0x18] sm:$0xff]  ;;  %v1311_v44 = vmul.f32 %v4164_v19, %v1254_v12  ;;  %v1344_v16 = vld [vmem:[#allocation2 + $0x22] sm:$0xff] }
 0x560   : > { %v1343_v57 = vld [vmem:[#allocation2 + $0x1a] sm:$0xff]  ;;  %v1310_v5 = vmul.f32 %v4170_v25, %v1253_v10  ;;  %v1669_v19 = vmul.f32 %v4220_v58, %v1344_v16  ;;  %v1401_v0 = vmul.f32 %v4192_v43, %v1344_v16  ;;  %v1179_v58 = vld [vmem:[#allocation2 + $0x6] sm:$0xff] }
 0x561   : > { %1414 = vrot.lane.b32.xlu1 %v1406_v52, %s3500_s6  ;;  %v1614_v22 = vld [vmem:[#allocation2 + $0x32] sm:$0xff]  ;;  %v1668_v45 = vmul.f32 %v4222_v59, %v1343_v57  ;;  %v1400_v42 = vmul.f32 %v4198_v46, %v1343_v57  ;;  %v4827_v57 = vld [vmem:[#allocation48_spill] sm:$0xff] }
 0x562   : > { %v1671_v13 = vmul.f32 %v4224_v61, %v1614_v22  ;;  %v1939_v34 = vmul.f32 %v4246_v17, %v1614_v22  ;;  %v1403_v61 = vmul.f32 %v1614_v22, %v4262_v47  ;;  %v1585_v17 = vmul.f32 %v4282_v33, %v1528_v30  ;;  %v4430_v47 = vld [vmem:[#allocation2 + $0x1e] sm:$0xff]  ;;  %v1180_v59 = vld [vmem:[#allocation2 + $0xe] sm:$0xff] }
 0x563   : > { %v1674_v33 = vmul.f32 %v4332_v36, %v4424_v24  ;;  %v1489_v15 = vmul.f32 %v4204_v51, %v4430_v47  ;;  %v1488_v36 = vmul.f32 %v4206_v29, %v4438_v41  ;;  %v1579_v51 = vmul.f32 %v4212_v54, %v1254_v12  ;;  %v4823_v46 = vld [vmem:[#allocation46_spill] sm:$0xff] }
 0x564   : > { %v1677_v62 = vpack.c.bf16 %v1671_v13, %v1670_v60  ;;  %v1946_v4 = vpack.c.bf16 %v1939_v34, %v1938_v2  ;;  %v1408_v26 = vpack.c.bf16 %v1403_v61, %v1402_v18  ;;  %v1589_v3 = vpack.c.bf16 %v1585_v17, %v1584_v39  ;;  %v4824_v2 = vld [vmem:[#allocation44_spill] sm:$0xff]  ;;  %v4825_v39 = vld [vmem:[#allocation65_spill] sm:$0xff] }
 0x565   : > { %1864 = vrot.lane.b32.xlu1 %v1856_v11, %s3501_s0  ;;  %v1679_v35 = vpack.c.bf16 %v1675_v9, %v1674_v33  ;;  %v1496_v8 = vpack.c.bf16 %v1489_v15, %v1488_v36  ;;  %v1769_v30 = vpack.c.bf16 %v1765_v27, %v1764_v53  ;;  %v1578_v29 = vmul.f32 %v4214_v55, %v1253_v10  ;;  %v1433_v55 = vld [vmem:[#allocation2 + $0x26] sm:$0xff]  ;;  %v4826_v10 = vld [vmem:[#allocation43_spill] sm:$0xff] }
 0x566   : > { %1686 = vrot.lane.b32.xlu0 %v1677_v62, %s3502_s8  ;;  %v1317_v52 = vpack.c.bf16 %v1311_v44, %v1310_v5  ;;  %v1676_v25 = vpack.c.bf16 %v1669_v19, %v1668_v45  ;;  %v1758_v60 = vmul.f32 %v4230_v40, %v1433_v55  ;;  %v1407_v13 = vpack.c.bf16 %v1401_v0, %v1400_v42  ;;  %v4822_v11 = vld [vmem:[#allocation45_spill] sm:$0xff]  ;;  %v4829_v19 = vld [vmem:[#allocation52_spill] sm:$0xff] }
 0x567   : > { %v1586_v54 = vpack.c.bf16 %v1579_v51, %v1578_v29  ;;  %v1490_v34 = vmul.f32 %v4822_v11, %v1433_v55  ;;  %v1759_v43 = vmul.f32 %v4823_v46, %v1184_v7  ;;  %v1491_v63 = vmul.f32 %v4824_v2, %v1184_v7  ;;  %v4832_v11 = vld [vmem:[#allocation57_spill] sm:$0xff]  ;;  %v4833_v46 = vld [vmem:[#allocation50_spill] sm:$0xff] }
 0x569   : > { %1954 = vrot.lane.b32.xlu1 %v1946_v4, %s3503_s27  ;;  %v1497_v17 = vpack.c.bf16 %v1491_v63, %v1490_v34  ;;  %v4835_v63 = vld [vmem:[#allocation61_spill] sm:$0xff] }
 0x56a   : > { %1328 = vrot.lane.b32.xlu0 %v1318_v20, %s3498_s17  ;;  %v1766_v20 = vpack.c.bf16 %v1759_v43, %v1758_v60 }
 0x56d   : > { %1418 = vrot.lane.b32.xlu1 %v1408_v26, %s3500_s6 }
 0x56e   : > { %1600 = vrot.lane.b32.xlu0 %v1589_v3, %s3499_s19 }
 0x571   : > { %1868 = vrot.lane.b32.xlu1 %v1858_v6, %s3501_s0  ;;  %v1203_v6 = vpop.permute.xlu0 %1202 }
 0x572   : > { %1690 = vrot.lane.b32.xlu0 %v1679_v35, %s3502_s8  ;;  %v1034_v1 = vpop.xlane.xlu1 %1033  ;;  %v1236_v4 = vmul.f32 %v1203_v6, %v1180_v59 }
 0x573   : > { %v1046_v50 = vmul.f32 0.25, %v1034_v1 }
 0x575   : > { %v1054_v49 = vadd.f32 1e-05, %v1046_v50  ;;  %1504 = vrot.lane.b32.xlu1 %v1496_v8, %s3504_s18  ;;  %v1213_v62 = vpop.permute.xlu0 %1212  ;;  %v2894_v8 = vld [vmem:[#allocation19] sm:$0xff]  }
 0x576   : > { %1780 = vrot.lane.b32.xlu0 %v1769_v30, %s3505_s26  ;;  %v4455_v31 = vpop.permute.xlu1 %1920  ;;  %v1238_v33 = vmul.f32 %v1213_v62, %v4430_v47  ;;  %2665 = vmatprep.subr.bf16.mxu1 %v2894_v8  ;;  %v4834_v62 = vld [vmem:[#allocation58_spill] sm:$0xff] }
 0x577   : > { %2927 = vrsqrt.f32 %v1054_v49  ;;  %2666 = vmatpush3.bf16.msra.mxu1 %v2894_v8  ;;  %v4843_v8 = vld [vmem:[#allocation66_spill] sm:$0xff] }
 0x579   : > { %1594 = vrot.lane.b32.xlu1 %v1586_v54, %s3499_s19  ;;  %v1223_v48 = vpop.permute.xlu0 %1222  ;;  %v4828_v54 = vld [vmem:[#allocation47_spill] sm:$0xff] }
 0x57a   : > { %1326 = vrot.lane.b32.xlu0 %v1317_v52, %s3498_s17  ;;  %v4464_v22 = vpop.permute.xlu1 %1930  ;;  %v1240_v12 = vmul.f32 %v1223_v48, %v1184_v7  ;;  %v4830_v52 = vld [vmem:[#allocation51_spill] sm:$0xff] }
 0x57b   : > { %v1793_v7 = vld [vmem:[#allocation2 + $0x38] sm:$0xff] }
 0x57c   : > { %v1850_v43 = vmul.f32 %v4833_v46, %v1793_v7 }
 0x57d   : > { %1684 = vrot.lane.b32.xlu1 %v1676_v25, %s3502_s8  ;;  %v1233_v51 = vpop.permute.xlu0 %1232  ;;  %v4831_v25 = vld [vmem:[#allocation49_spill] sm:$0xff] }
 0x57e   : > { %1416 = vrot.lane.b32.xlu0 %v1407_v13, %s3500_s6  ;;  %v1198_v28 = vpop.permute.xlu1 %1197 }
 0x57f   : > { %v1235_v61 = vmul.f32 %v1198_v28, %v1179_v58 }
 0x581   : > { %v2928_v40 = vpop.eup %2927  ;;  %v1243_v18 = vpack.c.bf16 %v1236_v4, %v1235_v61  ;;  %1774 = vrot.lane.b32.xlu1 %v1766_v20, %s3505_s26 }
 0x582   : > { %v1070_v26 = vmul.f32 %v2928_v40, %v4825_v39  ;;  %1506 = vrot.lane.b32.xlu0 %v1497_v17, %s3504_s18  ;;  %v1208_v3 = vpop.permute.xlu1 %1207  ;;  %v4836_v17 = vld [vmem:[#allocation53_spill] sm:$0xff] }
 0x583   : > { %1247 = vst.msk [vmem:[#allocation3] sm:$0xff] %vm967_vm2, %v1243_v18  ;;  %v1237_v9 = vmul.f32 %v4438_v41, %v1208_v3  ;;  %v2895_v41 = vld [vmem:[#allocation19 + $0x8] sm:$0xff]   ;;  %v4837_v18 = vld [vmem:[#allocation62_spill] sm:$0xff] }
 0x584   : > { %v1084_v38 = vmul.f32 %v4359_v14, %v1070_v26  ;;  %2667 = vmatprep.subr.bf16.mxu1 %v2895_v41  ;;  %v1582_v39 = vmul.f32 %v1793_v7, %v4837_v18  ;;  %v4838_v26 = vld [vmem:[#allocation54_spill] sm:$0xff] }
 0x585   : > { %v1244_v15 = vpack.c.bf16 %v1238_v33, %v1237_v9  ;;  %2668 = vmatpush3.bf16.msra.mxu1 %v2895_v41  ;;  %v1314_v3 = vmul.f32 %v1793_v7, %v4838_v26  ;;  %v4839_v9 = vld [vmem:[#allocation64_spill] sm:$0xff] }
 0x586   : > { %v1098_v35 = vadd.f32 %v4362_v21, %v1084_v38  ;;  %v1218_v53 = vpop.permute.xlu1 %1217  ;;  %v1185_v21 = vld [vmem:[#allocation2 + $0x36] sm:$0xff] }
 0x587   : > { %1248 = vst.msk [vmem:[#allocation3 + $0x8] sm:$0xff] %vm967_vm2, %v1244_v15  ;;  %v1239_v36 = vmul.f32 %v1433_v55, %v1218_v53  ;;  %v1760_v16 = vmul.f32 %v4827_v57, %v1185_v21  ;;  %v2896_v55 = vld [vmem:[#allocation19 + $0x10] ss:$0 sps:$4 sm:$0x33]   ;;  %v1492_v28 = vmul.f32 %v4834_v62, %v1185_v21  ;;  %v4840_v15 = vld [vmem:[#allocation63_spill] sm:$0xff]  ;;  %v4841_v53 = vld [vmem:[#allocation56_spill] sm:$0xff] }
 0x588   : > { %v1106_v27 = vmax.f32 %v1098_v35, 0.0  ;;  %2693 = vmatprep.subr.msk.bf16.mxu1 %vm2015_vm4, %v2896_v55  ;;  %v2017_v2 = vsel %vm2015_vm4, %v2896_v55, 0  ;;  %v4846_v57 = vld [vmem:[#allocation59_spill] sm:$0xff] }
 0x589   : > { %v1245_v1 = vpack.c.bf16 %v1240_v12, %v1239_v36  ;;  %2670 = vmatpush3.bf16.msra.mxu1 %v2017_v2  ;;  %v4842_v36 = vld [vmem:[#allocation55_spill] sm:$0xff] }
 0x58a   : > { %v1162_v50 = vmul.f32 %v4826_v10, %v1106_v27  ;;  %v1228_v47 = vpop.permute.xlu1 %1227  ;;  %v1706_v10 = vld [vmem:[#allocation2 + $0x4e] sm:$0xff] }
 0x58b   : > { %1249 = vst.msk [vmem:[#allocation3 + $0x10] sm:$0xff] %vm967_vm2, %v1245_v1  ;;  %v1241_v44 = vmul.f32 %v1228_v47, %v1185_v21  ;;  %v4844_v21 = vld [vmem:[#allocation60_spill] sm:$0xff] }
 0x58c   : > { %1176 = vst.msk [vmem:[#allocation2 + $0x40] sm:$0xff] %vm967_vm2, %v1162_v50 }
 0x58e   : > { %v1325_v14 = vpop.permute.xlu1 %1324 }
 0x58f   : > { %1337 = vst.msk [vmem:[#allocation3] sm:$0xff] %vm1336_vm3, %v1325_v14 }
 0x593   : > { %v1186_v30 = vld [vmem:[#allocation2 + $0x3e] sm:$0xff]  ;;  %v1705_v1 = vld [vmem:[#allocation2 + $0x46] sm:$0xff] }
 0x594   : > { %v1883_v49 = vld [vmem:[#allocation2 + $0x3a] sm:$0xff]  ;;  %v1884_v29 = vld [vmem:[#allocation2 + $0x42] sm:$0xff]  ;;  %v1242_v5 = vmul.f32 %v1233_v51, %v1186_v30  ;;  %v1761_v45 = vmul.f32 %v4828_v54, %v1186_v30  ;;  %v1493_v34 = vmul.f32 %v4832_v11, %v1186_v30  ;;  %v1762_v14 = vmul.f32 %v4843_v8, %v1705_v1 }
 0x595   : > { %v1940_v6 = vmul.f32 %v4829_v19, %v1883_v49  ;;  %v1941_v42 = vmul.f32 %v4830_v52, %v1884_v29  ;;  %v1794_v0 = vld [vmem:[#allocation2 + $0x40] sm:$0xff]  ;;  %v1672_v48 = vmul.f32 %v1883_v49, %v4839_v9  ;;  %v1673_v35 = vmul.f32 %v1884_v29, %v4840_v15 }
 0x596   : > { %v1851_v60 = vmul.f32 %v4831_v25, %v1794_v0  ;;  %v1246_v59 = vpack.c.bf16 %v1242_v5, %v1241_v44  ;;  %v1767_v13 = vpack.c.bf16 %v1761_v45, %v1760_v16  ;;  %v1583_v4 = vmul.f32 %v1794_v0, %v4835_v63  ;;  %v1798_v51 = vld [vmem:[#allocation2 + $0x60] sm:$0xff] }
 0x597   : > { %v1947_v58 = vpack.c.bf16 %v1941_v42, %v1940_v6  ;;  %v1498_v20 = vpack.c.bf16 %v1493_v34, %v1492_v28  ;;  %v1315_v40 = vmul.f32 %v1794_v0, %v4836_v17  ;;  %v1404_v12 = vmul.f32 %v1883_v49, %v4841_v53  ;;  %v4845_v30 = vld [vmem:[#allocation67_spill] sm:$0xff]  ;;  %v4847_v6 = vld [vmem:[#allocation68_spill] sm:$0xff] }
 0x598   : > { %1250 = vst.msk [vmem:[#allocation3 + $0x18] sm:$0xff] %vm967_vm2, %v1246_v59  ;;  %1776 = vrot.lane.b32.xlu0 %v1767_v13, %s3505_s26  ;;  %v1857_v61 = vpack.c.bf16 %v1851_v60, %v1850_v43  ;;  %v1588_v33 = vpack.c.bf16 %v1583_v4, %v1582_v39  ;;  %v1405_v27 = vmul.f32 %v1884_v29, %v4842_v36  ;;  %v1797_v49 = vld [vmem:[#allocation2 + $0x58] sm:$0xff]  ;;  %v1888_v0 = vld [vmem:[#allocation2 + $0x62] sm:$0xff] }
 0x599   : > { %1956 = vrot.lane.b32.xlu1 %v1947_v58, %s3503_s27  ;;  %v1319_v38 = vpack.c.bf16 %v1315_v40, %v1314_v3  ;;  %v1678_v50 = vpack.c.bf16 %v1673_v35, %v1672_v48  ;;  %v1494_v41 = vmul.f32 %v1705_v1, %v4844_v21  ;;  %v1763_v44 = vmul.f32 %v4845_v30, %v1706_v10  ;;  %v1887_v19 = vld [vmem:[#allocation2 + $0x5a] sm:$0xff] }
 0x59a   : > { %v1409_v47 = vpack.c.bf16 %v1405_v27, %v1404_v12  ;;  %v1495_v16 = vmul.f32 %v1706_v10, %v4846_v57  ;;  %v1855_v29 = vmul.f32 %v4414_v23, %v1798_v51  ;;  %v1942_v5 = vmul.f32 %v4455_v31, %v4424_v24  ;;  %v2615_v27 = vld [vmem:[#allocation21] ss:$0 sm:$0xff] }
 0x59b   : > { %v1768_v54 = vpack.c.bf16 %v1763_v44, %v1762_v14  ;;  %v1854_v52 = vmul.f32 %v4847_v6, %v1797_v49  ;;  %v1943_v42 = vmul.f32 %v4428_v56, %v4420_v32  ;;  %v1944_v23 = vmul.f32 %v4464_v22, %v1887_v19 }
 0x59c   : > { %1866 = vrot.lane.b32.xlu0 %v1857_v61, %s3501_s0  ;;  %v1499_v45 = vpack.c.bf16 %v1495_v16, %v1494_v41  ;;  %v1945_v25 = vmul.f32 %v4447_v37, %v1888_v0 }
 0x59d   : > { %1508 = vrot.lane.b32.xlu1 %v1498_v20, %s3504_s18  ;;  %v1859_v55 = vpack.c.bf16 %v1855_v29, %v1854_v52  ;;  %v1948_v7 = vpack.c.bf16 %v1943_v42, %v1942_v5 }
 0x59e   : > { %v1949_v24 = vpack.c.bf16 %v1945_v25, %v1944_v23 }
 0x5a0   : > { %1330 = vrot.lane.b32.xlu0 %v1319_v38, %s3498_s17  ;;  %s3506_s17 = smov [#allocation28]  }
 0x5a1   : > { %1598 = vrot.lane.b32.xlu1 %v1588_v33, %s3499_s19  ;;  %s3381_s19 = sshll.u32 %s3506_s17, 4  ;;  %s3382_s19 = int_to_ptr.vmem [resolvable:$false] %s3381_s19 }
 0x5a2   : > { %p3384_p1 = scmp.lt.s32.totalorder %s4656_s9, %s3382_s19 }
 0x5a4   : > { %1420 = vrot.lane.b32.xlu0 %v1409_v47, %s3500_s6 }
 0x5a5   : > { %1688 = vrot.lane.b32.xlu1 %v1678_v50, %s3502_s8 }
 0x5a8   : > { %1510 = vrot.lane.b32.xlu0 %v1499_v45, %s3504_s18 }
 0x5a9   : > { %1778 = vrot.lane.b32.xlu1 %v1768_v54, %s3505_s26 }
 0x5ac   : > { %1870 = vrot.lane.b32.xlu0 %v1859_v55, %s3501_s0 }
 0x5ad   : > { %1958 = vrot.lane.b32.xlu1 %v1948_v7, %s3503_s27 }
 0x5b0   : > { %1960 = vrot.lane.b32.xlu0 %v1949_v24, %s3503_s27 }
 0x5c9   : > { %v1597_v56 = vpop.permute.xlu0 %1596 }
 0x5d3   : > { %v1415_v32 = vpop.permute.xlu1 %1414 }
 0x5d4   : > { %1427 = vst.msk [vmem:[#allocation3] sm:$0xff] %vm1426_vm5, %v1415_v32 }
 0x5d7   : > { %v1865_v31 = vpop.permute.xlu1 %1864 }
 0x5d8   : > { %v1687_v60 = vpop.permute.xlu0 %1686 }
 0x5db   : > { %v1955_v59 = vpop.permute.xlu1 %1954 }
 0x5dc   : > { %v1329_v13 = vpop.permute.xlu0 %1328 }
 0x5dd   : > { %1339 = vst.msk [vmem:[#allocation3 + $0x10] sm:$0xff] %vm1336_vm3, %v1329_v13 }
 0x5df   : > { %v1419_v22 = vpop.permute.xlu1 %1418 }
 0x5e0   : > { %1429 = vst.msk [vmem:[#allocation3 + $0x10] sm:$0xff] %vm1426_vm5, %v1419_v22  ;;  %v1601_v37 = vpop.permute.xlu0 %1600 }
 0x5e3   : > { %v1869_v58 = vpop.permute.xlu1 %1868 }
 0x5e4   : > { %v1691_v11 = vpop.permute.xlu0 %1690 }
 0x5e7   : > { %v1505_v34 = vpop.permute.xlu1 %1504 }
 0x5e8   : > { %1517 = vst.msk [vmem:[#allocation3] sm:$0xff] %vm1516_vm6, %v1505_v34  ;;  %v1781_v46 = vpop.permute.xlu0 %1780 }
 0x5eb   : > { %v1595_v43 = vpop.permute.xlu1 %1594 }
 0x5ec   : > { %1607 = vst.msk [vmem:[#allocation3] sm:$0xff] %vm1606_vm7, %v1595_v43  ;;  %v1327_v62 = vpop.permute.xlu0 %1326 }
 0x5ed   : > { %1338 = vst.msk [vmem:[#allocation3 + $0x8] sm:$0xff] %vm1336_vm3, %v1327_v62 }
 0x5ef   : > { %v1685_v28 = vpop.permute.xlu1 %1684 }
 0x5f0   : > { %1697 = vst.msk [vmem:[#allocation3] sm:$0xff] %vm1696_vm8, %v1685_v28  ;;  %v1417_v2 = vpop.permute.xlu0 %1416 }
 0x5f1   : > { %1428 = vst.msk [vmem:[#allocation3 + $0x8] sm:$0xff] %vm1426_vm5, %v1417_v2 }
 0x5f3   : > { %v1775_v63 = vpop.permute.xlu1 %1774 }
 0x5f4   : > { %1787 = vst.msk [vmem:[#allocation3] sm:$0xff] %vm1786_vm9, %v1775_v63  ;;  %v1507_v4 = vpop.permute.xlu0 %1506 }
 0x5f5   : > { %1877 = vst.msk [vmem:[#allocation3] sm:$0xff] %vm1876_vm10, %v1865_v31 }
 0x5f6   : > { %1518 = vst.msk [vmem:[#allocation3 + $0x8] sm:$0xff] %vm1516_vm6, %v1507_v4 }
 0x5f7   : > { %1967 = vst.msk [vmem:[#allocation3] sm:$0xff] %vm1966_vm11, %v1955_v59 }
 0x5f8   : > { %1608 = vst.msk [vmem:[#allocation3 + $0x8] sm:$0xff] %vm1606_vm7, %v1597_v56 }
 0x5f9   : > { %1698 = vst.msk [vmem:[#allocation3 + $0x8] sm:$0xff] %vm1696_vm8, %v1687_v60 }
 0x5fe   : > { %v1971_v61 = vld [vmem:[#allocation3] sm:$0xff] }
 0x5ff   : > { %2671 = vmatprep.mubr.msk.bf16.mxu1 %vm2002_vm12, %v1971_v61 }
 0x60a   : > { %v1777_v17 = vpop.permute.xlu0 %1776 }
 0x60b   : > { %v1957_v20 = vpop.permute.xlu1 %1956  ;;  %1788 = vst.msk [vmem:[#allocation3 + $0x8] sm:$0xff] %vm1786_vm9, %v1777_v17 }
 0x60e   : > { %v1867_v18 = vpop.permute.xlu0 %1866 }
 0x60f   : > { %v1509_v40 = vpop.permute.xlu1 %1508  ;;  %1878 = vst.msk [vmem:[#allocation3 + $0x8] sm:$0xff] %vm1876_vm10, %v1867_v18 }
 0x610   : > { %1519 = vst.msk [vmem:[#allocation3 + $0x10] sm:$0xff] %vm1516_vm6, %v1509_v40 }
 0x611   : > { %1968 = vst.msk [vmem:[#allocation3 + $0x8] sm:$0xff] %vm1966_vm11, %v1957_v20 }
 0x612   : > { %v1331_v26 = vpop.permute.xlu0 %1330 }
 0x613   : > { %v1599_v39 = vpop.permute.xlu1 %1598  ;;  %1340 = vst.msk [vmem:[#allocation3 + $0x18] sm:$0xff] %vm1336_vm3, %v1331_v26 }
 0x614   : > { %1609 = vst.msk [vmem:[#allocation3 + $0x10] sm:$0xff] %vm1606_vm7, %v1599_v39 }
 0x616   : > { %v1421_v33 = vpop.permute.xlu0 %1420 }
 0x617   : > { %v1689_v3 = vpop.permute.xlu1 %1688  ;;  %1430 = vst.msk [vmem:[#allocation3 + $0x18] sm:$0xff] %vm1426_vm5, %v1421_v33 }
 0x618   : > { %1699 = vst.msk [vmem:[#allocation3 + $0x10] sm:$0xff] %vm1696_vm8, %v1689_v3  ;;  %v1972_v9 = vld [vmem:[#allocation3 + $0x8] sm:$0xff] }
 0x619   : > { %2672 = vmatmul.mubr.msk.bf16.vlgmr.msra.gmra.mrb[4].mxu1 %vm2002_vm12, %v1972_v9 }
 0x61a   : > { %v1511_v38 = vpop.permute.xlu0 %1510 }
 0x61b   : > { %v1779_v48 = vpop.permute.xlu1 %1778  ;;  %1520 = vst.msk [vmem:[#allocation3 + $0x18] sm:$0xff] %vm1516_vm6, %v1511_v38 }
 0x61c   : > { %1789 = vst.msk [vmem:[#allocation3 + $0x10] sm:$0xff] %vm1786_vm9, %v1779_v48 }
 0x61d   : > { %1879 = vst.msk [vmem:[#allocation3 + $0x10] sm:$0xff] %vm1876_vm10, %v1869_v58 }
 0x61e   : > { %1610 = vst.msk [vmem:[#allocation3 + $0x18] sm:$0xff] %vm1606_vm7, %v1601_v37  ;;  %v1871_v35 = vpop.permute.xlu0 %1870 }
 0x61f   : > { %1700 = vst.msk [vmem:[#allocation3 + $0x18] sm:$0xff] %vm1696_vm8, %v1691_v11  ;;  %v1959_v15 = vpop.permute.xlu1 %1958 }
 0x620   : > { %1790 = vst.msk [vmem:[#allocation3 + $0x18] sm:$0xff] %vm1786_vm9, %v1781_v46 }
 0x621   : > { %1969 = vst.msk [vmem:[#allocation3 + $0x10] sm:$0xff] %vm1966_vm11, %v1959_v15 }
 0x622   : > { %1880 = vst.msk [vmem:[#allocation3 + $0x18] sm:$0xff] %vm1876_vm10, %v1871_v35  ;;  %v1961_v53 = vpop.permute.xlu0 %1960 }
 0x623   : > { %1970 = vst.msk [vmem:[#allocation3 + $0x18] sm:$0xff] %vm1966_vm11, %v1961_v53 }
 0x628   : > { %v1973_v12 = vld [vmem:[#allocation3 + $0x10] sm:$0xff] }
 0x629   : > { %2675 = vmatprep.mubr.msk.bf16.mxu1 %vm2002_vm12, %v1973_v12 }
 0x62a   : > { %v1974_v36 = vld [vmem:[#allocation3 + $0x18] sm:$0xff] }
 0x62b   : > { %2676 = vmatmul.mubr.msk.bf16.gmra.mrb[8].mxu1 %vm2002_vm12, %v1974_v36 }
 0x6ec   : > { %v2673_v1 = vpop.f32.mrb[4].mxu1 }
 0x6ed   : > { %v2053_v10 = vpop.f32.mrb[5].mxu1  ;;  %v2062_v51 = vadd.f32 %v2673_v1, %v2615_v27  ;;  %v2230_v1 = vld [vmem:[#allocation25] sm:$0x3] }
 0x6ee   : > { %v2054_v50 = vadd.f32 %v2615_v27, %v2053_v10  ;;  %v2674_v47 = vpop.f32.mrb[6].mxu1  ;;  %2694 = vmatprep.subr.msk.bf16.mxu0 %vm2015_vm4, %v2230_v1  ;;  %v2251_v10 = vsel %vm2015_vm4, %v2230_v1, 0 }
 0x6ef   : > { %v2056_v8 = vpop.f32.mrb[7].mxu1  ;;  %v2065_v14 = vadd.f32 %v2674_v47, %v2615_v27  ;;  %v2092_v57 = vsel %vm967_vm2, %v2062_v51, 0.0  ;;  %2680 = vmatpush3.bf16.msra.mxu0 %v2251_v10 }
 0x6f0   : > { %v2057_v21 = vadd.f32 %v2615_v27, %v2056_v8  ;;  %v2086_v41 = vsel %vm967_vm2, %v2054_v50, 0.0 }
 0x6f1   : > { %2087 = vadd.xlane.f32.xlu1 %v2086_v41  ;;  %v2095_v44 = vsel %vm967_vm2, %v2065_v14, 0.0 }
 0x6f2   : > { %v2089_v30 = vsel %vm967_vm2, %v2057_v21, 0.0 }
 0x6f3   : > { %2090 = vadd.xlane.f32.xlu0 %v2089_v30 }
 0x6f5   : > { %2096 = vadd.xlane.f32.xlu1 %v2095_v44 }
 0x6f7   : > { %2093 = vadd.xlane.f32.xlu0 %v2092_v57 }
 0x6fe   : > { %v2677_v16 = vpop.f32.mrb[8].mxu1 }
 0x6ff   : > { %v2069_v49 = vpop.f32.mrb[9].mxu1  ;;  %v2078_v45 = vadd.f32 %v2677_v16, %v2615_v27 }
 0x700   : > { %v2070_v29 = vadd.f32 %v2615_v27, %v2069_v49  ;;  %v2678_v5 = vpop.f32.mrb[10].mxu1 }
 0x701   : > { %v2072_v54 = vpop.f32.mrb[11].mxu1  ;;  %v2081_v52 = vadd.f32 %v2678_v5, %v2615_v27  ;;  %v2104_v0 = vsel %vm967_vm2, %v2078_v45, 0.0  ;;  %v2623_v5 = vld [vmem:[#allocation22] ss:$0 sm:$0xff] }
 0x702   : > { %v2073_v19 = vadd.f32 %v2615_v27, %v2072_v54  ;;  %v2098_v6 = vsel %vm967_vm2, %v2070_v29, 0.0 }
 0x703   : > { %2099 = vadd.xlane.f32.xlu0 %v2098_v6  ;;  %v2107_v55 = vsel %vm967_vm2, %v2081_v52, 0.0  ;;  %v2624_v6 = vld [vmem:[#allocation24] ss:$0 sm:$0xff] }
 0x704   : > { %v2101_v42 = vsel %vm967_vm2, %v2073_v19, 0.0 }
 0x705   : > { %2102 = vadd.xlane.f32.xlu1 %v2101_v42 }
 0x707   : > { %2105 = vadd.xlane.f32.xlu0 %v2104_v0 }
 0x709   : > { %2108 = vadd.xlane.f32.xlu1 %v2107_v55 }
 0x77e   : > { %v2088_v7 = vpop.xlane.xlu1 %2087 }
 0x77f   : > { %v2110_v23 = vmul.f32 0.25, %v2088_v7 }
 0x780   : > { %v2091_v25 = vpop.xlane.xlu0 %2090 }
 0x781   : > { %v4572_v24 = vsub.f32 %v2054_v50, %v2110_v23  ;;  %v2111_v32 = vmul.f32 0.25, %v2091_v25 }
 0x782   : > { %v2097_v56 = vpop.xlane.xlu1 %2096 }
 0x783   : > { %v4574_v31 = vsub.f32 %v2057_v21, %v2111_v32  ;;  %v2113_v60 = vmul.f32 0.25, %v2097_v56  ;;  %v2126_v59 = vmul.f32 %v4572_v24, %v4572_v24 }
 0x784   : > { %v2094_v13 = vpop.xlane.xlu0 %2093 }
 0x785   : > { %v4578_v22 = vsub.f32 %v2065_v14, %v2113_v60  ;;  %v2112_v37 = vmul.f32 0.25, %v2094_v13  ;;  %v2134_v58 = vsel %vm967_vm2, %v2126_v59, 0.0  ;;  %v2127_v11 = vmul.f32 %v4574_v31, %v4574_v31 }
 0x786   : > { %2135 = vadd.xlane.f32.xlu0 %v2134_v58 }
 0x787   : > { %v4583_v34 = vsub.f32 %v2062_v51, %v2112_v37  ;;  %v2137_v46 = vsel %vm967_vm2, %v2127_v11, 0.0  ;;  %v2129_v43 = vmul.f32 %v4578_v22, %v4578_v22 }
 0x788   : > { %2138 = vadd.xlane.f32.xlu1 %v2137_v46 }
 0x789   : > { %v2128_v62 = vmul.f32 %v4583_v34, %v4583_v34  ;;  %v2143_v28 = vsel %vm967_vm2, %v2129_v43, 0.0 }
 0x78b   : > { %v2140_v2 = vsel %vm967_vm2, %v2128_v62, 0.0 }
 0x78c   : > { %2144 = vadd.xlane.f32.xlu1 %v2143_v28  ;;  %2141 = vadd.xlane.f32.xlu0 %v2140_v2 }
 0x790   : > { %v2100_v63 = vpop.xlane.xlu0 %2099 }
 0x791   : > { %v2114_v4 = vmul.f32 0.25, %v2100_v63 }
 0x792   : > { %v2103_v61 = vpop.xlane.xlu1 %2102 }
 0x793   : > { %v4592_v20 = vsub.f32 %v2070_v29, %v2114_v4  ;;  %v2115_v17 = vmul.f32 0.25, %v2103_v61 }
 0x794   : > { %v2106_v40 = vpop.xlane.xlu0 %2105 }
 0x795   : > { %v4594_v18 = vsub.f32 %v2073_v19, %v2115_v17  ;;  %v2116_v39 = vmul.f32 0.25, %v2106_v40  ;;  %v2130_v26 = vmul.f32 %v4592_v20, %v4592_v20 }
 0x796   : > { %v2109_v3 = vpop.xlane.xlu1 %2108 }
 0x797   : > { %v4598_v33 = vsub.f32 %v2078_v45, %v2116_v39  ;;  %v2117_v9 = vmul.f32 0.25, %v2109_v3  ;;  %v2146_v48 = vsel %vm967_vm2, %v2130_v26, 0.0  ;;  %v2131_v38 = vmul.f32 %v4594_v18, %v4594_v18 }
 0x798   : > { %2147 = vadd.xlane.f32.xlu0 %v2146_v48 }
 0x799   : > { %v4603_v15 = vsub.f32 %v2081_v52, %v2117_v9  ;;  %v2149_v35 = vsel %vm967_vm2, %v2131_v38, 0.0  ;;  %v2132_v53 = vmul.f32 %v4598_v33, %v4598_v33 }
 0x79a   : > { %2150 = vadd.xlane.f32.xlu1 %v2149_v35 }
 0x79b   : > { %v2152_v12 = vsel %vm967_vm2, %v2132_v53, 0.0  ;;  %v2133_v36 = vmul.f32 %v4603_v15, %v4603_v15 }
 0x79c   : > { %2153 = vadd.xlane.f32.xlu0 %v2152_v12 }
 0x79d   : > { %v2155_v27 = vsel %vm967_vm2, %v2133_v36, 0.0 }
 0x79e   : > { %2156 = vadd.xlane.f32.xlu1 %v2155_v27 }
 0x813   : > { %v2136_v50 = vpop.xlane.xlu0 %2135 }
 0x814   : > { %v2158_v47 = vmul.f32 0.25, %v2136_v50 }
 0x815   : > { %v2139_v8 = vpop.xlane.xlu1 %2138 }
 0x816   : > { %v2166_v14 = vadd.f32 1e-05, %v2158_v47  ;;  %v2159_v21 = vmul.f32 0.25, %v2139_v8 }
 0x818   : > { %2929 = vrsqrt.f32 %v2166_v14  ;;  %v2167_v41 = vadd.f32 1e-05, %v2159_v21 }
 0x819   : > { %v2145_v51 = vpop.xlane.xlu1 %2144  ;;  %v2142_v30 = vpop.xlane.xlu0 %2141 }
 0x81a   : > { %2931 = vrsqrt.f32 %v2167_v41  ;;  %v2161_v44 = vmul.f32 0.25, %v2145_v51  ;;  %v2160_v57 = vmul.f32 0.25, %v2142_v30 }
 0x81c   : > { %v2169_v16 = vadd.f32 1e-05, %v2161_v44  ;;  %v2168_v49 = vadd.f32 1e-05, %v2160_v57 }
 0x81e   : > { %2933 = vrsqrt.f32 %v2169_v16 }
 0x81f   : > { %2935 = vrsqrt.f32 %v2168_v49 }
 0x822   : > { %v2930_v29 = vpop.eup %2929 }
 0x823   : > { %v2182_v54 = vmul.f32 %v2930_v29, %v4572_v24  ;;  %v2945_v29 = vld [vmem:[%s4018_s29 + $0x10] sm:$0xff] }
 0x824   : > { %v2932_v45 = vpop.eup %2931 }
 0x825   : > { %v2183_v19 = vmul.f32 %v2932_v45, %v4574_v31  ;;  %v2196_v52 = vmul.f32 %v2623_v5, %v2182_v54  ;;  %v2148_v42 = vpop.xlane.xlu0 %2147 }
 0x826   : > { %v2162_v0 = vmul.f32 0.25, %v2148_v42  ;;  %v2947_v42 = vld [vmem:[%s4018_s29 + $0x18] sm:$0xff] }
 0x827   : > { %v2197_v55 = vmul.f32 %v2623_v5, %v2183_v19  ;;  %v2151_v23 = vpop.xlane.xlu1 %2150  ;;  %v2210_v25 = vadd.f32 %v2624_v6, %v2196_v52  ;;  %v2946_v19 = vld [vmem:[%s4018_s29] sm:$0xff] }
 0x828   : > { %v2934_v7 = vpop.eup %2933  ;;  %v2170_v60 = vadd.f32 1e-05, %v2162_v0  ;;  %v2163_v59 = vmul.f32 0.25, %v2151_v23 }
 0x829   : > { %v2936_v32 = vpop.eup %2935  ;;  %v2185_v56 = vmul.f32 %v2934_v7, %v4578_v22  ;;  %v2211_v13 = vadd.f32 %v2624_v6, %v2197_v55  ;;  %v2154_v24 = vpop.xlane.xlu0 %2153  ;;  %v2218_v62 = vmax.f32 %v2210_v25, 0.0  ;;  %v2948_v55 = vld [vmem:[%s4018_s29 + $0x8] sm:$0xff] }
 0x82a   : > { %v2184_v37 = vmul.f32 %v2936_v32, %v4583_v34  ;;  %2937 = vrsqrt.f32 %v2170_v60  ;;  %v2171_v31 = vadd.f32 1e-05, %v2163_v59  ;;  %v2164_v11 = vmul.f32 0.25, %v2154_v24  ;;  %v2949_v59 = vld [vmem:[%s4018_s29 + $0x30] sm:$0xff] }
 0x82b   : > { %v2199_v58 = vmul.f32 %v2623_v5, %v2185_v56  ;;  %v2157_v43 = vpop.xlane.xlu1 %2156  ;;  %v2219_v28 = vmax.f32 %v2211_v13, 0.0 }
 0x82c   : > { %v2198_v46 = vmul.f32 %v2623_v5, %v2184_v37  ;;  %2939 = vrsqrt.f32 %v2171_v31  ;;  %v2172_v2 = vadd.f32 1e-05, %v2164_v11  ;;  %v2165_v63 = vmul.f32 0.25, %v2157_v43 }
 0x82d   : > { %v2213_v4 = vadd.f32 %v2624_v6, %v2199_v58  ;;  %v2226_v61 = vpack.c.bf16 %v2219_v28, %v2218_v62  ;;  %v2950_v58 = vld [vmem:[%s4018_s29 + $0x20] sm:$0xff]  ;;  %v2952_v62 = vld [vmem:[%s4018_s29 + $0x28] sm:$0xff] }
 0x82e   : > { %v2212_v22 = vadd.f32 %v2624_v6, %v2198_v46  ;;  %2941 = vrsqrt.f32 %v2172_v2  ;;  %v2173_v17 = vadd.f32 1e-05, %v2165_v63  ;;  %v2951_v46 = vld [vmem:[%s4018_s29 + $0x38] sm:$0xff]  ;;  %s3383_s29 = scalar_lea.vmem %s3382_s19, 2048 }
 0x82f   : > { %v2221_v40 = vmax.f32 %v2213_v4, 0.0  ;;  %2681 = vmatprep.mubr.msk.bf16.mxu0 %vm967_vm2, %v2226_v61  ;;  %p3385_p3 = scmp.lt.s32.totalorder %s3383_s29, %s3377_s23 }
 0x830   : > { %v2220_v34 = vmax.f32 %v2212_v22, 0.0  ;;  %2943 = vrsqrt.f32 %v2173_v17 }
 0x831   : > { %p3386_p7 = por %p3385_p3, %p3384_p1 }
 0x832   : > { %v2227_v39 = vpack.c.bf16 %v2221_v40, %v2220_v34 }
 0x833   : > { %p3387_p2 = pnand %p3386_p7, %p3380_p13 }
 0x834   : > { %2682 = vmatmul.mubr.msk.bf16.vlgmr.msra.gmra.mrb[4].mxu0 %vm967_vm2, %v2227_v39  ;;  %v2938_v26 = vpop.eup %2937 }
 0x835   : > { %v2186_v3 = vmul.f32 %v2938_v26, %v4592_v20 }
 0x836   : > { %v2940_v9 = vpop.eup %2939 }
 0x837   : > { %v2187_v48 = vmul.f32 %v2940_v9, %v4594_v18  ;;  %v2200_v38 = vmul.f32 %v2623_v5, %v2186_v3 }
 0x838   : > { %v2942_v35 = vpop.eup %2941 }
 0x839   : > { %v2188_v53 = vmul.f32 %v2942_v35, %v4598_v33  ;;  %v2201_v12 = vmul.f32 %v2623_v5, %v2187_v48  ;;  %v2214_v36 = vadd.f32 %v2624_v6, %v2200_v38 }
 0x83a   : > { %v2944_v27 = vpop.eup %2943 }
 0x83b   : > { %v2189_v1 = vmul.f32 %v2944_v27, %v4603_v15  ;;  %v2215_v10 = vadd.f32 %v2624_v6, %v2201_v12  ;;  %v2202_v50 = vmul.f32 %v2623_v5, %v2188_v53  ;;  %v2222_v47 = vmax.f32 %v2214_v36, 0.0  ;;  %v2625_v15 = vld [vmem:[#allocation27] ss:$0 sm:$0xff] }
 0x83d   : > { %v2223_v8 = vmax.f32 %v2215_v10, 0.0  ;;  %v2203_v14 = vmul.f32 %v2623_v5, %v2189_v1  ;;  %v2216_v21 = vadd.f32 %v2624_v6, %v2202_v50 }
 0x83f   : > { %v2228_v20 = vpack.c.bf16 %v2223_v8, %v2222_v47  ;;  %v2217_v41 = vadd.f32 %v2624_v6, %v2203_v14  ;;  %v2224_v18 = vmax.f32 %v2216_v21, 0.0 }
 0x841   : > { %2685 = vmatprep.mubr.msk.bf16.mxu0 %vm967_vm2, %v2228_v20  ;;  %v2225_v51 = vmax.f32 %v2217_v41, 0.0 }
 0x843   : > { %v2229_v33 = vpack.c.bf16 %v2225_v51, %v2224_v18 }
 0x845   : > { %2686 = vmatmul.mubr.msk.bf16.gmra.mrb[8].mxu0 %vm967_vm2, %v2229_v33 }
 0x907   : > { %v2683_v30 = vpop.f32.mrb[4].mxu0 }
 0x908   : > { %v2296_v44 = vadd.f32 %v2683_v30, %v2625_v15  ;;  %v2287_v57 = vpop.f32.mrb[5].mxu0 }
 0x909   : > { %v2288_v16 = vadd.f32 %v2625_v15, %v2287_v57  ;;  %v2684_v49 = vpop.f32.mrb[6].mxu0 }
 0x90a   : > { %v2320_v5 = vadd.f32 %v2945_v29, %v2296_v44  ;;  %v2299_v54 = vadd.f32 %v2684_v49, %v2625_v15  ;;  %v2290_v45 = vpop.f32.mrb[7].mxu0 }
 0x90b   : > { %v2318_v6 = vadd.f32 %v2946_v19, %v2288_v16  ;;  %v2291_v52 = vadd.f32 %v2625_v15, %v2290_v45 }
 0x90c   : > { %2328 = vst.msk [vmem:[%s4629_s10 + $0x10] sm:$0xff] %vm730_vm0, %v2320_v5  ;;  %v2321_v0 = vadd.f32 %v2947_v42, %v2299_v54 }
 0x90d   : > { %2326 = vst.msk [vmem:[%s4629_s10] sm:$0xff] %vm730_vm0, %v2318_v6  ;;  %v2319_v7 = vadd.f32 %v2948_v55, %v2291_v52 }
 0x90e   : > { %2329 = vst.msk [vmem:[%s4629_s10 + $0x18] sm:$0xff] %vm730_vm0, %v2321_v0 }
 0x90f   : > { %2327 = vst.msk [vmem:[%s4629_s10 + $0x8] sm:$0xff] %vm730_vm0, %v2319_v7 }
 0x918   : > { %v2687_v23 = vpop.f32.mrb[8].mxu0 }
 0x919   : > { %v2312_v25 = vadd.f32 %v2687_v23, %v2625_v15  ;;  %v2303_v32 = vpop.f32.mrb[9].mxu0 }
 0x91a   : > { %v2304_v56 = vadd.f32 %v2625_v15, %v2303_v32  ;;  %v2688_v60 = vpop.f32.mrb[10].mxu0 }
 0x91b   : > { %v2324_v13 = vadd.f32 %v2949_v59, %v2312_v25  ;;  %v2315_v37 = vadd.f32 %v2688_v60, %v2625_v15  ;;  %v2306_v24 = vpop.f32.mrb[11].mxu0 }
 0x91c   : > { %v2322_v31 = vadd.f32 %v2950_v58, %v2304_v56  ;;  %v2307_v11 = vadd.f32 %v2625_v15, %v2306_v24 }
 0x91d   : > { %2332 = vst.msk [vmem:[%s4629_s10 + $0x30] sm:$0xff] %vm730_vm0, %v2324_v13  ;;  %v2325_v43 = vadd.f32 %v2951_v46, %v2315_v37 }
 0x91e   : > { %2330 = vst.msk [vmem:[%s4629_s10 + $0x20] sm:$0xff] %vm730_vm0, %v2322_v31  ;;  %v2323_v28 = vadd.f32 %v2952_v62, %v2307_v11 }
 0x91f   : > { %2333 = vst.msk [vmem:[%s4629_s10 + $0x38] sm:$0xff] %vm730_vm0, %v2325_v43 }
 0x920   : > { %2331 = vst.msk [vmem:[%s4629_s10 + $0x28] sm:$0xff] %vm730_vm0, %v2323_v28 }
 0x921   : > { %3390 = shalt.err (!%p3387_p2)
}
 0x922   : > { %s3391_s0 = scalar_lea.hbm %s4651_s30, 1024  ;;  %s3395_s18 = scalar_lea.hbm %s4848_s5, 2048 }
 0x923   : > { %p3392_p6 = scmp.ne.s32.totalorder %s4651_s30, %s3391_s0  ;;  %p3396_p9 = scmp.lt.u32.totalorder %s4651_s30, %s4848_s5 }
 0x924   : > { %p3397_p4 = scmp.lt.u32.totalorder %s3395_s18, %s3391_s0  ;;  %p3399_p11 = scmp.lt.u32.totalorder %s3391_s0, %s4651_s30 }
 0x925   : > { %p3393_p10 = pnand %p3392_p6, %p4849_p0 }
 0x926   : > { %p3398_p8 = por %p3397_p4, %p3396_p9 }
 0x927   : > { %p3394_p5 = pneg %p3393_p10 }
 0x928   : > { %p3400_p12 = por %p3399_p11, %p3398_p8 }
 0x92a   : > { %p3401_p13 = pnand %p3400_p12, %p3394_p5 }
 0x92c   : > { %3404 = shalt.err (!%p3401_p13)
}
 0x92d   : > { %s3507_s16 = smov 128  }
 0x92e   : > { %2751 = dma.vmem_to_hbm [thread:$0]  (%p4849_p0), %s4656_s9, 1024, %s4651_s30, %s2335_s7, %s3507_s16, %s3507_s16, %s3500_s6  }
 0x92f PF: > { %s4850_s22 = sld [smem:[#allocation39_spill]]  ;;  %p4851_p1 = scmp.ne.s32.totalorder %s4771_s15, 0 }
 0x930   : > { %p4852_p3 = scmp.ge.s32.totalorder %s3475_s21, 2 }
 0x932   : > { %p2801_p7 = pnand %p4852_p3, %p4851_p1 }
 0x935   : > { %s2363_s2 = sand.u32 1, %s4850_s22  }
 0x936   : > { %s2364_s23 = scalar_lea.sflag [#allocation6], %s2363_s2 }
 0x937   : > { %3458 = dma.done.wait (!%p2801_p7), %s2364_s23, 1024  }
 0x938   : > { %3460 = vsyncadd (!%p2801_p7), %s2364_s23, 4294966272  ;;  %s4853_s18 = sld [smem:[#allocation40_spill]]  ;;  %p37_p2 = scmp.ge.s32.totalorder %s3894_s28, 4  }
 0x939   : > { %s4854_s19 = smov %s3471_s20  ;;  %s4855_s20 = smov %s3906_s1 }
 0x93a   : > { %s4856_s21 = smov %s3894_s28  ;;  %39 = sbr.rel (!%p37_p2) target bundleno = 26 (0x1a), region = 198 }
 0x941   :  { %2369 = vsyncpa [#allocation5], 1 }
 0x942   :  { %2371 = vsyncpa [#allocation5 + $0x1], 1 }
 0x943   :  { %2372 = vsyncpa [#allocation8], 1 }
 0x944   :  { %2374 = vsyncpa [#allocation8 + $0x1], 1 }
 0x945   :  { %2375 = vsyncpa [#allocation11], 1 }
 0x946   :  { %2376 = vsyncpa [#allocation14], 1 }
 0x947   :  { %2377 = vsyncpa [#allocation17], 1 }
 0x948   :  { %2378 = vsyncpa [#allocation20], 1 }
 0x949   :  { %2379 = vsyncpa [#allocation23], 1 }
 0x94a   :  { %2380 = vsyncpa [#allocation26], 1 }
 0x94b   :  { %2381 = vsyncpa [#allocation6], 1 }
 0x94c   :  { %2383 = vsyncpa [#allocation6 + $0x1], 1 }

// kernel: forward.9
= control target key start
LH: loop header
LB: loop body
LE: loop exit
PB: predicated region body
PF: predicated region fallthrough
CT: control target
= control target key end

     0   :  { %s4766_s0 = inlined_call_operand.hbm [shape: f32[2,64,8], index: 0, kind: input, shape index: {}]   ;;  %s4767_s1 = inlined_call_operand.hbm [shape: f32[2,64,1], index: 1, kind: input, shape index: {}]   ;;  %s4768_s2 = inlined_call_operand.hbm [shape: f32[9,64,1], index: 2, kind: input, shape index: {}]   ;;  %s4769_s3 = inlined_call_operand.hbm [shape: f32[1,8], index: 3, kind: input, shape index: {}]   ;;  %s4770_s4 = inlined_call_operand.hbm [shape: f32[1,8], index: 4, kind: input, shape index: {}]   ;;  %s4771_s5 = inlined_call_operand.hbm [shape: bf16[8,4], index: 5, kind: input, shape index: {}]   ;;  %s4772_s6 = inlined_call_operand.hbm [shape: f32[1,4], index: 6, kind: input, shape index: {}]   ;;  %s4773_s7 = inlined_call_operand.hbm [shape: f32[1,4], index: 7, kind: input, shape index: {}]   ;;  %s4774_s8 = inlined_call_operand.hbm [shape: f32[1,4], index: 8, kind: input, shape index: {}]   ;;  %s4775_s9 = inlined_call_operand.hbm [shape: bf16[36,4], index: 9, kind: input, shape index: {}]   ;;  %s4776_s10 = inlined_call_operand.hbm [shape: f32[1,4], index: 10, kind: input, shape index: {}]   ;;  %s4777_s11 = inlined_call_operand.hbm [shape: f32[1,4], index: 11, kind: input, shape index: {}]   ;;  %s4778_s12 = inlined_call_operand.hbm [shape: f32[1,4], index: 12, kind: input, shape index: {}]   ;;  %s4779_s13 = inlined_call_operand.hbm [shape: bf16[4,8], index: 13, kind: input, shape index: {}]   ;;  %s4780_s14 = inlined_call_operand.hbm [shape: f32[1,8], index: 14, kind: input, shape index: {}]   ;;  %s4781_s15 = inlined_call_operand.hbm [shape: f32[2,64,8], index: 15, kind: output, shape index: {}]  }
   0x1   :  { %4798 = sst [smem:[#allocation71_spill]] %s4766_s0 }
   0x2   :  { %4799 = sst [smem:[#allocation72_spill]] %s4767_s1 }
   0x3   :  { %4800 = sst [smem:[#allocation73_spill]] %s4768_s2 }
   0x4   :  { %4801 = sst [smem:[#allocation74_spill]] %s4769_s3 }
   0x5   :  { %4802 = sst [smem:[#allocation75_spill]] %s4770_s4 }
   0x6   :  { %4803 = sst [smem:[#allocation76_spill]] %s4771_s5 }
   0x7   :  { %4804 = sst [smem:[#allocation77_spill]] %s4772_s6 }
   0x8   :  { %4805 = sst [smem:[#allocation78_spill]] %s4773_s7 }
   0x9   :  { %4806 = sst [smem:[#allocation79_spill]] %s4774_s8 }
   0xa   :  { %4807 = sst [smem:[#allocation80_spill]] %s4775_s9 }
   0xb   :  { %4808 = sst [smem:[#allocation81_spill]] %s4776_s10 }
   0xc   :  { %4809 = sst [smem:[#allocation82_spill]] %s4781_s15 }
   0xd   :  { %20 = vsyncpa [#allocation5], 0 }
   0xe   :  { %22 = vsyncpa [#allocation5 + $0x1], 0 }
   0xf   :  { %23 = vsyncpa [#allocation8], 0 }
  0x10   :  { %25 = vsyncpa [#allocation8 + $0x1], 0 }
  0x11   :  { %26 = vsyncpa [#allocation11], 0 }
  0x12   :  { %27 = vsyncpa [#allocation14], 0 }
  0x13   :  { %28 = vsyncpa [#allocation17], 0 }
  0x14   :  { %29 = vsyncpa [#allocation20], 0 }
  0x15   :  { %30 = vsyncpa [#allocation23], 0 }
  0x16   :  { %31 = vsyncpa [#allocation26], 0 }
  0x17   :  { %32 = vsyncpa [#allocation6], 0 }
  0x18   :  { %34 = vsyncpa [#allocation6 + $0x1], 0  ;;  %s3586_s18 = smov 0   ;;  %s3588_s19 = smov 0  }
  0x19   :  { %s3590_s20 = smov 0   ;;  %s3592_s21 = smov 0  }
  0x1a LB: > { %4810 = sst [smem:[#allocation39_spill]] %s3461_s18  ;;  %s3475_s22 = smov [#allocation9]   ;;  %s3473_s21 = sphi %s3592_s21, %s4921_s21   ;;  %s3469_s20 = sphi %s3590_s20, %s4920_s20   ;;  %s3465_s19 = sphi %s3588_s19, %s4919_s19   ;;  %s3461_s18 = sphi %s3586_s18, %s4918_s18  }
  0x1b   : > { %4811 = sst [smem:[#allocation40_spill]] %s3465_s19  ;;  %s408_s23 = sshll.u32 %s3475_s22, 4  ;;  %s3612_s23 = int_to_ptr.vmem [resolvable:$true] %s408_s23 }
  0x1c   : > { %s3607_s24 = sadd.s32 4294967295, %s3473_s21   ;;  %p2566_p0 = scmp.ge.s32.totalorder %s3473_s21, 1 }
  0x1d   : > { %4812 = sst [smem:[#allocation41_spill]] %s3607_s24  ;;  %p4792_p1 = scmp.eq.s32.totalorder %s3607_s24, 0 }
  0x1e   : > { %p396_p2 = scmp.lt.s32.totalorder %s3473_s21, 3  ;;  %s3476_s26 = smov [#allocation10]  }
  0x1f   : > { %s422_s27 = sshll.u32 %s3476_s26, 4  ;;  %s3477_s29 = smov [#allocation13]   ;;  %s3627_s27 = int_to_ptr.vmem [resolvable:$true] %s422_s27 }
  0x20   : > { %p3614_p3 = pnand %p2566_p0, %p396_p2  ;;  %s444_s30 = sshll.u32 %s3477_s29, 4  ;;  %s3629_s30 = int_to_ptr.vmem [resolvable:$true] %s444_s30 }
  0x21   : > { %s4816_s2 = sld [smem:[#allocation73_spill]] }
  0x22   : > { %s4813_s25 = scalar_select %p3614_p3, 1, 0 }
  0x23   : > { %p2751_p5 = pneg %p3614_p3 }
  0x24   : > { %4814 = sst [smem:[#allocation42_spill]] %s4813_s25 }
  0x25   : > { %p3623_p6 = pnand %p2751_p5, %p4792_p1 }
  0x27   : > { %s2951_s22 = scalar_lea.hbm %s4816_s2, 9216  ;;  %p3639_p8 = pneg %p3623_p6 }
  0x28   : > { %p2952_p7 = scmp.ne.s32.totalorder %s4816_s2, %s2951_s22  ;;  %p2958_p11 = scmp.lt.u32.totalorder %s2951_s22, %s4816_s2 }
  0x2a   : > { %p2954_p9 = pnand %p3639_p8, %p2952_p7 }
  0x2c   : > { %p2955_p10 = pneg %p2954_p9 }
  0x2e   : > { %p2960_p12 = pnand %p2958_p11, %p2955_p10 }
  0x30   : > { %2963 = shalt.err (!%p2960_p12)
}
  0x31   : > { %s2964_s15 = scalar_lea.vmem %s3612_s23, 9216  ;;  %p2972_p5 = scmp.lt.s32.totalorder %s3612_s23, %s3612_s23 }
  0x32   : > { %p2965_p13 = scmp.ne.s32.totalorder %s3612_s23, %s2964_s15  ;;  %p2973_p4 = scmp.lt.s32.totalorder %s2964_s15, %s2964_s15 }
  0x34   : > { %p2967_p0 = pnand %p2965_p13, %p3639_p8  ;;  %p2974_p7 = por %p2973_p4, %p2972_p5 }
  0x36   : > { %p2968_p2 = pneg %p2967_p0 }
  0x38   : > { %p2975_p9 = pnand %p2974_p7, %p2968_p2 }
  0x3a   : > { %2978 = shalt.err (!%p2975_p9)
}
  0x3b   : > { %s4790_s25 = smov 128   ;;  %s4794_s1 = smov 8  }
  0x3c   : > { %2754 = dma.hbm_to_vmem [thread:$0]  (!%p3623_p6), %s4816_s2, 9216, %s3612_s23, [#allocation8], %s4790_s25, %s4790_s25, %s4794_s1  }
  0x3d   : > { %s4818_s3 = sld [smem:[#allocation74_spill]] }
  0x43   : > { %s2979_s15 = scalar_lea.hbm %s4818_s3, 16 }
  0x44   : > { %p2980_p4 = scmp.ne.s32.totalorder %s4818_s3, %s2979_s15  ;;  %p2986_p12 = scmp.lt.u32.totalorder %s2979_s15, %s4818_s3 }
  0x46   : > { %p2982_p10 = pnand %p2980_p4, %p3639_p8 }
  0x48   : > { %p2983_p11 = pneg %p2982_p10 }
  0x4a   : > { %p2988_p13 = pnand %p2986_p12, %p2983_p11 }
  0x4c   : > { %2991 = shalt.err (!%p2988_p13)
}
  0x4d   : > { %s2992_s23 = scalar_lea.vmem %s3627_s27, 16  ;;  %s2999_s0 = scalar_lea.vmem %s3627_s27, 32 }
  0x4e   : > { %p2993_p0 = scmp.ne.s32.totalorder %s3627_s27, %s2992_s23  ;;  %p3000_p7 = scmp.lt.s32.totalorder %s3627_s27, %s3627_s27 }
  0x4f   : > { %p3001_p9 = scmp.lt.s32.totalorder %s2999_s0, %s2992_s23 }
  0x50   : > { %p2995_p2 = pnand %p2993_p0, %p3639_p8 }
  0x51   : > { %p3002_p4 = por %p3001_p9, %p3000_p7 }
  0x52   : > { %p2996_p5 = pneg %p2995_p2 }
  0x54   : > { %p3003_p10 = pnand %p3002_p4, %p2996_p5 }
  0x56   : > { %3006 = shalt.err (!%p3003_p10)
}
  0x57   : > { %2757 = dma.hbm_to_vmem [thread:$0]  (!%p3623_p6), %s4818_s3, 16, %s3627_s27, [#allocation11]  }
  0x58   : > { %s4819_s5 = sld [smem:[#allocation76_spill]] }
  0x5e   : > { %s3007_s17 = scalar_lea.hbm %s4819_s5, 64 }
  0x5f   : > { %p3008_p11 = scmp.ne.s32.totalorder %s4819_s5, %s3007_s17  ;;  %p3014_p0 = scmp.lt.u32.totalorder %s3007_s17, %s4819_s5 }
  0x61   : > { %p3010_p12 = pnand %p3008_p11, %p3639_p8 }
  0x63   : > { %p3011_p13 = pneg %p3010_p12 }
  0x65   : > { %p3016_p2 = pnand %p3014_p0, %p3011_p13 }
  0x67   : > { %3019 = shalt.err (!%p3016_p2)
}
  0x68   : > { %s3020_s27 = scalar_lea.vmem %s3629_s30, 64  ;;  %p3028_p4 = scmp.lt.s32.totalorder %s3629_s30, %s3629_s30 }
  0x69   : > { %p3021_p5 = scmp.ne.s32.totalorder %s3629_s30, %s3020_s27  ;;  %p3029_p10 = scmp.lt.s32.totalorder %s3020_s27, %s3020_s27 }
  0x6b   : > { %p3023_p7 = pnand %p3021_p5, %p3639_p8  ;;  %p3030_p11 = por %p3029_p10, %p3028_p4 }
  0x6d   : > { %p3024_p9 = pneg %p3023_p7 }
  0x6f   : > { %p3031_p12 = pnand %p3030_p11, %p3024_p9 }
  0x71   : > { %3034 = shalt.err (!%p3031_p12)
}
  0x72   : > { %2763 = dma.hbm_to_vmem [thread:$0]  (!%p3623_p6), %s4819_s5, 64, %s3629_s30, [#allocation14]  }
  0x73   : > { %s3480_s19 = smov [#allocation16]   ;;  %s3481_s16 = smov [#allocation19]  }
  0x74   : > { %s466_s24 = sshll.u32 %s3480_s19, 4  ;;  %s487_s17 = sshll.u32 %s3481_s16, 4  ;;  %s467_s24 = int_to_ptr.vmem [resolvable:$true] %s466_s24  ;;  %s488_s17 = int_to_ptr.vmem [resolvable:$true] %s487_s17 }
  0x75   : > { %s4820_s7 = sld [smem:[#allocation78_spill]] }
  0x7b   : > { %s3035_s15 = scalar_lea.hbm %s4820_s7, 16 }
  0x7c   : > { %p3036_p13 = scmp.ne.s32.totalorder %s4820_s7, %s3035_s15  ;;  %p3042_p5 = scmp.lt.u32.totalorder %s3035_s15, %s4820_s7 }
  0x7e   : > { %p3038_p0 = pnand %p3036_p13, %p3639_p8 }
  0x80   : > { %p3039_p2 = pneg %p3038_p0 }
  0x82   : > { %p3044_p7 = pnand %p3042_p5, %p3039_p2 }
  0x84   : > { %3047 = shalt.err (!%p3044_p7)
}
  0x85   : > { %s3048_s30 = scalar_lea.vmem %s467_s24, 16  ;;  %s3055_s18 = scalar_lea.vmem %s467_s24, 32 }
  0x86   : > { %p3049_p9 = scmp.ne.s32.totalorder %s467_s24, %s3048_s30  ;;  %p3056_p11 = scmp.lt.s32.totalorder %s467_s24, %s467_s24 }
  0x87   : > { %p3057_p12 = scmp.lt.s32.totalorder %s3055_s18, %s3048_s30 }
  0x88   : > { %p3051_p4 = pnand %p3049_p9, %p3639_p8 }
  0x89   : > { %p3058_p1 = por %p3057_p12, %p3056_p11 }
  0x8a   : > { %p3052_p10 = pneg %p3051_p4 }
  0x8c   : > { %p3059_p3 = pnand %p3058_p1, %p3052_p10 }
  0x8e   : > { %3062 = shalt.err (!%p3059_p3)
}
  0x8f   : > { %2769 = dma.hbm_to_vmem [thread:$0]  (!%p3623_p6), %s4820_s7, 16, %s467_s24, [#allocation17]  }
  0x90   : > { %s4821_s9 = sld [smem:[#allocation80_spill]] }
  0x96   : > { %s3063_s29 = scalar_lea.hbm %s4821_s9, 320 }
  0x97   : > { %p3064_p13 = scmp.ne.s32.totalorder %s4821_s9, %s3063_s29  ;;  %p3070_p3 = scmp.lt.u32.totalorder %s3063_s29, %s4821_s9 }
  0x99   : > { %p3066_p0 = pnand %p3064_p13, %p3639_p8 }
  0x9b   : > { %p3067_p1 = pneg %p3066_p0 }
  0x9d   : > { %p3072_p2 = pnand %p3070_p3, %p3067_p1 }
  0x9f   : > { %3075 = shalt.err (!%p3072_p2)
}
  0xa0   : > { %s3076_s30 = scalar_lea.vmem %s488_s17, 320  ;;  %p3084_p4 = scmp.lt.s32.totalorder %s488_s17, %s488_s17 }
  0xa1   : > { %p3077_p5 = scmp.ne.s32.totalorder %s488_s17, %s3076_s30  ;;  %p3085_p10 = scmp.lt.s32.totalorder %s3076_s30, %s3076_s30 }
  0xa3   : > { %p3079_p7 = pnand %p3077_p5, %p3639_p8  ;;  %p3086_p11 = por %p3085_p10, %p3084_p4 }
  0xa5   : > { %p3080_p9 = pneg %p3079_p7 }
  0xa7   : > { %p3087_p12 = pnand %p3086_p11, %p3080_p9 }
  0xa9   : > { %3090 = shalt.err (!%p3087_p12)
}
  0xaa   : > { %s3482_s24 = smov 64   ;;  %s3483_s18 = smov 4  }
  0xab   : > { %2775 = dma.hbm_to_vmem [thread:$0]  (!%p3623_p6), %s4821_s9, 320, %s488_s17, [#allocation20], %s3482_s24, %s3482_s24, %s3483_s18  }
  0xac   : > { %s3484_s25 = smov [#allocation22]   ;;  %s3485_s29 = smov [#allocation25]  }
  0xad   : > { %s512_s22 = sshll.u32 %s3484_s25, 4  ;;  %s534_s15 = sshll.u32 %s3485_s29, 4  ;;  %s513_s22 = int_to_ptr.vmem [resolvable:$true] %s512_s22  ;;  %s535_s15 = int_to_ptr.vmem [resolvable:$true] %s534_s15 }
  0xae   : > { %s3091_s0 = scalar_lea.hbm %s4777_s11, 16 }
  0xaf   : > { %p3092_p13 = scmp.ne.s32.totalorder %s4777_s11, %s3091_s0  ;;  %p3098_p3 = scmp.lt.u32.totalorder %s3091_s0, %s4777_s11 }
  0xb1   : > { %p3094_p0 = pnand %p3092_p13, %p3639_p8 }
  0xb3   : > { %p3095_p1 = pneg %p3094_p0 }
  0xb5   : > { %p3100_p2 = pnand %p3098_p3, %p3095_p1 }
  0xb7   : > { %3103 = shalt.err (!%p3100_p2)
}
  0xb8   : > { %s3104_s17 = scalar_lea.vmem %s513_s22, 16  ;;  %s3111_s24 = scalar_lea.vmem %s513_s22, 32 }
  0xb9   : > { %p3105_p5 = scmp.ne.s32.totalorder %s513_s22, %s3104_s17  ;;  %p3112_p4 = scmp.lt.s32.totalorder %s513_s22, %s513_s22 }
  0xba   : > { %p3113_p10 = scmp.lt.s32.totalorder %s3111_s24, %s3104_s17 }
  0xbb   : > { %p3107_p7 = pnand %p3105_p5, %p3639_p8 }
  0xbc   : > { %p3114_p11 = por %p3113_p10, %p3112_p4 }
  0xbd   : > { %p3108_p9 = pneg %p3107_p7 }
  0xbf   : > { %p3115_p12 = pnand %p3114_p11, %p3108_p9 }
  0xc1   : > { %3118 = shalt.err (!%p3115_p12)
}
  0xc2   : > { %2781 = dma.hbm_to_vmem [thread:$0]  (!%p3623_p6), %s4777_s11, 16, %s513_s22, [#allocation23]  }
  0xc3   : > { %s3119_s19 = scalar_lea.hbm %s4779_s13, 32 }
  0xc4   : > { %p3120_p13 = scmp.ne.s32.totalorder %s4779_s13, %s3119_s19  ;;  %p3126_p3 = scmp.lt.u32.totalorder %s3119_s19, %s4779_s13 }
  0xc6   : > { %p3122_p0 = pnand %p3120_p13, %p3639_p8 }
  0xc8   : > { %p3123_p1 = pneg %p3122_p0 }
  0xca   : > { %p3128_p2 = pnand %p3126_p3, %p3123_p1 }
  0xcc   : > { %3131 = shalt.err (!%p3128_p2)
}
  0xcd   : > { %s3132_s27 = scalar_lea.vmem %s535_s15, 32  ;;  %p3140_p4 = scmp.lt.s32.totalorder %s535_s15, %s535_s15 }
  0xce   : > { %p3133_p5 = scmp.ne.s32.totalorder %s535_s15, %s3132_s27  ;;  %p3141_p10 = scmp.lt.s32.totalorder %s3132_s27, %s3132_s27 }
  0xd0   : > { %p3135_p7 = pnand %p3133_p5, %p3639_p8  ;;  %p3142_p11 = por %p3141_p10, %p3140_p4 }
  0xd2   : > { %p3136_p9 = pneg %p3135_p7 }
  0xd4   : > { %p3143_p12 = pnand %p3142_p11, %p3136_p9 }
  0xd6   : > { %3146 = shalt.err (!%p3143_p12)
}
  0xd7   : > { %2787 = dma.hbm_to_vmem [thread:$0]  (!%p3623_p6), %s4779_s13, 32, %s535_s15, [#allocation26]  }
  0xd8   : > { %s3486_s30 = smov [#allocation12]   ;;  %s3487_s24 = smov [#allocation15]  }
  0xd9   : > { %s433_s17 = sshll.u32 %s3486_s30, 4  ;;  %s455_s1 = sshll.u32 %s3487_s24, 4  ;;  %s434_s17 = int_to_ptr.vmem [resolvable:$true] %s433_s17  ;;  %s456_s1 = int_to_ptr.vmem [resolvable:$true] %s455_s1 }
  0xda   : > { %s4822_s4 = sld [smem:[#allocation75_spill]] }
  0xe0   : > { %s3147_s3 = scalar_lea.hbm %s4822_s4, 16 }
  0xe1   : > { %p3148_p13 = scmp.ne.s32.totalorder %s4822_s4, %s3147_s3  ;;  %p3154_p3 = scmp.lt.u32.totalorder %s3147_s3, %s4822_s4 }
  0xe3   : > { %p3150_p0 = pnand %p3148_p13, %p3639_p8 }
  0xe5   : > { %p3151_p1 = pneg %p3150_p0 }
  0xe7   : > { %p3156_p2 = pnand %p3154_p3, %p3151_p1 }
  0xe9   : > { %3159 = shalt.err (!%p3156_p2)
}
  0xea   : > { %s3160_s15 = scalar_lea.vmem %s434_s17, 16  ;;  %s3167_s23 = scalar_lea.vmem %s434_s17, 32 }
  0xeb   : > { %p3161_p5 = scmp.ne.s32.totalorder %s434_s17, %s3160_s15  ;;  %p3168_p4 = scmp.lt.s32.totalorder %s434_s17, %s434_s17 }
  0xec   : > { %p3169_p10 = scmp.lt.s32.totalorder %s3167_s23, %s3160_s15 }
  0xed   : > { %p3163_p7 = pnand %p3161_p5, %p3639_p8 }
  0xee   : > { %p3170_p11 = por %p3169_p10, %p3168_p4 }
  0xef   : > { %p3164_p9 = pneg %p3163_p7 }
  0xf1   : > { %p3171_p12 = pnand %p3170_p11, %p3164_p9 }
  0xf3   : > { %3174 = shalt.err (!%p3171_p12)
}
  0xf4   : > { %2760 = dma.hbm_to_vmem [thread:$0]  (!%p3623_p6), %s4822_s4, 16, %s434_s17, [#allocation11]  }
  0xf5   : > { %s4823_s6 = sld [smem:[#allocation77_spill]] }
  0xfb   : > { %s3175_s24 = scalar_lea.hbm %s4823_s6, 16 }
  0xfc   : > { %p3176_p13 = scmp.ne.s32.totalorder %s4823_s6, %s3175_s24  ;;  %p3182_p3 = scmp.lt.u32.totalorder %s3175_s24, %s4823_s6 }
  0xfe   : > { %p3178_p0 = pnand %p3176_p13, %p3639_p8 }
 0x100   : > { %p3179_p1 = pneg %p3178_p0 }
 0x102   : > { %p3184_p2 = pnand %p3182_p3, %p3179_p1 }
 0x104   : > { %3187 = shalt.err (!%p3184_p2)
}
 0x105   : > { %s3188_s16 = scalar_lea.vmem %s456_s1, 16  ;;  %s3195_s17 = scalar_lea.vmem %s456_s1, 32 }
 0x106   : > { %p3189_p5 = scmp.ne.s32.totalorder %s456_s1, %s3188_s16  ;;  %p3196_p4 = scmp.lt.s32.totalorder %s456_s1, %s456_s1 }
 0x107   : > { %p3197_p10 = scmp.lt.s32.totalorder %s3195_s17, %s3188_s16 }
 0x108   : > { %p3191_p7 = pnand %p3189_p5, %p3639_p8 }
 0x109   : > { %p3198_p11 = por %p3197_p10, %p3196_p4 }
 0x10a   : > { %p3192_p9 = pneg %p3191_p7 }
 0x10c   : > { %p3199_p12 = pnand %p3198_p11, %p3192_p9 }
 0x10e   : > { %3202 = shalt.err (!%p3199_p12)
}
 0x10f   : > { %2766 = dma.hbm_to_vmem [thread:$0]  (!%p3623_p6), %s4823_s6, 16, %s456_s1, [#allocation14]  }
 0x110   : > { %s3488_s15 = smov [#allocation18]   ;;  %s3489_s27 = smov [#allocation21]  }
 0x111   : > { %s477_s23 = sshll.u32 %s3488_s15, 4  ;;  %s501_s22 = sshll.u32 %s3489_s27, 4  ;;  %s478_s23 = int_to_ptr.vmem [resolvable:$true] %s477_s23  ;;  %s502_s22 = int_to_ptr.vmem [resolvable:$true] %s501_s22 }
 0x112   : > { %s4824_s8 = sld [smem:[#allocation79_spill]] }
 0x118   : > { %s3203_s24 = scalar_lea.hbm %s4824_s8, 16 }
 0x119   : > { %p3204_p13 = scmp.ne.s32.totalorder %s4824_s8, %s3203_s24  ;;  %p3210_p3 = scmp.lt.u32.totalorder %s3203_s24, %s4824_s8 }
 0x11b   : > { %p3206_p0 = pnand %p3204_p13, %p3639_p8 }
 0x11d   : > { %p3207_p1 = pneg %p3206_p0 }
 0x11f   : > { %p3212_p2 = pnand %p3210_p3, %p3207_p1 }
 0x121   : > { %3215 = shalt.err (!%p3212_p2)
}
 0x122   : > { %s3216_s1 = scalar_lea.vmem %s478_s23, 16  ;;  %s3223_s16 = scalar_lea.vmem %s478_s23, 32 }
 0x123   : > { %p3217_p5 = scmp.ne.s32.totalorder %s478_s23, %s3216_s1  ;;  %p3224_p4 = scmp.lt.s32.totalorder %s478_s23, %s478_s23 }
 0x124   : > { %p3225_p10 = scmp.lt.s32.totalorder %s3223_s16, %s3216_s1 }
 0x125   : > { %p3219_p7 = pnand %p3217_p5, %p3639_p8 }
 0x126   : > { %p3226_p11 = por %p3225_p10, %p3224_p4 }
 0x127   : > { %p3220_p9 = pneg %p3219_p7 }
 0x129   : > { %p3227_p12 = pnand %p3226_p11, %p3220_p9 }
 0x12b   : > { %3230 = shalt.err (!%p3227_p12)
}
 0x12c   : > { %2772 = dma.hbm_to_vmem [thread:$0]  (!%p3623_p6), %s4824_s8, 16, %s478_s23, [#allocation17]  }
 0x12d   : > { %s4825_s10 = sld [smem:[#allocation81_spill]] }
 0x133   : > { %s3231_s27 = scalar_lea.hbm %s4825_s10, 16 }
 0x134   : > { %p3232_p13 = scmp.ne.s32.totalorder %s4825_s10, %s3231_s27  ;;  %p3238_p3 = scmp.lt.u32.totalorder %s3231_s27, %s4825_s10 }
 0x136   : > { %p3234_p0 = pnand %p3232_p13, %p3639_p8 }
 0x138   : > { %p3235_p1 = pneg %p3234_p0 }
 0x13a   : > { %p3240_p2 = pnand %p3238_p3, %p3235_p1 }
 0x13c   : > { %3243 = shalt.err (!%p3240_p2)
}
 0x13d   : > { %s3244_s2 = scalar_lea.vmem %s502_s22, 16  ;;  %s3251_s23 = scalar_lea.vmem %s502_s22, 32 }
 0x13e   : > { %p3245_p5 = scmp.ne.s32.totalorder %s502_s22, %s3244_s2  ;;  %p3252_p4 = scmp.lt.s32.totalorder %s502_s22, %s502_s22 }
 0x13f   : > { %p3253_p10 = scmp.lt.s32.totalorder %s3251_s23, %s3244_s2 }
 0x140   : > { %p3247_p7 = pnand %p3245_p5, %p3639_p8 }
 0x141   : > { %p3254_p11 = por %p3253_p10, %p3252_p4 }
 0x142   : > { %p3248_p9 = pneg %p3247_p7 }
 0x144   : > { %p3255_p12 = pnand %p3254_p11, %p3248_p9 }
 0x146   : > { %3258 = shalt.err (!%p3255_p12)
}
 0x147   : > { %2778 = dma.hbm_to_vmem [thread:$0]  (!%p3623_p6), %s4825_s10, 16, %s502_s22, [#allocation20]  }
 0x148   : > { %s3490_s1 = smov [#allocation24]   ;;  %s3491_s17 = smov [#allocation27]  }
 0x149   : > { %s523_s16 = sshll.u32 %s3490_s1, 4  ;;  %s545_s25 = sshll.u32 %s3491_s17, 4  ;;  %s524_s16 = int_to_ptr.vmem [resolvable:$true] %s523_s16  ;;  %s546_s25 = int_to_ptr.vmem [resolvable:$true] %s545_s25 }
 0x14a   : > { %s3259_s27 = scalar_lea.hbm %s4778_s12, 16 }
 0x14b   : > { %p3260_p13 = scmp.ne.s32.totalorder %s4778_s12, %s3259_s27  ;;  %p3266_p3 = scmp.lt.u32.totalorder %s3259_s27, %s4778_s12 }
 0x14d   : > { %p3262_p0 = pnand %p3260_p13, %p3639_p8 }
 0x14f   : > { %p3263_p1 = pneg %p3262_p0 }
 0x151   : > { %p3268_p2 = pnand %p3266_p3, %p3263_p1 }
 0x153   : > { %3271 = shalt.err (!%p3268_p2)
}
 0x154   : > { %s3272_s22 = scalar_lea.vmem %s524_s16, 16  ;;  %s3279_s2 = scalar_lea.vmem %s524_s16, 32 }
 0x155   : > { %p3273_p5 = scmp.ne.s32.totalorder %s524_s16, %s3272_s22  ;;  %p3280_p4 = scmp.lt.s32.totalorder %s524_s16, %s524_s16 }
 0x156   : > { %p3281_p10 = scmp.lt.s32.totalorder %s3279_s2, %s3272_s22 }
 0x157   : > { %p3275_p7 = pnand %p3273_p5, %p3639_p8 }
 0x158   : > { %p3282_p11 = por %p3281_p10, %p3280_p4 }
 0x159   : > { %p3276_p9 = pneg %p3275_p7 }
 0x15b   : > { %p3283_p12 = pnand %p3282_p11, %p3276_p9 }
 0x15d   : > { %3286 = shalt.err (!%p3283_p12)
}
 0x15e   : > { %2784 = dma.hbm_to_vmem [thread:$0]  (!%p3623_p6), %s4778_s12, 16, %s524_s16, [#allocation23]  }
 0x15f   : > { %s3287_s17 = scalar_lea.hbm %s4780_s14, 16 }
 0x160   : > { %p3288_p13 = scmp.ne.s32.totalorder %s4780_s14, %s3287_s17  ;;  %p3294_p3 = scmp.lt.u32.totalorder %s3287_s17, %s4780_s14 }
 0x162   : > { %p3290_p0 = pnand %p3288_p13, %p3639_p8 }
 0x164   : > { %p3291_p1 = pneg %p3290_p0 }
 0x166   : > { %p3296_p2 = pnand %p3294_p3, %p3291_p1 }
 0x168   : > { %3299 = shalt.err (!%p3296_p2)
}
 0x169   : > { %s3300_s30 = scalar_lea.vmem %s546_s25, 16  ;;  %s3307_s16 = scalar_lea.vmem %s546_s25, 32 }
 0x16a   : > { %p3301_p5 = scmp.ne.s32.totalorder %s546_s25, %s3300_s30  ;;  %p3308_p4 = scmp.lt.s32.totalorder %s546_s25, %s546_s25 }
 0x16b   : > { %p3309_p10 = scmp.lt.s32.totalorder %s3307_s16, %s3300_s30 }
 0x16c   : > { %p3303_p7 = pnand %p3301_p5, %p3639_p8 }
 0x16d   : > { %p3310_p11 = por %p3309_p10, %p3308_p4 }
 0x16e   : > { %p3304_p9 = pneg %p3303_p7 }
 0x170   : > { %p3311_p12 = pnand %p3310_p11, %p3304_p9 }
 0x172   : > { %3314 = shalt.err (!%p3311_p12)
}
 0x173   : > { %s4826_s22 = sld [smem:[#allocation40_spill]]  ;;  %s4827_s26 = sld [smem:[#allocation39_spill]] }
 0x174   : > { %s4828_s2 = sld [smem:[#allocation41_spill]]  ;;  %s2565_s23 = sadd.s32 4294967294, %s3473_s21  }
 0x175   : > { %2790 = dma.hbm_to_vmem [thread:$0]  (!%p3623_p6), %s4780_s14, 16, %s546_s25, [#allocation26]  }
 0x176   : > { %s3892_s28 = sadd.s32 1, %s3473_s21   ;;  %s47_s3 = sadd.s32 1, %s3469_s20 }
 0x177   : > { %s44_s19 = ssub.s32 %s3473_s21, %s3892_s28  ;;  %p55_p0 = scmp.eq.s32.totalorder %s3473_s21, 0 }
 0x178   : > { %p45_p13 = scmp.eq.s32.totalorder %s44_s19, 0  ;;  %p389_p9 = scmp.eq.s32.totalorder %s2565_s23, 1 }
 0x179   : > { %p54_p8 = scmp.ne.s32.totalorder %s3469_s20, %s4826_s22  ;;  %p60_p1 = scmp.ne.s32.totalorder %s4826_s22, %s4827_s26 }
 0x17a   : > { %p383_p3 = scmp.eq.s32.totalorder %s4828_s2, 1  ;;  %p4829_p5 = scmp.eq.s32.totalorder %s4828_s2, 0 }
 0x17b   : > { %s3904_s1 = scalar_select %p45_p13, %s3469_s20, %s47_s3  }
 0x17c   : > { %p56_p2 = por %p55_p0, %p54_p8  ;;  %p3908_p7 = por %p4829_p5, %p60_p1 }
 0x17d   : > { %p3912_p6 = por %p383_p3, %p54_p8  ;;  %p2815_p4 = scmp.lt.s32.totalorder %s3473_s21, 2 }
 0x17e   : > { %s556_s29 = sand.u32 1, %s3469_s20   ;;  %p3918_p10 = por %p389_p9, %p60_p1 }
 0x17f   : > { %s4831_s25 = scalar_select %p3912_p6, 1, 0 }
 0x180   : > { %s4832_s15 = scalar_select %p3918_p10, 1, 0 }
 0x181   : > { %s3922_s27 = sshll.u32 %s556_s29, 6  ;;  %s2633_s0 = sshll.u32 %s3473_s21, 10 }
 0x182   : > { %s4833_s24 = sld [smem:[#allocation71_spill]]  ;;  %s560_s22 = scalar_lea.vmem [#allocation4], %s3922_s27 }
 0x183   : > { %s567_s26 = sshll.u32 %s560_s22, 4  ;;  %p3931_p11 = pnand %p2815_p4, %p56_p2  ;;  %s3935_s26 = int_to_ptr.vmem [resolvable:$true] %s567_s26 }
 0x184   : > { %s4835_s19 = sld [smem:[#allocation72_spill]]  ;;  %s3942_s16 = scalar_lea.sflag [#allocation5], %s556_s29 }
 0x185   : > { %p3317_p8 = pneg %p3931_p11 }
 0x188   : > { %s3928_s18 = scalar_lea.hbm %s4833_s24, %s2633_s0  ;;  %s3320_s7 = scalar_lea.hbm %s4833_s24, 2048 }
 0x189   : > { %s3315_s5 = scalar_lea.hbm %s3928_s18, 1024  ;;  %p3321_p1 = scmp.lt.u32.totalorder %s3928_s18, %s4833_s24 }
 0x18a   : > { %s4836_s4 = smov %s4835_s19  ;;  %s3940_s30 = scalar_lea.hbm %s4835_s19, %s2633_s0 }
 0x18b   : > { %p3316_p12 = scmp.ne.s32.totalorder %s3928_s18, %s3315_s5  ;;  %p3322_p3 = scmp.lt.u32.totalorder %s3320_s7, %s3315_s5 }
 0x18c   : > { %p3324_p5 = scmp.lt.u32.totalorder %s3315_s5, %s3928_s18 }
 0x18d   : > { %p3318_p13 = pnand %p3317_p8, %p3316_p12  ;;  %p3323_p2 = por %p3322_p3, %p3321_p1 }
 0x18f   : > { %p3319_p0 = pneg %p3318_p13  ;;  %p3325_p9 = por %p3324_p5, %p3323_p2 }
 0x191   : > { %p3326_p4 = pnand %p3325_p9, %p3319_p0 }
 0x193   : > { %3329 = shalt.err (!%p3326_p4)
}
 0x194   : > { %s3330_s29 = scalar_lea.vmem %s3935_s26, 1024  ;;  %s3492_s6 = smov [#allocation4]  }
 0x195   : > { %p3331_p12 = scmp.ne.s32.totalorder %s3935_s26, %s3330_s29  ;;  %s3335_s0 = sshll.u32 %s3492_s6, 4  ;;  %s3336_s0 = int_to_ptr.vmem [resolvable:$false] %s3335_s0 }
 0x196   : > { %s3337_s8 = scalar_lea.vmem %s3336_s0, 2048  ;;  %p3338_p6 = scmp.lt.s32.totalorder %s3935_s26, %s3336_s0 }
 0x197   : > { %p3333_p13 = pnand %p3331_p12, %p3317_p8  ;;  %p3339_p1 = scmp.lt.s32.totalorder %s3337_s8, %s3330_s29 }
 0x199   : > { %p3334_p10 = pneg %p3333_p13  ;;  %p3340_p3 = por %p3339_p1, %p3338_p6 }
 0x19b   : > { %p3341_p2 = pnand %p3340_p3, %p3334_p10 }
 0x19d   : > { %3344 = shalt.err (!%p3341_p2)
}
 0x19e   : > { %s4837_s5 = smov 8   ;;  %s4838_s7 = smov 128  }
 0x19f   : > { %2794 = dma.hbm_to_vmem [thread:$0]  (!%p3931_p11), %s3928_s18, 1024, %s3935_s26, %s3942_s16, %s4838_s7, %s4838_s7, %s4837_s5  }
 0x1a0   : > { %s581_s9 = scalar_lea.vmem [#allocation7], %s3922_s27  ;;  %s577_s3 = sand.u32 1, %s3473_s21  }
 0x1a1   : > { %s588_s23 = sshll.u32 %s581_s9, 4  ;;  %s3977_s19 = scalar_lea.sflag [#allocation8], %s577_s3  ;;  %s3975_s23 = int_to_ptr.vmem [resolvable:$true] %s588_s23 }
 0x1a2   : > { %s3345_s22 = scalar_lea.hbm %s3940_s30, 1024  ;;  %s3350_s0 = scalar_lea.hbm %s4836_s4, 2048 }
 0x1a3   : > { %p3346_p6 = scmp.ne.s32.totalorder %s3940_s30, %s3345_s22  ;;  %p3351_p5 = scmp.lt.u32.totalorder %s3940_s30, %s4836_s4 }
 0x1a4   : > { %p3352_p9 = scmp.lt.u32.totalorder %s3350_s0, %s3345_s22  ;;  %p3354_p12 = scmp.lt.u32.totalorder %s3345_s22, %s3940_s30 }
 0x1a5   : > { %p3348_p10 = pnand %p3346_p6, %p3317_p8 }
 0x1a6   : > { %p3353_p4 = por %p3352_p9, %p3351_p5 }
 0x1a7   : > { %p3349_p0 = pneg %p3348_p10 }
 0x1a8   : > { %p3355_p13 = por %p3354_p12, %p3353_p4 }
 0x1aa   : > { %p3356_p1 = pnand %p3355_p13, %p3349_p0 }
 0x1ac   : > { %3359 = shalt.err (!%p3356_p1)
}
 0x1ad   : > { %s3360_s27 = scalar_lea.vmem %s3975_s23, 1024  ;;  %s3493_s18 = smov [#allocation7]  }
 0x1ae   : > { %p3361_p3 = scmp.ne.s32.totalorder %s3975_s23, %s3360_s27  ;;  %s3365_s26 = sshll.u32 %s3493_s18, 4  ;;  %s3366_s26 = int_to_ptr.vmem [resolvable:$false] %s3365_s26 }
 0x1af   : > { %s3367_s10 = scalar_lea.vmem %s3366_s26, 2048  ;;  %p3368_p10 = scmp.lt.s32.totalorder %s3975_s23, %s3366_s26 }
 0x1b0   : > { %p3363_p2 = pnand %p3361_p3, %p3317_p8  ;;  %p3369_p5 = scmp.lt.s32.totalorder %s3367_s10, %s3360_s27 }
 0x1b2   : > { %p3364_p6 = pneg %p3363_p2  ;;  %p3370_p9 = por %p3369_p5, %p3368_p10 }
 0x1b4   : > { %p3371_p4 = pnand %p3370_p9, %p3364_p6 }
 0x1b6   : > { %3374 = shalt.err (!%p3371_p4)
}
 0x1b7   : > { %2797 = dma.hbm_to_vmem [thread:$0]  (!%p3931_p11), %s3940_s30, 1024, %s3975_s23, %s3977_s19, %s4838_s7, %s4838_s7, %s4837_s5  }
 0x1b8   : > { %s4839_s16 = sld [smem:[#allocation42_spill]] }
 0x1be   : > { %p4840_p8 = scmp.ne.s32.totalorder %s4839_s16, 0 }
 0x1c0   : > { %600 = sbr.rel (%p4840_p8) target bundleno = 2357 (0x935), region = 80 }
 0x1c7   : > { %s4841_s9 = sld [smem:[#allocation40_spill]] }
 0x1cd   : > { %s4009_s3 = sand.u32 1, %s4841_s9  }
 0x1ce   : > { %s4012_s22 = sshll.u32 %s4009_s3, 6  ;;  %s603_s2 = scalar_lea.sflag [#allocation5], %s4009_s3 }
 0x1cf   : > { %s4016_s29 = scalar_lea.vmem [#allocation4], %s4012_s22 }
 0x1d0   : > { %3420 = dma.done.wait (%p3908_p7), %s603_s2, 1024  }
 0x1d1   : > { %3422 = vsyncadd (%p3908_p7), %s603_s2, 4294966272  ;;  %s4842_s30 = sld [smem:[#allocation41_spill]]  ;;  %s4024_s23 = scalar_lea.vmem [#allocation7], %s4012_s22 }
 0x1d7   : > { %s611_s5 = sand.u32 1, %s4842_s30  }
 0x1d8   : > { %s612_s7 = scalar_lea.sflag [#allocation8], %s611_s5 }
 0x1d9   : > { %3424 = dma.done.wait (%p3908_p7), %s612_s7, 1024  }
 0x1da   : > { %3426 = vsyncadd (%p3908_p7), %s612_s7, 4294966272  ;;  %p4843_p11 = scmp.eq.s32.totalorder %s4842_s30, 0 }
 0x1dc   : > { %3428 = dma.done.wait (%p4843_p11), [#allocation8], 9216   ;;  %p4844_p0 = pmov %p4843_p11 }
 0x1de   : > { %3430 = vsyncadd (%p4844_p0), [#allocation8], 4294958080  ;;  %p4845_p12 = pmov %p4844_p0 }
 0x1df   : > { %p4846_p13 = pmov %p4844_p0 }
 0x1e0   : > { %3432 = dma.done.wait (%p4845_p12), [#allocation11], 32  }
 0x1e1   : > { %3434 = vsyncadd (%p4846_p13), [#allocation11], 4294967264  ;;  %p4847_p1 = pmov %p4844_p0 }
 0x1e2   : > { %p4848_p3 = pmov %p4844_p0 }
 0x1e3   : > { %3436 = dma.done.wait (%p4847_p1), [#allocation14], 80  }
 0x1e4   : > { %3438 = vsyncadd (%p4848_p3), [#allocation14], 4294967216  ;;  %p4849_p7 = pmov %p4844_p0 }
 0x1e5   : > { %p4850_p2 = pmov %p4844_p0 }
 0x1e6   : > { %3440 = dma.done.wait (%p4849_p7), [#allocation17], 32  }
 0x1e7   : > { %3442 = vsyncadd (%p4850_p2), [#allocation17], 4294967264  ;;  %p4851_p6 = pmov %p4844_p0 }
 0x1e8   : > { %p4852_p10 = pmov %p4844_p0 }
 0x1e9   : > { %3444 = dma.done.wait (%p4851_p6), [#allocation20], 336  }
 0x1ea   : > { %3446 = vsyncadd (%p4852_p10), [#allocation20], 4294966960  ;;  %p4853_p5 = pmov %p4844_p0 }
 0x1eb   : > { %p4854_p9 = pmov %p4844_p0 }
 0x1ec   : > { %3448 = dma.done.wait (%p4853_p5), [#allocation23], 32  }
 0x1ed   : > { %3450 = vsyncadd (%p4854_p9), [#allocation23], 4294967264  ;;  %p4855_p4 = pmov %p4844_p0 }
 0x1ee   : > { %p4856_p8 = pmov %p4844_p0 }
 0x1ef   : > { %3452 = dma.done.wait (%p4855_p4), [#allocation26], 48  }
 0x1f0   : > { %3454 = vsyncadd (%p4856_p8), [#allocation26], 4294967248  ;;  %vm730_vm0 = vcmask 64512   ;;  %v720_v0 = vld [vmem:[%s4016_s29] sm:$0xff]  ;;  %v722_v1 = vld [vmem:[%s4016_s29 + $0x10] sm:$0xff]  ;;  %v3494_v16 = vmov 0  }
 0x1f1   : > { %v721_v2 = vld [vmem:[%s4016_s29 + $0x8] sm:$0xff]  ;;  %v731_v3 = vsel %vm730_vm0, %v720_v0, 0.0  ;;  %v737_v4 = vsel %vm730_vm0, %v722_v1, 0.0  ;;  %v723_v5 = vld [vmem:[%s4016_s29 + $0x18] sm:$0xff]  ;;  %v724_v7 = vld [vmem:[%s4016_s29 + $0x20] sm:$0xff]  ;;  %2891 = vset.pattern.permute.xlu1 %v3494_v16  ;;  %2890 = vset.pattern.permute.xlu0 %v3494_v16  ;;  %vm896_vm1 = vcmask 1043456  }
 0x1f2   : > { %732 = vadd.xlane.f32.xlu0 %v731_v3  ;;  %738 = vadd.xlane.f32.xlu1 %v737_v4  ;;  %v734_v6 = vsel %vm730_vm0, %v721_v2, 0.0  ;;  %v740_v8 = vsel %vm730_vm0, %v723_v5, 0.0  ;;  %v725_v9 = vld [vmem:[%s4016_s29 + $0x28] sm:$0xff]  ;;  %v743_v10 = vsel %vm730_vm0, %v724_v7, 0.0  ;;  %v726_v12 = vld [vmem:[%s4016_s29 + $0x30] sm:$0xff]  ;;  %v727_v13 = vld [vmem:[%s4016_s29 + $0x38] sm:$0xff] }
 0x1f3   : > { %v746_v11 = vsel %vm730_vm0, %v725_v9, 0.0  ;;  %v749_v14 = vsel %vm730_vm0, %v726_v12, 0.0  ;;  %v752_v15 = vsel %vm730_vm0, %v727_v13, 0.0  ;;  %v1110_v57 = vld [vmem:[%s4024_s23 + $0x8] sm:$0xff]  ;;  %v1111_v58 = vld [vmem:[%s4024_s23 + $0x10] sm:$0xff]  ;;  %v1112_v59 = vld [vmem:[%s4024_s23 + $0x18] sm:$0xff] }
 0x1f4   : > { %v1113_v60 = vld [vmem:[%s4024_s23 + $0x20] sm:$0xff]  ;;  %v1114_v63 = vld [vmem:[%s4024_s23 + $0x28] sm:$0xff]  ;;  %vm967_vm2 = vcmask 31744   ;;  %s3496_s17 = smov 16   ;;  %s3497_s19 = smov 4   ;;  %vm2013_vm3 = vcmask 1041408  }
 0x1f5   : > { %v876_v61 = vld [vmem:[#allocation13] sm:$0xf]  ;;  %v1259_v3 = vld [vmem:[#allocation9 + $0x48] sm:$0xff]  ;;  %s3498_s6 = smov 8   ;;  %s3499_s0 = smov 20   ;;  %vm1334_vm4 = vcmask 64544  }
 0x1f6   : > { %735 = vadd.xlane.f32.xlu0 %v734_v6  ;;  %741 = vadd.xlane.f32.xlu1 %v740_v8  ;;  %v898_v62 = vsel %vm896_vm1, %v876_v61, 0  ;;  %v1258_v4 = vld [vmem:[#allocation9 + $0x40] sm:$0xff]  ;;  %v1261_v6 = vld [vmem:[#allocation9 + $0x58] sm:$0xff]  ;;  %v1349_v8 = vld [vmem:[#allocation9 + $0x88] sm:$0xff]  ;;  %s3500_s8 = smov 12   ;;  %s3501_s27 = smov 24  }
 0x1f7   : > { %2689 = vmatprep.subr.msk.bf16.mxu0 %vm896_vm1, %v876_v61  ;;  %2690 = vmatprep.subr.msk.bf16.mxu1 %vm896_vm1, %v876_v61  ;;  %v1529_v16 = vld [vmem:[#allocation9 + $0x108] sm:$0xff]  ;;  %s3502_s18 = smov 28   ;;  %s3503_s26 = smov 32   ;;  %vm1424_vm5 = vcmask 97344   ;;  %vm1514_vm6 = vcmask 130144   ;;  %vm1604_vm7 = vcmask 162944  }
 0x1f8   : > { %2654 = vmatpush3.bf16.msra.mxu0 %v898_v62  ;;  %2688 = vmatpush3.bf16.msra.mxu1 %v898_v62  ;;  %v1533_v61 = vld [vmem:[#allocation9 + $0x128] sm:$0xff]  ;;  %vm1694_vm8 = vcmask 195744   ;;  %vm1784_vm9 = vcmask 228544   ;;  %vm1874_vm10 = vcmask 261344   ;;  %vm1964_vm11 = vcmask 294144   ;;  %s4690_s10 = scalar_lea.vmem [#allocation28], %s4012_s22 }
 0x1f9   : > { %vm2000_vm12 = vcmask 293888   ;;  %s2635_s16 = sshll.u32 %s4842_s30, 10  ;;  %s2346_s9 = sshll.u32 %s4690_s10, 4  ;;  %s4717_s9 = int_to_ptr.vmem [resolvable:$true] %s2346_s9 }
 0x1fa   : > { %744 = vadd.xlane.f32.xlu0 %v743_v10  ;;  %747 = vadd.xlane.f32.xlu1 %v746_v11  ;;  %v1351_v10 = vld [vmem:[#allocation9 + $0x98] sm:$0xff]  ;;  %v1350_v11 = vld [vmem:[#allocation9 + $0x90] sm:$0xff]  ;;  %s4913_s5 = sld [smem:[#allocation82_spill]]  ;;  %s2333_s7 = scalar_lea.sflag [#allocation6], %s4009_s3 }
 0x1fb   : > { %p4914_p0 = scmp.ne.s32.totalorder %s4831_s25, 0 }
 0x1fe   : > { %750 = vadd.xlane.f32.xlu0 %v749_v14  ;;  %753 = vadd.xlane.f32.xlu1 %v752_v15  ;;  %v1441_v14 = vld [vmem:[#allocation9 + $0xd8] sm:$0xff]  ;;  %v1440_v15 = vld [vmem:[#allocation9 + $0xd0] sm:$0xff] }
 0x200   : > { %s4712_s30 = scalar_lea.hbm %s4913_s5, %s2635_s16 }
 0x27f   : > { %v733_v17 = vpop.xlane.xlu0 %732  ;;  %v739_v18 = vpop.xlane.xlu1 %738 }
 0x280   : > { %v756_v19 = vmul.f32 0.125, %v733_v17  ;;  %v758_v20 = vmul.f32 0.125, %v739_v18  ;;  %v1528_v17 = vld [vmem:[#allocation9 + $0x100] sm:$0xff]  ;;  %v1531_v18 = vld [vmem:[#allocation9 + $0x118] sm:$0xff] }
 0x282   : > { %v4074_v21 = vsub.f32 %v720_v0, %v756_v19  ;;  %v4076_v22 = vsub.f32 %v722_v1, %v758_v20  ;;  %v1115_v0 = vld [vmem:[%s4024_s23 + $0x30] sm:$0xff]  ;;  %v1116_v1 = vld [vmem:[%s4024_s23 + $0x38] sm:$0xff]  ;;  %v1619_v20 = vld [vmem:[#allocation9 + $0x148] sm:$0xff] }
 0x283   : > { %v736_v23 = vpop.xlane.xlu0 %735  ;;  %v742_v24 = vpop.xlane.xlu1 %741  ;;  %v1530_v19 = vld [vmem:[#allocation9 + $0x110] sm:$0xff] }
 0x284   : > { %v757_v25 = vmul.f32 0.125, %v736_v23  ;;  %v759_v26 = vmul.f32 0.125, %v742_v24  ;;  %v772_v27 = vmul.f32 %v4074_v21, %v4074_v21  ;;  %v774_v28 = vmul.f32 %v4076_v22, %v4076_v22  ;;  %v1618_v23 = vld [vmem:[#allocation9 + $0x140] sm:$0xff]  ;;  %v1621_v24 = vld [vmem:[#allocation9 + $0x158] sm:$0xff] }
 0x286   : > { %v4082_v29 = vsub.f32 %v721_v2, %v757_v25  ;;  %v4084_v30 = vsub.f32 %v723_v5, %v759_v26  ;;  %v780_v31 = vsel %vm730_vm0, %v772_v27, 0.0  ;;  %v786_v34 = vsel %vm730_vm0, %v774_v28, 0.0  ;;  %v1109_v2 = vld [vmem:[%s4024_s23] sm:$0xff]  ;;  %v1620_v25 = vld [vmem:[#allocation9 + $0x150] sm:$0xff]  ;;  %v1709_v26 = vld [vmem:[#allocation9 + $0x188] sm:$0xff]  ;;  %s3375_s23 = scalar_lea.vmem %s4717_s9, 1024 }
 0x287   : > { %781 = vadd.xlane.f32.xlu0 %v780_v31  ;;  %v745_v32 = vpop.xlane.xlu0 %744  ;;  %v748_v33 = vpop.xlane.xlu1 %747  ;;  %v3495_v5 = vmov 0.0   ;;  %v1708_v27 = vld [vmem:[#allocation9 + $0x180] sm:$0xff]  ;;  %v1711_v28 = vld [vmem:[#allocation9 + $0x198] sm:$0xff]  ;;  %v1710_v31 = vld [vmem:[#allocation9 + $0x190] sm:$0xff]  ;;  %p3376_p11 = scmp.ne.s32.totalorder %s4717_s9, %s3375_s23 }
 0x288   : > { %v760_v35 = vmul.f32 0.125, %v745_v32  ;;  %v761_v36 = vmul.f32 0.125, %v748_v33  ;;  %v773_v37 = vmul.f32 %v4082_v29, %v4082_v29  ;;  %v775_v38 = vmul.f32 %v4084_v30, %v4084_v30  ;;  %1166 = vst.msk [vmem:[#allocation2 + $0x8] sm:$0xff] %vm967_vm2, %v3495_v5  ;;  %1165 = vst.msk [vmem:[#allocation2] sm:$0xff] %vm967_vm2, %v3495_v5  ;;  %v1799_v32 = vld [vmem:[#allocation9 + $0x1c8] sm:$0xff]  ;;  %v1798_v33 = vld [vmem:[#allocation9 + $0x1c0] sm:$0xff] }
 0x289   : > { %1167 = vst.msk [vmem:[#allocation2 + $0x50] sm:$0xff] %vm967_vm2, %v3495_v5  ;;  %1168 = vst.msk [vmem:[#allocation2 + $0x58] sm:$0xff] %vm967_vm2, %v3495_v5  ;;  %v1535_v5 = vld [vmem:[#allocation9 + $0x138] sm:$0xff]  ;;  %p3377_p12 = pnand %p3376_p11, %p4914_p0 }
 0x28a   : > { %v4092_v39 = vsub.f32 %v724_v7, %v760_v35  ;;  %v4094_v40 = vsub.f32 %v725_v9, %v761_v36  ;;  %v783_v41 = vsel %vm730_vm0, %v773_v37, 0.0  ;;  %v789_v44 = vsel %vm730_vm0, %v775_v38, 0.0  ;;  %v1260_v7 = vld [vmem:[#allocation9 + $0x50] sm:$0xff]  ;;  %v1348_v9 = vld [vmem:[#allocation9 + $0x80] sm:$0xff]  ;;  %v1889_v36 = vld [vmem:[#allocation9 + $0x208] sm:$0xff] }
 0x28b   : > { %787 = vadd.xlane.f32.xlu0 %v786_v34  ;;  %784 = vadd.xlane.f32.xlu1 %v783_v41  ;;  %v751_v42 = vpop.xlane.xlu0 %750  ;;  %v754_v43 = vpop.xlane.xlu1 %753  ;;  %v1801_v34 = vld [vmem:[#allocation9 + $0x1d8] sm:$0xff]  ;;  %v1800_v35 = vld [vmem:[#allocation9 + $0x1d0] sm:$0xff]  ;;  %v1888_v37 = vld [vmem:[#allocation9 + $0x200] sm:$0xff]  ;;  %p3378_p13 = pneg %p3377_p12 }
 0x28c   : > { %v762_v45 = vmul.f32 0.125, %v751_v42  ;;  %v763_v46 = vmul.f32 0.125, %v754_v43  ;;  %v776_v47 = vmul.f32 %v4092_v39, %v4092_v39  ;;  %v777_v48 = vmul.f32 %v4094_v40, %v4094_v40  ;;  %v1263_v38 = vld [vmem:[#allocation9 + $0x68] sm:$0xff]  ;;  %v1262_v41 = vld [vmem:[#allocation9 + $0x60] sm:$0xff]  ;;  %v1891_v42 = vld [vmem:[#allocation9 + $0x218] sm:$0xff] }
 0x28d   : > { %v1890_v43 = vld [vmem:[#allocation9 + $0x210] sm:$0xff] }
 0x28e   : > { %v4102_v49 = vsub.f32 %v726_v12, %v762_v45  ;;  %v4104_v50 = vsub.f32 %v727_v13, %v763_v46  ;;  %v792_v51 = vsel %vm730_vm0, %v776_v47, 0.0  ;;  %v795_v52 = vsel %vm730_vm0, %v777_v48, 0.0  ;;  %v1439_v12 = vld [vmem:[#allocation9 + $0xc8] sm:$0xff]  ;;  %v1438_v13 = vld [vmem:[#allocation9 + $0xc0] sm:$0xff]  ;;  %v1264_v45 = vld [vmem:[#allocation9 + $0x70] sm:$0xff] }
 0x28f   : > { %790 = vadd.xlane.f32.xlu1 %v789_v44  ;;  %793 = vadd.xlane.f32.xlu0 %v792_v51  ;;  %v1265_v44 = vld [vmem:[#allocation9 + $0x78] sm:$0xff]  ;;  %v1353_v46 = vld [vmem:[#allocation9 + $0xa8] sm:$0xff]  ;;  %v1352_v47 = vld [vmem:[#allocation9 + $0xa0] sm:$0xff] }
 0x290   : > { %v778_v53 = vmul.f32 %v4102_v49, %v4102_v49  ;;  %v779_v54 = vmul.f32 %v4104_v50, %v4104_v50  ;;  %v1355_v48 = vld [vmem:[#allocation9 + $0xb8] sm:$0xff]  ;;  %v1354_v51 = vld [vmem:[#allocation9 + $0xb0] sm:$0xff] }
 0x292   : > { %v798_v55 = vsel %vm730_vm0, %v778_v53, 0.0  ;;  %v801_v56 = vsel %vm730_vm0, %v779_v54, 0.0  ;;  %v1442_v53 = vld [vmem:[#allocation9 + $0xe0] sm:$0xff] }
 0x293   : > { %796 = vadd.xlane.f32.xlu1 %v795_v52  ;;  %799 = vadd.xlane.f32.xlu0 %v798_v55  ;;  %v1443_v52 = vld [vmem:[#allocation9 + $0xe8] sm:$0xff]  ;;  %v1445_v55 = vld [vmem:[#allocation9 + $0xf8] sm:$0xff] }
 0x297   : > { %802 = vadd.xlane.f32.xlu1 %v801_v56 }
 0x2a8   : > { %1124 = vperm.xlu1 %2891, %v1110_v57   ;;  %v1444_v57 = vld [vmem:[#allocation9 + $0xf0] sm:$0xff] }
 0x2a9   : > { %1119 = vperm.xlu0 %2890, %v1109_v2  }
 0x2ac   : > { %1129 = vperm.xlu1 %2891, %v1111_v58  }
 0x2ad   : > { %1273 = vperm.xlu0 %2890, %v1259_v3  }
 0x2b0   : > { %1134 = vperm.xlu1 %2891, %v1112_v59  }
 0x2b1   : > { %1283 = vperm.xlu0 %2890, %v1261_v6  }
 0x2b4   : > { %1139 = vperm.xlu1 %2891, %v1113_v60  }
 0x2b5   : > { %1363 = vperm.xlu0 %2890, %v1349_v8   ;;  %v1534_v8 = vld [vmem:[#allocation9 + $0x130] sm:$0xff] }
 0x2b8   : > { %1144 = vperm.xlu1 %2891, %v1114_v63  }
 0x2b9   : > { %1373 = vperm.xlu0 %2890, %v1351_v10  }
 0x2bc   : > { %1149 = vperm.xlu1 %2891, %v1115_v0   ;;  %v1532_v0 = vld [vmem:[#allocation9 + $0x120] sm:$0xff] }
 0x2bd   : > { %1453 = vperm.xlu0 %2890, %v1439_v12  }
 0x2c0   : > { %1154 = vperm.xlu1 %2891, %v1116_v1  }
 0x2c1   : > { %1463 = vperm.xlu0 %2890, %v1441_v14  }
 0x2c4   : > { %1268 = vperm.xlu1 %2891, %v1258_v4  }
 0x2c5   : > { %1543 = vperm.xlu0 %2890, %v1529_v16   ;;  %v1622_v16 = vld [vmem:[#allocation9 + $0x160] sm:$0xff] }
 0x2c8   : > { %1278 = vperm.xlu1 %2891, %v1260_v7  }
 0x2c9   : > { %1553 = vperm.xlu0 %2890, %v1531_v18  }
 0x2cc   : > { %1358 = vperm.xlu1 %2891, %v1348_v9  }
 0x2cd   : > { %1633 = vperm.xlu0 %2890, %v1619_v20   ;;  %v2604_v20 = vld [vmem:[#allocation10] ss:$0 sm:$0xff] }
 0x2d0   : > { %1368 = vperm.xlu1 %2891, %v1350_v11  }
 0x2d1   : > { %1643 = vperm.xlu0 %2890, %v1621_v24  }
 0x2d4   : > { %1448 = vperm.xlu1 %2891, %v1438_v13   ;;  %v1623_v13 = vld [vmem:[#allocation9 + $0x168] sm:$0xff] }
 0x2d5   : > { %1723 = vperm.xlu0 %2890, %v1709_v26   ;;  %v1624_v26 = vld [vmem:[#allocation9 + $0x170] sm:$0xff] }
 0x2d8   : > { %1458 = vperm.xlu1 %2891, %v1440_v15  }
 0x2d9   : > { %1733 = vperm.xlu0 %2890, %v1711_v28  }
 0x2dc   : > { %1538 = vperm.xlu1 %2891, %v1528_v17  }
 0x2dd   : > { %1813 = vperm.xlu0 %2890, %v1799_v32   ;;  %v2605_v32 = vld [vmem:[#allocation12] ss:$0 sm:$0xff] }
 0x2e0   : > { %1548 = vperm.xlu1 %2891, %v1530_v19  }
 0x2e1   : > { %1823 = vperm.xlu0 %2890, %v1801_v34  }
 0x2e4   : > { %1628 = vperm.xlu1 %2891, %v1618_v23  }
 0x2e5   : > { %1903 = vperm.xlu0 %2890, %v1889_v36   ;;  %v1712_v36 = vld [vmem:[#allocation9 + $0x1a0] sm:$0xff] }
 0x2e8   : > { %1638 = vperm.xlu1 %2891, %v1620_v25  }
 0x2e9   : > { %1293 = vperm.xlu0 %2890, %v1263_v38  }
 0x2ec   : > { %1718 = vperm.xlu1 %2891, %v1708_v27  }
 0x2ed   : > { %1913 = vperm.xlu0 %2890, %v1891_v42  }
 0x2f0   : > { %1728 = vperm.xlu1 %2891, %v1710_v31  }
 0x2f1   : > { %1303 = vperm.xlu0 %2890, %v1265_v44  }
 0x2f4   : > { %1808 = vperm.xlu1 %2891, %v1798_v33  }
 0x2f5   : > { %1383 = vperm.xlu0 %2890, %v1353_v46   ;;  %v1714_v46 = vld [vmem:[#allocation9 + $0x1b0] sm:$0xff] }
 0x2f8   : > { %1818 = vperm.xlu1 %2891, %v1800_v35  }
 0x2f9   : > { %1393 = vperm.xlu0 %2890, %v1355_v48  }
 0x2fc   : > { %1898 = vperm.xlu1 %2891, %v1888_v37  }
 0x2fd   : > { %1473 = vperm.xlu0 %2890, %v1443_v52  }
 0x300   : > { %1288 = vperm.xlu1 %2891, %v1262_v41  }
 0x301   : > { %1483 = vperm.xlu0 %2890, %v1445_v55  }
 0x304   : > { %1908 = vperm.xlu1 %2891, %v1890_v43  }
 0x305   : > { %1563 = vperm.xlu0 %2890, %v1533_v61  }
 0x308   : > { %1298 = vperm.xlu1 %2891, %v1264_v45  }
 0x309   : > { %1573 = vperm.xlu0 %2890, %v1535_v5  }
 0x30c   : > { %1378 = vperm.xlu1 %2891, %v1352_v47  }
 0x30d   : > { %1653 = vperm.xlu0 %2890, %v1623_v13  }
 0x310   : > { %1388 = vperm.xlu1 %2891, %v1354_v51  }
 0x314   : > { %v782_v54 = vpop.xlane.xlu0 %781  ;;  %1468 = vperm.xlu1 %2891, %v1442_v53  }
 0x315   : > { %v804_v56 = vmul.f32 0.125, %v782_v54 }
 0x317   : > { %v812_v58 = vadd.f32 1e-05, %v804_v56 }
 0x318   : > { %v785_v59 = vpop.xlane.xlu1 %784  ;;  %v788_v60 = vpop.xlane.xlu0 %787  ;;  %1478 = vperm.xlu1 %2891, %v1444_v57  }
 0x319   : > { %2895 = vrsqrt.f32 %v812_v58  ;;  %v805_v62 = vmul.f32 0.125, %v785_v59  ;;  %v806_v63 = vmul.f32 0.125, %v788_v60 }
 0x31b   : > { %v813_v1 = vadd.f32 1e-05, %v805_v62  ;;  %v814_v2 = vadd.f32 1e-05, %v806_v63 }
 0x31c   : > { %v791_v3 = vpop.xlane.xlu1 %790  ;;  %v794_v4 = vpop.xlane.xlu0 %793  ;;  %1558 = vperm.xlu1 %2891, %v1532_v0  }
 0x31d   : > { %2897 = vrsqrt.f32 %v813_v1  ;;  %v807_v6 = vmul.f32 0.125, %v791_v3  ;;  %v808_v7 = vmul.f32 0.125, %v794_v4 }
 0x31e   : > { %2899 = vrsqrt.f32 %v814_v2 }
 0x31f   : > { %v815_v9 = vadd.f32 1e-05, %v807_v6  ;;  %v816_v10 = vadd.f32 1e-05, %v808_v7 }
 0x320   : > { %v797_v11 = vpop.xlane.xlu1 %796  ;;  %v800_v12 = vpop.xlane.xlu0 %799  ;;  %1568 = vperm.xlu1 %2891, %v1534_v8  }
 0x321   : > { %2901 = vrsqrt.f32 %v815_v9  ;;  %v809_v14 = vmul.f32 0.125, %v797_v11  ;;  %v810_v15 = vmul.f32 0.125, %v800_v12 }
 0x322   : > { %2903 = vrsqrt.f32 %v816_v10 }
 0x323   : > { %v2896_v17 = vpop.eup %2895  ;;  %v817_v18 = vadd.f32 1e-05, %v809_v14  ;;  %v818_v19 = vadd.f32 1e-05, %v810_v15 }
 0x324   : > { %v803_v23 = vpop.xlane.xlu1 %802  ;;  %v828_v24 = vmul.f32 %v2896_v17, %v4074_v21  ;;  %1648 = vperm.xlu1 %2891, %v1622_v16  }
 0x325   : > { %2905 = vrsqrt.f32 %v817_v18  ;;  %v811_v25 = vmul.f32 0.125, %v803_v23  ;;  %v2606_v23 = vld [vmem:[#allocation15] ss:$0 sm:$0xff] }
 0x326   : > { %2907 = vrsqrt.f32 %v818_v19  ;;  %v842_v27 = vmul.f32 %v2604_v20, %v828_v24 }
 0x327   : > { %v2898_v28 = vpop.eup %2897  ;;  %v819_v31 = vadd.f32 1e-05, %v811_v25 }
 0x328   : > { %v2900_v33 = vpop.eup %2899  ;;  %v829_v34 = vmul.f32 %v2898_v28, %v4082_v29  ;;  %1658 = vperm.xlu1 %2891, %v1624_v26   ;;  %v856_v38 = vadd.f32 %v2605_v32, %v842_v27  ;;  %v4138_v9 = vpop.permute.xlu1 %1124 }
 0x329   : > { %v830_v35 = vmul.f32 %v2900_v33, %v4076_v22  ;;  %2909 = vrsqrt.f32 %v819_v31  ;;  %v4158_v18 = vpop.permute.xlu0 %1119 }
 0x32a   : > { %v843_v37 = vmul.f32 %v2604_v20, %v829_v34  ;;  %v864_v47 = vmax.f32 %v856_v38, 0.0 }
 0x32b   : > { %v2902_v21 = vpop.eup %2901  ;;  %v844_v41 = vmul.f32 %v2604_v20, %v830_v35 }
 0x32c   : > { %v2904_v42 = vpop.eup %2903  ;;  %v831_v43 = vmul.f32 %v2902_v21, %v4084_v30  ;;  %v857_v44 = vadd.f32 %v2605_v32, %v843_v37  ;;  %1738 = vperm.xlu1 %2891, %v1712_v36   ;;  %v1802_v30 = vld [vmem:[#allocation9 + $0x1e0] sm:$0xff] }
 0x32d   : > { %v832_v45 = vmul.f32 %v2904_v42, %v4092_v39  ;;  %v858_v51 = vadd.f32 %v2605_v32, %v844_v41 }
 0x32e   : > { %v865_v48 = vmax.f32 %v857_v44, 0.0  ;;  %v845_v29 = vmul.f32 %v2604_v20, %v831_v43 }
 0x32f   : > { %v2906_v52 = vpop.eup %2905  ;;  %v846_v22 = vmul.f32 %v2604_v20, %v832_v45  ;;  %v866_v58 = vmax.f32 %v858_v51, 0.0 }
 0x330   : > { %v2908_v53 = vpop.eup %2907  ;;  %v872_v54 = vpack.c.bf16 %v865_v48, %v864_v47  ;;  %v859_v55 = vadd.f32 %v2605_v32, %v845_v29  ;;  %v833_v56 = vmul.f32 %v2906_v52, %v4094_v40  ;;  %1748 = vperm.xlu1 %2891, %v1714_v46  }
 0x331   : > { %v834_v57 = vmul.f32 %v2908_v53, %v4102_v49  ;;  %v860_v60 = vadd.f32 %v2605_v32, %v846_v22 }
 0x332   : > { %2655 = vmatprep.mubr.msk.bf16.mxu0 %vm730_vm0, %v872_v54  ;;  %v867_v39 = vmax.f32 %v859_v55, 0.0  ;;  %v847_v59 = vmul.f32 %v2604_v20, %v833_v56 }
 0x333   : > { %v2910_v61 = vpop.eup %2909  ;;  %v848_v62 = vmul.f32 %v2604_v20, %v834_v57  ;;  %v868_v40 = vmax.f32 %v860_v60, 0.0 }
 0x334   : > { %v835_v63 = vmul.f32 %v2910_v61, %v4104_v50  ;;  %v873_v0 = vpack.c.bf16 %v867_v39, %v866_v58  ;;  %v861_v1 = vadd.f32 %v2605_v32, %v847_v59  ;;  %1828 = vperm.xlu1 %2891, %v1802_v30   ;;  %v4140_v50 = vpop.permute.xlu1 %1129 }
 0x335   : > { %v862_v49 = vadd.f32 %v2605_v32, %v848_v62  ;;  %v1804_v62 = vld [vmem:[#allocation9 + $0x1f0] sm:$0xff] }
 0x336   : > { %2656 = vmatmul.mubr.msk.bf16.vlgmr.msra.gmra.mrb[0].mxu0 %vm730_vm0, %v873_v0  ;;  %v869_v2 = vmax.f32 %v861_v1, 0.0  ;;  %v849_v3 = vmul.f32 %v2604_v20, %v835_v63  ;;  %v4162_v20 = vpop.permute.xlu0 %1273  ;;  %v1625_v0 = vld [vmem:[#allocation9 + $0x178] sm:$0xff] }
 0x337   : > { %v870_v6 = vmax.f32 %v862_v49, 0.0  ;;  %v1715_v49 = vld [vmem:[#allocation9 + $0x1b8] sm:$0xff] }
 0x338   : > { %v874_v4 = vpack.c.bf16 %v869_v2, %v868_v40  ;;  %v863_v5 = vadd.f32 %v2605_v32, %v849_v3  ;;  %v4142_v10 = vpop.permute.xlu1 %1134  ;;  %v1713_v40 = vld [vmem:[#allocation9 + $0x1a8] sm:$0xff] }
 0x33a   : > { %2659 = vmatprep.mubr.msk.bf16.mxu1 %vm730_vm0, %v874_v4  ;;  %v871_v7 = vmax.f32 %v863_v5, 0.0  ;;  %v4168_v31 = vpop.permute.xlu0 %1283  ;;  %v1803_v5 = vld [vmem:[#allocation9 + $0x1e8] sm:$0xff] }
 0x33b   : > { %4859 = vst [vmem:[#allocation45_spill] sm:$0xff] %v4168_v31 }
 0x33c   : > { %v875_v8 = vpack.c.bf16 %v871_v7, %v870_v6  ;;  %v4144_v11 = vpop.permute.xlu1 %1139 }
 0x33e   : > { %2660 = vmatmul.mubr.msk.bf16.vlgmr.msra.gmra.mrb[0].mxu1 %vm730_vm0, %v875_v8  ;;  %v4178_v38 = vpop.permute.xlu0 %1363 }
 0x340   : > { %v4146_v12 = vpop.permute.xlu1 %1144 }
 0x341   : > { %4857 = vst [vmem:[#allocation43_spill] sm:$0xff] %v4146_v12 }
 0x342   : > { %v4194_v51 = vpop.permute.xlu0 %1373 }
 0x343   : > { %4861 = vst [vmem:[#allocation47_spill] sm:$0xff] %v4194_v51 }
 0x344   : > { %v4148_v13 = vpop.permute.xlu1 %1149 }
 0x346   : > { %v4208_v57 = vpop.permute.xlu0 %1453 }
 0x348   : > { %v4150_v14 = vpop.permute.xlu1 %1154 }
 0x34a   : > { %v4214_v39 = vpop.permute.xlu0 %1463 }
 0x34b   : > { %4862 = vst [vmem:[#allocation48_spill] sm:$0xff] %v4214_v39 }
 0x34c   : > { %v4152_v15 = vpop.permute.xlu1 %1268 }
 0x34e   : > { %v4218_v60 = vpop.permute.xlu0 %1543 }
 0x350   : > { %v4154_v16 = vpop.permute.xlu1 %1278 }
 0x352   : > { %v4222_v63 = vpop.permute.xlu0 %1553 }
 0x354   : > { %v4156_v17 = vpop.permute.xlu1 %1358 }
 0x356   : > { %v4226_v2 = vpop.permute.xlu0 %1633 }
 0x358   : > { %v4160_v19 = vpop.permute.xlu1 %1368 }
 0x359   : > { %4858 = vst [vmem:[#allocation44_spill] sm:$0xff] %v4160_v19 }
 0x35a   : > { %v4230_v4 = vpop.permute.xlu0 %1643 }
 0x35c   : > { %v4164_v24 = vpop.permute.xlu1 %1448 }
 0x35e   : > { %v4234_v7 = vpop.permute.xlu0 %1723 }
 0x360   : > { %v4174_v35 = vpop.permute.xlu1 %1458 }
 0x361   : > { %4860 = vst [vmem:[#allocation46_spill] sm:$0xff] %v4174_v35 }
 0x364   : > { %v4182_v43 = vpop.permute.xlu1 %1538 }
 0x368   : > { %v4200_v53 = vpop.permute.xlu1 %1548 }
 0x36c   : > { %v4212_v58 = vpop.permute.xlu1 %1628 }
 0x370   : > { %v4216_v59 = vpop.permute.xlu1 %1638 }
 0x374   : > { %v4220_v61 = vpop.permute.xlu1 %1718 }
 0x378   : > { %v4224_v1 = vpop.permute.xlu1 %1728 }
 0x37c   : > { %v4228_v3 = vpop.permute.xlu1 %1808 }
 0x380   : > { %v4232_v6 = vpop.permute.xlu1 %1818 }
 0x384   : > { %v4236_v8 = vpop.permute.xlu1 %1898 }
 0x409   : > { %v2657_v25 = vpop.f32.mrb[0].mxu0 }
 0x40a   : > { %v4166_v26 = vadd.f32 %v2657_v25, %v2606_v23  ;;  %v934_v27 = vpop.f32.mrb[1].mxu0  ;;  %v4240_v25 = vpop.permute.xlu1 %1288 }
 0x40b   : > { %v2658_v28 = vpop.f32.mrb[2].mxu0  ;;  %v4184_v44 = vadd.f32 %v2606_v23, %v934_v27 }
 0x40c   : > { %v4170_v32 = vadd.f32 %v2658_v28, %v2606_v23  ;;  %v937_v33 = vpop.f32.mrb[3].mxu0  ;;  %v974_v34 = vsel %vm967_vm2, %v4166_v26, 0.0 }
 0x40d   : > { %975 = vadd.xlane.f32.xlu0 %v974_v34  ;;  %v4190_v48 = vadd.f32 %v2606_v23, %v937_v33  ;;  %v968_v22 = vsel %vm967_vm2, %v4184_v44, 0.0 }
 0x40e   : > { %v977_v36 = vsel %vm967_vm2, %v4170_v32, 0.0  ;;  %v4244_v28 = vpop.permute.xlu1 %1908 }
 0x40f   : > { %978 = vadd.xlane.f32.xlu1 %v977_v36  ;;  %v971_v55 = vsel %vm967_vm2, %v4190_v48, 0.0  ;;  %4863 = vst [vmem:[#allocation49_spill] sm:$0xff] %v4244_v28 }
 0x411   : > { %v2661_v37 = vpop.f32.mrb[0].mxu1 }
 0x412   : > { %v4180_v21 = vadd.f32 %v2661_v37, %v2606_v23  ;;  %v950_v41 = vpop.f32.mrb[1].mxu1  ;;  %v4248_v34 = vpop.permute.xlu1 %1298 }
 0x413   : > { %v2662_v42 = vpop.f32.mrb[2].mxu1  ;;  %v4196_v52 = vadd.f32 %v2606_v23, %v950_v41  ;;  %4864 = vst [vmem:[#allocation50_spill] sm:$0xff] %v4248_v34 }
 0x414   : > { %v4186_v45 = vadd.f32 %v2662_v42, %v2606_v23  ;;  %v953_v46 = vpop.f32.mrb[3].mxu1  ;;  %v986_v47 = vsel %vm967_vm2, %v4180_v21, 0.0 }
 0x415   : > { %987 = vadd.xlane.f32.xlu0 %v986_v47  ;;  %v4202_v54 = vadd.f32 %v2606_v23, %v953_v46  ;;  %v980_v56 = vsel %vm967_vm2, %v4196_v52, 0.0  ;;  %v4238_v23 = vpop.permute.xlu0 %1733 }
 0x416   : > { %v989_v29 = vsel %vm967_vm2, %v4186_v45, 0.0  ;;  %v4252_v37 = vpop.permute.xlu1 %1378 }
 0x417   : > { %990 = vadd.xlane.f32.xlu1 %v989_v29  ;;  %v983_v30 = vsel %vm967_vm2, %v4202_v54, 0.0  ;;  %4865 = vst [vmem:[#allocation51_spill] sm:$0xff] %v4252_v37 }
 0x419   : > { %969 = vadd.xlane.f32.xlu0 %v968_v22  ;;  %v4242_v27 = vpop.permute.xlu0 %1813 }
 0x41a   : > { %v4256_v42 = vpop.permute.xlu1 %1388 }
 0x41b   : > { %972 = vadd.xlane.f32.xlu1 %v971_v55  ;;  %4866 = vst [vmem:[#allocation52_spill] sm:$0xff] %v4256_v42 }
 0x41d   : > { %981 = vadd.xlane.f32.xlu0 %v980_v56  ;;  %v4246_v33 = vpop.permute.xlu0 %1823 }
 0x41e   : > { %v4260_v47 = vpop.permute.xlu1 %1468 }
 0x41f   : > { %984 = vadd.xlane.f32.xlu1 %v983_v30  ;;  %4868 = vst [vmem:[#allocation54_spill] sm:$0xff] %v4260_v47 }
 0x421   : > { %v4250_v36 = vpop.permute.xlu0 %1903 }
 0x422   : > { %v4264_v22 = vpop.permute.xlu1 %1478 }
 0x423   : > { %4870 = vst [vmem:[#allocation56_spill] sm:$0xff] %v4264_v22 }
 0x425   : > { %v4254_v41 = vpop.permute.xlu0 %1293 }
 0x426   : > { %v4268_v56 = vpop.permute.xlu1 %1558 }
 0x427   : > { %4872 = vst [vmem:[#allocation58_spill] sm:$0xff] %v4268_v56 }
 0x429   : > { %v4258_v46 = vpop.permute.xlu0 %1913 }
 0x42a   : > { %4867 = vst [vmem:[#allocation53_spill] sm:$0xff] %v4258_v46 }
 0x42d   : > { %v4262_v29 = vpop.permute.xlu0 %1303 }
 0x42e   : > { %4869 = vst [vmem:[#allocation55_spill] sm:$0xff] %v4262_v29 }
 0x430   : > { %1838 = vperm.xlu1 %2891, %v1804_v62   ;;  %v4272_v62 = vpop.permute.xlu1 %1568 }
 0x431   : > { %v4266_v55 = vpop.permute.xlu0 %1383 }
 0x432   : > { %4871 = vst [vmem:[#allocation57_spill] sm:$0xff] %v4266_v55 }
 0x433   : > { %1663 = vperm.xlu0 %2890, %v1625_v0  }
 0x435   : > { %v4270_v30 = vpop.permute.xlu0 %1393 }
 0x436   : > { %4873 = vst [vmem:[#allocation59_spill] sm:$0xff] %v4270_v30 }
 0x437   : > { %1743 = vperm.xlu0 %2890, %v1713_v40   ;;  %v4276_v40 = vpop.permute.xlu1 %1648 }
 0x438   : > { %4875 = vst [vmem:[#allocation61_spill] sm:$0xff] %v4276_v40 }
 0x439   : > { %v4274_v0 = vpop.permute.xlu0 %1473 }
 0x43a   : > { %4874 = vst [vmem:[#allocation60_spill] sm:$0xff] %v4274_v0 }
 0x43b   : > { %1753 = vperm.xlu0 %2890, %v1715_v49  }
 0x43d   : > { %v4278_v49 = vpop.permute.xlu0 %1483 }
 0x43e   : > { %4876 = vst [vmem:[#allocation62_spill] sm:$0xff] %v4278_v49 }
 0x43f   : > { %1833 = vperm.xlu0 %2890, %v1803_v5   ;;  %v4280_v5 = vpop.permute.xlu1 %1658 }
 0x441   : > { %v4282_v47 = vpop.permute.xlu0 %1563 }
 0x442   : > { %4877 = vst [vmem:[#allocation63_spill] sm:$0xff] %v4282_v47 }
 0x443   : > { %v4284_v37 = vpop.permute.xlu1 %1738 }
 0x444   : > { %4878 = vst [vmem:[#allocation64_spill] sm:$0xff] %v4284_v37 }
 0x445   : > { %v4286_v22 = vpop.permute.xlu0 %1573 }
 0x447   : > { %v4288_v42 = vpop.permute.xlu1 %1748 }
 0x449   : > { %v4290_v56 = vpop.permute.xlu0 %1653 }
 0x44a   : > { %4879 = vst [vmem:[#allocation65_spill] sm:$0xff] %v4290_v56 }
 0x44b   : > { %v4292_v30 = vpop.permute.xlu1 %1828 }
 0x44c   : > { %4880 = vst [vmem:[#allocation66_spill] sm:$0xff] %v4292_v30 }
 0x49a   : > { %v976_v55 = vpop.xlane.xlu0 %975 }
 0x49b   : > { %v995_v0 = vmul.f32 0.25, %v976_v55 }
 0x49c   : > { %v979_v29 = vpop.xlane.xlu1 %978 }
 0x49d   : > { %v4295_v40 = vsub.f32 %v4166_v26, %v995_v0  ;;  %v996_v49 = vmul.f32 0.25, %v979_v29 }
 0x49f   : > { %v4298_v34 = vsub.f32 %v4170_v32, %v996_v49  ;;  %v1011_v37 = vmul.f32 %v4295_v40, %v4295_v40 }
 0x4a1   : > { %v1023_v47 = vsel %vm967_vm2, %v1011_v37, 0.0  ;;  %v1012_v56 = vmul.f32 %v4298_v34, %v4298_v34 }
 0x4a2   : > { %1024 = vadd.xlane.f32.xlu0 %v1023_v47  ;;  %v988_v30 = vpop.xlane.xlu0 %987 }
 0x4a3   : > { %v999_v46 = vmul.f32 0.25, %v988_v30  ;;  %v1026_v55 = vsel %vm967_vm2, %v1012_v56, 0.0 }
 0x4a4   : > { %v991_v28 = vpop.xlane.xlu1 %990  ;;  %1027 = vadd.xlane.f32.xlu1 %v1026_v55 }
 0x4a5   : > { %v4307_v26 = vsub.f32 %v4180_v21, %v999_v46  ;;  %v1000_v32 = vmul.f32 0.25, %v991_v28 }
 0x4a6   : > { %v970_v29 = vpop.xlane.xlu0 %969 }
 0x4a7   : > { %v4310_v0 = vsub.f32 %v4186_v45, %v1000_v32  ;;  %v993_v49 = vmul.f32 0.25, %v970_v29  ;;  %v1015_v37 = vmul.f32 %v4307_v26, %v4307_v26 }
 0x4a8   : > { %v973_v12 = vpop.xlane.xlu1 %972 }
 0x4a9   : > { %v4315_v47 = vsub.f32 %v4184_v44, %v993_v49  ;;  %v994_v30 = vmul.f32 0.25, %v973_v12  ;;  %v1035_v56 = vsel %vm967_vm2, %v1015_v37, 0.0  ;;  %v1016_v21 = vmul.f32 %v4310_v0, %v4310_v0 }
 0x4aa   : > { %1036 = vadd.xlane.f32.xlu0 %v1035_v56  ;;  %v982_v28 = vpop.xlane.xlu0 %981  ;;  %v1805_v56 = vld [vmem:[#allocation9 + $0x1f8] sm:$0xff] }
 0x4ab   : > { %v4321_v46 = vsub.f32 %v4190_v48, %v994_v30  ;;  %v997_v45 = vmul.f32 0.25, %v982_v28  ;;  %v1038_v55 = vsel %vm967_vm2, %v1016_v21, 0.0  ;;  %v1009_v32 = vmul.f32 %v4315_v47, %v4315_v47  ;;  %v1892_v30 = vld [vmem:[#allocation9 + $0x220] sm:$0xff]  ;;  %v1895_v21 = vld [vmem:[#allocation9 + $0x238] sm:$0xff]  ;;  %v1186_v28 = vld [vmem:[#allocation9 + $0x8] sm:$0xff] }
 0x4ac   : > { %1039 = vadd.xlane.f32.xlu1 %v1038_v55  ;;  %v1188_v55 = vld [vmem:[#allocation9 + $0x18] sm:$0xff] }
 0x4ad   : > { %v4327_v44 = vsub.f32 %v4196_v52, %v997_v45  ;;  %v1017_v12 = vsel %vm967_vm2, %v1009_v32, 0.0  ;;  %v1010_v29 = vmul.f32 %v4321_v46, %v4321_v46  ;;  %v1893_v52 = vld [vmem:[#allocation9 + $0x228] sm:$0xff]  ;;  %v985_v45 = vpop.xlane.xlu1 %984 }
 0x4ae   : > { %1018 = vadd.xlane.f32.xlu0 %v1017_v12  ;;  %v998_v32 = vmul.f32 0.25, %v985_v45  ;;  %v1190_v12 = vld [vmem:[#allocation9 + $0x28] sm:$0xff] }
 0x4af   : > { %v1020_v49 = vsel %vm967_vm2, %v1010_v29, 0.0  ;;  %v1013_v48 = vmul.f32 %v4327_v44, %v4327_v44 }
 0x4b0   : > { %1021 = vadd.xlane.f32.xlu1 %v1020_v49  ;;  %v4337_v29 = vsub.f32 %v4202_v54, %v998_v32  ;;  %v1192_v49 = vld [vmem:[#allocation9 + $0x38] sm:$0xff] }
 0x4b1   : > { %v1029_v37 = vsel %vm967_vm2, %v1013_v48, 0.0 }
 0x4b2   : > { %1030 = vadd.xlane.f32.xlu0 %v1029_v37  ;;  %4881 = vst [vmem:[#allocation67_spill] sm:$0xff] %v4337_v29  ;;  %v1014_v48 = vmul.f32 %v4337_v29, %v4337_v29  ;;  %v4342_v54 = vpop.permute.xlu0 %1663 }
 0x4b4   : > { %v1032_v37 = vsel %vm967_vm2, %v1014_v48, 0.0 }
 0x4b6   : > { %v4344_v45 = vpop.permute.xlu0 %1743 }
 0x4b7   : > { %4882 = vst [vmem:[#allocation68_spill] sm:$0xff] %v4344_v45 }
 0x4c1   : > { %1918 = vperm.xlu1 %2891, %v1892_v30   ;;  %v1894_v30 = vld [vmem:[#allocation9 + $0x230] sm:$0xff] }
 0x4c8   : > { %1843 = vperm.xlu0 %2890, %v1805_v56   ;;  %v1185_v56 = vld [vmem:[#allocation9] sm:$0xff] }
 0x4cc   : > { %1923 = vperm.xlu0 %2890, %v1893_v52   ;;  %v1187_v52 = vld [vmem:[#allocation9 + $0x10] sm:$0xff] }
 0x4d0   : > { %1933 = vperm.xlu0 %2890, %v1895_v21   ;;  %v1189_v21 = vld [vmem:[#allocation9 + $0x20] sm:$0xff] }
 0x4d4   : > { %1200 = vperm.xlu0 %2890, %v1186_v28   ;;  %v1191_v28 = vld [vmem:[#allocation9 + $0x30] sm:$0xff] }
 0x4d8   : > { %1210 = vperm.xlu0 %2890, %v1188_v55   ;;  %v4346_v55 = vpop.permute.xlu0 %1753 }
 0x4dc   : > { %1220 = vperm.xlu0 %2890, %v1190_v12   ;;  %v4348_v32 = vpop.permute.xlu0 %1833  ;;  %v4350_v12 = vpop.permute.xlu1 %1838 }
 0x4dd   : > { %4883 = vst [vmem:[#allocation69_spill] sm:$0xff] %v4348_v32  ;;  %4884 = vst [vmem:[#allocation70_spill] sm:$0xff] %v4350_v12  ;;  %v4352_v12 = vld [vmem:[#allocation16] ss:$0 sm:$0xff] }
 0x4e0   : > { %1230 = vperm.xlu0 %2890, %v1192_v49  }
 0x4e5   : > { %1033 = vadd.xlane.f32.xlu1 %v1032_v37 }
 0x4f6   : > { %1928 = vperm.xlu1 %2891, %v1894_v30  }
 0x4fa   : > { %1195 = vperm.xlu1 %2891, %v1185_v56  }
 0x4fe   : > { %1205 = vperm.xlu1 %2891, %v1187_v52  }
 0x502   : > { %1215 = vperm.xlu1 %2891, %v1189_v21  }
 0x506   : > { %1225 = vperm.xlu1 %2891, %v1191_v28  }
 0x52f   : > { %v1025_v49 = vpop.xlane.xlu0 %1024 }
 0x530   : > { %v1043_v48 = vmul.f32 0.25, %v1025_v49 }
 0x531   : > { %v1028_v37 = vpop.xlane.xlu1 %1027 }
 0x532   : > { %v1051_v30 = vadd.f32 1e-05, %v1043_v48  ;;  %v1044_v56 = vmul.f32 0.25, %v1028_v37 }
 0x534   : > { %2911 = vrsqrt.f32 %v1051_v30  ;;  %v1052_v52 = vadd.f32 1e-05, %v1044_v56 }
 0x536   : > { %2913 = vrsqrt.f32 %v1052_v52  ;;  %v4355_v52 = vld [vmem:[#allocation18] ss:$0 sm:$0xff] }
 0x537   : > { %v1037_v21 = vpop.xlane.xlu0 %1036 }
 0x538   : > { %v1047_v28 = vmul.f32 0.25, %v1037_v21 }
 0x539   : > { %v1040_v39 = vpop.xlane.xlu1 %1039 }
 0x53a   : > { %v1055_v35 = vadd.f32 1e-05, %v1047_v28  ;;  %v1048_v51 = vmul.f32 0.25, %v1040_v39 }
 0x53b   : > { %v1019_v45 = vpop.xlane.xlu0 %1018 }
 0x53c   : > { %2915 = vrsqrt.f32 %v1055_v35  ;;  %v1056_v29 = vadd.f32 1e-05, %v1048_v51  ;;  %v1041_v19 = vmul.f32 0.25, %v1019_v45 }
 0x53d   : > { %v1022_v32 = vpop.xlane.xlu1 %1021 }
 0x53e   : > { %v2912_v31 = vpop.eup %2911  ;;  %2917 = vrsqrt.f32 %v1056_v29  ;;  %v1049_v49 = vadd.f32 1e-05, %v1041_v19  ;;  %v1042_v48 = vmul.f32 0.25, %v1022_v32 }
 0x53f   : > { %v1067_v37 = vmul.f32 %v2912_v31, %v4295_v40  ;;  %v1031_v30 = vpop.xlane.xlu0 %1030 }
 0x540   : > { %v2914_v56 = vpop.eup %2913  ;;  %2919 = vrsqrt.f32 %v1049_v49  ;;  %v1050_v21 = vadd.f32 1e-05, %v1042_v48  ;;  %v1045_v39 = vmul.f32 0.25, %v1031_v30 }
 0x541   : > { %v1081_v35 = vmul.f32 %v4352_v12, %v1067_v37  ;;  %v1068_v51 = vmul.f32 %v2914_v56, %v4298_v34 }
 0x542   : > { %2921 = vrsqrt.f32 %v1050_v21  ;;  %v1053_v45 = vadd.f32 1e-05, %v1045_v39 }
 0x543   : > { %v1095_v28 = vadd.f32 %v4355_v52, %v1081_v35  ;;  %v1082_v19 = vmul.f32 %v4352_v12, %v1068_v51 }
 0x544   : > { %2923 = vrsqrt.f32 %v1053_v45 }
 0x545   : > { %v1103_v29 = vmax.f32 %v1095_v28, 0.0  ;;  %v1096_v31 = vadd.f32 %v4355_v52, %v1082_v19 }
 0x546   : > { %v2916_v40 = vpop.eup %2915 }
 0x547   : > { %v1159_v32 = vmul.f32 %v4140_v50, %v1103_v29  ;;  %v1104_v49 = vmax.f32 %v1096_v31, 0.0  ;;  %v1071_v48 = vmul.f32 %v2916_v40, %v4307_v26 }
 0x548   : > { %v2918_v30 = vpop.eup %2917 }
 0x549   : > { %1171 = vst.msk [vmem:[#allocation2 + $0x20] sm:$0xff] %vm967_vm2, %v1159_v32  ;;  %v1160_v34 = vmul.f32 %v4142_v10, %v1104_v49  ;;  %v1085_v37 = vmul.f32 %v4352_v12, %v1071_v48  ;;  %v1072_v56 = vmul.f32 %v2918_v30, %v4310_v0 }
 0x54a   : > { %v2920_v21 = vpop.eup %2919 }
 0x54b   : > { %1172 = vst.msk [vmem:[#allocation2 + $0x28] sm:$0xff] %vm967_vm2, %v1160_v34  ;;  %v1099_v39 = vadd.f32 %v4355_v52, %v1085_v37  ;;  %v1086_v35 = vmul.f32 %v4352_v12, %v1072_v56  ;;  %v1065_v50 = vmul.f32 %v2920_v21, %v4315_v47 }
 0x54c   : > { %v2922_v51 = vpop.eup %2921 }
 0x54d   : > { %v1107_v26 = vmax.f32 %v1099_v39, 0.0  ;;  %v1100_v45 = vadd.f32 %v4355_v52, %v1086_v35  ;;  %v1079_v28 = vmul.f32 %v4352_v12, %v1065_v50  ;;  %v1066_v10 = vmul.f32 %v2922_v51, %v4321_v46  ;;  %v1249_v50 = vld [vmem:[#allocation2 + $0x8] sm:$0xff] }
 0x54e   : > { %v2924_v19 = vpop.eup %2923 }
 0x54f   : > { %v1163_v0 = vmul.f32 %v4148_v13, %v1107_v26  ;;  %v1108_v29 = vmax.f32 %v1100_v45, 0.0  ;;  %v1093_v31 = vadd.f32 %v4355_v52, %v1079_v28  ;;  %v1080_v40 = vmul.f32 %v4352_v12, %v1066_v10 }
 0x550   : > { %v1069_v32 = vmul.f32 %v2924_v19, %v4327_v44  ;;  %v4379_v49 = vld [vmem:[#allocation2 + $0x20] sm:$0xff] }
 0x551   : > { %1175 = vst.msk [vmem:[#allocation2 + $0x40] sm:$0xff] %vm967_vm2, %v1163_v0  ;;  %v1164_v47 = vmul.f32 %v4150_v14, %v1108_v29  ;;  %v1101_v48 = vmax.f32 %v1093_v31, 0.0  ;;  %v1094_v30 = vadd.f32 %v4355_v52, %v1080_v40  ;;  %v1578_v44 = vmul.f32 %v4200_v53, %v4379_v49 }
 0x552   : > { %v1083_v46 = vmul.f32 %v4352_v12, %v1069_v32  ;;  %v4385_v34 = vld [vmem:[#allocation2 + $0x28] sm:$0xff] }
 0x553   : > { %1176 = vst.msk [vmem:[#allocation2 + $0x48] sm:$0xff] %vm967_vm2, %v1164_v47  ;;  %v1157_v13 = vmul.f32 %v4158_v18, %v1101_v48  ;;  %v1102_v37 = vmax.f32 %v1094_v30, 0.0  ;;  %v1579_v56 = vmul.f32 %v4222_v63, %v4385_v34  ;;  %v1306_v63 = vmul.f32 %v4152_v15, %v1249_v50  ;;  %v4403_v10 = vld [vmem:[#allocation2 + $0x21] sm:$0xff]  ;;  %v4423_v47 = vpop.permute.xlu0 %1843 }
 0x554   : > { %v1097_v14 = vadd.f32 %v4355_v52, %v1083_v46  ;;  %v4421_v32 = vld [vmem:[#allocation2 + $0x27] sm:$0xff] }
 0x555   : > { %1169 = vst.msk [vmem:[#allocation2 + $0x10] sm:$0xff] %vm967_vm2, %v1157_v13  ;;  %v1158_v21 = vmul.f32 %v4138_v9, %v1102_v37  ;;  %v1585_v39 = vpack.c.bf16 %v1579_v56, %v1578_v44 }
 0x556   : > { %v1105_v35 = vmax.f32 %v1097_v14, 0.0 }
 0x557   : > { %1170 = vst.msk [vmem:[#allocation2 + $0x18] sm:$0xff] %vm967_vm2, %v1158_v21  ;;  %1594 = vrot.lane.b32.xlu0 %v1585_v39, %s3496_s17  ;;  %v4445_v56 = vpop.permute.xlu0 %1923 }
 0x558   : > { %v1161_v18 = vmul.f32 %v4144_v11, %v1105_v35 }
 0x55a   : > { %1173 = vst.msk [vmem:[#allocation2 + $0x30] sm:$0xff] %vm967_vm2, %v1161_v18  ;;  %v4457_v35 = vld [vmem:[#allocation2 + $0x48] sm:$0xff]  ;;  %v4460_v18 = vpop.permute.xlu1 %1918 }
 0x55c   : > { %v1250_v53 = vld [vmem:[#allocation2 + $0x10] sm:$0xff] }
 0x55d   : > { %v1307_v51 = vmul.f32 %v4162_v20, %v1250_v53  ;;  %v1339_v26 = vld [vmem:[#allocation2 + $0x9] sm:$0xff]  ;;  %v1668_v20 = vmul.f32 %v4216_v59, %v4403_v10 }
 0x55e   : > { %v1340_v45 = vld [vmem:[#allocation2 + $0x11] sm:$0xff]  ;;  %v1396_v11 = vmul.f32 %v4156_v17, %v1339_v26  ;;  %v4441_v44 = vld [vmem:[#allocation2 + $0x19] sm:$0xff]  ;;  %v4475_v26 = vld [vmem:[#allocation2 + $0x41] sm:$0xff] }
 0x55f   : > { %v1314_v9 = vpack.c.bf16 %v1307_v51, %v1306_v63  ;;  %v1397_v28 = vmul.f32 %v4178_v38, %v1340_v45  ;;  %v4405_v19 = vld [vmem:[#allocation2 + $0x17] sm:$0xff]  ;;  %v4413_v15 = vld [vmem:[#allocation2 + $0xf] sm:$0xff]  ;;  %v1666_v14 = vmul.f32 %v4212_v58, %v1340_v45  ;;  %v4453_v21 = vld [vmem:[#allocation2 + $0x1f] sm:$0xff]  ;;  %v1310_v58 = vmul.f32 %v4385_v34, %v4240_v25 }
 0x560   : > { %v1487_v40 = vmul.f32 %v4208_v57, %v4405_v19  ;;  %v4427_v30 = vld [vmem:[#allocation2 + $0x18] sm:$0xff]  ;;  %v1486_v59 = vmul.f32 %v4164_v24, %v4413_v15  ;;  %v1758_v57 = vmul.f32 %v4224_v1, %v4421_v32  ;;  %v1576_v24 = vmul.f32 %v4182_v43, %v1250_v53  ;;  %v4471_v53 = vpop.permute.xlu0 %1933  ;;  %v4478_v25 = vld [vmem:[#allocation2 + $0x49] sm:$0xff] }
 0x561   : > { %v4407_v0 = vld [vmem:[#allocation2 + $0x2f] sm:$0xff]  ;;  %1322 = vrot.lane.b32.xlu1 %v1314_v9, %s3497_s19  ;;  %v1404_v31 = vpack.c.bf16 %v1397_v28, %v1396_v11  ;;  %v1848_v1 = vmul.f32 %v4232_v6, %v4385_v34  ;;  %v1757_v50 = vmul.f32 %v4234_v7, %v4453_v21  ;;  %v1583_v51 = vmul.f32 %v4457_v35, %v4286_v22 }
 0x562   : > { %v4411_v29 = vld [vmem:[#allocation2 + $0x29] sm:$0xff]  ;;  %v1759_v17 = vmul.f32 %v4238_v23, %v4407_v0  ;;  %v1494_v46 = vpack.c.bf16 %v1487_v40, %v1486_v59  ;;  %v1577_v23 = vmul.f32 %v4218_v60, %v4427_v30  ;;  %v1846_v9 = vmul.f32 %v4228_v3, %v4427_v30 }
 0x563   : > { %v1669_v38 = vmul.f32 %v4230_v4, %v4411_v29  ;;  %v4432_v4 = vld [vmem:[#allocation2 + $0x30] sm:$0xff]  ;;  %v1672_v22 = vmul.f32 %v4475_v26, %v4280_v5  ;;  %v1673_v11 = vmul.f32 %v4478_v25, %v4342_v54  ;;  %v1936_v5 = vmul.f32 %v4236_v8, %v4441_v44 }
 0x564   : > { %v1765_v13 = vpack.c.bf16 %v1759_v17, %v1758_v57  ;;  %v1849_v37 = vmul.f32 %v4246_v33, %v4432_v4  ;;  %v1584_v60 = vpack.c.bf16 %v1577_v23, %v1576_v24  ;;  %v1667_v33 = vmul.f32 %v4226_v2, %v4441_v44  ;;  %v1201_v40 = vpop.permute.xlu0 %1200  ;;  %v1177_v17 = vld [vmem:[#allocation2 + $0x7] sm:$0xff] }
 0x565   : > { %v1675_v48 = vpack.c.bf16 %v1669_v38, %v1668_v20  ;;  %1412 = vrot.lane.b32.xlu1 %v1404_v31, %s3498_s6  ;;  %v1311_v43 = vmul.f32 %v4432_v4, %v4254_v41  ;;  %v1756_v2 = vmul.f32 %v4220_v61, %v4405_v19  ;;  %v4469_v41 = vld [vmem:[#allocation2 + $0x40] sm:$0xff]  ;;  %v1847_v38 = vmul.f32 %v4242_v27, %v4379_v49 }
 0x566   : > { %v1855_v39 = vpack.c.bf16 %v1849_v37, %v1848_v1  ;;  %v1674_v6 = vpack.c.bf16 %v1667_v33, %v1666_v14  ;;  %v1582_v7 = vmul.f32 %v4272_v62, %v4469_v41  ;;  %v4492_v31 = vld [vmem:[#allocation2 + $0x47] sm:$0xff]  ;;  %v1706_v62 = vld [vmem:[#allocation2 + $0x4f] sm:$0xff]  ;;  %v1677_v54 = vpack.c.bf16 %v1673_v11, %v1672_v22 }
 0x567   : > { %1684 = vrot.lane.b32.xlu0 %v1675_v48, %s3499_s0  ;;  %v1316_v63 = vpack.c.bf16 %v1311_v43, %v1310_v58  ;;  %v1764_v45 = vpack.c.bf16 %v1757_v50, %v1756_v2  ;;  %v1854_v48 = vpack.c.bf16 %v1847_v38, %v1846_v9  ;;  %v1762_v59 = vmul.f32 %v4288_v42, %v4492_v31  ;;  %v4887_v2 = vld [vmem:[#allocation67_spill] sm:$0xff] }
 0x568   : > { %v1587_v28 = vpack.c.bf16 %v1583_v51, %v1582_v7  ;;  %v1763_v27 = vmul.f32 %v4346_v55, %v1706_v62  ;;  %v1937_v57 = vmul.f32 %v4250_v36, %v4403_v10  ;;  %v1234_v23 = vmul.f32 %v1201_v40, %v4413_v15  ;;  %v1211_v8 = vpop.permute.xlu0 %1210  ;;  %v4885_v36 = vld [vmem:[#allocation45_spill] sm:$0xff]  ;;  %v4891_v38 = vld [vmem:[#allocation43_spill] sm:$0xff] }
 0x569   : > { %1502 = vrot.lane.b32.xlu1 %v1494_v46, %s3500_s8  ;;  %v1308_v1 = vmul.f32 %v4427_v30, %v4154_v16  ;;  %v1236_v14 = vmul.f32 %v1211_v8, %v4453_v21  ;;  %v2892_v30 = vld [vmem:[#allocation19] sm:$0xff]   ;;  %v4894_v8 = vld [vmem:[#allocation50_spill] sm:$0xff] }
 0x56a   : > { %v1944_v37 = vpack.c.bf16 %v1937_v57, %v1936_v5  ;;  %v1767_v24 = vpack.c.bf16 %v1763_v27, %v1762_v59  ;;  %2663 = vmatprep.subr.bf16.mxu1 %v2892_v30  ;;  %v4892_v27 = vld [vmem:[#allocation49_spill] sm:$0xff] }
 0x56b   : > { %1774 = vrot.lane.b32.xlu0 %v1765_v13, %s3501_s27  ;;  %2664 = vmatpush3.bf16.msra.mxu1 %v2892_v30  ;;  %v1938_v57 = vmul.f32 %v4892_v27, %v4411_v29 }
 0x56d   : > { %1592 = vrot.lane.b32.xlu1 %v1584_v60, %s3496_s17  ;;  %v1309_v60 = vmul.f32 %v4379_v49, %v4885_v36  ;;  %v4888_v49 = vld [vmem:[#allocation47_spill] sm:$0xff] }
 0x56e   : > { %v1399_v51 = vmul.f32 %v4403_v10, %v4888_v49  ;;  %v4890_v10 = vld [vmem:[#allocation48_spill] sm:$0xff] }
 0x56f   : > { %1864 = vrot.lane.b32.xlu0 %v1855_v39, %s3502_s18  ;;  %v1315_v33 = vpack.c.bf16 %v1309_v60, %v1308_v1  ;;  %v4886_v39 = vld [vmem:[#allocation44_spill] sm:$0xff]  ;;  %v1489_v22 = vmul.f32 %v4421_v32, %v4890_v10  ;;  %v4895_v1 = vld [vmem:[#allocation55_spill] sm:$0xff]  ;;  %v4896_v60 = vld [vmem:[#allocation57_spill] sm:$0xff] }
 0x570   : > { %v1398_v16 = vmul.f32 %v4441_v44, %v4886_v39  ;;  %v4901_v49 = vld [vmem:[#allocation56_spill] sm:$0xff] }
 0x571   : > { %1682 = vrot.lane.b32.xlu1 %v1674_v6, %s3499_s0  ;;  %v1221_v6 = vpop.permute.xlu0 %1220 }
 0x572   : > { %v1034_v61 = vpop.xlane.xlu1 %1033  ;;  %v1405_v7 = vpack.c.bf16 %v1399_v51, %v1398_v16  ;;  %v4898_v16 = vld [vmem:[#allocation51_spill] sm:$0xff] }
 0x573   : > { %1326 = vrot.lane.b32.xlu0 %v1316_v63, %s3497_s19  ;;  %v1046_v34 = vmul.f32 0.25, %v1034_v61  ;;  %v1238_v61 = vmul.f32 %v1221_v6, %v4407_v0  ;;  %v1400_v30 = vmul.f32 %v4411_v29, %v4898_v16 }
 0x575   : > { %v1054_v20 = vadd.f32 1e-05, %v1046_v34  ;;  %1772 = vrot.lane.b32.xlu1 %v1764_v45, %s3501_s27  ;;  %v4889_v34 = vld [vmem:[#allocation46_spill] sm:$0xff] }
 0x576   : > { %v4495_v3 = vpop.permute.xlu1 %1928  ;;  %v1488_v45 = vmul.f32 %v4889_v34, %v4453_v21  ;;  %v2894_v21 = vld [vmem:[#allocation19 + $0x10] ss:$0 sps:$4 sm:$0x33]  }
 0x577   : > { %1598 = vrot.lane.b32.xlu0 %v1587_v28, %s3496_s17  ;;  %2925 = vrsqrt.f32 %v1054_v20 }
 0x578   : > { %v1495_v20 = vpack.c.bf16 %v1489_v22, %v1488_v45  ;;  %v4904_v45 = vld [vmem:[#allocation63_spill] sm:$0xff] }
 0x579   : > { %1862 = vrot.lane.b32.xlu1 %v1854_v48, %s3502_s18 }
 0x57a   : > { %v1196_v46 = vpop.permute.xlu1 %1195 }
 0x57b   : > { %1688 = vrot.lane.b32.xlu0 %v1677_v54, %s3499_s0  ;;  %v1233_v13 = vmul.f32 %v1196_v46, %v1177_v17  ;;  %v4893_v46 = vld [vmem:[#allocation53_spill] sm:$0xff] }
 0x57d   : > { %v1241_v42 = vpack.c.bf16 %v1234_v23, %v1233_v13  ;;  %1952 = vrot.lane.b32.xlu1 %v1944_v37, %s3503_s26 }
 0x57e   : > { %v1206_v55 = vpop.permute.xlu1 %1205 }
 0x57f   : > { %1778 = vrot.lane.b32.xlu0 %v1767_v24, %s3501_s27  ;;  %1245 = vst.msk [vmem:[#allocation3] sm:$0xff] %vm967_vm2, %v1241_v42  ;;  %v1235_v15 = vmul.f32 %v4405_v19, %v1206_v55  ;;  %v1313_v42 = vmul.f32 %v4469_v41, %v4895_v1 }
 0x581   : > { %v2926_v43 = vpop.eup %2925  ;;  %v1242_v58 = vpack.c.bf16 %v1236_v14, %v1235_v15 }
 0x582   : > { %v1070_v50 = vmul.f32 %v2926_v43, %v4887_v2  ;;  %v1216_v63 = vpop.permute.xlu1 %1215  ;;  %v4899_v43 = vld [vmem:[#allocation59_spill] sm:$0xff]  ;;  %v4900_v2 = vld [vmem:[#allocation60_spill] sm:$0xff] }
 0x583   : > { %1324 = vrot.lane.b32.xlu0 %v1315_v33, %s3497_s19  ;;  %1246 = vst.msk [vmem:[#allocation3 + $0x8] sm:$0xff] %vm967_vm2, %v1242_v58  ;;  %v1237_v19 = vmul.f32 %v4421_v32, %v1216_v63  ;;  %v1231_v32 = vpop.permute.xlu0 %1230  ;;  %v4897_v33 = vld [vmem:[#allocation52_spill] sm:$0xff]  ;;  %v1403_v58 = vmul.f32 %v4475_v26, %v4899_v43 }
 0x584   : > { %v1084_v44 = vmul.f32 %v4352_v12, %v1070_v50  ;;  %v2893_v12 = vld [vmem:[#allocation19 + $0x8] sm:$0xff]  }
 0x585   : > { %v1243_v9 = vpack.c.bf16 %v1238_v61, %v1237_v19  ;;  %2665 = vmatprep.subr.bf16.mxu1 %v2893_v12  ;;  %v4902_v61 = vld [vmem:[#allocation54_spill] sm:$0xff] }
 0x586   : > { %v1098_v28 = vadd.f32 %v4355_v52, %v1084_v44  ;;  %2666 = vmatpush3.bf16.msra.mxu1 %v2893_v12  ;;  %v2015_v52 = vsel %vm2013_vm3, %v2894_v21, 0  ;;  %v1226_v40 = vpop.permute.xlu1 %1225  ;;  %v1490_v19 = vmul.f32 %v4902_v61, %v4407_v0  ;;  %v4903_v44 = vld [vmem:[#allocation62_spill] sm:$0xff] }
 0x587   : > { %1414 = vrot.lane.b32.xlu0 %v1405_v7, %s3498_s6  ;;  %1247 = vst.msk [vmem:[#allocation3 + $0x10] sm:$0xff] %vm967_vm2, %v1243_v9  ;;  %2691 = vmatprep.subr.msk.bf16.mxu1 %vm2013_vm3, %v2894_v21  ;;  %v1493_v29 = vmul.f32 %v4492_v31, %v4903_v44  ;;  %v1796_v7 = vld [vmem:[#allocation2 + $0x50] sm:$0xff]  ;;  %v4907_v31 = vld [vmem:[#allocation61_spill] sm:$0xff] }
 0x588   : > { %v1106_v11 = vmax.f32 %v1098_v28, 0.0  ;;  %v4905_v28 = vld [vmem:[#allocation70_spill] sm:$0xff]  ;;  %v1853_v0 = vmul.f32 %v4423_v47, %v1796_v7  ;;  %v4908_v21 = vld [vmem:[#allocation65_spill] sm:$0xff]  ;;  %v4909_v47 = vld [vmem:[#allocation64_spill] sm:$0xff] }
 0x589   : > { %v1852_v10 = vmul.f32 %v4905_v28, %v4457_v35  ;;  %v1942_v35 = vmul.f32 %v4495_v3, %v4478_v25  ;;  %v4912_v25 = vld [vmem:[#allocation69_spill] sm:$0xff] }
 0x58a   : > { %v1162_v62 = vmul.f32 %v4891_v38, %v1106_v11  ;;  %2668 = vmatpush3.bf16.msra.mxu1 %v2015_v52  ;;  %v4906_v11 = vld [vmem:[#allocation58_spill] sm:$0xff]  ;;  %v1886_v38 = vld [vmem:[#allocation2 + $0x51] sm:$0xff] }
 0x58b   : > { %1504 = vrot.lane.b32.xlu0 %v1495_v20, %s3500_s8  ;;  %v1580_v20 = vmul.f32 %v4432_v4, %v4906_v11 }
 0x58c   : > { %1174 = vst.msk [vmem:[#allocation2 + $0x38] sm:$0xff] %vm967_vm2, %v1162_v62 }
 0x593   : > { %v1183_v48 = vld [vmem:[#allocation2 + $0x37] sm:$0xff]  ;;  %v1184_v5 = vld [vmem:[#allocation2 + $0x3f] sm:$0xff] }
 0x594   : > { %v1882_v54 = vld [vmem:[#allocation2 + $0x31] sm:$0xff]  ;;  %v1239_v17 = vmul.f32 %v1226_v40, %v1183_v48  ;;  %v1240_v59 = vmul.f32 %v1231_v32, %v1184_v5  ;;  %v1345_v37 = vld [vmem:[#allocation2 + $0x39] sm:$0xff]  ;;  %v1491_v50 = vmul.f32 %v4900_v2, %v1183_v48  ;;  %v1492_v51 = vmul.f32 %v4901_v49, %v1184_v5 }
 0x595   : > { %v1939_v23 = vmul.f32 %v4893_v46, %v1882_v54  ;;  %v1255_v13 = vld [vmem:[#allocation2 + $0x38] sm:$0xff]  ;;  %v1401_v14 = vmul.f32 %v1882_v54, %v4896_v60  ;;  %v1402_v39 = vmul.f32 %v4897_v33, %v1345_v37  ;;  %v1670_v12 = vmul.f32 %v1882_v54, %v4907_v31  ;;  %v4911_v46 = vld [vmem:[#allocation66_spill] sm:$0xff] }
 0x596   : > { %v1312_v24 = vmul.f32 %v4894_v8, %v1255_v13  ;;  %v1244_v55 = vpack.c.bf16 %v1240_v59, %v1239_v17  ;;  %v1496_v34 = vpack.c.bf16 %v1491_v50, %v1490_v19  ;;  %v1581_v9 = vmul.f32 %v4904_v45, %v1255_v13  ;;  %v4910_v59 = vld [vmem:[#allocation68_spill] sm:$0xff] }
 0x597   : > { %v1945_v36 = vpack.c.bf16 %v1939_v23, %v1938_v57  ;;  %v1406_v6 = vpack.c.bf16 %v1401_v14, %v1400_v30  ;;  %v1407_v63 = vpack.c.bf16 %v1403_v58, %v1402_v39  ;;  %v1497_v22 = vpack.c.bf16 %v1493_v29, %v1492_v51 }
 0x598   : > { %v1317_v15 = vpack.c.bf16 %v1313_v42, %v1312_v24  ;;  %1248 = vst.msk [vmem:[#allocation3 + $0x18] sm:$0xff] %vm967_vm2, %v1244_v55  ;;  %v1586_v62 = vpack.c.bf16 %v1581_v9, %v1580_v20  ;;  %v1671_v52 = vmul.f32 %v4908_v21, %v1345_v37  ;;  %v1857_v32 = vpack.c.bf16 %v1853_v0, %v1852_v10 }
 0x599   : > { %1954 = vrot.lane.b32.xlu1 %v1945_v36, %s3503_s26  ;;  %v1943_v40 = vmul.f32 %v4471_v53, %v1886_v38  ;;  %v1760_v17 = vmul.f32 %v4909_v47, %v1183_v48  ;;  %v1761_v27 = vmul.f32 %v4910_v59, %v1184_v5  ;;  %v1850_v23 = vmul.f32 %v4911_v46, %v1255_v13 }
 0x59a   : > { %1328 = vrot.lane.b32.xlu0 %v1317_v15, %s3497_s19  ;;  %v1676_v4 = vpack.c.bf16 %v1671_v52, %v1670_v12  ;;  %v1851_v53 = vmul.f32 %v4912_v25, %v4469_v41  ;;  %v1940_v8 = vmul.f32 %v4460_v18, %v1345_v37  ;;  %v1941_v48 = vmul.f32 %v4445_v56, %v4475_v26 }
 0x59b   : > { %v1947_v57 = vpack.c.bf16 %v1943_v40, %v1942_v35  ;;  %v1766_v54 = vpack.c.bf16 %v1761_v27, %v1760_v17 }
 0x59c   : > { %v1856_v3 = vpack.c.bf16 %v1851_v53, %v1850_v23  ;;  %v1946_v5 = vpack.c.bf16 %v1941_v48, %v1940_v8 }
 0x59d   : > { %1416 = vrot.lane.b32.xlu1 %v1406_v6, %s3498_s6 }
 0x59e   : > { %1418 = vrot.lane.b32.xlu0 %v1407_v63, %s3498_s6 }
 0x5a1   : > { %1506 = vrot.lane.b32.xlu1 %v1496_v34, %s3500_s8 }
 0x5a2   : > { %1508 = vrot.lane.b32.xlu0 %v1497_v22, %s3500_s8  ;;  %v2613_v22 = vld [vmem:[#allocation21] ss:$0 sm:$0xff] }
 0x5a5   : > { %1596 = vrot.lane.b32.xlu1 %v1586_v62, %s3496_s17  ;;  %s3504_s17 = smov [#allocation28]  }
 0x5a6   : > { %1868 = vrot.lane.b32.xlu0 %v1857_v32, %s3502_s18  ;;  %s3379_s19 = sshll.u32 %s3504_s17, 4  ;;  %s3380_s19 = int_to_ptr.vmem [resolvable:$false] %s3379_s19 }
 0x5a7   : > { %p3382_p1 = scmp.lt.s32.totalorder %s4717_s9, %s3380_s19 }
 0x5a9   : > { %1686 = vrot.lane.b32.xlu1 %v1676_v4, %s3499_s0 }
 0x5aa   : > { %1958 = vrot.lane.b32.xlu0 %v1947_v57, %s3503_s26 }
 0x5ad   : > { %1776 = vrot.lane.b32.xlu1 %v1766_v54, %s3501_s27 }
 0x5b1   : > { %1866 = vrot.lane.b32.xlu1 %v1856_v3, %s3502_s18 }
 0x5b5   : > { %1956 = vrot.lane.b32.xlu1 %v1946_v5, %s3503_s26 }
 0x5c9   : > { %v1595_v1 = vpop.permute.xlu0 %1594 }
 0x5d3   : > { %v1323_v24 = vpop.permute.xlu1 %1322 }
 0x5d4   : > { %1335 = vst.msk [vmem:[#allocation3] sm:$0xff] %vm1334_vm4, %v1323_v24 }
 0x5d7   : > { %v1413_v13 = vpop.permute.xlu1 %1412 }
 0x5d8   : > { %1425 = vst.msk [vmem:[#allocation3] sm:$0xff] %vm1424_vm5, %v1413_v13 }
 0x5d9   : > { %v1685_v41 = vpop.permute.xlu0 %1684 }
 0x5db   : > { %v1503_v18 = vpop.permute.xlu1 %1502 }
 0x5dc   : > { %1515 = vst.msk [vmem:[#allocation3] sm:$0xff] %vm1514_vm6, %v1503_v18 }
 0x5dd   : > { %v1775_v56 = vpop.permute.xlu0 %1774 }
 0x5df   : > { %v1593_v26 = vpop.permute.xlu1 %1592 }
 0x5e0   : > { %1605 = vst.msk [vmem:[#allocation3] sm:$0xff] %vm1604_vm7, %v1593_v26 }
 0x5e1   : > { %v1865_v37 = vpop.permute.xlu0 %1864 }
 0x5e3   : > { %v1683_v42 = vpop.permute.xlu1 %1682 }
 0x5e4   : > { %1695 = vst.msk [vmem:[#allocation3] sm:$0xff] %vm1694_vm8, %v1683_v42 }
 0x5e5   : > { %v1327_v55 = vpop.permute.xlu0 %1326 }
 0x5e6   : > { %1337 = vst.msk [vmem:[#allocation3 + $0x10] sm:$0xff] %vm1334_vm4, %v1327_v55 }
 0x5e7   : > { %v1773_v36 = vpop.permute.xlu1 %1772 }
 0x5e8   : > { %1785 = vst.msk [vmem:[#allocation3] sm:$0xff] %vm1784_vm9, %v1773_v36 }
 0x5e9   : > { %v1599_v60 = vpop.permute.xlu0 %1598 }
 0x5eb   : > { %v1863_v14 = vpop.permute.xlu1 %1862 }
 0x5ec   : > { %1875 = vst.msk [vmem:[#allocation3] sm:$0xff] %vm1874_vm10, %v1863_v14 }
 0x5ed   : > { %v1689_v15 = vpop.permute.xlu0 %1688 }
 0x5ef   : > { %v1953_v33 = vpop.permute.xlu1 %1952 }
 0x5f0   : > { %1965 = vst.msk [vmem:[#allocation3] sm:$0xff] %vm1964_vm11, %v1953_v33 }
 0x5f1   : > { %v1779_v39 = vpop.permute.xlu0 %1778 }
 0x5f5   : > { %v1325_v16 = vpop.permute.xlu0 %1324 }
 0x5f6   : > { %1336 = vst.msk [vmem:[#allocation3 + $0x8] sm:$0xff] %vm1334_vm4, %v1325_v16 }
 0x5f7   : > { %v1969_v30 = vld [vmem:[#allocation3] sm:$0xff] }
 0x5f8   : > { %2669 = vmatprep.mubr.msk.bf16.mxu1 %vm2000_vm12, %v1969_v30 }
 0x5f9   : > { %v1415_v43 = vpop.permute.xlu0 %1414 }
 0x5fa   : > { %1426 = vst.msk [vmem:[#allocation3 + $0x8] sm:$0xff] %vm1424_vm5, %v1415_v43 }
 0x5fd   : > { %v1505_v58 = vpop.permute.xlu0 %1504 }
 0x5fe   : > { %1516 = vst.msk [vmem:[#allocation3 + $0x8] sm:$0xff] %vm1514_vm6, %v1505_v58 }
 0x5ff   : > { %1606 = vst.msk [vmem:[#allocation3 + $0x8] sm:$0xff] %vm1604_vm7, %v1595_v1 }
 0x600   : > { %1696 = vst.msk [vmem:[#allocation3 + $0x8] sm:$0xff] %vm1694_vm8, %v1685_v41 }
 0x601   : > { %1786 = vst.msk [vmem:[#allocation3 + $0x8] sm:$0xff] %vm1784_vm9, %v1775_v56 }
 0x602   : > { %1876 = vst.msk [vmem:[#allocation3 + $0x8] sm:$0xff] %vm1874_vm10, %v1865_v37 }
 0x60b   : > { %v1955_v6 = vpop.permute.xlu1 %1954 }
 0x60c   : > { %1966 = vst.msk [vmem:[#allocation3 + $0x8] sm:$0xff] %vm1964_vm11, %v1955_v6  ;;  %v1329_v2 = vpop.permute.xlu0 %1328 }
 0x60d   : > { %1338 = vst.msk [vmem:[#allocation3 + $0x18] sm:$0xff] %vm1334_vm4, %v1329_v2 }
 0x60f   : > { %v1417_v50 = vpop.permute.xlu1 %1416 }
 0x610   : > { %1427 = vst.msk [vmem:[#allocation3 + $0x10] sm:$0xff] %vm1424_vm5, %v1417_v50  ;;  %v1419_v63 = vpop.permute.xlu0 %1418 }
 0x611   : > { %1428 = vst.msk [vmem:[#allocation3 + $0x18] sm:$0xff] %vm1424_vm5, %v1419_v63 }
 0x613   : > { %v1507_v49 = vpop.permute.xlu1 %1506  ;;  %v1970_v51 = vld [vmem:[#allocation3 + $0x8] sm:$0xff] }
 0x614   : > { %1517 = vst.msk [vmem:[#allocation3 + $0x10] sm:$0xff] %vm1514_vm6, %v1507_v49  ;;  %v1509_v61 = vpop.permute.xlu0 %1508  ;;  %2670 = vmatmul.mubr.msk.bf16.vlgmr.msra.gmra.mrb[4].mxu1 %vm2000_vm12, %v1970_v51 }
 0x615   : > { %1518 = vst.msk [vmem:[#allocation3 + $0x18] sm:$0xff] %vm1514_vm6, %v1509_v61 }
 0x616   : > { %1608 = vst.msk [vmem:[#allocation3 + $0x18] sm:$0xff] %vm1604_vm7, %v1599_v60 }
 0x617   : > { %1698 = vst.msk [vmem:[#allocation3 + $0x18] sm:$0xff] %vm1694_vm8, %v1689_v15  ;;  %v1597_v19 = vpop.permute.xlu1 %1596 }
 0x618   : > { %1788 = vst.msk [vmem:[#allocation3 + $0x18] sm:$0xff] %vm1784_vm9, %v1779_v39  ;;  %v1869_v44 = vpop.permute.xlu0 %1868 }
 0x619   : > { %1607 = vst.msk [vmem:[#allocation3 + $0x10] sm:$0xff] %vm1604_vm7, %v1597_v19 }
 0x61a   : > { %1878 = vst.msk [vmem:[#allocation3 + $0x18] sm:$0xff] %vm1874_vm10, %v1869_v44 }
 0x61b   : > { %v1687_v29 = vpop.permute.xlu1 %1686 }
 0x61c   : > { %1697 = vst.msk [vmem:[#allocation3 + $0x10] sm:$0xff] %vm1694_vm8, %v1687_v29  ;;  %v1959_v7 = vpop.permute.xlu0 %1958 }
 0x61d   : > { %1968 = vst.msk [vmem:[#allocation3 + $0x18] sm:$0xff] %vm1964_vm11, %v1959_v7 }
 0x61f   : > { %v1777_v34 = vpop.permute.xlu1 %1776 }
 0x620   : > { %1787 = vst.msk [vmem:[#allocation3 + $0x10] sm:$0xff] %vm1784_vm9, %v1777_v34 }
 0x623   : > { %v1867_v45 = vpop.permute.xlu1 %1866 }
 0x624   : > { %1877 = vst.msk [vmem:[#allocation3 + $0x10] sm:$0xff] %vm1874_vm10, %v1867_v45  ;;  %v1972_v10 = vld [vmem:[#allocation3 + $0x18] sm:$0xff] }
 0x627   : > { %v1957_v9 = vpop.permute.xlu1 %1956 }
 0x628   : > { %1967 = vst.msk [vmem:[#allocation3 + $0x10] sm:$0xff] %vm1964_vm11, %v1957_v9 }
 0x62f   : > { %v1971_v28 = vld [vmem:[#allocation3 + $0x10] sm:$0xff] }
 0x630   : > { %2673 = vmatprep.mubr.msk.bf16.mxu1 %vm2000_vm12, %v1971_v28 }
 0x631   : > { %2674 = vmatmul.mubr.msk.bf16.gmra.mrb[8].mxu1 %vm2000_vm12, %v1972_v10 }
 0x6e7   : > { %v2671_v11 = vpop.f32.mrb[4].mxu1 }
 0x6e8   : > { %v2051_v20 = vpop.f32.mrb[5].mxu1  ;;  %v2060_v52 = vadd.f32 %v2671_v11, %v2613_v22  ;;  %v2228_v11 = vld [vmem:[#allocation25] sm:$0x3] }
 0x6e9   : > { %v2052_v0 = vadd.f32 %v2613_v22, %v2051_v20  ;;  %v2672_v38 = vpop.f32.mrb[6].mxu1  ;;  %2692 = vmatprep.subr.msk.bf16.mxu0 %vm2013_vm3, %v2228_v11  ;;  %v2249_v20 = vsel %vm2013_vm3, %v2228_v11, 0 }
 0x6ea   : > { %v2054_v62 = vpop.f32.mrb[7].mxu1  ;;  %v2063_v31 = vadd.f32 %v2672_v38, %v2613_v22  ;;  %v2090_v40 = vsel %vm967_vm2, %v2060_v52, 0.0  ;;  %2678 = vmatpush3.bf16.msra.mxu0 %v2249_v20 }
 0x6eb   : > { %v2055_v12 = vadd.f32 %v2613_v22, %v2054_v62  ;;  %v2084_v21 = vsel %vm967_vm2, %v2052_v0, 0.0 }
 0x6ec   : > { %2085 = vadd.xlane.f32.xlu1 %v2084_v21  ;;  %v2093_v35 = vsel %vm967_vm2, %v2063_v31, 0.0 }
 0x6ed   : > { %v2087_v32 = vsel %vm967_vm2, %v2055_v12, 0.0 }
 0x6ee   : > { %2088 = vadd.xlane.f32.xlu0 %v2087_v32 }
 0x6f0   : > { %2094 = vadd.xlane.f32.xlu1 %v2093_v35 }
 0x6f2   : > { %2091 = vadd.xlane.f32.xlu0 %v2090_v40 }
 0x704   : > { %v2675_v4 = vpop.f32.mrb[8].mxu1 }
 0x705   : > { %v2067_v47 = vpop.f32.mrb[9].mxu1  ;;  %v2076_v57 = vadd.f32 %v2675_v4, %v2613_v22 }
 0x706   : > { %v2068_v17 = vadd.f32 %v2613_v22, %v2067_v47  ;;  %v2676_v59 = vpop.f32.mrb[10].mxu1 }
 0x707   : > { %v2070_v27 = vpop.f32.mrb[11].mxu1  ;;  %v2079_v23 = vadd.f32 %v2676_v59, %v2613_v22  ;;  %v2102_v53 = vsel %vm967_vm2, %v2076_v57, 0.0  ;;  %v2621_v59 = vld [vmem:[#allocation22] ss:$0 sm:$0xff] }
 0x708   : > { %v2071_v54 = vadd.f32 %v2613_v22, %v2070_v27  ;;  %v2096_v46 = vsel %vm967_vm2, %v2068_v17, 0.0 }
 0x709   : > { %2097 = vadd.xlane.f32.xlu0 %v2096_v46  ;;  %v2105_v3 = vsel %vm967_vm2, %v2079_v23, 0.0 }
 0x70a   : > { %v2099_v25 = vsel %vm967_vm2, %v2071_v54, 0.0 }
 0x70b   : > { %2100 = vadd.xlane.f32.xlu1 %v2099_v25 }
 0x70d   : > { %2103 = vadd.xlane.f32.xlu0 %v2102_v53 }
 0x70f   : > { %2106 = vadd.xlane.f32.xlu1 %v2105_v3 }
 0x779   : > { %v2086_v8 = vpop.xlane.xlu1 %2085 }
 0x77a   : > { %v2108_v48 = vmul.f32 0.25, %v2086_v8 }
 0x77b   : > { %v2089_v5 = vpop.xlane.xlu0 %2088 }
 0x77c   : > { %v4633_v24 = vsub.f32 %v2052_v0, %v2108_v48  ;;  %v2109_v1 = vmul.f32 0.25, %v2089_v5 }
 0x77d   : > { %v2095_v13 = vpop.xlane.xlu1 %2094 }
 0x77e   : > { %v4635_v41 = vsub.f32 %v2055_v12, %v2109_v1  ;;  %v2111_v18 = vmul.f32 0.25, %v2095_v13  ;;  %v2124_v56 = vmul.f32 %v4633_v24, %v4633_v24 }
 0x77f   : > { %v2092_v26 = vpop.xlane.xlu0 %2091 }
 0x780   : > { %v4639_v37 = vsub.f32 %v2063_v31, %v2111_v18  ;;  %v2110_v42 = vmul.f32 0.25, %v2092_v26  ;;  %v2132_v55 = vsel %vm967_vm2, %v2124_v56, 0.0  ;;  %v2125_v36 = vmul.f32 %v4635_v41, %v4635_v41 }
 0x781   : > { %2133 = vadd.xlane.f32.xlu0 %v2132_v55 }
 0x782   : > { %v4644_v60 = vsub.f32 %v2060_v52, %v2110_v42  ;;  %v2135_v14 = vsel %vm967_vm2, %v2125_v36, 0.0  ;;  %v2127_v15 = vmul.f32 %v4639_v37, %v4639_v37 }
 0x783   : > { %2136 = vadd.xlane.f32.xlu1 %v2135_v14 }
 0x784   : > { %v2126_v33 = vmul.f32 %v4644_v60, %v4644_v60  ;;  %v2141_v39 = vsel %vm967_vm2, %v2127_v15, 0.0 }
 0x786   : > { %v2138_v16 = vsel %vm967_vm2, %v2126_v33, 0.0 }
 0x787   : > { %2142 = vadd.xlane.f32.xlu1 %v2141_v39  ;;  %2139 = vadd.xlane.f32.xlu0 %v2138_v16 }
 0x796   : > { %v2098_v30 = vpop.xlane.xlu0 %2097 }
 0x797   : > { %v2112_v43 = vmul.f32 0.25, %v2098_v30 }
 0x798   : > { %v2101_v58 = vpop.xlane.xlu1 %2100 }
 0x799   : > { %v4653_v6 = vsub.f32 %v2068_v17, %v2112_v43  ;;  %v2113_v2 = vmul.f32 0.25, %v2101_v58 }
 0x79a   : > { %v2104_v50 = vpop.xlane.xlu0 %2103 }
 0x79b   : > { %v4655_v63 = vsub.f32 %v2071_v54, %v2113_v2  ;;  %v2114_v49 = vmul.f32 0.25, %v2104_v50  ;;  %v2128_v51 = vmul.f32 %v4653_v6, %v4653_v6  ;;  %v2622_v54 = vld [vmem:[#allocation24] ss:$0 sm:$0xff] }
 0x79c   : > { %v2107_v61 = vpop.xlane.xlu1 %2106 }
 0x79d   : > { %v4659_v19 = vsub.f32 %v2076_v57, %v2114_v49  ;;  %v2115_v44 = vmul.f32 0.25, %v2107_v61  ;;  %v2144_v29 = vsel %vm967_vm2, %v2128_v51, 0.0  ;;  %v2129_v7 = vmul.f32 %v4655_v63, %v4655_v63 }
 0x79e   : > { %2145 = vadd.xlane.f32.xlu0 %v2144_v29 }
 0x79f   : > { %v4664_v34 = vsub.f32 %v2079_v23, %v2115_v44  ;;  %v2147_v45 = vsel %vm967_vm2, %v2129_v7, 0.0  ;;  %v2130_v9 = vmul.f32 %v4659_v19, %v4659_v19 }
 0x7a0   : > { %2148 = vadd.xlane.f32.xlu1 %v2147_v45 }
 0x7a1   : > { %v2150_v28 = vsel %vm967_vm2, %v2130_v9, 0.0  ;;  %v2131_v10 = vmul.f32 %v4664_v34, %v4664_v34 }
 0x7a2   : > { %2151 = vadd.xlane.f32.xlu0 %v2150_v28 }
 0x7a3   : > { %v2153_v22 = vsel %vm967_vm2, %v2131_v10, 0.0 }
 0x7a4   : > { %2154 = vadd.xlane.f32.xlu1 %v2153_v22 }
 0x80e   : > { %v2134_v0 = vpop.xlane.xlu0 %2133 }
 0x80f   : > { %v2156_v38 = vmul.f32 0.25, %v2134_v0 }
 0x810   : > { %v2137_v62 = vpop.xlane.xlu1 %2136 }
 0x811   : > { %v2164_v31 = vadd.f32 1e-05, %v2156_v38  ;;  %v2157_v12 = vmul.f32 0.25, %v2137_v62 }
 0x813   : > { %2927 = vrsqrt.f32 %v2164_v31  ;;  %v2165_v21 = vadd.f32 1e-05, %v2157_v12 }
 0x814   : > { %v2143_v52 = vpop.xlane.xlu1 %2142  ;;  %v2140_v32 = vpop.xlane.xlu0 %2139 }
 0x815   : > { %2929 = vrsqrt.f32 %v2165_v21  ;;  %v2159_v35 = vmul.f32 0.25, %v2143_v52  ;;  %v2158_v40 = vmul.f32 0.25, %v2140_v32 }
 0x817   : > { %v2167_v4 = vadd.f32 1e-05, %v2159_v35  ;;  %v2166_v47 = vadd.f32 1e-05, %v2158_v40 }
 0x819   : > { %2931 = vrsqrt.f32 %v2167_v4 }
 0x81a   : > { %2933 = vrsqrt.f32 %v2166_v47 }
 0x81d   : > { %v2928_v17 = vpop.eup %2927 }
 0x81e   : > { %v2180_v27 = vmul.f32 %v2928_v17, %v4633_v24  ;;  %v2943_v17 = vld [vmem:[%s4016_s29 + $0x10] sm:$0xff] }
 0x81f   : > { %v2930_v57 = vpop.eup %2929 }
 0x820   : > { %v2181_v46 = vmul.f32 %v2930_v57, %v4635_v41  ;;  %v2194_v23 = vmul.f32 %v2621_v59, %v2180_v27 }
 0x822   : > { %v2195_v25 = vmul.f32 %v2621_v59, %v2181_v46  ;;  %v2208_v53 = vadd.f32 %v2622_v54, %v2194_v23 }
 0x823   : > { %v2932_v3 = vpop.eup %2931 }
 0x824   : > { %v2934_v8 = vpop.eup %2933  ;;  %v2183_v48 = vmul.f32 %v2932_v3, %v4639_v37  ;;  %v2209_v5 = vadd.f32 %v2622_v54, %v2195_v25  ;;  %v2216_v18 = vmax.f32 %v2208_v53, 0.0  ;;  %v2945_v25 = vld [vmem:[%s4016_s29 + $0x18] sm:$0xff]  ;;  %v2946_v3 = vld [vmem:[%s4016_s29 + $0x8] sm:$0xff] }
 0x825   : > { %v2182_v1 = vmul.f32 %v2934_v8, %v4644_v60 }
 0x826   : > { %v2197_v13 = vmul.f32 %v2621_v59, %v2183_v48  ;;  %v2217_v56 = vmax.f32 %v2209_v5, 0.0 }
 0x827   : > { %v2196_v26 = vmul.f32 %v2621_v59, %v2182_v1 }
 0x828   : > { %v2224_v42 = vpack.c.bf16 %v2217_v56, %v2216_v18  ;;  %v2211_v24 = vadd.f32 %v2622_v54, %v2197_v13  ;;  %v2947_v56 = vld [vmem:[%s4016_s29 + $0x30] sm:$0xff] }
 0x829   : > { %v2210_v55 = vadd.f32 %v2622_v54, %v2196_v26 }
 0x82a   : > { %2679 = vmatprep.mubr.msk.bf16.mxu0 %vm967_vm2, %v2224_v42  ;;  %v2219_v41 = vmax.f32 %v2211_v24, 0.0 }
 0x82b   : > { %v2146_v36 = vpop.xlane.xlu0 %2145  ;;  %v2218_v14 = vmax.f32 %v2210_v55, 0.0  ;;  %v2948_v55 = vld [vmem:[%s4016_s29 + $0x20] sm:$0xff] }
 0x82c   : > { %v2160_v15 = vmul.f32 0.25, %v2146_v36 }
 0x82d   : > { %v2149_v33 = vpop.xlane.xlu1 %2148  ;;  %v2225_v39 = vpack.c.bf16 %v2219_v41, %v2218_v14  ;;  %v2949_v14 = vld [vmem:[%s4016_s29 + $0x38] sm:$0xff] }
 0x82e   : > { %v2168_v16 = vadd.f32 1e-05, %v2160_v15  ;;  %v2161_v37 = vmul.f32 0.25, %v2149_v33  ;;  %v2950_v33 = vld [vmem:[%s4016_s29 + $0x28] sm:$0xff] }
 0x82f   : > { %2680 = vmatmul.mubr.msk.bf16.vlgmr.msra.gmra.mrb[4].mxu0 %vm967_vm2, %v2225_v39  ;;  %v2152_v60 = vpop.xlane.xlu0 %2151 }
 0x830   : > { %2935 = vrsqrt.f32 %v2168_v16  ;;  %v2169_v30 = vadd.f32 1e-05, %v2161_v37  ;;  %v2162_v43 = vmul.f32 0.25, %v2152_v60 }
 0x831   : > { %v2155_v58 = vpop.xlane.xlu1 %2154 }
 0x832   : > { %2937 = vrsqrt.f32 %v2169_v30  ;;  %v2170_v2 = vadd.f32 1e-05, %v2162_v43  ;;  %v2163_v50 = vmul.f32 0.25, %v2155_v58 }
 0x834   : > { %2939 = vrsqrt.f32 %v2170_v2  ;;  %v2171_v49 = vadd.f32 1e-05, %v2163_v50 }
 0x836   : > { %2941 = vrsqrt.f32 %v2171_v49 }
 0x83a   : > { %v2936_v51 = vpop.eup %2935 }
 0x83b   : > { %v2184_v61 = vmul.f32 %v2936_v51, %v4653_v6 }
 0x83c   : > { %v2938_v44 = vpop.eup %2937 }
 0x83d   : > { %v2185_v29 = vmul.f32 %v2938_v44, %v4655_v63  ;;  %v2198_v7 = vmul.f32 %v2621_v59, %v2184_v61 }
 0x83e   : > { %v2940_v45 = vpop.eup %2939 }
 0x83f   : > { %v2186_v9 = vmul.f32 %v2940_v45, %v4659_v19  ;;  %v2199_v28 = vmul.f32 %v2621_v59, %v2185_v29  ;;  %v2212_v10 = vadd.f32 %v2622_v54, %v2198_v7 }
 0x840   : > { %v2942_v22 = vpop.eup %2941 }
 0x841   : > { %v2187_v11 = vmul.f32 %v2942_v22, %v4664_v34  ;;  %v2213_v20 = vadd.f32 %v2622_v54, %v2199_v28  ;;  %v2200_v0 = vmul.f32 %v2621_v59, %v2186_v9  ;;  %v2220_v38 = vmax.f32 %v2212_v10, 0.0  ;;  %v2623_v34 = vld [vmem:[#allocation27] ss:$0 sm:$0xff] }
 0x843   : > { %v2221_v62 = vmax.f32 %v2213_v20, 0.0  ;;  %v2201_v31 = vmul.f32 %v2621_v59, %v2187_v11  ;;  %v2214_v12 = vadd.f32 %v2622_v54, %v2200_v0 }
 0x845   : > { %v2226_v6 = vpack.c.bf16 %v2221_v62, %v2220_v38  ;;  %v2215_v21 = vadd.f32 %v2622_v54, %v2201_v31  ;;  %v2222_v63 = vmax.f32 %v2214_v12, 0.0  ;;  %v2944_v54 = vld [vmem:[%s4016_s29] sm:$0xff]  ;;  %s3381_s29 = scalar_lea.vmem %s3380_s19, 2048 }
 0x846   : > { %p3383_p3 = scmp.lt.s32.totalorder %s3381_s29, %s3375_s23 }
 0x847   : > { %2683 = vmatprep.mubr.msk.bf16.mxu0 %vm967_vm2, %v2226_v6  ;;  %v2223_v52 = vmax.f32 %v2215_v21, 0.0 }
 0x848   : > { %p3384_p7 = por %p3383_p3, %p3382_p1 }
 0x849   : > { %v2227_v19 = vpack.c.bf16 %v2223_v52, %v2222_v63 }
 0x84a   : > { %p3385_p2 = pnand %p3384_p7, %p3378_p13 }
 0x84b   : > { %2684 = vmatmul.mubr.msk.bf16.gmra.mrb[8].mxu0 %vm967_vm2, %v2227_v19 }
 0x902   : > { %v2681_v32 = vpop.f32.mrb[4].mxu0 }
 0x903   : > { %v2294_v35 = vadd.f32 %v2681_v32, %v2623_v34  ;;  %v2285_v40 = vpop.f32.mrb[5].mxu0 }
 0x904   : > { %v2286_v4 = vadd.f32 %v2623_v34, %v2285_v40  ;;  %v2682_v47 = vpop.f32.mrb[6].mxu0 }
 0x905   : > { %v2318_v59 = vadd.f32 %v2943_v17, %v2294_v35  ;;  %v2297_v27 = vadd.f32 %v2682_v47, %v2623_v34  ;;  %v2288_v57 = vpop.f32.mrb[7].mxu0 }
 0x906   : > { %v2316_v46 = vadd.f32 %v2944_v54, %v2286_v4  ;;  %v2289_v23 = vadd.f32 %v2623_v34, %v2288_v57 }
 0x907   : > { %2326 = vst.msk [vmem:[%s4690_s10 + $0x10] sm:$0xff] %vm730_vm0, %v2318_v59  ;;  %v2319_v53 = vadd.f32 %v2945_v25, %v2297_v27 }
 0x908   : > { %2324 = vst.msk [vmem:[%s4690_s10] sm:$0xff] %vm730_vm0, %v2316_v46  ;;  %v2317_v8 = vadd.f32 %v2946_v3, %v2289_v23 }
 0x909   : > { %2327 = vst.msk [vmem:[%s4690_s10 + $0x18] sm:$0xff] %vm730_vm0, %v2319_v53 }
 0x90a   : > { %2325 = vst.msk [vmem:[%s4690_s10 + $0x8] sm:$0xff] %vm730_vm0, %v2317_v8 }
 0x91e   : > { %v2685_v48 = vpop.f32.mrb[8].mxu0 }
 0x91f   : > { %v2310_v5 = vadd.f32 %v2685_v48, %v2623_v34  ;;  %v2301_v1 = vpop.f32.mrb[9].mxu0 }
 0x920   : > { %v2302_v13 = vadd.f32 %v2623_v34, %v2301_v1  ;;  %v2686_v18 = vpop.f32.mrb[10].mxu0 }
 0x921   : > { %v2322_v26 = vadd.f32 %v2947_v56, %v2310_v5  ;;  %v2313_v42 = vadd.f32 %v2686_v18, %v2623_v34  ;;  %v2304_v24 = vpop.f32.mrb[11].mxu0 }
 0x922   : > { %v2320_v41 = vadd.f32 %v2948_v55, %v2302_v13  ;;  %v2305_v36 = vadd.f32 %v2623_v34, %v2304_v24 }
 0x923   : > { %2330 = vst.msk [vmem:[%s4690_s10 + $0x30] sm:$0xff] %vm730_vm0, %v2322_v26  ;;  %v2323_v15 = vadd.f32 %v2949_v14, %v2313_v42 }
 0x924   : > { %2328 = vst.msk [vmem:[%s4690_s10 + $0x20] sm:$0xff] %vm730_vm0, %v2320_v41  ;;  %v2321_v39 = vadd.f32 %v2950_v33, %v2305_v36 }
 0x925   : > { %2331 = vst.msk [vmem:[%s4690_s10 + $0x38] sm:$0xff] %vm730_vm0, %v2323_v15 }
 0x926   : > { %2329 = vst.msk [vmem:[%s4690_s10 + $0x28] sm:$0xff] %vm730_vm0, %v2321_v39 }
 0x927   : > { %3388 = shalt.err (!%p3385_p2)
}
 0x928   : > { %s3389_s0 = scalar_lea.hbm %s4712_s30, 1024  ;;  %s3393_s18 = scalar_lea.hbm %s4913_s5, 2048 }
 0x929   : > { %p3390_p6 = scmp.ne.s32.totalorder %s4712_s30, %s3389_s0  ;;  %p3394_p9 = scmp.lt.u32.totalorder %s4712_s30, %s4913_s5 }
 0x92a   : > { %p3395_p4 = scmp.lt.u32.totalorder %s3393_s18, %s3389_s0  ;;  %p3397_p11 = scmp.lt.u32.totalorder %s3389_s0, %s4712_s30 }
 0x92b   : > { %p3391_p10 = pnand %p3390_p6, %p4914_p0 }
 0x92c   : > { %p3396_p8 = por %p3395_p4, %p3394_p9 }
 0x92d   : > { %p3392_p5 = pneg %p3391_p10 }
 0x92e   : > { %p3398_p12 = por %p3397_p11, %p3396_p8 }
 0x930   : > { %p3399_p13 = pnand %p3398_p12, %p3392_p5 }
 0x932   : > { %3402 = shalt.err (!%p3399_p13)
}
 0x933   : > { %s3505_s16 = smov 128  }
 0x934   : > { %2749 = dma.vmem_to_hbm [thread:$0]  (%p4914_p0), %s4717_s9, 1024, %s4712_s30, %s2333_s7, %s3505_s16, %s3505_s16, %s3498_s6  }
 0x935 PF: > { %s4915_s22 = sld [smem:[#allocation39_spill]]  ;;  %p4916_p1 = scmp.ne.s32.totalorder %s4832_s15, 0 }
 0x936   : > { %p4917_p3 = scmp.ge.s32.totalorder %s3473_s21, 2 }
 0x938   : > { %p2799_p7 = pnand %p4917_p3, %p4916_p1 }
 0x93b   : > { %s2361_s2 = sand.u32 1, %s4915_s22  }
 0x93c   : > { %s2362_s23 = scalar_lea.sflag [#allocation6], %s2361_s2 }
 0x93d   : > { %3456 = dma.done.wait (!%p2799_p7), %s2362_s23, 1024  }
 0x93e   : > { %3458 = vsyncadd (!%p2799_p7), %s2362_s23, 4294966272  ;;  %s4918_s18 = sld [smem:[#allocation40_spill]]  ;;  %p37_p2 = scmp.ge.s32.totalorder %s3892_s28, 4  }
 0x93f   : > { %s4919_s19 = smov %s3469_s20  ;;  %s4920_s20 = smov %s3904_s1 }
 0x940   : > { %s4921_s21 = smov %s3892_s28  ;;  %39 = sbr.rel (!%p37_p2) target bundleno = 26 (0x1a), region = 198 }
 0x947   :  { %2367 = vsyncpa [#allocation5], 1 }
 0x948   :  { %2369 = vsyncpa [#allocation5 + $0x1], 1 }
 0x949   :  { %2370 = vsyncpa [#allocation8], 1 }
 0x94a   :  { %2372 = vsyncpa [#allocation8 + $0x1], 1 }
 0x94b   :  { %2373 = vsyncpa [#allocation11], 1 }
 0x94c   :  { %2374 = vsyncpa [#allocation14], 1 }
 0x94d   :  { %2375 = vsyncpa [#allocation17], 1 }
 0x94e   :  { %2376 = vsyncpa [#allocation20], 1 }
 0x94f   :  { %2377 = vsyncpa [#allocation23], 1 }
 0x950   :  { %2378 = vsyncpa [#allocation26], 1 }
 0x951   :  { %2379 = vsyncpa [#allocation6], 1 }
 0x952   :  { %2381 = vsyncpa [#allocation6 + $0x1], 1 }

// kernel: forward.12
= control target key start
LH: loop header
LB: loop body
LE: loop exit
PB: predicated region body
PF: predicated region fallthrough
CT: control target
= control target key end

     0   :  { %8 = vsyncpa [#allocation3], 0  ;;  %s350_s0 = inlined_call_operand.hbm [shape: f32[32,8], index: 0, kind: input, shape index: {}]   ;;  %s351_s1 = inlined_call_operand.hbm [shape: bf16[8,24], index: 1, kind: input, shape index: {}]   ;;  %s352_s2 = inlined_call_operand.hbm [shape: f32[1,24], index: 2, kind: input, shape index: {}]   ;;  %s353_s3 = inlined_call_operand.hbm [shape: f32[32,24], index: 3, kind: output, shape index: {}]  }
   0x1   :  { %9 = vsyncpa [#allocation6], 0 }
   0x2   :  { %10 = vsyncpa [#allocation4], 0  ;;  %s263_s12 = smov [#allocation5]   ;;  %s264_s14 = smov [#allocation2]  }
   0x3   :  { %s29_s13 = sshll.u32 %s263_s12, 4  ;;  %s16_s15 = sshll.u32 %s264_s14, 4  ;;  %s30_s13 = int_to_ptr.vmem [resolvable:$true] %s29_s13  ;;  %s289_s15 = int_to_ptr.vmem [resolvable:$true] %s16_s15 }
   0x4   :  { %s169_s18 = scalar_lea.hbm %s351_s1, 64 }
   0x5   :  { %p170_p0 = scmp.ne.s32.totalorder %s351_s1, %s169_s18  ;;  %p173_p1 = scmp.lt.u32.totalorder %s169_s18, %s351_s1 }
   0x7   :  { %p175_p2 = pnand %p173_p1, %p170_p0 }
   0x9   :  { %178 = shalt.err (!%p175_p2)
}
   0xa   :  { %s179_s23 = scalar_lea.vmem %s30_s13, 64  ;;  %p184_p4 = scmp.lt.s32.totalorder %s30_s13, %s30_s13 }
   0xb   :  { %p180_p3 = scmp.ne.s32.totalorder %s30_s13, %s179_s23  ;;  %p185_p5 = scmp.lt.s32.totalorder %s179_s23, %s179_s23 }
   0xd   :  { %p186_p6 = por %p185_p5, %p184_p4 }
   0xf   :  { %p187_p7 = pnand %p186_p6, %p180_p3 }
  0x11   :  { %190 = shalt.err (!%p187_p7)
}
  0x12   :  { %32 = dma.hbm_to_vmem [thread:$0]  %s351_s1, 64, %s30_s13, [#allocation6]  }
  0x13   :  { %s191_s28 = scalar_lea.hbm %s350_s0, 512 }
  0x14   :  { %p192_p8 = scmp.ne.s32.totalorder %s350_s0, %s191_s28  ;;  %p195_p9 = scmp.lt.u32.totalorder %s191_s28, %s350_s0 }
  0x16   :  { %p197_p10 = pnand %p195_p9, %p192_p8 }
  0x18   :  { %200 = shalt.err (!%p197_p10)
}
  0x19   :  { %s201_s6 = scalar_lea.vmem %s289_s15, 512  ;;  %p206_p12 = scmp.lt.s32.totalorder %s289_s15, %s289_s15 }
  0x1a   :  { %p202_p11 = scmp.ne.s32.totalorder %s289_s15, %s201_s6  ;;  %p207_p13 = scmp.lt.s32.totalorder %s201_s6, %s201_s6 }
  0x1c   :  { %p208_p0 = por %p207_p13, %p206_p12 }
  0x1e   :  { %p209_p1 = pnand %p208_p0, %p202_p11 }
  0x20   :  { %212 = shalt.err (!%p209_p1)
}
  0x21   :  { %s265_s1 = smov 128   ;;  %s266_s7 = smov 8  }
  0x22   :  { %22 = dma.hbm_to_vmem [thread:$0]  %s350_s0, 512, %s289_s15, [#allocation3], %s265_s1, %s265_s1, %s266_s7  }
  0x23   :  { %s267_s10 = smov [#allocation7]   ;;  %s213_s14 = scalar_lea.hbm %s352_s2, 16 }
  0x24   :  { %s39_s11 = sshll.u32 %s267_s10, 4  ;;  %p214_p2 = scmp.ne.s32.totalorder %s352_s2, %s213_s14  ;;  %s40_s11 = int_to_ptr.vmem [resolvable:$true] %s39_s11 }
  0x25   :  { %p217_p3 = scmp.lt.u32.totalorder %s213_s14, %s352_s2 }
  0x27   :  { %p219_p4 = pnand %p217_p3, %p214_p2 }
  0x29   :  { %222 = shalt.err (!%p219_p4)
}
  0x2a   :  { %s223_s20 = scalar_lea.vmem %s40_s11, 16  ;;  %s227_s0 = scalar_lea.vmem %s40_s11, 32 }
  0x2b   :  { %p224_p5 = scmp.ne.s32.totalorder %s40_s11, %s223_s20  ;;  %p228_p6 = scmp.lt.s32.totalorder %s40_s11, %s40_s11 }
  0x2c   :  { %p229_p7 = scmp.lt.s32.totalorder %s227_s0, %s223_s20 }
  0x2e   :  { %p230_p8 = por %p229_p7, %p228_p6 }
  0x30   :  { %p231_p9 = pnand %p230_p8, %p224_p5 }
  0x32   :  { %234 = shalt.err (!%p231_p9)
}
  0x33   :  { %42 = dma.hbm_to_vmem [thread:$0]  %s352_s2, 16, %s40_s11, [#allocation6]  }
  0x34   :  { %257 = dma.done.wait [#allocation3], 512  }
  0x35   :  { %258 = vsyncadd [#allocation3], 4294966784 }
  0x36   :  { %259 = dma.done.wait [#allocation6], 80  }
  0x37   :  { %260 = vsyncadd [#allocation6], 4294967216  ;;  %vm74_vm0 = vcmask 1043456   ;;  %v59_v0 = vld [vmem:[#allocation5] sm:$0xf]  ;;  %v54_v2 = vld [vmem:[#allocation2 + $0x8] sm:$0xff] }
  0x38   :  { %v53_v1 = vld [vmem:[#allocation2] sm:$0xff]  ;;  %vm67_vm1 = vcmask 64512   ;;  %162 = vmatprep.subr.msk.bf16.mxu0 %vm74_vm0, %v59_v0  ;;  %v76_v3 = vsel %vm74_vm0, %v59_v0, 0  ;;  %v55_v5 = vld [vmem:[#allocation2 + $0x10] sm:$0xff]  ;;  %v56_v6 = vld [vmem:[#allocation2 + $0x18] sm:$0xff]  ;;  %vm127_vm2 = vcmask 195584  }
  0x39   :  { %v57_v4 = vpack.c.bf16 %v54_v2, %v53_v1  ;;  %157 = vmatpush3.bf16.msra.mxu0 %v76_v3  ;;  %v58_v7 = vpack.c.bf16 %v56_v6, %v55_v5  ;;  %v150_v8 = vld [vmem:[#allocation7] ss:$0 sm:$0xff]  ;;  %s268_s2 = smov [#allocation8]  }
  0x3a   :  { %s137_s22 = sshll.u32 %s268_s2, 4  ;;  %s138_s22 = int_to_ptr.vmem [resolvable:$true] %s137_s22 }
  0x3b   :  { %158 = vmatprep.mubr.msk.bf16.mxu0 %vm67_vm1, %v57_v4  ;;  %s235_s23 = scalar_lea.vmem %s138_s22, 512  ;;  %p240_p11 = scmp.lt.s32.totalorder %s138_s22, %s138_s22 }
  0x3c   :  { %159 = vmatmul.mubr.msk.bf16.vlgmr.msra.gmra.mrb[0].mxu0 %vm67_vm1, %v58_v7  ;;  %p236_p10 = scmp.ne.s32.totalorder %s138_s22, %s235_s23  ;;  %p241_p12 = scmp.lt.s32.totalorder %s235_s23, %s235_s23 }
  0x3e   :  { %p242_p13 = por %p241_p12, %p240_p11 }
  0x40   :  { %p243_p0 = pnand %p242_p13, %p236_p10 }
 0x10f   :  { %v160_v9 = vpop.f32.mrb[0].mxu0 }
 0x110   :  { %v121_v10 = vadd.f32 %v160_v9, %v150_v8  ;;  %v112_v11 = vpop.f32.mrb[1].mxu0 }
 0x111   :  { %v113_v12 = vadd.f32 %v150_v8, %v112_v11  ;;  %v161_v13 = vpop.f32.mrb[2].mxu0 }
 0x112   :  { %130 = vst.msk [vmem:[#allocation8 + $0x10] sm:$0xff] %vm127_vm2, %v121_v10  ;;  %v124_v14 = vadd.f32 %v161_v13, %v150_v8  ;;  %v115_v15 = vpop.f32.mrb[3].mxu0 }
 0x113   :  { %128 = vst.msk [vmem:[#allocation8] sm:$0xff] %vm127_vm2, %v113_v12  ;;  %v116_v16 = vadd.f32 %v150_v8, %v115_v15 }
 0x114   :  { %131 = vst.msk [vmem:[#allocation8 + $0x18] sm:$0xff] %vm127_vm2, %v124_v14 }
 0x115   :  { %129 = vst.msk [vmem:[#allocation8 + $0x8] sm:$0xff] %vm127_vm2, %v116_v16 }
 0x116   :  { %246 = shalt.err (!%p243_p0)
}
 0x117   :  { %s247_s26 = scalar_lea.hbm %s353_s3, 512 }
 0x118   :  { %p248_p1 = scmp.ne.s32.totalorder %s353_s3, %s247_s26  ;;  %p251_p2 = scmp.lt.u32.totalorder %s247_s26, %s353_s3 }
 0x11a   :  { %p253_p3 = pnand %p251_p2, %p248_p1 }
 0x11c   :  { %256 = shalt.err (!%p253_p3)
}
 0x11d   :  { %143 = dma.vmem_to_hbm [thread:$0]  %s138_s22, 512, %s353_s3, [#allocation4], %s265_s1, %s265_s1, %s266_s7  }
 0x11e   :  { %261 = dma.done.wait [#allocation4], 512  }
 0x11f   :  { %262 = vsyncadd [#allocation4], 4294966784 }
 0x120   :  { %147 = vsyncpa [#allocation3], 1 }
 0x121   :  { %148 = vsyncpa [#allocation6], 1 }
 0x122   :  { %149 = vsyncpa [#allocation4], 1 }

// kernel: forward.13
= control target key start
LH: loop header
LB: loop body
LE: loop exit
PB: predicated region body
PF: predicated region fallthrough
CT: control target
= control target key end

     0   :  { %s2767_s0 = inlined_call_operand.hbm [shape: f32[2,16,32], index: 0, kind: input, shape index: {}]   ;;  %s2768_s1 = inlined_call_operand.hbm [shape: f32[2,16,1], index: 1, kind: input, shape index: {}]   ;;  %s2769_s2 = inlined_call_operand.hbm [shape: f32[1,32], index: 2, kind: input, shape index: {}]   ;;  %s2770_s3 = inlined_call_operand.hbm [shape: f32[1,32], index: 3, kind: input, shape index: {}]   ;;  %s2771_s4 = inlined_call_operand.hbm [shape: bf16[32,16], index: 4, kind: input, shape index: {}]   ;;  %s2772_s5 = inlined_call_operand.hbm [shape: f32[1,16], index: 5, kind: input, shape index: {}]   ;;  %s2773_s6 = inlined_call_operand.hbm [shape: f32[1,16], index: 6, kind: input, shape index: {}]   ;;  %s2774_s7 = inlined_call_operand.hbm [shape: f32[1,16], index: 7, kind: input, shape index: {}]   ;;  %s2775_s8 = inlined_call_operand.hbm [shape: bf16[48,16], index: 8, kind: input, shape index: {}]   ;;  %s2776_s9 = inlined_call_operand.hbm [shape: f32[1,16], index: 9, kind: input, shape index: {}]   ;;  %s2777_s10 = inlined_call_operand.hbm [shape: f32[1,16], index: 10, kind: input, shape index: {}]   ;;  %s2778_s11 = inlined_call_operand.hbm [shape: f32[1,16], index: 11, kind: input, shape index: {}]   ;;  %s2779_s12 = inlined_call_operand.hbm [shape: bf16[16,32], index: 12, kind: input, shape index: {}]   ;;  %s2780_s13 = inlined_call_operand.hbm [shape: f32[1,32], index: 13, kind: input, shape index: {}]   ;;  %s2781_s14 = inlined_call_operand.hbm [shape: f32[2,16,32], index: 14, kind: output, shape index: {}]  }
   0x1   :  { %2794 = sst [smem:[#allocation40_spill]] %s2767_s0 }
   0x2   :  { %2795 = sst [smem:[#allocation41_spill]] %s2768_s1 }
   0x3   :  { %2796 = sst [smem:[#allocation42_spill]] %s2769_s2 }
   0x4   :  { %2797 = sst [smem:[#allocation43_spill]] %s2770_s3 }
   0x5   :  { %2798 = sst [smem:[#allocation44_spill]] %s2771_s4 }
   0x6   :  { %2799 = sst [smem:[#allocation45_spill]] %s2772_s5 }
   0x7   :  { %2800 = sst [smem:[#allocation46_spill]] %s2773_s6 }
   0x8   :  { %2801 = sst [smem:[#allocation47_spill]] %s2774_s7 }
   0x9   :  { %2802 = sst [smem:[#allocation48_spill]] %s2775_s8 }
   0xa   :  { %2803 = sst [smem:[#allocation49_spill]] %s2781_s14 }
   0xb   :  { %19 = vsyncpa [#allocation5], 0 }
   0xc   :  { %21 = vsyncpa [#allocation5 + $0x1], 0 }
   0xd   :  { %22 = vsyncpa [#allocation8], 0 }
   0xe   :  { %24 = vsyncpa [#allocation8 + $0x1], 0 }
   0xf   :  { %25 = vsyncpa [#allocation11], 0 }
  0x10   :  { %26 = vsyncpa [#allocation14], 0 }
  0x11   :  { %27 = vsyncpa [#allocation17], 0 }
  0x12   :  { %28 = vsyncpa [#allocation20], 0 }
  0x13   :  { %29 = vsyncpa [#allocation23], 0 }
  0x14   :  { %30 = vsyncpa [#allocation26], 0 }
  0x15   :  { %31 = vsyncpa [#allocation6], 0 }
  0x16   :  { %33 = vsyncpa [#allocation6 + $0x1], 0  ;;  %s2196_s29 = smov 0   ;;  %s2198_s30 = smov 0  }
  0x17   :  { %s2200_s15 = smov 0   ;;  %s2202_s16 = smov 0  }
  0x18 LB: > { %s2095_s17 = smov [#allocation9]   ;;  %s2217_s19 = sadd.s32 4294967295, %s2093_s16   ;;  %s2093_s16 = sphi %s2202_s16, %s2850_s16   ;;  %s2089_s15 = sphi %s2200_s15, %s2849_s15   ;;  %s2085_s30 = sphi %s2198_s30, %s2848_s30   ;;  %s2081_s29 = sphi %s2196_s29, %s2847_s29  }
  0x19   : > { %s387_s18 = sshll.u32 %s2095_s17, 4  ;;  %2804 = sst [smem:[#allocation38_spill]] %s2217_s19  ;;  %s2222_s18 = int_to_ptr.vmem [resolvable:$true] %s387_s18 }
  0x1a   : > { %p1301_p0 = scmp.ge.s32.totalorder %s2093_s16, 1  ;;  %p2789_p1 = scmp.eq.s32.totalorder %s2217_s19, 0 }
  0x1b   : > { %p374_p2 = scmp.lt.s32.totalorder %s2093_s16, 3  ;;  %s2096_s21 = smov [#allocation10]  }
  0x1c   : > { %s398_s22 = sshll.u32 %s2096_s21, 4  ;;  %s2097_s23 = smov [#allocation13]   ;;  %s2231_s22 = int_to_ptr.vmem [resolvable:$true] %s398_s22 }
  0x1d   : > { %p2224_p3 = pnand %p1301_p0, %p374_p2  ;;  %s422_s24 = sshll.u32 %s2097_s23, 4  ;;  %s2239_s24 = int_to_ptr.vmem [resolvable:$true] %s422_s24 }
  0x1e   : > { %s2098_s26 = smov [#allocation16]   ;;  %s2808_s2 = sld [smem:[#allocation42_spill]] }
  0x1f   : > { %s2805_s20 = scalar_select %p2224_p3, 1, 0 }
  0x20   : > { %p1450_p5 = pneg %p2224_p3  ;;  %s2241_s27 = sshll.u32 %s2098_s26, 4  ;;  %s445_s27 = int_to_ptr.vmem [resolvable:$true] %s2241_s27 }
  0x21   : > { %2806 = sst [smem:[#allocation39_spill]] %s2805_s20 }
  0x22   : > { %p2235_p6 = pnand %p1450_p5, %p2789_p1 }
  0x24   : > { %s1599_s14 = scalar_lea.hbm %s2808_s2, 16  ;;  %p2251_p8 = pneg %p2235_p6 }
  0x25   : > { %p1600_p7 = scmp.ne.s32.totalorder %s2808_s2, %s1599_s14  ;;  %p1606_p11 = scmp.lt.u32.totalorder %s1599_s14, %s2808_s2 }
  0x27   : > { %p1602_p9 = pnand %p2251_p8, %p1600_p7 }
  0x29   : > { %p1603_p10 = pneg %p1602_p9 }
  0x2b   : > { %p1608_p12 = pnand %p1606_p11, %p1603_p10 }
  0x2d   : > { %1611 = shalt.err (!%p1608_p12)
}
  0x2e   : > { %s1612_s20 = scalar_lea.vmem %s2222_s18, 16  ;;  %s1619_s28 = scalar_lea.vmem %s2222_s18, 32 }
  0x2f   : > { %p1613_p13 = scmp.ne.s32.totalorder %s2222_s18, %s1612_s20  ;;  %p1620_p5 = scmp.lt.s32.totalorder %s2222_s18, %s2222_s18 }
  0x30   : > { %p1621_p7 = scmp.lt.s32.totalorder %s1619_s28, %s1612_s20 }
  0x31   : > { %p1615_p0 = pnand %p1613_p13, %p2251_p8 }
  0x32   : > { %p1622_p9 = por %p1621_p7, %p1620_p5 }
  0x33   : > { %p1616_p2 = pneg %p1615_p0 }
  0x35   : > { %p1623_p4 = pnand %p1622_p9, %p1616_p2 }
  0x37   : > { %1626 = shalt.err (!%p1623_p4)
}
  0x38   : > { %1453 = dma.hbm_to_vmem [thread:$0]  (!%p2235_p6), %s2808_s2, 16, %s2222_s18, [#allocation8]  }
  0x39   : > { %s2810_s3 = sld [smem:[#allocation43_spill]] }
  0x3f   : > { %s1627_s26 = scalar_lea.hbm %s2810_s3, 16 }
  0x40   : > { %p1628_p10 = scmp.ne.s32.totalorder %s2810_s3, %s1627_s26  ;;  %p1634_p4 = scmp.lt.u32.totalorder %s1627_s26, %s2810_s3 }
  0x42   : > { %p1630_p11 = pnand %p1628_p10, %p2251_p8 }
  0x44   : > { %p1631_p12 = pneg %p1630_p11 }
  0x46   : > { %p1636_p13 = pnand %p1634_p4, %p1631_p12 }
  0x48   : > { %1639 = shalt.err (!%p1636_p13)
}
  0x49   : > { %s1640_s18 = scalar_lea.vmem %s2231_s22, 16  ;;  %s1647_s0 = scalar_lea.vmem %s2231_s22, 32 }
  0x4a   : > { %p1641_p0 = scmp.ne.s32.totalorder %s2231_s22, %s1640_s18  ;;  %p1648_p7 = scmp.lt.s32.totalorder %s2231_s22, %s2231_s22 }
  0x4b   : > { %p1649_p9 = scmp.lt.s32.totalorder %s1647_s0, %s1640_s18 }
  0x4c   : > { %p1643_p2 = pnand %p1641_p0, %p2251_p8 }
  0x4d   : > { %p1650_p10 = por %p1649_p9, %p1648_p7 }
  0x4e   : > { %p1644_p5 = pneg %p1643_p2 }
  0x50   : > { %p1651_p11 = pnand %p1650_p10, %p1644_p5 }
  0x52   : > { %1654 = shalt.err (!%p1651_p11)
}
  0x53   : > { %1456 = dma.hbm_to_vmem [thread:$0]  (!%p2235_p6), %s2810_s3, 16, %s2231_s22, [#allocation11]  }
  0x54   : > { %s2811_s5 = sld [smem:[#allocation45_spill]] }
  0x5a   : > { %s1655_s21 = scalar_lea.hbm %s2811_s5, 16 }
  0x5b   : > { %p1656_p12 = scmp.ne.s32.totalorder %s2811_s5, %s1655_s21  ;;  %p1662_p0 = scmp.lt.u32.totalorder %s1655_s21, %s2811_s5 }
  0x5d   : > { %p1658_p4 = pnand %p1656_p12, %p2251_p8 }
  0x5f   : > { %p1659_p13 = pneg %p1658_p4 }
  0x61   : > { %p1664_p2 = pnand %p1662_p0, %p1659_p13 }
  0x63   : > { %1667 = shalt.err (!%p1664_p2)
}
  0x64   : > { %s1668_s22 = scalar_lea.vmem %s2239_s24, 16  ;;  %s1675_s0 = scalar_lea.vmem %s2239_s24, 32 }
  0x65   : > { %p1669_p5 = scmp.ne.s32.totalorder %s2239_s24, %s1668_s22  ;;  %p1676_p10 = scmp.lt.s32.totalorder %s2239_s24, %s2239_s24 }
  0x66   : > { %p1677_p11 = scmp.lt.s32.totalorder %s1675_s0, %s1668_s22 }
  0x67   : > { %p1671_p7 = pnand %p1669_p5, %p2251_p8 }
  0x68   : > { %p1678_p12 = por %p1677_p11, %p1676_p10 }
  0x69   : > { %p1672_p9 = pneg %p1671_p7 }
  0x6b   : > { %p1679_p4 = pnand %p1678_p12, %p1672_p9 }
  0x6d   : > { %1682 = shalt.err (!%p1679_p4)
}
  0x6e   : > { %1462 = dma.hbm_to_vmem [thread:$0]  (!%p2235_p6), %s2811_s5, 16, %s2239_s24, [#allocation14]  }
  0x6f   : > { %s2099_s14 = smov [#allocation19]   ;;  %s2812_s7 = sld [smem:[#allocation47_spill]] }
  0x70   : > { %s468_s17 = sshll.u32 %s2099_s14, 4  ;;  %s469_s17 = int_to_ptr.vmem [resolvable:$true] %s468_s17 }
  0x75   : > { %s1683_s20 = scalar_lea.hbm %s2812_s7, 16 }
  0x76   : > { %p1684_p13 = scmp.ne.s32.totalorder %s2812_s7, %s1683_s20  ;;  %p1690_p5 = scmp.lt.u32.totalorder %s1683_s20, %s2812_s7 }
  0x78   : > { %p1686_p0 = pnand %p1684_p13, %p2251_p8 }
  0x7a   : > { %p1687_p2 = pneg %p1686_p0 }
  0x7c   : > { %p1692_p7 = pnand %p1690_p5, %p1687_p2 }
  0x7e   : > { %1695 = shalt.err (!%p1692_p7)
}
  0x7f   : > { %s1696_s24 = scalar_lea.vmem %s445_s27, 16  ;;  %s1703_s19 = scalar_lea.vmem %s445_s27, 32 }
  0x80   : > { %p1697_p9 = scmp.ne.s32.totalorder %s445_s27, %s1696_s24  ;;  %p1704_p12 = scmp.lt.s32.totalorder %s445_s27, %s445_s27 }
  0x81   : > { %p1705_p4 = scmp.lt.s32.totalorder %s1703_s19, %s1696_s24 }
  0x82   : > { %p1699_p10 = pnand %p1697_p9, %p2251_p8 }
  0x83   : > { %p1706_p1 = por %p1705_p4, %p1704_p12 }
  0x84   : > { %p1700_p11 = pneg %p1699_p10 }
  0x86   : > { %p1707_p3 = pnand %p1706_p1, %p1700_p11 }
  0x88   : > { %1710 = shalt.err (!%p1707_p3)
}
  0x89   : > { %1468 = dma.hbm_to_vmem [thread:$0]  (!%p2235_p6), %s2812_s7, 16, %s445_s27, [#allocation17]  }
  0x8a   : > { %s1711_s20 = scalar_lea.hbm %s2776_s9, 16 }
  0x8b   : > { %p1712_p13 = scmp.ne.s32.totalorder %s2776_s9, %s1711_s20  ;;  %p1718_p3 = scmp.lt.u32.totalorder %s1711_s20, %s2776_s9 }
  0x8d   : > { %p1714_p0 = pnand %p1712_p13, %p2251_p8 }
  0x8f   : > { %p1715_p1 = pneg %p1714_p0 }
  0x91   : > { %p1720_p2 = pnand %p1718_p3, %p1715_p1 }
  0x93   : > { %1723 = shalt.err (!%p1720_p2)
}
  0x94   : > { %s1724_s24 = scalar_lea.vmem %s469_s17, 16  ;;  %s1731_s27 = scalar_lea.vmem %s469_s17, 32 }
  0x95   : > { %p1725_p5 = scmp.ne.s32.totalorder %s469_s17, %s1724_s24  ;;  %p1732_p10 = scmp.lt.s32.totalorder %s469_s17, %s469_s17 }
  0x96   : > { %p1733_p11 = scmp.lt.s32.totalorder %s1731_s27, %s1724_s24 }
  0x97   : > { %p1727_p7 = pnand %p1725_p5, %p2251_p8 }
  0x98   : > { %p1734_p12 = por %p1733_p11, %p1732_p10 }
  0x99   : > { %p1728_p9 = pneg %p1727_p7 }
  0x9b   : > { %p1735_p4 = pnand %p1734_p12, %p1728_p9 }
  0x9d   : > { %1738 = shalt.err (!%p1735_p4)
}
  0x9e   : > { %1474 = dma.hbm_to_vmem [thread:$0]  (!%p2235_p6), %s2776_s9, 16, %s469_s17, [#allocation20]  }
  0x9f   : > { %s2100_s14 = smov [#allocation22]   ;;  %s2101_s26 = smov [#allocation12]  }
  0xa0   : > { %s490_s21 = sshll.u32 %s2100_s14, 4  ;;  %s408_s20 = sshll.u32 %s2101_s26, 4  ;;  %s491_s21 = int_to_ptr.vmem [resolvable:$true] %s490_s21  ;;  %s409_s20 = int_to_ptr.vmem [resolvable:$true] %s408_s20 }
  0xa1   : > { %s1739_s22 = scalar_lea.hbm %s2778_s11, 16 }
  0xa2   : > { %p1740_p13 = scmp.ne.s32.totalorder %s2778_s11, %s1739_s22  ;;  %p1746_p3 = scmp.lt.u32.totalorder %s1739_s22, %s2778_s11 }
  0xa4   : > { %p1742_p0 = pnand %p1740_p13, %p2251_p8 }
  0xa6   : > { %p1743_p1 = pneg %p1742_p0 }
  0xa8   : > { %p1748_p2 = pnand %p1746_p3, %p1743_p1 }
  0xaa   : > { %1751 = shalt.err (!%p1748_p2)
}
  0xab   : > { %s1752_s17 = scalar_lea.vmem %s491_s21, 16  ;;  %s1759_s1 = scalar_lea.vmem %s491_s21, 32 }
  0xac   : > { %p1753_p5 = scmp.ne.s32.totalorder %s491_s21, %s1752_s17  ;;  %p1760_p10 = scmp.lt.s32.totalorder %s491_s21, %s491_s21 }
  0xad   : > { %p1761_p11 = scmp.lt.s32.totalorder %s1759_s1, %s1752_s17 }
  0xae   : > { %p1755_p7 = pnand %p1753_p5, %p2251_p8 }
  0xaf   : > { %p1762_p12 = por %p1761_p11, %p1760_p10 }
  0xb0   : > { %p1756_p9 = pneg %p1755_p7 }
  0xb2   : > { %p1763_p4 = pnand %p1762_p12, %p1756_p9 }
  0xb4   : > { %1766 = shalt.err (!%p1763_p4)
}
  0xb5   : > { %1480 = dma.hbm_to_vmem [thread:$0]  (!%p2235_p6), %s2778_s11, 16, %s491_s21, [#allocation23]  }
  0xb6   : > { %s2813_s4 = sld [smem:[#allocation44_spill]] }
  0xbc   : > { %s1767_s22 = scalar_lea.hbm %s2813_s4, 256 }
  0xbd   : > { %p1768_p13 = scmp.ne.s32.totalorder %s2813_s4, %s1767_s22  ;;  %p1774_p3 = scmp.lt.u32.totalorder %s1767_s22, %s2813_s4 }
  0xbf   : > { %p1770_p0 = pnand %p1768_p13, %p2251_p8 }
  0xc1   : > { %p1771_p1 = pneg %p1770_p0 }
  0xc3   : > { %p1776_p2 = pnand %p1774_p3, %p1771_p1 }
  0xc5   : > { %1779 = shalt.err (!%p1776_p2)
}
  0xc6   : > { %s1780_s17 = scalar_lea.vmem %s409_s20, 256  ;;  %p1788_p10 = scmp.lt.s32.totalorder %s409_s20, %s409_s20 }
  0xc7   : > { %p1781_p5 = scmp.ne.s32.totalorder %s409_s20, %s1780_s17  ;;  %p1789_p11 = scmp.lt.s32.totalorder %s1780_s17, %s1780_s17 }
  0xc9   : > { %p1783_p7 = pnand %p1781_p5, %p2251_p8  ;;  %p1790_p12 = por %p1789_p11, %p1788_p10 }
  0xcb   : > { %p1784_p9 = pneg %p1783_p7 }
  0xcd   : > { %p1791_p4 = pnand %p1790_p12, %p1784_p9 }
  0xcf   : > { %1794 = shalt.err (!%p1791_p4)
}
  0xd0   : > { %s2102_s21 = smov 64   ;;  %s2103_s1 = smov 4  }
  0xd1   : > { %1459 = dma.hbm_to_vmem [thread:$0]  (!%p2235_p6), %s2813_s4, 256, %s409_s20, [#allocation11], %s2102_s21, %s2102_s21, %s2103_s1  }
  0xd2   : > { %s2104_s28 = smov [#allocation15]   ;;  %s2105_s22 = smov [#allocation18]  }
  0xd3   : > { %s433_s18 = sshll.u32 %s2104_s28, 4  ;;  %s454_s0 = sshll.u32 %s2105_s22, 4  ;;  %s434_s18 = int_to_ptr.vmem [resolvable:$true] %s433_s18  ;;  %s455_s0 = int_to_ptr.vmem [resolvable:$true] %s454_s0 }
  0xd4   : > { %s2814_s6 = sld [smem:[#allocation46_spill]] }
  0xda   : > { %s1795_s19 = scalar_lea.hbm %s2814_s6, 16 }
  0xdb   : > { %p1796_p13 = scmp.ne.s32.totalorder %s2814_s6, %s1795_s19  ;;  %p1802_p3 = scmp.lt.u32.totalorder %s1795_s19, %s2814_s6 }
  0xdd   : > { %p1798_p0 = pnand %p1796_p13, %p2251_p8 }
  0xdf   : > { %p1799_p1 = pneg %p1798_p0 }
  0xe1   : > { %p1804_p2 = pnand %p1802_p3, %p1799_p1 }
  0xe3   : > { %1807 = shalt.err (!%p1804_p2)
}
  0xe4   : > { %s1808_s20 = scalar_lea.vmem %s434_s18, 16  ;;  %s1815_s14 = scalar_lea.vmem %s434_s18, 32 }
  0xe5   : > { %p1809_p5 = scmp.ne.s32.totalorder %s434_s18, %s1808_s20  ;;  %p1816_p10 = scmp.lt.s32.totalorder %s434_s18, %s434_s18 }
  0xe6   : > { %p1817_p11 = scmp.lt.s32.totalorder %s1815_s14, %s1808_s20 }
  0xe7   : > { %p1811_p7 = pnand %p1809_p5, %p2251_p8 }
  0xe8   : > { %p1818_p12 = por %p1817_p11, %p1816_p10 }
  0xe9   : > { %p1812_p9 = pneg %p1811_p7 }
  0xeb   : > { %p1819_p4 = pnand %p1818_p12, %p1812_p9 }
  0xed   : > { %1822 = shalt.err (!%p1819_p4)
}
  0xee   : > { %1465 = dma.hbm_to_vmem [thread:$0]  (!%p2235_p6), %s2814_s6, 16, %s434_s18, [#allocation14]  }
  0xef   : > { %s2815_s8 = sld [smem:[#allocation48_spill]] }
  0xf5   : > { %s1823_s28 = scalar_lea.hbm %s2815_s8, 384 }
  0xf6   : > { %p1824_p13 = scmp.ne.s32.totalorder %s2815_s8, %s1823_s28  ;;  %p1830_p3 = scmp.lt.u32.totalorder %s1823_s28, %s2815_s8 }
  0xf8   : > { %p1826_p0 = pnand %p1824_p13, %p2251_p8 }
  0xfa   : > { %p1827_p1 = pneg %p1826_p0 }
  0xfc   : > { %p1832_p2 = pnand %p1830_p3, %p1827_p1 }
  0xfe   : > { %1835 = shalt.err (!%p1832_p2)
}
  0xff   : > { %s1836_s17 = scalar_lea.vmem %s455_s0, 384  ;;  %p1844_p10 = scmp.lt.s32.totalorder %s455_s0, %s455_s0 }
 0x100   : > { %p1837_p5 = scmp.ne.s32.totalorder %s455_s0, %s1836_s17  ;;  %p1845_p11 = scmp.lt.s32.totalorder %s1836_s17, %s1836_s17 }
 0x102   : > { %p1839_p7 = pnand %p1837_p5, %p2251_p8  ;;  %p1846_p12 = por %p1845_p11, %p1844_p10 }
 0x104   : > { %p1840_p9 = pneg %p1839_p7 }
 0x106   : > { %p1847_p4 = pnand %p1846_p12, %p1840_p9 }
 0x108   : > { %1850 = shalt.err (!%p1847_p4)
}
 0x109   : > { %1471 = dma.hbm_to_vmem [thread:$0]  (!%p2235_p6), %s2815_s8, 384, %s455_s0, [#allocation17], %s2102_s21, %s2102_s21, %s2103_s1  }
 0x10a   : > { %s2106_s14 = smov [#allocation21]   ;;  %s2107_s26 = smov [#allocation24]  }
 0x10b   : > { %s479_s2 = sshll.u32 %s2106_s14, 4  ;;  %s500_s3 = sshll.u32 %s2107_s26, 4  ;;  %s480_s2 = int_to_ptr.vmem [resolvable:$true] %s479_s2  ;;  %s501_s3 = int_to_ptr.vmem [resolvable:$true] %s500_s3 }
 0x10c   : > { %s1851_s22 = scalar_lea.hbm %s2777_s10, 16 }
 0x10d   : > { %p1852_p13 = scmp.ne.s32.totalorder %s2777_s10, %s1851_s22  ;;  %p1858_p3 = scmp.lt.u32.totalorder %s1851_s22, %s2777_s10 }
 0x10f   : > { %p1854_p0 = pnand %p1852_p13, %p2251_p8 }
 0x111   : > { %p1855_p1 = pneg %p1854_p0 }
 0x113   : > { %p1860_p2 = pnand %p1858_p3, %p1855_p1 }
 0x115   : > { %1863 = shalt.err (!%p1860_p2)
}
 0x116   : > { %s1864_s0 = scalar_lea.vmem %s480_s2, 16  ;;  %s1871_s18 = scalar_lea.vmem %s480_s2, 32 }
 0x117   : > { %p1865_p5 = scmp.ne.s32.totalorder %s480_s2, %s1864_s0  ;;  %p1872_p10 = scmp.lt.s32.totalorder %s480_s2, %s480_s2 }
 0x118   : > { %p1873_p11 = scmp.lt.s32.totalorder %s1871_s18, %s1864_s0 }
 0x119   : > { %p1867_p7 = pnand %p1865_p5, %p2251_p8 }
 0x11a   : > { %p1874_p12 = por %p1873_p11, %p1872_p10 }
 0x11b   : > { %p1868_p9 = pneg %p1867_p7 }
 0x11d   : > { %p1875_p4 = pnand %p1874_p12, %p1868_p9 }
 0x11f   : > { %1878 = shalt.err (!%p1875_p4)
}
 0x120   : > { %1477 = dma.hbm_to_vmem [thread:$0]  (!%p2235_p6), %s2777_s10, 16, %s480_s2, [#allocation20]  }
 0x121   : > { %s1879_s28 = scalar_lea.hbm %s2779_s12, 128 }
 0x122   : > { %p1880_p13 = scmp.ne.s32.totalorder %s2779_s12, %s1879_s28  ;;  %p1886_p3 = scmp.lt.u32.totalorder %s1879_s28, %s2779_s12 }
 0x124   : > { %p1882_p0 = pnand %p1880_p13, %p2251_p8 }
 0x126   : > { %p1883_p1 = pneg %p1882_p0 }
 0x128   : > { %p1888_p2 = pnand %p1886_p3, %p1883_p1 }
 0x12a   : > { %1891 = shalt.err (!%p1888_p2)
}
 0x12b   : > { %s1892_s17 = scalar_lea.vmem %s501_s3, 128  ;;  %p1900_p10 = scmp.lt.s32.totalorder %s501_s3, %s501_s3 }
 0x12c   : > { %p1893_p5 = scmp.ne.s32.totalorder %s501_s3, %s1892_s17  ;;  %p1901_p11 = scmp.lt.s32.totalorder %s1892_s17, %s1892_s17 }
 0x12e   : > { %p1895_p7 = pnand %p1893_p5, %p2251_p8  ;;  %p1902_p12 = por %p1901_p11, %p1900_p10 }
 0x130   : > { %p1896_p9 = pneg %p1895_p7 }
 0x132   : > { %p1903_p4 = pnand %p1902_p12, %p1896_p9 }
 0x134   : > { %1906 = shalt.err (!%p1903_p4)
}
 0x135   : > { %1483 = dma.hbm_to_vmem [thread:$0]  (!%p2235_p6), %s2779_s12, 128, %s501_s3, [#allocation23], %s2102_s21, %s2102_s21, %s2103_s1  }
 0x136   : > { %s2108_s18 = smov [#allocation25]   ;;  %s1907_s5 = scalar_lea.hbm %s2780_s13, 16 }
 0x137   : > { %s514_s20 = sshll.u32 %s2108_s18, 4  ;;  %p1908_p13 = scmp.ne.s32.totalorder %s2780_s13, %s1907_s5  ;;  %s515_s20 = int_to_ptr.vmem [resolvable:$true] %s514_s20 }
 0x138   : > { %p1914_p3 = scmp.lt.u32.totalorder %s1907_s5, %s2780_s13 }
 0x139   : > { %p1910_p0 = pnand %p1908_p13, %p2251_p8 }
 0x13b   : > { %p1911_p1 = pneg %p1910_p0 }
 0x13d   : > { %p1916_p2 = pnand %p1914_p3, %p1911_p1 }
 0x13f   : > { %1919 = shalt.err (!%p1916_p2)
}
 0x140   : > { %s1920_s21 = scalar_lea.vmem %s515_s20, 16  ;;  %s1927_s1 = scalar_lea.vmem %s515_s20, 32 }
 0x141   : > { %p1921_p5 = scmp.ne.s32.totalorder %s515_s20, %s1920_s21  ;;  %p1928_p10 = scmp.lt.s32.totalorder %s515_s20, %s515_s20 }
 0x142   : > { %p1929_p11 = scmp.lt.s32.totalorder %s1927_s1, %s1920_s21 }
 0x143   : > { %p1923_p7 = pnand %p1921_p5, %p2251_p8 }
 0x144   : > { %p1930_p12 = por %p1929_p11, %p1928_p10 }
 0x145   : > { %p1924_p9 = pneg %p1923_p7 }
 0x147   : > { %p1931_p4 = pnand %p1930_p12, %p1924_p9 }
 0x149   : > { %1934 = shalt.err (!%p1931_p4)
}
 0x14a   : > { %s2816_s23 = sld [smem:[#allocation38_spill]]  ;;  %s1300_s17 = sadd.s32 4294967294, %s2093_s16  }
 0x14b   : > { %1486 = dma.hbm_to_vmem [thread:$0]  (!%p2235_p6), %s2780_s13, 16, %s515_s20, [#allocation26]  }
 0x14c   : > { %s2495_s25 = sadd.s32 1, %s2093_s16   ;;  %s46_s0 = sadd.s32 1, %s2089_s15 }
 0x14d   : > { %s43_s2 = ssub.s32 %s2093_s16, %s2495_s25  ;;  %p53_p13 = scmp.ne.s32.totalorder %s2089_s15, %s2085_s30 }
 0x14e   : > { %p44_p8 = scmp.eq.s32.totalorder %s43_s2, 0  ;;  %p54_p0 = scmp.eq.s32.totalorder %s2093_s16, 0 }
 0x14f   : > { %p59_p1 = scmp.ne.s32.totalorder %s2085_s30, %s2081_s29  ;;  %p367_p7 = scmp.eq.s32.totalorder %s1300_s17, 1 }
 0x150   : > { %s2506_s18 = scalar_select %p44_p8, %s2089_s15, %s46_s0  }
 0x151   : > { %p2508_p3 = por %p54_p0, %p53_p13  ;;  %p2818_p2 = scmp.eq.s32.totalorder %s2816_s23, 0 }
 0x152   : > { %p361_p5 = scmp.eq.s32.totalorder %s2816_s23, 1  ;;  %p1510_p9 = scmp.lt.s32.totalorder %s2093_s16, 2 }
 0x153   : > { %p2514_p6 = por %p2818_p2, %p59_p1  ;;  %s525_s26 = sand.u32 1, %s2089_s15  }
 0x154   : > { %p2521_p10 = por %p361_p5, %p53_p13  ;;  %p2525_p11 = por %p367_p7, %p59_p1 }
 0x155   : > { %s2529_s22 = sshll.u32 %s525_s26, 4  ;;  %s2791_s24 = sshll.u32 %s2093_s16, 8 }
 0x156   : > { %s2820_s5 = scalar_select %p2521_p10, 1, 0 }
 0x157   : > { %s2821_s28 = scalar_select %p2525_p11, 1, 0 }
 0x158   : > { %s2822_s1 = sld [smem:[#allocation40_spill]]  ;;  %s529_s19 = scalar_lea.vmem [#allocation4], %s2529_s22 }
 0x159   : > { %s536_s23 = sshll.u32 %s529_s19, 4  ;;  %p2544_p12 = pnand %p1510_p9, %p2508_p3  ;;  %s2540_s23 = int_to_ptr.vmem [resolvable:$true] %s536_s23 }
 0x15a   : > { %s2548_s2 = scalar_lea.sflag [#allocation5], %s525_s26 }
 0x15b   : > { %p1937_p8 = pneg %p2544_p12 }
 0x15e   : > { %s2537_s3 = scalar_lea.hbm %s2822_s1, %s2791_s24  ;;  %s1940_s14 = scalar_lea.hbm %s2822_s1, 512 }
 0x15f   : > { %s1935_s0 = scalar_lea.hbm %s2537_s3, 256  ;;  %p1941_p1 = scmp.lt.u32.totalorder %s2537_s3, %s2822_s1 }
 0x160   : > { %p1936_p4 = scmp.ne.s32.totalorder %s2537_s3, %s1935_s0  ;;  %p1942_p3 = scmp.lt.u32.totalorder %s1940_s14, %s1935_s0 }
 0x161   : > { %p1944_p5 = scmp.lt.u32.totalorder %s1935_s0, %s2537_s3 }
 0x162   : > { %p1938_p13 = pnand %p1937_p8, %p1936_p4  ;;  %p1943_p2 = por %p1942_p3, %p1941_p1 }
 0x164   : > { %p1939_p0 = pneg %p1938_p13  ;;  %p1945_p7 = por %p1944_p5, %p1943_p2 }
 0x166   : > { %p1946_p9 = pnand %p1945_p7, %p1939_p0 }
 0x168   : > { %1949 = shalt.err (!%p1946_p9)
}
 0x169   : > { %s1950_s26 = scalar_lea.vmem %s2540_s23, 256  ;;  %s2109_s27 = smov [#allocation4]  }
 0x16a   : > { %p1951_p4 = scmp.ne.s32.totalorder %s2540_s23, %s1950_s26  ;;  %s1955_s21 = sshll.u32 %s2109_s27, 4  ;;  %s1956_s21 = int_to_ptr.vmem [resolvable:$false] %s1955_s21 }
 0x16b   : > { %s1957_s24 = scalar_lea.vmem %s1956_s21, 512  ;;  %p1958_p10 = scmp.lt.s32.totalorder %s2540_s23, %s1956_s21 }
 0x16c   : > { %p1953_p13 = pnand %p1951_p4, %p1937_p8  ;;  %p1959_p1 = scmp.lt.s32.totalorder %s1957_s24, %s1950_s26 }
 0x16e   : > { %p1954_p11 = pneg %p1953_p13  ;;  %p1960_p3 = por %p1959_p1, %p1958_p10 }
 0x170   : > { %p1961_p2 = pnand %p1960_p3, %p1954_p11 }
 0x172   : > { %1964 = shalt.err (!%p1961_p2)
}
 0x173   : > { %s2110_s0 = smov 128   ;;  %s2111_s14 = smov 8  }
 0x174   : > { %1490 = dma.hbm_to_vmem [thread:$0]  (!%p2544_p12), %s2537_s3, 256, %s2540_s23, %s2548_s2, %s2110_s0, %s2110_s0, %s2111_s14  }
 0x175   : > { %s2824_s19 = sshll.u32 %s2093_s16, 8  ;;  %s2825_s21 = sld [smem:[#allocation41_spill]] }
 0x176   : > { %s550_s1 = scalar_lea.vmem [#allocation7], %s2529_s22  ;;  %s546_s6 = sand.u32 1, %s2093_s16  }
 0x177   : > { %s557_s4 = sshll.u32 %s550_s1, 4  ;;  %s2590_s7 = scalar_lea.sflag [#allocation8], %s546_s6  ;;  %s2587_s4 = int_to_ptr.vmem [resolvable:$true] %s557_s4 }
 0x17b   : > { %s2584_s24 = scalar_lea.hbm %s2825_s21, %s2824_s19  ;;  %s1970_s2 = scalar_lea.hbm %s2825_s21, 512 }
 0x17c   : > { %s1965_s8 = scalar_lea.hbm %s2584_s24, 256  ;;  %p1971_p5 = scmp.lt.u32.totalorder %s2584_s24, %s2825_s21 }
 0x17d   : > { %p1966_p10 = scmp.ne.s32.totalorder %s2584_s24, %s1965_s8  ;;  %p1972_p7 = scmp.lt.u32.totalorder %s1970_s2, %s1965_s8 }
 0x17e   : > { %p1974_p4 = scmp.lt.u32.totalorder %s1965_s8, %s2584_s24 }
 0x17f   : > { %p1968_p11 = pnand %p1966_p10, %p1937_p8  ;;  %p1973_p9 = por %p1972_p7, %p1971_p5 }
 0x181   : > { %p1969_p0 = pneg %p1968_p11  ;;  %p1975_p13 = por %p1974_p4, %p1973_p9 }
 0x183   : > { %p1976_p1 = pnand %p1975_p13, %p1969_p0 }
 0x185   : > { %1979 = shalt.err (!%p1976_p1)
}
 0x186   : > { %s1980_s6 = scalar_lea.vmem %s2587_s4, 256  ;;  %s2112_s22 = smov [#allocation7]  }
 0x187   : > { %p1981_p3 = scmp.ne.s32.totalorder %s2587_s4, %s1980_s6  ;;  %s1985_s1 = sshll.u32 %s2112_s22, 4  ;;  %s1986_s1 = int_to_ptr.vmem [resolvable:$false] %s1985_s1 }
 0x188   : > { %s1987_s27 = scalar_lea.vmem %s1986_s1, 512  ;;  %p1988_p11 = scmp.lt.s32.totalorder %s2587_s4, %s1986_s1 }
 0x189   : > { %p1983_p2 = pnand %p1981_p3, %p1937_p8  ;;  %p1989_p5 = scmp.lt.s32.totalorder %s1987_s27, %s1980_s6 }
 0x18b   : > { %p1984_p10 = pneg %p1983_p2  ;;  %p1990_p7 = por %p1989_p5, %p1988_p11 }
 0x18d   : > { %p1991_p9 = pnand %p1990_p7, %p1984_p10 }
 0x18f   : > { %1994 = shalt.err (!%p1991_p9)
}
 0x190   : > { %1493 = dma.hbm_to_vmem [thread:$0]  (!%p2544_p12), %s2584_s24, 256, %s2587_s4, %s2590_s7, %s2110_s0, %s2110_s0, %s2111_s14  }
 0x191   : > { %s2826_s8 = sld [smem:[#allocation39_spill]] }
 0x197   : > { %p2827_p8 = scmp.ne.s32.totalorder %s2826_s8, 0 }
 0x198   : > { %s2622_s3 = sand.u32 (!%p2827_p8), 1, %s2085_s30  }
 0x199   : > { %569 = sbr.rel (%p2827_p8) target bundleno = 2208 (0x8a0), region = 76  ;;  %s2625_s23 = sshll.u32 (!%p2827_p8), %s2622_s3, 4 }
 0x19a   : > { %s572_s17 = scalar_lea.sflag (!%p2827_p8), [#allocation5], %s2622_s3  ;;  %s575_s2 = scalar_lea.vmem (!%p2827_p8), [#allocation4], %s2625_s23 }
 0x1a0   : > { %2040 = dma.done.wait (%p2514_p6), %s572_s17, 256  }
 0x1a1   : > { %2042 = vsyncadd (%p2514_p6), %s572_s17, 4294967040  ;;  %s2828_s4 = sld [smem:[#allocation38_spill]]  ;;  %s584_s14 = scalar_lea.vmem [#allocation7], %s2625_s23 }
 0x1a7   : > { %s580_s7 = sand.u32 1, %s2828_s4  }
 0x1a8   : > { %s581_s0 = scalar_lea.sflag [#allocation8], %s580_s7 }
 0x1a9   : > { %2044 = dma.done.wait (%p2514_p6), %s581_s0, 256  }
 0x1aa   : > { %2046 = vsyncadd (%p2514_p6), %s581_s0, 4294967040  ;;  %p2829_p12 = scmp.eq.s32.totalorder %s2828_s4, 0 }
 0x1ac   : > { %2048 = dma.done.wait (%p2829_p12), [#allocation8], 16   ;;  %p2830_p0 = pmov %p2829_p12 }
 0x1ae   : > { %2050 = vsyncadd (%p2830_p0), [#allocation8], 4294967280  ;;  %p2831_p4 = pmov %p2830_p0 }
 0x1af   : > { %p2832_p13 = pmov %p2830_p0 }
 0x1b0   : > { %2052 = dma.done.wait (%p2831_p4), [#allocation11], 272  }
 0x1b1   : > { %2054 = vsyncadd (%p2832_p13), [#allocation11], 4294967024  ;;  %p2833_p1 = pmov %p2830_p0 }
 0x1b2   : > { %p2834_p3 = pmov %p2830_p0 }
 0x1b3   : > { %2056 = dma.done.wait (%p2833_p1), [#allocation14], 32  }
 0x1b4   : > { %2058 = vsyncadd (%p2834_p3), [#allocation14], 4294967264  ;;  %p2835_p6 = pmov %p2830_p0 }
 0x1b5   : > { %p2836_p2 = pmov %p2830_p0 }
 0x1b6   : > { %2060 = dma.done.wait (%p2835_p6), [#allocation17], 400  }
 0x1b7   : > { %2062 = vsyncadd (%p2836_p2), [#allocation17], 4294966896  ;;  %p2837_p10 = pmov %p2830_p0 }
 0x1b8   : > { %p2838_p11 = pmov %p2830_p0 }
 0x1b9   : > { %2064 = dma.done.wait (%p2837_p10), [#allocation20], 32  }
 0x1ba   : > { %2066 = vsyncadd (%p2838_p11), [#allocation20], 4294967264  ;;  %p2839_p5 = pmov %p2830_p0 }
 0x1bb   : > { %p2840_p7 = pmov %p2830_p0 }
 0x1bc   : > { %2068 = dma.done.wait (%p2839_p5), [#allocation23], 144  }
 0x1bd   : > { %2070 = vsyncadd (%p2840_p7), [#allocation23], 4294967152  ;;  %p2841_p9 = pmov %p2830_p0 }
 0x1be   : > { %p2842_p8 = pmov %p2830_p0 }
 0x1bf   : > { %2072 = dma.done.wait (%p2841_p9), [#allocation26], 16  }
 0x1c0   : > { %2074 = vsyncadd (%p2842_p8), [#allocation26], 4294967280  ;;  %vm687_vm0 = vcmask 261120   ;;  %v2667_v0 = vld [vmem:[%s575_s2] sm:$0xff]  ;;  %v2669_v1 = vld [vmem:[%s575_s2 + $0x8] sm:$0xff]  ;;  %v2113_v15 = vmov 0.0  }
 0x1c1   : > { %v688_v2 = vsel %vm687_vm0, %v2667_v0, 0.0  ;;  %v691_v3 = vsel %vm687_vm0, %v2669_v1, 0.0  ;;  %v1581_v14 = vld [vmem:[#allocation12] sm:$0xff]   ;;  %1372 = vmatprep.subr.bf16.mxu0 %v2113_v15  ;;  %vm2114_vm1 = vmmov 0   ;;  %v1582_v16 = vld [vmem:[#allocation12 + $0x8] sm:$0xff]   ;;  %1380 = vmatprep.subr.bf16.mxu1 %v2113_v15  ;;  %vm803_vm2 = vcmask 130048  }
 0x1c2   : > { %689 = vadd.xlane.f32.xlu0 %v688_v2  ;;  %1376 = vmatprep.mubr.msk.bf16.mxu0 %vm2114_vm1, %v2113_v15  ;;  %v1337_v24 = vld [vmem:[#allocation9] ss:$0 sm:$0xff]  ;;  %v1338_v28 = vld [vmem:[#allocation10] ss:$0 sm:$0xff]  ;;  %863 = vst.msk [vmem:[#allocation2] sm:$0xff] %vm803_vm2, %v2113_v15  ;;  %864 = vst.msk [vmem:[#allocation2 + $0x18] sm:$0xff] %vm803_vm2, %v2113_v15 }
 0x1c3   : > { %1373 = vmatpush3.bf16.msra.mxu0 %v1581_v14  ;;  %1386 = vmatprep.mubr.msk.bf16.mxu1 %vm2114_vm1, %v2113_v15  ;;  %v1339_v36 = vld [vmem:[#allocation13] ss:$0 sm:$0xff]  ;;  %v2115_v45 = vmov 0   ;;  %v850_v56 = vld [vmem:[%s584_s14 + $0x8] sm:$0xff]  ;;  %s2116_s20 = smov 16   ;;  %s2117_s24 = smov 32  }
 0x1c4   : > { %1374 = vmatprep.subr.bf16.mxu0 %v2113_v15  ;;  %1579 = vset.pattern.permute.xlu0 %v2115_v45  ;;  %v849_v57 = vld [vmem:[%s584_s14] sm:$0xff]  ;;  %vm878_vm3 = vcmask 261248   ;;  %vm887_vm4 = vcmask 392448   ;;  %vm921_vm5 = vcmask 392192   ;;  %s1362_s19 = sshll.u32 %s2828_s4, 8  ;;  %s681_s26 = scalar_lea.vmem [#allocation27], %s2625_s23 }
 0x1c5   : > { %1580 = vset.pattern.permute.xlu1 %v2115_v45  ;;  %s1090_s6 = sshll.u32 %s681_s26, 4  ;;  %s2843_s27 = sld [smem:[#allocation49_spill]]  ;;  %s2720_s6 = int_to_ptr.vmem [resolvable:$true] %s1090_s6 }
 0x1c6   : > { %692 = vadd.xlane.f32.xlu0 %v691_v3  ;;  %v1343_v3 = vld [vmem:[#allocation15] ss:$0 sm:$0xff]  ;;  %s1077_s23 = scalar_lea.sflag [#allocation6], %s2622_s3  ;;  %s1995_s17 = scalar_lea.vmem %s2720_s6, 256 }
 0x1c7   : > { %1375 = vmatpush3.bf16.msra.mxu0 %v1582_v16  ;;  %p1996_p12 = scmp.ne.s32.totalorder %s2720_s6, %s1995_s17  ;;  %p2844_p0 = scmp.ne.s32.totalorder %s2820_s5, 0 }
 0x1c8   : > { %1390 = vmatprep.subr.bf16.mxu0 %v2113_v15  ;;  %s2118_s2 = smov [#allocation27]  }
 0x1c9   : > { %p1997_p4 = pnand %p1996_p12, %p2844_p0  ;;  %s1999_s4 = sshll.u32 %s2118_s2, 4  ;;  %s2000_s4 = int_to_ptr.vmem [resolvable:$false] %s1999_s4 }
 0x1ca   : > { %s2001_s7 = scalar_lea.vmem %s2000_s4, 512  ;;  %p2002_p1 = scmp.lt.s32.totalorder %s2720_s6, %s2000_s4 }
 0x1cb   : > { %s2718_s8 = scalar_lea.hbm %s2843_s27, %s1362_s19  ;;  %p1998_p13 = pneg %p1997_p4 }
 0x1cc   : > { %p2003_p3 = scmp.lt.s32.totalorder %s2001_s7, %s1995_s17 }
 0x1ce   : > { %p2004_p6 = por %p2003_p3, %p2002_p1 }
 0x1d0   : > { %p2005_p2 = pnand %p2004_p6, %p1998_p13 }
 0x24f   : > { %v690_v4 = vpop.xlane.xlu0 %689 }
 0x250   : > { %v695_v5 = vmul.f32 0.03125, %v690_v4 }
 0x252   : > { %v697_v6 = vsub.f32 %v2667_v0, %v695_v5 }
 0x253   : > { %v693_v7 = vpop.xlane.xlu0 %692 }
 0x254   : > { %v696_v8 = vmul.f32 0.03125, %v693_v7  ;;  %v699_v9 = vmul.f32 %v697_v6, %v697_v6 }
 0x256   : > { %v698_v10 = vsub.f32 %v2669_v1, %v696_v8  ;;  %v701_v11 = vsel %vm687_vm0, %v699_v9, 0.0 }
 0x257   : > { %702 = vadd.xlane.f32.xlu1 %v701_v11 }
 0x258   : > { %v700_v12 = vmul.f32 %v698_v10, %v698_v10 }
 0x25a   : > { %v704_v13 = vsel %vm687_vm0, %v700_v12, 0.0 }
 0x25b   : > { %705 = vadd.xlane.f32.xlu1 %v704_v13 }
 0x2e4   : > { %v703_v17 = vpop.xlane.xlu1 %702 }
 0x2e5   : > { %v707_v18 = vmul.f32 0.03125, %v703_v17 }
 0x2e7   : > { %v709_v19 = vadd.f32 1e-05, %v707_v18  ;;  %v1583_v18 = vld [vmem:[#allocation18] sm:$0xff]  }
 0x2e8   : > { %v706_v20 = vpop.xlane.xlu1 %705  ;;  %1381 = vmatpush3.bf16.msra.mxu1 %v1583_v18 }
 0x2e9   : > { %1587 = vrsqrt.f32 %v709_v19  ;;  %v708_v21 = vmul.f32 0.03125, %v706_v20  ;;  %1382 = vmatprep.subr.bf16.mxu1 %v2113_v15  ;;  %v1584_v20 = vld [vmem:[#allocation18 + $0x8] sm:$0xff]  }
 0x2eb   : > { %v710_v22 = vadd.f32 1e-05, %v708_v21  ;;  %v1585_v21 = vld [vmem:[#allocation18 + $0x10] sm:$0xff]  }
 0x2ec   : > { %1383 = vmatpush3.bf16.msra.mxu1 %v1584_v20 }
 0x2ed   : > { %1589 = vrsqrt.f32 %v710_v22  ;;  %1384 = vmatprep.subr.bf16.mxu1 %v2113_v15 }
 0x2f0   : > { %1385 = vmatpush3.bf16.msra.mxu1 %v1585_v21 }
 0x2f3   : > { %v1588_v23 = vpop.eup %1587 }
 0x2f4   : > { %v713_v25 = vmul.f32 %v1588_v23, %v697_v6  ;;  %v1344_v6 = vld [vmem:[#allocation16] ss:$0 sm:$0xff] }
 0x2f6   : > { %v721_v26 = vmul.f32 %v1337_v24, %v713_v25 }
 0x2f7   : > { %v1590_v27 = vpop.eup %1589 }
 0x2f8   : > { %v714_v29 = vmul.f32 %v1590_v27, %v698_v10  ;;  %v729_v31 = vadd.f32 %v1338_v28, %v721_v26 }
 0x2fa   : > { %v722_v30 = vmul.f32 %v1337_v24, %v714_v29  ;;  %v731_v33 = vmax.f32 %v729_v31, 0.0 }
 0x2fc   : > { %v730_v32 = vadd.f32 %v1338_v28, %v722_v30 }
 0x2fe   : > { %v732_v34 = vmax.f32 %v730_v32, 0.0 }
 0x300   : > { %v733_v35 = vpack.c.bf16 %v732_v34, %v731_v33  ;;  %v1345_v33 = vld [vmem:[#allocation19] ss:$0 sm:$0xff] }
 0x302   : > { %1377 = vmatmul.mubr.msk.bf16.vlgmr.msra.gmra.mrb[0].mxu0 %vm687_vm0, %v733_v35 }
 0x303   : > { %1392 = vmatprep.mubr.msk.bf16.mxu0 %vm2114_vm1, %v2113_v15 }
 0x3d5   : > { %v794_v37 = vpop.f32.mrb[0].mxu0 }
 0x3d6   : > { %v795_v38 = vadd.f32 %v1339_v36, %v794_v37  ;;  %v1378_v39 = vpop.f32.mrb[1].mxu0 }
 0x3d7   : > { %v797_v40 = vpop.f32.mrb[2].mxu0 }
 0x3d8   : > { %v798_v41 = vadd.f32 %v1339_v36, %v797_v40  ;;  %v1379_v42 = vpop.f32.mrb[3].mxu0  ;;  %v804_v43 = vsel %vm803_vm2, %v795_v38, 0.0 }
 0x3d9   : > { %805 = vadd.xlane.f32.xlu0 %v804_v43 }
 0x3da   : > { %v807_v44 = vsel %vm803_vm2, %v798_v41, 0.0 }
 0x3db   : > { %808 = vadd.xlane.f32.xlu1 %v807_v44 }
 0x466   : > { %v806_v46 = vpop.xlane.xlu0 %805 }
 0x467   : > { %v811_v47 = vmul.f32 0.0625, %v806_v46 }
 0x468   : > { %v809_v48 = vpop.xlane.xlu1 %808 }
 0x469   : > { %v813_v49 = vsub.f32 %v795_v38, %v811_v47  ;;  %v812_v50 = vmul.f32 0.0625, %v809_v48 }
 0x46b   : > { %v814_v51 = vsub.f32 %v798_v41, %v812_v50  ;;  %v815_v52 = vmul.f32 %v813_v49, %v813_v49 }
 0x46d   : > { %v817_v53 = vsel %vm803_vm2, %v815_v52, 0.0  ;;  %v816_v54 = vmul.f32 %v814_v51, %v814_v51  ;;  %v1586_v52 = vld [vmem:[#allocation24] sm:$0xff]  }
 0x46e   : > { %818 = vadd.xlane.f32.xlu0 %v817_v53  ;;  %1391 = vmatpush3.bf16.msra.mxu0 %v1586_v52 }
 0x46f   : > { %v820_v55 = vsel %vm803_vm2, %v816_v54, 0.0 }
 0x470   : > { %821 = vadd.xlane.f32.xlu1 %v820_v55 }
 0x481   : > { %858 = vperm.xlu1 %1580, %v850_v56  }
 0x484   : > { %853 = vperm.xlu0 %1579, %v849_v57  }
 0x4fb   : > { %v819_v58 = vpop.xlane.xlu0 %818 }
 0x4fc   : > { %v823_v59 = vmul.f32 0.0625, %v819_v58 }
 0x4fd   : > { %v822_v60 = vpop.xlane.xlu1 %821 }
 0x4fe   : > { %v825_v61 = vadd.f32 1e-05, %v823_v59  ;;  %v824_v62 = vmul.f32 0.0625, %v822_v60  ;;  %v1350_v60 = vld [vmem:[#allocation21] ss:$0 sm:$0xff] }
 0x500   : > { %1591 = vrsqrt.f32 %v825_v61  ;;  %v826_v63 = vadd.f32 1e-05, %v824_v62 }
 0x501   : > { %v859_v14 = vpop.permute.xlu1 %858 }
 0x502   : > { %1593 = vrsqrt.f32 %v826_v63 }
 0x503   : > { %v854_v11 = vpop.permute.xlu0 %853 }
 0x50a   : > { %v1592_v2 = vpop.eup %1591 }
 0x50b   : > { %v829_v4 = vmul.f32 %v1592_v2, %v813_v49  ;;  %v1351_v2 = vld [vmem:[#allocation22] ss:$0 sm:$0xff] }
 0x50c   : > { %v1594_v5 = vpop.eup %1593 }
 0x50d   : > { %v837_v7 = vmul.f32 %v1343_v3, %v829_v4  ;;  %v830_v8 = vmul.f32 %v1594_v5, %v814_v51 }
 0x50f   : > { %v845_v9 = vadd.f32 %v1344_v6, %v837_v7  ;;  %v838_v10 = vmul.f32 %v1343_v3, %v830_v8 }
 0x511   : > { %v847_v12 = vmax.f32 %v845_v9, 0.0  ;;  %v846_v13 = vadd.f32 %v1344_v6, %v838_v10  ;;  %v1352_v10 = vld [vmem:[#allocation25] ss:$0 sm:$0xff] }
 0x513   : > { %v861_v16 = vmul.f32 %v854_v11, %v847_v12  ;;  %v848_v17 = vmax.f32 %v846_v13, 0.0 }
 0x515   : > { %865 = vst.msk [vmem:[#allocation2 + $0x8] sm:$0xff] %vm803_vm2, %v861_v16  ;;  %v862_v19 = vmul.f32 %v859_v14, %v848_v17 }
 0x517   : > { %866 = vst.msk [vmem:[#allocation2 + $0x10] sm:$0xff] %vm803_vm2, %v862_v19 }
 0x51c   : > { %v871_v22 = vld [vmem:[#allocation2 + $0x8] sm:$0xff] }
 0x51d   : > { %v867_v25 = vld [vmem:[#allocation2 + $0x7] sm:$0xff] }
 0x51e   : > { %v872_v23 = vld [vmem:[#allocation2 + $0x10] sm:$0xff] }
 0x51f   : > { %v873_v24 = vpack.c.bf16 %v872_v23, %v871_v22  ;;  %v868_v26 = vld [vmem:[#allocation2 + $0xf] sm:$0xff] }
 0x520   : > { %v880_v27 = vld [vmem:[#allocation2 + $0x9] sm:$0xff]  ;;  %v881_v28 = vld [vmem:[#allocation2 + $0x11] sm:$0xff]  ;;  %v869_v29 = vpack.c.bf16 %v868_v26, %v867_v25 }
 0x521   : > { %875 = vrot.lane.b32.xlu1 %v873_v24, %s2116_s20  ;;  %v882_v30 = vpack.c.bf16 %v881_v28, %v880_v27 }
 0x522   : > { %870 = vst.msk [vmem:[#allocation3] sm:$0xff] %vm803_vm2, %v869_v29 }
 0x525   : > { %884 = vrot.lane.b32.xlu1 %v882_v30, %s2117_s24 }
 0x593   : > { %v876_v31 = vpop.permute.xlu1 %875 }
 0x594   : > { %879 = vst.msk [vmem:[#allocation3] sm:$0xff] %vm878_vm3, %v876_v31 }
 0x597   : > { %v885_v15 = vpop.permute.xlu1 %884 }
 0x598   : > { %888 = vst.msk [vmem:[#allocation3] sm:$0xff] %vm887_vm4, %v885_v15 }
 0x59f   : > { %v889_v32 = vld [vmem:[#allocation3] sm:$0xff] }
 0x5a0   : > { %1387 = vmatmul.mubr.msk.bf16.vlgmr.msra.gmra.mrb[0].mxu1 %vm921_vm5, %v889_v32 }
 0x673   : > { %v959_v34 = vpop.f32.mrb[0].mxu1 }
 0x674   : > { %v960_v35 = vadd.f32 %v1345_v33, %v959_v34  ;;  %v1388_v36 = vpop.f32.mrb[1].mxu1 }
 0x675   : > { %v962_v37 = vpop.f32.mrb[2].mxu1 }
 0x676   : > { %v963_v38 = vadd.f32 %v1345_v33, %v962_v37  ;;  %v1389_v39 = vpop.f32.mrb[3].mxu1  ;;  %v968_v40 = vsel %vm803_vm2, %v960_v35, 0.0 }
 0x677   : > { %969 = vadd.xlane.f32.xlu1 %v968_v40 }
 0x678   : > { %v971_v41 = vsel %vm803_vm2, %v963_v38, 0.0 }
 0x679   : > { %972 = vadd.xlane.f32.xlu0 %v971_v41 }
 0x704   : > { %v970_v42 = vpop.xlane.xlu1 %969 }
 0x705   : > { %v974_v43 = vmul.f32 0.0625, %v970_v42 }
 0x706   : > { %v973_v44 = vpop.xlane.xlu0 %972 }
 0x707   : > { %v976_v45 = vsub.f32 %v960_v35, %v974_v43  ;;  %v975_v46 = vmul.f32 0.0625, %v973_v44 }
 0x709   : > { %v977_v47 = vsub.f32 %v963_v38, %v975_v46  ;;  %v978_v48 = vmul.f32 %v976_v45, %v976_v45 }
 0x70b   : > { %v980_v49 = vsel %vm803_vm2, %v978_v48, 0.0  ;;  %v979_v50 = vmul.f32 %v977_v47, %v977_v47 }
 0x70c   : > { %981 = vadd.xlane.f32.xlu1 %v980_v49 }
 0x70d   : > { %v983_v51 = vsel %vm803_vm2, %v979_v50, 0.0 }
 0x710   : > { %984 = vadd.xlane.f32.xlu1 %v983_v51 }
 0x799   : > { %v982_v53 = vpop.xlane.xlu1 %981 }
 0x79a   : > { %v986_v54 = vmul.f32 0.0625, %v982_v53 }
 0x79c   : > { %v988_v55 = vadd.f32 1e-05, %v986_v54 }
 0x79d   : > { %v985_v56 = vpop.xlane.xlu1 %984 }
 0x79e   : > { %1595 = vrsqrt.f32 %v988_v55  ;;  %v987_v57 = vmul.f32 0.0625, %v985_v56 }
 0x7a0   : > { %v989_v58 = vadd.f32 1e-05, %v987_v57 }
 0x7a2   : > { %1597 = vrsqrt.f32 %v989_v58 }
 0x7a8   : > { %v1596_v59 = vpop.eup %1595 }
 0x7a9   : > { %v992_v61 = vmul.f32 %v1596_v59, %v976_v45 }
 0x7ab   : > { %v1000_v62 = vmul.f32 %v1350_v60, %v992_v61 }
 0x7ac   : > { %v1598_v63 = vpop.eup %1597 }
 0x7ad   : > { %v993_v3 = vmul.f32 %v1598_v63, %v977_v47  ;;  %v1008_v5 = vadd.f32 %v1351_v2, %v1000_v62 }
 0x7af   : > { %v1001_v4 = vmul.f32 %v1350_v60, %v993_v3  ;;  %v1010_v7 = vmax.f32 %v1008_v5, 0.0 }
 0x7b1   : > { %v1009_v6 = vadd.f32 %v1351_v2, %v1001_v4 }
 0x7b3   : > { %v1011_v8 = vmax.f32 %v1009_v6, 0.0 }
 0x7b5   : > { %v1012_v9 = vpack.c.bf16 %v1011_v8, %v1010_v7 }
 0x7b7   : > { %1393 = vmatmul.mubr.msk.bf16.vlgmr.msra.gmra.mrb[4].mxu0 %vm803_vm2, %v1012_v9 }
 0x88a   : > { %v1065_v11 = vpop.f32.mrb[4].mxu0 }
 0x88b   : > { %v1066_v12 = vadd.f32 %v1352_v10, %v1065_v11  ;;  %v1394_v13 = vpop.f32.mrb[5].mxu0 }
 0x88c   : > { %v1068_v14 = vpop.f32.mrb[6].mxu0 }
 0x88d   : > { %v1072_v16 = vadd.f32 %v1066_v12, %v2667_v0  ;;  %v1069_v17 = vadd.f32 %v1352_v10, %v1068_v14  ;;  %v1395_v18 = vpop.f32.mrb[7].mxu0 }
 0x88f   : > { %1074 = vst.msk [vmem:[%s681_s26] sm:$0xff] %vm687_vm0, %v1072_v16  ;;  %v1073_v19 = vadd.f32 %v1069_v17, %v2669_v1 }
 0x891   : > { %1075 = vst.msk [vmem:[%s681_s26 + $0x8] sm:$0xff] %vm687_vm0, %v1073_v19 }
 0x892   : > { %2008 = shalt.err (!%p2005_p2)
}
 0x893   : > { %s2009_s0 = scalar_lea.hbm %s2718_s8, 256  ;;  %s2013_s24 = scalar_lea.hbm %s2843_s27, 512 }
 0x894   : > { %p2010_p10 = scmp.ne.s32.totalorder %s2718_s8, %s2009_s0  ;;  %p2014_p7 = scmp.lt.u32.totalorder %s2718_s8, %s2843_s27 }
 0x895   : > { %p2015_p9 = scmp.lt.u32.totalorder %s2013_s24, %s2009_s0  ;;  %p2017_p12 = scmp.lt.u32.totalorder %s2009_s0, %s2718_s8 }
 0x896   : > { %p2011_p11 = pnand %p2010_p10, %p2844_p0 }
 0x897   : > { %p2016_p8 = por %p2015_p9, %p2014_p7 }
 0x898   : > { %p2012_p5 = pneg %p2011_p11 }
 0x899   : > { %p2018_p4 = por %p2017_p12, %p2016_p8 }
 0x89b   : > { %p2019_p13 = pnand %p2018_p4, %p2012_p5 }
 0x89d   : > { %2022 = shalt.err (!%p2019_p13)
}
 0x89e   : > { %s2119_s22 = smov 128   ;;  %s2120_s1 = smov 8  }
 0x89f   : > { %1448 = dma.vmem_to_hbm [thread:$0]  (%p2844_p0), %s2720_s6, 256, %s2718_s8, %s1077_s23, %s2119_s22, %s2119_s22, %s2120_s1  }
 0x8a0 PF: > { %s1105_s17 = sand.u32 1, %s2081_s29   ;;  %p2845_p1 = scmp.ne.s32.totalorder %s2821_s28, 0 }
 0x8a1   : > { %p2846_p3 = scmp.ge.s32.totalorder %s2093_s16, 2  ;;  %s1106_s2 = scalar_lea.sflag [#allocation6], %s1105_s17 }
 0x8a3   : > { %p1495_p6 = pnand %p2846_p3, %p2845_p1 }
 0x8a5   : > { %2076 = dma.done.wait (!%p1495_p6), %s1106_s2, 256  }
 0x8a6   : > { %2078 = vsyncadd (!%p1495_p6), %s1106_s2, 4294967040  ;;  %p36_p2 = scmp.ge.s32.totalorder %s2495_s25, 4   ;;  %s2847_s29 = smov %s2085_s30 }
 0x8a7   : > { %s2848_s30 = smov %s2089_s15  ;;  %s2849_s15 = smov %s2506_s18 }
 0x8a8   : > { %s2850_s16 = smov %s2495_s25  ;;  %38 = sbr.rel (!%p36_p2) target bundleno = 24 (0x18), region = 182 }
 0x8af   :  { %1111 = vsyncpa [#allocation5], 1 }
 0x8b0   :  { %1113 = vsyncpa [#allocation5 + $0x1], 1 }
 0x8b1   :  { %1114 = vsyncpa [#allocation8], 1 }
 0x8b2   :  { %1116 = vsyncpa [#allocation8 + $0x1], 1 }
 0x8b3   :  { %1117 = vsyncpa [#allocation11], 1 }
 0x8b4   :  { %1118 = vsyncpa [#allocation14], 1 }
 0x8b5   :  { %1119 = vsyncpa [#allocation17], 1 }
 0x8b6   :  { %1120 = vsyncpa [#allocation20], 1 }
 0x8b7   :  { %1121 = vsyncpa [#allocation23], 1 }
 0x8b8   :  { %1122 = vsyncpa [#allocation26], 1 }
 0x8b9   :  { %1123 = vsyncpa [#allocation6], 1 }
 0x8ba   :  { %1125 = vsyncpa [#allocation6 + $0x1], 1 }

// kernel: forward.15
= control target key start
LH: loop header
LB: loop body
LE: loop exit
PB: predicated region body
PF: predicated region fallthrough
CT: control target
= control target key end

     0   :  { %8 = vsyncpa [#allocation3], 0  ;;  %s365_s0 = inlined_call_operand.hbm [shape: f32[32,32], index: 0, kind: input, shape index: {}]   ;;  %s366_s1 = inlined_call_operand.hbm [shape: bf16[32,128], index: 1, kind: input, shape index: {}]   ;;  %s367_s2 = inlined_call_operand.hbm [shape: f32[1,128], index: 2, kind: input, shape index: {}]   ;;  %s368_s3 = inlined_call_operand.hbm [shape: f32[32,128], index: 3, kind: output, shape index: {}]  }
   0x1   :  { %9 = vsyncpa [#allocation6], 0 }
   0x2   :  { %10 = vsyncpa [#allocation4], 0  ;;  %s283_s12 = smov [#allocation5]   ;;  %s189_s16 = scalar_lea.hbm %s366_s1, 256 }
   0x3   :  { %s28_s13 = sshll.u32 %s283_s12, 4  ;;  %p190_p0 = scmp.ne.s32.totalorder %s366_s1, %s189_s16  ;;  %s29_s13 = int_to_ptr.vmem [resolvable:$true] %s28_s13 }
   0x4   :  { %p193_p1 = scmp.lt.u32.totalorder %s189_s16, %s366_s1 }
   0x6   :  { %p195_p2 = pnand %p193_p1, %p190_p0 }
   0x8   :  { %198 = shalt.err (!%p195_p2)
}
   0x9   :  { %s199_s21 = scalar_lea.vmem %s29_s13, 256  ;;  %p204_p4 = scmp.lt.s32.totalorder %s29_s13, %s29_s13 }
   0xa   :  { %p200_p3 = scmp.ne.s32.totalorder %s29_s13, %s199_s21  ;;  %p205_p5 = scmp.lt.s32.totalorder %s199_s21, %s199_s21 }
   0xc   :  { %p206_p6 = por %p205_p5, %p204_p4 }
   0xe   :  { %p207_p7 = pnand %p206_p6, %p200_p3 }
  0x10   :  { %210 = shalt.err (!%p207_p7)
}
  0x11   :  { %s284_s22 = smov 64   ;;  %s285_s23 = smov 4  }
  0x12   :  { %34 = dma.hbm_to_vmem [thread:$0]  %s366_s1, 256, %s29_s13, [#allocation6], %s284_s22, %s284_s22, %s285_s23  }
  0x13   :  { %s286_s26 = smov [#allocation2]   ;;  %s211_s30 = scalar_lea.hbm %s365_s0, 512 }
  0x14   :  { %s16_s27 = sshll.u32 %s286_s26, 4  ;;  %p212_p8 = scmp.ne.s32.totalorder %s365_s0, %s211_s30  ;;  %s17_s27 = int_to_ptr.vmem [resolvable:$true] %s16_s27 }
  0x15   :  { %p215_p9 = scmp.lt.u32.totalorder %s211_s30, %s365_s0 }
  0x17   :  { %p217_p10 = pnand %p215_p9, %p212_p8 }
  0x19   :  { %220 = shalt.err (!%p217_p10)
}
  0x1a   :  { %s221_s8 = scalar_lea.vmem %s17_s27, 512  ;;  %p226_p12 = scmp.lt.s32.totalorder %s17_s27, %s17_s27 }
  0x1b   :  { %p222_p11 = scmp.ne.s32.totalorder %s17_s27, %s221_s8  ;;  %p227_p13 = scmp.lt.s32.totalorder %s221_s8, %s221_s8 }
  0x1d   :  { %p228_p0 = por %p227_p13, %p226_p12 }
  0x1f   :  { %p229_p1 = pnand %p228_p0, %p222_p11 }
  0x21   :  { %232 = shalt.err (!%p229_p1)
}
  0x22   :  { %s287_s1 = smov 128   ;;  %s288_s9 = smov 8  }
  0x23   :  { %22 = dma.hbm_to_vmem [thread:$0]  %s365_s0, 512, %s17_s27, [#allocation3], %s287_s1, %s287_s1, %s288_s9  }
  0x24   :  { %s289_s12 = smov [#allocation7]   ;;  %s233_s16 = scalar_lea.hbm %s367_s2, 16 }
  0x25   :  { %s41_s13 = sshll.u32 %s289_s12, 4  ;;  %p234_p2 = scmp.ne.s32.totalorder %s367_s2, %s233_s16  ;;  %s42_s13 = int_to_ptr.vmem [resolvable:$true] %s41_s13 }
  0x26   :  { %p237_p3 = scmp.lt.u32.totalorder %s233_s16, %s367_s2 }
  0x28   :  { %p239_p4 = pnand %p237_p3, %p234_p2 }
  0x2a   :  { %242 = shalt.err (!%p239_p4)
}
  0x2b   :  { %s243_s21 = scalar_lea.vmem %s42_s13, 16  ;;  %s247_s0 = scalar_lea.vmem %s42_s13, 32 }
  0x2c   :  { %p244_p5 = scmp.ne.s32.totalorder %s42_s13, %s243_s21  ;;  %p248_p6 = scmp.lt.s32.totalorder %s42_s13, %s42_s13 }
  0x2d   :  { %p249_p7 = scmp.lt.s32.totalorder %s247_s0, %s243_s21 }
  0x2f   :  { %p250_p8 = por %p249_p7, %p248_p6 }
  0x31   :  { %p251_p9 = pnand %p250_p8, %p244_p5 }
  0x33   :  { %254 = shalt.err (!%p251_p9)
}
  0x34   :  { %44 = dma.hbm_to_vmem [thread:$0]  %s367_s2, 16, %s42_s13, [#allocation6]  }
  0x35   :  { %277 = dma.done.wait [#allocation3], 512  }
  0x36   :  { %278 = vsyncadd [#allocation3], 4294966784 }
  0x37   :  { %279 = dma.done.wait [#allocation6], 272  }
  0x38   :  { %280 = vsyncadd [#allocation6], 4294967024  ;;  %v187_v0 = vld [vmem:[#allocation5] sm:$0xff]   ;;  %v188_v1 = vld [vmem:[#allocation5 + $0x8] sm:$0xff]   ;;  %vm84_vm0 = vcmask 261120   ;;  %s290_s2 = smov [#allocation8]  }
  0x39   :  { %171 = vmatprep.subr.bf16.mxu0 %v187_v0  ;;  %v55_v2 = vld [vmem:[#allocation2] sm:$0xff]  ;;  %v56_v3 = vld [vmem:[#allocation2 + $0x8] sm:$0xff]  ;;  %v57_v5 = vld [vmem:[#allocation2 + $0x10] sm:$0xff]  ;;  %s149_s24 = sshll.u32 %s290_s2, 4  ;;  %s150_s24 = int_to_ptr.vmem [resolvable:$true] %s149_s24 }
  0x3a   :  { %172 = vmatpush3.bf16.msra.mxu0 %v187_v0  ;;  %v59_v4 = vpack.c.bf16 %v56_v3, %v55_v2  ;;  %v58_v6 = vld [vmem:[#allocation2 + $0x18] sm:$0xff]  ;;  %v162_v8 = vld [vmem:[#allocation7] ss:$0 sm:$0xff]  ;;  %s255_s25 = scalar_lea.vmem %s150_s24, 512  ;;  %p260_p11 = scmp.lt.s32.totalorder %s150_s24, %s150_s24 }
  0x3b   :  { %173 = vmatprep.subr.bf16.mxu0 %v188_v1  ;;  %v60_v7 = vpack.c.bf16 %v58_v6, %v57_v5  ;;  %p256_p10 = scmp.ne.s32.totalorder %s150_s24, %s255_s25  ;;  %p261_p12 = scmp.lt.s32.totalorder %s255_s25, %s255_s25 }
  0x3c   :  { %175 = vmatprep.mubr.msk.bf16.mxu0 %vm84_vm0, %v59_v4 }
  0x3d   :  { %p262_p13 = por %p261_p12, %p260_p11 }
  0x3e   :  { %174 = vmatpush3.bf16.msra.mxu0 %v188_v1 }
  0x3f   :  { %p263_p0 = pnand %p262_p13, %p256_p10 }
  0x41   :  { %176 = vmatmul.mubr.msk.bf16.vlgmr.msra.gmra.mrb[0].mxu0 %vm84_vm0, %v60_v7 }
 0x114   :  { %v177_v9 = vpop.f32.mrb[0].mxu0 }
 0x115   :  { %v134_v10 = vadd.f32 %v177_v9, %v162_v8  ;;  %v125_v11 = vpop.f32.mrb[1].mxu0 }
 0x116   :  { %v126_v12 = vadd.f32 %v162_v8, %v125_v11  ;;  %v178_v13 = vpop.f32.mrb[2].mxu0 }
 0x117   :  { %142 = vst [vmem:[#allocation8 + $0x10] sm:$0xff] %v134_v10  ;;  %v137_v14 = vadd.f32 %v178_v13, %v162_v8  ;;  %v128_v15 = vpop.f32.mrb[3].mxu0 }
 0x118   :  { %140 = vst [vmem:[#allocation8] sm:$0xff] %v126_v12  ;;  %v129_v16 = vadd.f32 %v162_v8, %v128_v15 }
 0x119   :  { %143 = vst [vmem:[#allocation8 + $0x18] sm:$0xff] %v137_v14 }
 0x11a   :  { %141 = vst [vmem:[#allocation8 + $0x8] sm:$0xff] %v129_v16 }
 0x11b   :  { %266 = shalt.err (!%p263_p0)
}
 0x11c   :  { %s267_s28 = scalar_lea.hbm %s368_s3, 512 }
 0x11d   :  { %p268_p1 = scmp.ne.s32.totalorder %s368_s3, %s267_s28  ;;  %p271_p2 = scmp.lt.u32.totalorder %s267_s28, %s368_s3 }
 0x11f   :  { %p273_p3 = pnand %p271_p2, %p268_p1 }
 0x121   :  { %276 = shalt.err (!%p273_p3)
}
 0x122   :  { %155 = dma.vmem_to_hbm [thread:$0]  %s150_s24, 512, %s368_s3, [#allocation4], %s287_s1, %s287_s1, %s288_s9  }
 0x123   :  { %281 = dma.done.wait [#allocation4], 512  }
 0x124   :  { %282 = vsyncadd [#allocation4], 4294966784 }
 0x125   :  { %159 = vsyncpa [#allocation3], 1 }
 0x126   :  { %160 = vsyncpa [#allocation6], 1 }
 0x127   :  { %161 = vsyncpa [#allocation4], 1 }

// kernel: forward.14
= control target key start
LH: loop header
LB: loop body
LE: loop exit
PB: predicated region body
PF: predicated region fallthrough
CT: control target
= control target key end

     0   :  { %s2767_s0 = inlined_call_operand.hbm [shape: f32[2,16,32], index: 0, kind: input, shape index: {}]   ;;  %s2768_s1 = inlined_call_operand.hbm [shape: f32[2,16,1], index: 1, kind: input, shape index: {}]   ;;  %s2769_s2 = inlined_call_operand.hbm [shape: f32[1,32], index: 2, kind: input, shape index: {}]   ;;  %s2770_s3 = inlined_call_operand.hbm [shape: f32[1,32], index: 3, kind: input, shape index: {}]   ;;  %s2771_s4 = inlined_call_operand.hbm [shape: bf16[32,16], index: 4, kind: input, shape index: {}]   ;;  %s2772_s5 = inlined_call_operand.hbm [shape: f32[1,16], index: 5, kind: input, shape index: {}]   ;;  %s2773_s6 = inlined_call_operand.hbm [shape: f32[1,16], index: 6, kind: input, shape index: {}]   ;;  %s2774_s7 = inlined_call_operand.hbm [shape: f32[1,16], index: 7, kind: input, shape index: {}]   ;;  %s2775_s8 = inlined_call_operand.hbm [shape: bf16[48,16], index: 8, kind: input, shape index: {}]   ;;  %s2776_s9 = inlined_call_operand.hbm [shape: f32[1,16], index: 9, kind: input, shape index: {}]   ;;  %s2777_s10 = inlined_call_operand.hbm [shape: f32[1,16], index: 10, kind: input, shape index: {}]   ;;  %s2778_s11 = inlined_call_operand.hbm [shape: f32[1,16], index: 11, kind: input, shape index: {}]   ;;  %s2779_s12 = inlined_call_operand.hbm [shape: bf16[16,32], index: 12, kind: input, shape index: {}]   ;;  %s2780_s13 = inlined_call_operand.hbm [shape: f32[1,32], index: 13, kind: input, shape index: {}]   ;;  %s2781_s14 = inlined_call_operand.hbm [shape: f32[2,16,32], index: 14, kind: output, shape index: {}]  }
   0x1   :  { %2794 = sst [smem:[#allocation40_spill]] %s2767_s0 }
   0x2   :  { %2795 = sst [smem:[#allocation41_spill]] %s2768_s1 }
   0x3   :  { %2796 = sst [smem:[#allocation42_spill]] %s2769_s2 }
   0x4   :  { %2797 = sst [smem:[#allocation43_spill]] %s2770_s3 }
   0x5   :  { %2798 = sst [smem:[#allocation44_spill]] %s2771_s4 }
   0x6   :  { %2799 = sst [smem:[#allocation45_spill]] %s2772_s5 }
   0x7   :  { %2800 = sst [smem:[#allocation46_spill]] %s2773_s6 }
   0x8   :  { %2801 = sst [smem:[#allocation47_spill]] %s2774_s7 }
   0x9   :  { %2802 = sst [smem:[#allocation48_spill]] %s2775_s8 }
   0xa   :  { %2803 = sst [smem:[#allocation49_spill]] %s2781_s14 }
   0xb   :  { %19 = vsyncpa [#allocation5], 0 }
   0xc   :  { %21 = vsyncpa [#allocation5 + $0x1], 0 }
   0xd   :  { %22 = vsyncpa [#allocation8], 0 }
   0xe   :  { %24 = vsyncpa [#allocation8 + $0x1], 0 }
   0xf   :  { %25 = vsyncpa [#allocation11], 0 }
  0x10   :  { %26 = vsyncpa [#allocation14], 0 }
  0x11   :  { %27 = vsyncpa [#allocation17], 0 }
  0x12   :  { %28 = vsyncpa [#allocation20], 0 }
  0x13   :  { %29 = vsyncpa [#allocation23], 0 }
  0x14   :  { %30 = vsyncpa [#allocation26], 0 }
  0x15   :  { %31 = vsyncpa [#allocation6], 0 }
  0x16   :  { %33 = vsyncpa [#allocation6 + $0x1], 0  ;;  %s2196_s29 = smov 0   ;;  %s2198_s30 = smov 0  }
  0x17   :  { %s2200_s15 = smov 0   ;;  %s2202_s16 = smov 0  }
  0x18 LB: > { %s2095_s17 = smov [#allocation9]   ;;  %s2217_s19 = sadd.s32 4294967295, %s2093_s16   ;;  %s2093_s16 = sphi %s2202_s16, %s2850_s16   ;;  %s2089_s15 = sphi %s2200_s15, %s2849_s15   ;;  %s2085_s30 = sphi %s2198_s30, %s2848_s30   ;;  %s2081_s29 = sphi %s2196_s29, %s2847_s29  }
  0x19   : > { %s387_s18 = sshll.u32 %s2095_s17, 4  ;;  %2804 = sst [smem:[#allocation38_spill]] %s2217_s19  ;;  %s2222_s18 = int_to_ptr.vmem [resolvable:$true] %s387_s18 }
  0x1a   : > { %p1301_p0 = scmp.ge.s32.totalorder %s2093_s16, 1  ;;  %p2789_p1 = scmp.eq.s32.totalorder %s2217_s19, 0 }
  0x1b   : > { %p374_p2 = scmp.lt.s32.totalorder %s2093_s16, 3  ;;  %s2096_s21 = smov [#allocation10]  }
  0x1c   : > { %s398_s22 = sshll.u32 %s2096_s21, 4  ;;  %s2097_s23 = smov [#allocation13]   ;;  %s2231_s22 = int_to_ptr.vmem [resolvable:$true] %s398_s22 }
  0x1d   : > { %p2224_p3 = pnand %p1301_p0, %p374_p2  ;;  %s422_s24 = sshll.u32 %s2097_s23, 4  ;;  %s2239_s24 = int_to_ptr.vmem [resolvable:$true] %s422_s24 }
  0x1e   : > { %s2098_s26 = smov [#allocation16]   ;;  %s2808_s2 = sld [smem:[#allocation42_spill]] }
  0x1f   : > { %s2805_s20 = scalar_select %p2224_p3, 1, 0 }
  0x20   : > { %p1450_p5 = pneg %p2224_p3  ;;  %s2241_s27 = sshll.u32 %s2098_s26, 4  ;;  %s445_s27 = int_to_ptr.vmem [resolvable:$true] %s2241_s27 }
  0x21   : > { %2806 = sst [smem:[#allocation39_spill]] %s2805_s20 }
  0x22   : > { %p2235_p6 = pnand %p1450_p5, %p2789_p1 }
  0x24   : > { %s1599_s14 = scalar_lea.hbm %s2808_s2, 16  ;;  %p2251_p8 = pneg %p2235_p6 }
  0x25   : > { %p1600_p7 = scmp.ne.s32.totalorder %s2808_s2, %s1599_s14  ;;  %p1606_p11 = scmp.lt.u32.totalorder %s1599_s14, %s2808_s2 }
  0x27   : > { %p1602_p9 = pnand %p2251_p8, %p1600_p7 }
  0x29   : > { %p1603_p10 = pneg %p1602_p9 }
  0x2b   : > { %p1608_p12 = pnand %p1606_p11, %p1603_p10 }
  0x2d   : > { %1611 = shalt.err (!%p1608_p12)
}
  0x2e   : > { %s1612_s20 = scalar_lea.vmem %s2222_s18, 16  ;;  %s1619_s28 = scalar_lea.vmem %s2222_s18, 32 }
  0x2f   : > { %p1613_p13 = scmp.ne.s32.totalorder %s2222_s18, %s1612_s20  ;;  %p1620_p5 = scmp.lt.s32.totalorder %s2222_s18, %s2222_s18 }
  0x30   : > { %p1621_p7 = scmp.lt.s32.totalorder %s1619_s28, %s1612_s20 }
  0x31   : > { %p1615_p0 = pnand %p1613_p13, %p2251_p8 }
  0x32   : > { %p1622_p9 = por %p1621_p7, %p1620_p5 }
  0x33   : > { %p1616_p2 = pneg %p1615_p0 }
  0x35   : > { %p1623_p4 = pnand %p1622_p9, %p1616_p2 }
  0x37   : > { %1626 = shalt.err (!%p1623_p4)
}
  0x38   : > { %1453 = dma.hbm_to_vmem [thread:$0]  (!%p2235_p6), %s2808_s2, 16, %s2222_s18, [#allocation8]  }
  0x39   : > { %s2810_s3 = sld [smem:[#allocation43_spill]] }
  0x3f   : > { %s1627_s26 = scalar_lea.hbm %s2810_s3, 16 }
  0x40   : > { %p1628_p10 = scmp.ne.s32.totalorder %s2810_s3, %s1627_s26  ;;  %p1634_p4 = scmp.lt.u32.totalorder %s1627_s26, %s2810_s3 }
  0x42   : > { %p1630_p11 = pnand %p1628_p10, %p2251_p8 }
  0x44   : > { %p1631_p12 = pneg %p1630_p11 }
  0x46   : > { %p1636_p13 = pnand %p1634_p4, %p1631_p12 }
  0x48   : > { %1639 = shalt.err (!%p1636_p13)
}
  0x49   : > { %s1640_s18 = scalar_lea.vmem %s2231_s22, 16  ;;  %s1647_s0 = scalar_lea.vmem %s2231_s22, 32 }
  0x4a   : > { %p1641_p0 = scmp.ne.s32.totalorder %s2231_s22, %s1640_s18  ;;  %p1648_p7 = scmp.lt.s32.totalorder %s2231_s22, %s2231_s22 }
  0x4b   : > { %p1649_p9 = scmp.lt.s32.totalorder %s1647_s0, %s1640_s18 }
  0x4c   : > { %p1643_p2 = pnand %p1641_p0, %p2251_p8 }
  0x4d   : > { %p1650_p10 = por %p1649_p9, %p1648_p7 }
  0x4e   : > { %p1644_p5 = pneg %p1643_p2 }
  0x50   : > { %p1651_p11 = pnand %p1650_p10, %p1644_p5 }
  0x52   : > { %1654 = shalt.err (!%p1651_p11)
}
  0x53   : > { %1456 = dma.hbm_to_vmem [thread:$0]  (!%p2235_p6), %s2810_s3, 16, %s2231_s22, [#allocation11]  }
  0x54   : > { %s2811_s5 = sld [smem:[#allocation45_spill]] }
  0x5a   : > { %s1655_s21 = scalar_lea.hbm %s2811_s5, 16 }
  0x5b   : > { %p1656_p12 = scmp.ne.s32.totalorder %s2811_s5, %s1655_s21  ;;  %p1662_p0 = scmp.lt.u32.totalorder %s1655_s21, %s2811_s5 }
  0x5d   : > { %p1658_p4 = pnand %p1656_p12, %p2251_p8 }
  0x5f   : > { %p1659_p13 = pneg %p1658_p4 }
  0x61   : > { %p1664_p2 = pnand %p1662_p0, %p1659_p13 }
  0x63   : > { %1667 = shalt.err (!%p1664_p2)
}
  0x64   : > { %s1668_s22 = scalar_lea.vmem %s2239_s24, 16  ;;  %s1675_s0 = scalar_lea.vmem %s2239_s24, 32 }
  0x65   : > { %p1669_p5 = scmp.ne.s32.totalorder %s2239_s24, %s1668_s22  ;;  %p1676_p10 = scmp.lt.s32.totalorder %s2239_s24, %s2239_s24 }
  0x66   : > { %p1677_p11 = scmp.lt.s32.totalorder %s1675_s0, %s1668_s22 }
  0x67   : > { %p1671_p7 = pnand %p1669_p5, %p2251_p8 }
  0x68   : > { %p1678_p12 = por %p1677_p11, %p1676_p10 }
  0x69   : > { %p1672_p9 = pneg %p1671_p7 }
  0x6b   : > { %p1679_p4 = pnand %p1678_p12, %p1672_p9 }
  0x6d   : > { %1682 = shalt.err (!%p1679_p4)
}
  0x6e   : > { %1462 = dma.hbm_to_vmem [thread:$0]  (!%p2235_p6), %s2811_s5, 16, %s2239_s24, [#allocation14]  }
  0x6f   : > { %s2099_s14 = smov [#allocation19]   ;;  %s2812_s7 = sld [smem:[#allocation47_spill]] }
  0x70   : > { %s468_s17 = sshll.u32 %s2099_s14, 4  ;;  %s469_s17 = int_to_ptr.vmem [resolvable:$true] %s468_s17 }
  0x75   : > { %s1683_s20 = scalar_lea.hbm %s2812_s7, 16 }
  0x76   : > { %p1684_p13 = scmp.ne.s32.totalorder %s2812_s7, %s1683_s20  ;;  %p1690_p5 = scmp.lt.u32.totalorder %s1683_s20, %s2812_s7 }
  0x78   : > { %p1686_p0 = pnand %p1684_p13, %p2251_p8 }
  0x7a   : > { %p1687_p2 = pneg %p1686_p0 }
  0x7c   : > { %p1692_p7 = pnand %p1690_p5, %p1687_p2 }
  0x7e   : > { %1695 = shalt.err (!%p1692_p7)
}
  0x7f   : > { %s1696_s24 = scalar_lea.vmem %s445_s27, 16  ;;  %s1703_s19 = scalar_lea.vmem %s445_s27, 32 }
  0x80   : > { %p1697_p9 = scmp.ne.s32.totalorder %s445_s27, %s1696_s24  ;;  %p1704_p12 = scmp.lt.s32.totalorder %s445_s27, %s445_s27 }
  0x81   : > { %p1705_p4 = scmp.lt.s32.totalorder %s1703_s19, %s1696_s24 }
  0x82   : > { %p1699_p10 = pnand %p1697_p9, %p2251_p8 }
  0x83   : > { %p1706_p1 = por %p1705_p4, %p1704_p12 }
  0x84   : > { %p1700_p11 = pneg %p1699_p10 }
  0x86   : > { %p1707_p3 = pnand %p1706_p1, %p1700_p11 }
  0x88   : > { %1710 = shalt.err (!%p1707_p3)
}
  0x89   : > { %1468 = dma.hbm_to_vmem [thread:$0]  (!%p2235_p6), %s2812_s7, 16, %s445_s27, [#allocation17]  }
  0x8a   : > { %s1711_s20 = scalar_lea.hbm %s2776_s9, 16 }
  0x8b   : > { %p1712_p13 = scmp.ne.s32.totalorder %s2776_s9, %s1711_s20  ;;  %p1718_p3 = scmp.lt.u32.totalorder %s1711_s20, %s2776_s9 }
  0x8d   : > { %p1714_p0 = pnand %p1712_p13, %p2251_p8 }
  0x8f   : > { %p1715_p1 = pneg %p1714_p0 }
  0x91   : > { %p1720_p2 = pnand %p1718_p3, %p1715_p1 }
  0x93   : > { %1723 = shalt.err (!%p1720_p2)
}
  0x94   : > { %s1724_s24 = scalar_lea.vmem %s469_s17, 16  ;;  %s1731_s27 = scalar_lea.vmem %s469_s17, 32 }
  0x95   : > { %p1725_p5 = scmp.ne.s32.totalorder %s469_s17, %s1724_s24  ;;  %p1732_p10 = scmp.lt.s32.totalorder %s469_s17, %s469_s17 }
  0x96   : > { %p1733_p11 = scmp.lt.s32.totalorder %s1731_s27, %s1724_s24 }
  0x97   : > { %p1727_p7 = pnand %p1725_p5, %p2251_p8 }
  0x98   : > { %p1734_p12 = por %p1733_p11, %p1732_p10 }
  0x99   : > { %p1728_p9 = pneg %p1727_p7 }
  0x9b   : > { %p1735_p4 = pnand %p1734_p12, %p1728_p9 }
  0x9d   : > { %1738 = shalt.err (!%p1735_p4)
}
  0x9e   : > { %1474 = dma.hbm_to_vmem [thread:$0]  (!%p2235_p6), %s2776_s9, 16, %s469_s17, [#allocation20]  }
  0x9f   : > { %s2100_s14 = smov [#allocation22]   ;;  %s2101_s26 = smov [#allocation12]  }
  0xa0   : > { %s490_s21 = sshll.u32 %s2100_s14, 4  ;;  %s408_s20 = sshll.u32 %s2101_s26, 4  ;;  %s491_s21 = int_to_ptr.vmem [resolvable:$true] %s490_s21  ;;  %s409_s20 = int_to_ptr.vmem [resolvable:$true] %s408_s20 }
  0xa1   : > { %s1739_s22 = scalar_lea.hbm %s2778_s11, 16 }
  0xa2   : > { %p1740_p13 = scmp.ne.s32.totalorder %s2778_s11, %s1739_s22  ;;  %p1746_p3 = scmp.lt.u32.totalorder %s1739_s22, %s2778_s11 }
  0xa4   : > { %p1742_p0 = pnand %p1740_p13, %p2251_p8 }
  0xa6   : > { %p1743_p1 = pneg %p1742_p0 }
  0xa8   : > { %p1748_p2 = pnand %p1746_p3, %p1743_p1 }
  0xaa   : > { %1751 = shalt.err (!%p1748_p2)
}
  0xab   : > { %s1752_s17 = scalar_lea.vmem %s491_s21, 16  ;;  %s1759_s1 = scalar_lea.vmem %s491_s21, 32 }
  0xac   : > { %p1753_p5 = scmp.ne.s32.totalorder %s491_s21, %s1752_s17  ;;  %p1760_p10 = scmp.lt.s32.totalorder %s491_s21, %s491_s21 }
  0xad   : > { %p1761_p11 = scmp.lt.s32.totalorder %s1759_s1, %s1752_s17 }
  0xae   : > { %p1755_p7 = pnand %p1753_p5, %p2251_p8 }
  0xaf   : > { %p1762_p12 = por %p1761_p11, %p1760_p10 }
  0xb0   : > { %p1756_p9 = pneg %p1755_p7 }
  0xb2   : > { %p1763_p4 = pnand %p1762_p12, %p1756_p9 }
  0xb4   : > { %1766 = shalt.err (!%p1763_p4)
}
  0xb5   : > { %1480 = dma.hbm_to_vmem [thread:$0]  (!%p2235_p6), %s2778_s11, 16, %s491_s21, [#allocation23]  }
  0xb6   : > { %s2813_s4 = sld [smem:[#allocation44_spill]] }
  0xbc   : > { %s1767_s22 = scalar_lea.hbm %s2813_s4, 256 }
  0xbd   : > { %p1768_p13 = scmp.ne.s32.totalorder %s2813_s4, %s1767_s22  ;;  %p1774_p3 = scmp.lt.u32.totalorder %s1767_s22, %s2813_s4 }
  0xbf   : > { %p1770_p0 = pnand %p1768_p13, %p2251_p8 }
  0xc1   : > { %p1771_p1 = pneg %p1770_p0 }
  0xc3   : > { %p1776_p2 = pnand %p1774_p3, %p1771_p1 }
  0xc5   : > { %1779 = shalt.err (!%p1776_p2)
}
  0xc6   : > { %s1780_s17 = scalar_lea.vmem %s409_s20, 256  ;;  %p1788_p10 = scmp.lt.s32.totalorder %s409_s20, %s409_s20 }
  0xc7   : > { %p1781_p5 = scmp.ne.s32.totalorder %s409_s20, %s1780_s17  ;;  %p1789_p11 = scmp.lt.s32.totalorder %s1780_s17, %s1780_s17 }
  0xc9   : > { %p1783_p7 = pnand %p1781_p5, %p2251_p8  ;;  %p1790_p12 = por %p1789_p11, %p1788_p10 }
  0xcb   : > { %p1784_p9 = pneg %p1783_p7 }
  0xcd   : > { %p1791_p4 = pnand %p1790_p12, %p1784_p9 }
  0xcf   : > { %1794 = shalt.err (!%p1791_p4)
}
  0xd0   : > { %s2102_s21 = smov 64   ;;  %s2103_s1 = smov 4  }
  0xd1   : > { %1459 = dma.hbm_to_vmem [thread:$0]  (!%p2235_p6), %s2813_s4, 256, %s409_s20, [#allocation11], %s2102_s21, %s2102_s21, %s2103_s1  }
  0xd2   : > { %s2104_s28 = smov [#allocation15]   ;;  %s2105_s22 = smov [#allocation18]  }
  0xd3   : > { %s433_s18 = sshll.u32 %s2104_s28, 4  ;;  %s454_s0 = sshll.u32 %s2105_s22, 4  ;;  %s434_s18 = int_to_ptr.vmem [resolvable:$true] %s433_s18  ;;  %s455_s0 = int_to_ptr.vmem [resolvable:$true] %s454_s0 }
  0xd4   : > { %s2814_s6 = sld [smem:[#allocation46_spill]] }
  0xda   : > { %s1795_s19 = scalar_lea.hbm %s2814_s6, 16 }
  0xdb   : > { %p1796_p13 = scmp.ne.s32.totalorder %s2814_s6, %s1795_s19  ;;  %p1802_p3 = scmp.lt.u32.totalorder %s1795_s19, %s2814_s6 }
  0xdd   : > { %p1798_p0 = pnand %p1796_p13, %p2251_p8 }
  0xdf   : > { %p1799_p1 = pneg %p1798_p0 }
  0xe1   : > { %p1804_p2 = pnand %p1802_p3, %p1799_p1 }
  0xe3   : > { %1807 = shalt.err (!%p1804_p2)
}
  0xe4   : > { %s1808_s20 = scalar_lea.vmem %s434_s18, 16  ;;  %s1815_s14 = scalar_lea.vmem %s434_s18, 32 }
  0xe5   : > { %p1809_p5 = scmp.ne.s32.totalorder %s434_s18, %s1808_s20  ;;  %p1816_p10 = scmp.lt.s32.totalorder %s434_s18, %s434_s18 }
  0xe6   : > { %p1817_p11 = scmp.lt.s32.totalorder %s1815_s14, %s1808_s20 }
  0xe7   : > { %p1811_p7 = pnand %p1809_p5, %p2251_p8 }
  0xe8   : > { %p1818_p12 = por %p1817_p11, %p1816_p10 }
  0xe9   : > { %p1812_p9 = pneg %p1811_p7 }
  0xeb   : > { %p1819_p4 = pnand %p1818_p12, %p1812_p9 }
  0xed   : > { %1822 = shalt.err (!%p1819_p4)
}
  0xee   : > { %1465 = dma.hbm_to_vmem [thread:$0]  (!%p2235_p6), %s2814_s6, 16, %s434_s18, [#allocation14]  }
  0xef   : > { %s2815_s8 = sld [smem:[#allocation48_spill]] }
  0xf5   : > { %s1823_s28 = scalar_lea.hbm %s2815_s8, 384 }
  0xf6   : > { %p1824_p13 = scmp.ne.s32.totalorder %s2815_s8, %s1823_s28  ;;  %p1830_p3 = scmp.lt.u32.totalorder %s1823_s28, %s2815_s8 }
  0xf8   : > { %p1826_p0 = pnand %p1824_p13, %p2251_p8 }
  0xfa   : > { %p1827_p1 = pneg %p1826_p0 }
  0xfc   : > { %p1832_p2 = pnand %p1830_p3, %p1827_p1 }
  0xfe   : > { %1835 = shalt.err (!%p1832_p2)
}
  0xff   : > { %s1836_s17 = scalar_lea.vmem %s455_s0, 384  ;;  %p1844_p10 = scmp.lt.s32.totalorder %s455_s0, %s455_s0 }
 0x100   : > { %p1837_p5 = scmp.ne.s32.totalorder %s455_s0, %s1836_s17  ;;  %p1845_p11 = scmp.lt.s32.totalorder %s1836_s17, %s1836_s17 }
 0x102   : > { %p1839_p7 = pnand %p1837_p5, %p2251_p8  ;;  %p1846_p12 = por %p1845_p11, %p1844_p10 }
 0x104   : > { %p1840_p9 = pneg %p1839_p7 }
 0x106   : > { %p1847_p4 = pnand %p1846_p12, %p1840_p9 }
 0x108   : > { %1850 = shalt.err (!%p1847_p4)
}
 0x109   : > { %1471 = dma.hbm_to_vmem [thread:$0]  (!%p2235_p6), %s2815_s8, 384, %s455_s0, [#allocation17], %s2102_s21, %s2102_s21, %s2103_s1  }
 0x10a   : > { %s2106_s14 = smov [#allocation21]   ;;  %s2107_s26 = smov [#allocation24]  }
 0x10b   : > { %s479_s2 = sshll.u32 %s2106_s14, 4  ;;  %s500_s3 = sshll.u32 %s2107_s26, 4  ;;  %s480_s2 = int_to_ptr.vmem [resolvable:$true] %s479_s2  ;;  %s501_s3 = int_to_ptr.vmem [resolvable:$true] %s500_s3 }
 0x10c   : > { %s1851_s22 = scalar_lea.hbm %s2777_s10, 16 }
 0x10d   : > { %p1852_p13 = scmp.ne.s32.totalorder %s2777_s10, %s1851_s22  ;;  %p1858_p3 = scmp.lt.u32.totalorder %s1851_s22, %s2777_s10 }
 0x10f   : > { %p1854_p0 = pnand %p1852_p13, %p2251_p8 }
 0x111   : > { %p1855_p1 = pneg %p1854_p0 }
 0x113   : > { %p1860_p2 = pnand %p1858_p3, %p1855_p1 }
 0x115   : > { %1863 = shalt.err (!%p1860_p2)
}
 0x116   : > { %s1864_s0 = scalar_lea.vmem %s480_s2, 16  ;;  %s1871_s18 = scalar_lea.vmem %s480_s2, 32 }
 0x117   : > { %p1865_p5 = scmp.ne.s32.totalorder %s480_s2, %s1864_s0  ;;  %p1872_p10 = scmp.lt.s32.totalorder %s480_s2, %s480_s2 }
 0x118   : > { %p1873_p11 = scmp.lt.s32.totalorder %s1871_s18, %s1864_s0 }
 0x119   : > { %p1867_p7 = pnand %p1865_p5, %p2251_p8 }
 0x11a   : > { %p1874_p12 = por %p1873_p11, %p1872_p10 }
 0x11b   : > { %p1868_p9 = pneg %p1867_p7 }
 0x11d   : > { %p1875_p4 = pnand %p1874_p12, %p1868_p9 }
 0x11f   : > { %1878 = shalt.err (!%p1875_p4)
}
 0x120   : > { %1477 = dma.hbm_to_vmem [thread:$0]  (!%p2235_p6), %s2777_s10, 16, %s480_s2, [#allocation20]  }
 0x121   : > { %s1879_s28 = scalar_lea.hbm %s2779_s12, 128 }
 0x122   : > { %p1880_p13 = scmp.ne.s32.totalorder %s2779_s12, %s1879_s28  ;;  %p1886_p3 = scmp.lt.u32.totalorder %s1879_s28, %s2779_s12 }
 0x124   : > { %p1882_p0 = pnand %p1880_p13, %p2251_p8 }
 0x126   : > { %p1883_p1 = pneg %p1882_p0 }
 0x128   : > { %p1888_p2 = pnand %p1886_p3, %p1883_p1 }
 0x12a   : > { %1891 = shalt.err (!%p1888_p2)
}
 0x12b   : > { %s1892_s17 = scalar_lea.vmem %s501_s3, 128  ;;  %p1900_p10 = scmp.lt.s32.totalorder %s501_s3, %s501_s3 }
 0x12c   : > { %p1893_p5 = scmp.ne.s32.totalorder %s501_s3, %s1892_s17  ;;  %p1901_p11 = scmp.lt.s32.totalorder %s1892_s17, %s1892_s17 }
 0x12e   : > { %p1895_p7 = pnand %p1893_p5, %p2251_p8  ;;  %p1902_p12 = por %p1901_p11, %p1900_p10 }
 0x130   : > { %p1896_p9 = pneg %p1895_p7 }
 0x132   : > { %p1903_p4 = pnand %p1902_p12, %p1896_p9 }
 0x134   : > { %1906 = shalt.err (!%p1903_p4)
}
 0x135   : > { %1483 = dma.hbm_to_vmem [thread:$0]  (!%p2235_p6), %s2779_s12, 128, %s501_s3, [#allocation23], %s2102_s21, %s2102_s21, %s2103_s1  }
 0x136   : > { %s2108_s18 = smov [#allocation25]   ;;  %s1907_s5 = scalar_lea.hbm %s2780_s13, 16 }
 0x137   : > { %s514_s20 = sshll.u32 %s2108_s18, 4  ;;  %p1908_p13 = scmp.ne.s32.totalorder %s2780_s13, %s1907_s5  ;;  %s515_s20 = int_to_ptr.vmem [resolvable:$true] %s514_s20 }
 0x138   : > { %p1914_p3 = scmp.lt.u32.totalorder %s1907_s5, %s2780_s13 }
 0x139   : > { %p1910_p0 = pnand %p1908_p13, %p2251_p8 }
 0x13b   : > { %p1911_p1 = pneg %p1910_p0 }
 0x13d   : > { %p1916_p2 = pnand %p1914_p3, %p1911_p1 }
 0x13f   : > { %1919 = shalt.err (!%p1916_p2)
}
 0x140   : > { %s1920_s21 = scalar_lea.vmem %s515_s20, 16  ;;  %s1927_s1 = scalar_lea.vmem %s515_s20, 32 }
 0x141   : > { %p1921_p5 = scmp.ne.s32.totalorder %s515_s20, %s1920_s21  ;;  %p1928_p10 = scmp.lt.s32.totalorder %s515_s20, %s515_s20 }
 0x142   : > { %p1929_p11 = scmp.lt.s32.totalorder %s1927_s1, %s1920_s21 }
 0x143   : > { %p1923_p7 = pnand %p1921_p5, %p2251_p8 }
 0x144   : > { %p1930_p12 = por %p1929_p11, %p1928_p10 }
 0x145   : > { %p1924_p9 = pneg %p1923_p7 }
 0x147   : > { %p1931_p4 = pnand %p1930_p12, %p1924_p9 }
 0x149   : > { %1934 = shalt.err (!%p1931_p4)
}
 0x14a   : > { %s2816_s23 = sld [smem:[#allocation38_spill]]  ;;  %s1300_s17 = sadd.s32 4294967294, %s2093_s16  }
 0x14b   : > { %1486 = dma.hbm_to_vmem [thread:$0]  (!%p2235_p6), %s2780_s13, 16, %s515_s20, [#allocation26]  }
 0x14c   : > { %s2495_s25 = sadd.s32 1, %s2093_s16   ;;  %s46_s0 = sadd.s32 1, %s2089_s15 }
 0x14d   : > { %s43_s2 = ssub.s32 %s2093_s16, %s2495_s25  ;;  %p53_p13 = scmp.ne.s32.totalorder %s2089_s15, %s2085_s30 }
 0x14e   : > { %p44_p8 = scmp.eq.s32.totalorder %s43_s2, 0  ;;  %p54_p0 = scmp.eq.s32.totalorder %s2093_s16, 0 }
 0x14f   : > { %p59_p1 = scmp.ne.s32.totalorder %s2085_s30, %s2081_s29  ;;  %p367_p7 = scmp.eq.s32.totalorder %s1300_s17, 1 }
 0x150   : > { %s2506_s18 = scalar_select %p44_p8, %s2089_s15, %s46_s0  }
 0x151   : > { %p2508_p3 = por %p54_p0, %p53_p13  ;;  %p2818_p2 = scmp.eq.s32.totalorder %s2816_s23, 0 }
 0x152   : > { %p361_p5 = scmp.eq.s32.totalorder %s2816_s23, 1  ;;  %p1510_p9 = scmp.lt.s32.totalorder %s2093_s16, 2 }
 0x153   : > { %p2514_p6 = por %p2818_p2, %p59_p1  ;;  %s525_s26 = sand.u32 1, %s2089_s15  }
 0x154   : > { %p2521_p10 = por %p361_p5, %p53_p13  ;;  %p2525_p11 = por %p367_p7, %p59_p1 }
 0x155   : > { %s2529_s22 = sshll.u32 %s525_s26, 4  ;;  %s2791_s24 = sshll.u32 %s2093_s16, 8 }
 0x156   : > { %s2820_s5 = scalar_select %p2521_p10, 1, 0 }
 0x157   : > { %s2821_s28 = scalar_select %p2525_p11, 1, 0 }
 0x158   : > { %s2822_s1 = sld [smem:[#allocation40_spill]]  ;;  %s529_s19 = scalar_lea.vmem [#allocation4], %s2529_s22 }
 0x159   : > { %s536_s23 = sshll.u32 %s529_s19, 4  ;;  %p2544_p12 = pnand %p1510_p9, %p2508_p3  ;;  %s2540_s23 = int_to_ptr.vmem [resolvable:$true] %s536_s23 }
 0x15a   : > { %s2548_s2 = scalar_lea.sflag [#allocation5], %s525_s26 }
 0x15b   : > { %p1937_p8 = pneg %p2544_p12 }
 0x15e   : > { %s2537_s3 = scalar_lea.hbm %s2822_s1, %s2791_s24  ;;  %s1940_s14 = scalar_lea.hbm %s2822_s1, 512 }
 0x15f   : > { %s1935_s0 = scalar_lea.hbm %s2537_s3, 256  ;;  %p1941_p1 = scmp.lt.u32.totalorder %s2537_s3, %s2822_s1 }
 0x160   : > { %p1936_p4 = scmp.ne.s32.totalorder %s2537_s3, %s1935_s0  ;;  %p1942_p3 = scmp.lt.u32.totalorder %s1940_s14, %s1935_s0 }
 0x161   : > { %p1944_p5 = scmp.lt.u32.totalorder %s1935_s0, %s2537_s3 }
 0x162   : > { %p1938_p13 = pnand %p1937_p8, %p1936_p4  ;;  %p1943_p2 = por %p1942_p3, %p1941_p1 }
 0x164   : > { %p1939_p0 = pneg %p1938_p13  ;;  %p1945_p7 = por %p1944_p5, %p1943_p2 }
 0x166   : > { %p1946_p9 = pnand %p1945_p7, %p1939_p0 }
 0x168   : > { %1949 = shalt.err (!%p1946_p9)
}
 0x169   : > { %s1950_s26 = scalar_lea.vmem %s2540_s23, 256  ;;  %s2109_s27 = smov [#allocation4]  }
 0x16a   : > { %p1951_p4 = scmp.ne.s32.totalorder %s2540_s23, %s1950_s26  ;;  %s1955_s21 = sshll.u32 %s2109_s27, 4  ;;  %s1956_s21 = int_to_ptr.vmem [resolvable:$false] %s1955_s21 }
 0x16b   : > { %s1957_s24 = scalar_lea.vmem %s1956_s21, 512  ;;  %p1958_p10 = scmp.lt.s32.totalorder %s2540_s23, %s1956_s21 }
 0x16c   : > { %p1953_p13 = pnand %p1951_p4, %p1937_p8  ;;  %p1959_p1 = scmp.lt.s32.totalorder %s1957_s24, %s1950_s26 }
 0x16e   : > { %p1954_p11 = pneg %p1953_p13  ;;  %p1960_p3 = por %p1959_p1, %p1958_p10 }
 0x170   : > { %p1961_p2 = pnand %p1960_p3, %p1954_p11 }
 0x172   : > { %1964 = shalt.err (!%p1961_p2)
}
 0x173   : > { %s2110_s0 = smov 128   ;;  %s2111_s14 = smov 8  }
 0x174   : > { %1490 = dma.hbm_to_vmem [thread:$0]  (!%p2544_p12), %s2537_s3, 256, %s2540_s23, %s2548_s2, %s2110_s0, %s2110_s0, %s2111_s14  }
 0x175   : > { %s2824_s19 = sshll.u32 %s2093_s16, 8  ;;  %s2825_s21 = sld [smem:[#allocation41_spill]] }
 0x176   : > { %s550_s1 = scalar_lea.vmem [#allocation7], %s2529_s22  ;;  %s546_s6 = sand.u32 1, %s2093_s16  }
 0x177   : > { %s557_s4 = sshll.u32 %s550_s1, 4  ;;  %s2590_s7 = scalar_lea.sflag [#allocation8], %s546_s6  ;;  %s2587_s4 = int_to_ptr.vmem [resolvable:$true] %s557_s4 }
 0x17b   : > { %s2584_s24 = scalar_lea.hbm %s2825_s21, %s2824_s19  ;;  %s1970_s2 = scalar_lea.hbm %s2825_s21, 512 }
 0x17c   : > { %s1965_s8 = scalar_lea.hbm %s2584_s24, 256  ;;  %p1971_p5 = scmp.lt.u32.totalorder %s2584_s24, %s2825_s21 }
 0x17d   : > { %p1966_p10 = scmp.ne.s32.totalorder %s2584_s24, %s1965_s8  ;;  %p1972_p7 = scmp.lt.u32.totalorder %s1970_s2, %s1965_s8 }
 0x17e   : > { %p1974_p4 = scmp.lt.u32.totalorder %s1965_s8, %s2584_s24 }
 0x17f   : > { %p1968_p11 = pnand %p1966_p10, %p1937_p8  ;;  %p1973_p9 = por %p1972_p7, %p1971_p5 }
 0x181   : > { %p1969_p0 = pneg %p1968_p11  ;;  %p1975_p13 = por %p1974_p4, %p1973_p9 }
 0x183   : > { %p1976_p1 = pnand %p1975_p13, %p1969_p0 }
 0x185   : > { %1979 = shalt.err (!%p1976_p1)
}
 0x186   : > { %s1980_s6 = scalar_lea.vmem %s2587_s4, 256  ;;  %s2112_s22 = smov [#allocation7]  }
 0x187   : > { %p1981_p3 = scmp.ne.s32.totalorder %s2587_s4, %s1980_s6  ;;  %s1985_s1 = sshll.u32 %s2112_s22, 4  ;;  %s1986_s1 = int_to_ptr.vmem [resolvable:$false] %s1985_s1 }
 0x188   : > { %s1987_s27 = scalar_lea.vmem %s1986_s1, 512  ;;  %p1988_p11 = scmp.lt.s32.totalorder %s2587_s4, %s1986_s1 }
 0x189   : > { %p1983_p2 = pnand %p1981_p3, %p1937_p8  ;;  %p1989_p5 = scmp.lt.s32.totalorder %s1987_s27, %s1980_s6 }
 0x18b   : > { %p1984_p10 = pneg %p1983_p2  ;;  %p1990_p7 = por %p1989_p5, %p1988_p11 }
 0x18d   : > { %p1991_p9 = pnand %p1990_p7, %p1984_p10 }
 0x18f   : > { %1994 = shalt.err (!%p1991_p9)
}
 0x190   : > { %1493 = dma.hbm_to_vmem [thread:$0]  (!%p2544_p12), %s2584_s24, 256, %s2587_s4, %s2590_s7, %s2110_s0, %s2110_s0, %s2111_s14  }
 0x191   : > { %s2826_s8 = sld [smem:[#allocation39_spill]] }
 0x197   : > { %p2827_p8 = scmp.ne.s32.totalorder %s2826_s8, 0 }
 0x198   : > { %s2622_s3 = sand.u32 (!%p2827_p8), 1, %s2085_s30  }
 0x199   : > { %569 = sbr.rel (%p2827_p8) target bundleno = 2208 (0x8a0), region = 76  ;;  %s2625_s23 = sshll.u32 (!%p2827_p8), %s2622_s3, 4 }
 0x19a   : > { %s572_s17 = scalar_lea.sflag (!%p2827_p8), [#allocation5], %s2622_s3  ;;  %s575_s2 = scalar_lea.vmem (!%p2827_p8), [#allocation4], %s2625_s23 }
 0x1a0   : > { %2040 = dma.done.wait (%p2514_p6), %s572_s17, 256  }
 0x1a1   : > { %2042 = vsyncadd (%p2514_p6), %s572_s17, 4294967040  ;;  %s2828_s4 = sld [smem:[#allocation38_spill]]  ;;  %s584_s14 = scalar_lea.vmem [#allocation7], %s2625_s23 }
 0x1a7   : > { %s580_s7 = sand.u32 1, %s2828_s4  }
 0x1a8   : > { %s581_s0 = scalar_lea.sflag [#allocation8], %s580_s7 }
 0x1a9   : > { %2044 = dma.done.wait (%p2514_p6), %s581_s0, 256  }
 0x1aa   : > { %2046 = vsyncadd (%p2514_p6), %s581_s0, 4294967040  ;;  %p2829_p12 = scmp.eq.s32.totalorder %s2828_s4, 0 }
 0x1ac   : > { %2048 = dma.done.wait (%p2829_p12), [#allocation8], 16   ;;  %p2830_p0 = pmov %p2829_p12 }
 0x1ae   : > { %2050 = vsyncadd (%p2830_p0), [#allocation8], 4294967280  ;;  %p2831_p4 = pmov %p2830_p0 }
 0x1af   : > { %p2832_p13 = pmov %p2830_p0 }
 0x1b0   : > { %2052 = dma.done.wait (%p2831_p4), [#allocation11], 272  }
 0x1b1   : > { %2054 = vsyncadd (%p2832_p13), [#allocation11], 4294967024  ;;  %p2833_p1 = pmov %p2830_p0 }
 0x1b2   : > { %p2834_p3 = pmov %p2830_p0 }
 0x1b3   : > { %2056 = dma.done.wait (%p2833_p1), [#allocation14], 32  }
 0x1b4   : > { %2058 = vsyncadd (%p2834_p3), [#allocation14], 4294967264  ;;  %p2835_p6 = pmov %p2830_p0 }
 0x1b5   : > { %p2836_p2 = pmov %p2830_p0 }
 0x1b6   : > { %2060 = dma.done.wait (%p2835_p6), [#allocation17], 400  }
 0x1b7   : > { %2062 = vsyncadd (%p2836_p2), [#allocation17], 4294966896  ;;  %p2837_p10 = pmov %p2830_p0 }
 0x1b8   : > { %p2838_p11 = pmov %p2830_p0 }
 0x1b9   : > { %2064 = dma.done.wait (%p2837_p10), [#allocation20], 32  }
 0x1ba   : > { %2066 = vsyncadd (%p2838_p11), [#allocation20], 4294967264  ;;  %p2839_p5 = pmov %p2830_p0 }
 0x1bb   : > { %p2840_p7 = pmov %p2830_p0 }
 0x1bc   : > { %2068 = dma.done.wait (%p2839_p5), [#allocation23], 144  }
 0x1bd   : > { %2070 = vsyncadd (%p2840_p7), [#allocation23], 4294967152  ;;  %p2841_p9 = pmov %p2830_p0 }
 0x1be   : > { %p2842_p8 = pmov %p2830_p0 }
 0x1bf   : > { %2072 = dma.done.wait (%p2841_p9), [#allocation26], 16  }
 0x1c0   : > { %2074 = vsyncadd (%p2842_p8), [#allocation26], 4294967280  ;;  %vm687_vm0 = vcmask 261120   ;;  %v2667_v0 = vld [vmem:[%s575_s2] sm:$0xff]  ;;  %v2669_v1 = vld [vmem:[%s575_s2 + $0x8] sm:$0xff]  ;;  %v2113_v15 = vmov 0.0  }
 0x1c1   : > { %v688_v2 = vsel %vm687_vm0, %v2667_v0, 0.0  ;;  %v691_v3 = vsel %vm687_vm0, %v2669_v1, 0.0  ;;  %v1581_v14 = vld [vmem:[#allocation12] sm:$0xff]   ;;  %1372 = vmatprep.subr.bf16.mxu0 %v2113_v15  ;;  %vm2114_vm1 = vmmov 0   ;;  %v1582_v16 = vld [vmem:[#allocation12 + $0x8] sm:$0xff]   ;;  %1380 = vmatprep.subr.bf16.mxu1 %v2113_v15  ;;  %vm803_vm2 = vcmask 130048  }
 0x1c2   : > { %689 = vadd.xlane.f32.xlu0 %v688_v2  ;;  %1376 = vmatprep.mubr.msk.bf16.mxu0 %vm2114_vm1, %v2113_v15  ;;  %v1337_v24 = vld [vmem:[#allocation9] ss:$0 sm:$0xff]  ;;  %v1338_v28 = vld [vmem:[#allocation10] ss:$0 sm:$0xff]  ;;  %863 = vst.msk [vmem:[#allocation2] sm:$0xff] %vm803_vm2, %v2113_v15  ;;  %864 = vst.msk [vmem:[#allocation2 + $0x18] sm:$0xff] %vm803_vm2, %v2113_v15 }
 0x1c3   : > { %1373 = vmatpush3.bf16.msra.mxu0 %v1581_v14  ;;  %1386 = vmatprep.mubr.msk.bf16.mxu1 %vm2114_vm1, %v2113_v15  ;;  %v1339_v36 = vld [vmem:[#allocation13] ss:$0 sm:$0xff]  ;;  %v2115_v45 = vmov 0   ;;  %v850_v56 = vld [vmem:[%s584_s14 + $0x8] sm:$0xff]  ;;  %s2116_s20 = smov 16   ;;  %s2117_s24 = smov 32  }
 0x1c4   : > { %1374 = vmatprep.subr.bf16.mxu0 %v2113_v15  ;;  %1579 = vset.pattern.permute.xlu0 %v2115_v45  ;;  %v849_v57 = vld [vmem:[%s584_s14] sm:$0xff]  ;;  %vm878_vm3 = vcmask 261248   ;;  %vm887_vm4 = vcmask 392448   ;;  %vm921_vm5 = vcmask 392192   ;;  %s1362_s19 = sshll.u32 %s2828_s4, 8  ;;  %s681_s26 = scalar_lea.vmem [#allocation27], %s2625_s23 }
 0x1c5   : > { %1580 = vset.pattern.permute.xlu1 %v2115_v45  ;;  %s1090_s6 = sshll.u32 %s681_s26, 4  ;;  %s2843_s27 = sld [smem:[#allocation49_spill]]  ;;  %s2720_s6 = int_to_ptr.vmem [resolvable:$true] %s1090_s6 }
 0x1c6   : > { %692 = vadd.xlane.f32.xlu0 %v691_v3  ;;  %v1343_v3 = vld [vmem:[#allocation15] ss:$0 sm:$0xff]  ;;  %s1077_s23 = scalar_lea.sflag [#allocation6], %s2622_s3  ;;  %s1995_s17 = scalar_lea.vmem %s2720_s6, 256 }
 0x1c7   : > { %1375 = vmatpush3.bf16.msra.mxu0 %v1582_v16  ;;  %p1996_p12 = scmp.ne.s32.totalorder %s2720_s6, %s1995_s17  ;;  %p2844_p0 = scmp.ne.s32.totalorder %s2820_s5, 0 }
 0x1c8   : > { %1390 = vmatprep.subr.bf16.mxu0 %v2113_v15  ;;  %s2118_s2 = smov [#allocation27]  }
 0x1c9   : > { %p1997_p4 = pnand %p1996_p12, %p2844_p0  ;;  %s1999_s4 = sshll.u32 %s2118_s2, 4  ;;  %s2000_s4 = int_to_ptr.vmem [resolvable:$false] %s1999_s4 }
 0x1ca   : > { %s2001_s7 = scalar_lea.vmem %s2000_s4, 512  ;;  %p2002_p1 = scmp.lt.s32.totalorder %s2720_s6, %s2000_s4 }
 0x1cb   : > { %s2718_s8 = scalar_lea.hbm %s2843_s27, %s1362_s19  ;;  %p1998_p13 = pneg %p1997_p4 }
 0x1cc   : > { %p2003_p3 = scmp.lt.s32.totalorder %s2001_s7, %s1995_s17 }
 0x1ce   : > { %p2004_p6 = por %p2003_p3, %p2002_p1 }
 0x1d0   : > { %p2005_p2 = pnand %p2004_p6, %p1998_p13 }
 0x24f   : > { %v690_v4 = vpop.xlane.xlu0 %689 }
 0x250   : > { %v695_v5 = vmul.f32 0.03125, %v690_v4 }
 0x252   : > { %v697_v6 = vsub.f32 %v2667_v0, %v695_v5 }
 0x253   : > { %v693_v7 = vpop.xlane.xlu0 %692 }
 0x254   : > { %v696_v8 = vmul.f32 0.03125, %v693_v7  ;;  %v699_v9 = vmul.f32 %v697_v6, %v697_v6 }
 0x256   : > { %v698_v10 = vsub.f32 %v2669_v1, %v696_v8  ;;  %v701_v11 = vsel %vm687_vm0, %v699_v9, 0.0 }
 0x257   : > { %702 = vadd.xlane.f32.xlu1 %v701_v11 }
 0x258   : > { %v700_v12 = vmul.f32 %v698_v10, %v698_v10 }
 0x25a   : > { %v704_v13 = vsel %vm687_vm0, %v700_v12, 0.0 }
 0x25b   : > { %705 = vadd.xlane.f32.xlu1 %v704_v13 }
 0x2e4   : > { %v703_v17 = vpop.xlane.xlu1 %702 }
 0x2e5   : > { %v707_v18 = vmul.f32 0.03125, %v703_v17 }
 0x2e7   : > { %v709_v19 = vadd.f32 1e-05, %v707_v18  ;;  %v1583_v18 = vld [vmem:[#allocation18] sm:$0xff]  }
 0x2e8   : > { %v706_v20 = vpop.xlane.xlu1 %705  ;;  %1381 = vmatpush3.bf16.msra.mxu1 %v1583_v18 }
 0x2e9   : > { %1587 = vrsqrt.f32 %v709_v19  ;;  %v708_v21 = vmul.f32 0.03125, %v706_v20  ;;  %1382 = vmatprep.subr.bf16.mxu1 %v2113_v15  ;;  %v1584_v20 = vld [vmem:[#allocation18 + $0x8] sm:$0xff]  }
 0x2eb   : > { %v710_v22 = vadd.f32 1e-05, %v708_v21  ;;  %v1585_v21 = vld [vmem:[#allocation18 + $0x10] sm:$0xff]  }
 0x2ec   : > { %1383 = vmatpush3.bf16.msra.mxu1 %v1584_v20 }
 0x2ed   : > { %1589 = vrsqrt.f32 %v710_v22  ;;  %1384 = vmatprep.subr.bf16.mxu1 %v2113_v15 }
 0x2f0   : > { %1385 = vmatpush3.bf16.msra.mxu1 %v1585_v21 }
 0x2f3   : > { %v1588_v23 = vpop.eup %1587 }
 0x2f4   : > { %v713_v25 = vmul.f32 %v1588_v23, %v697_v6  ;;  %v1344_v6 = vld [vmem:[#allocation16] ss:$0 sm:$0xff] }
 0x2f6   : > { %v721_v26 = vmul.f32 %v1337_v24, %v713_v25 }
 0x2f7   : > { %v1590_v27 = vpop.eup %1589 }
 0x2f8   : > { %v714_v29 = vmul.f32 %v1590_v27, %v698_v10  ;;  %v729_v31 = vadd.f32 %v1338_v28, %v721_v26 }
 0x2fa   : > { %v722_v30 = vmul.f32 %v1337_v24, %v714_v29  ;;  %v731_v33 = vmax.f32 %v729_v31, 0.0 }
 0x2fc   : > { %v730_v32 = vadd.f32 %v1338_v28, %v722_v30 }
 0x2fe   : > { %v732_v34 = vmax.f32 %v730_v32, 0.0 }
 0x300   : > { %v733_v35 = vpack.c.bf16 %v732_v34, %v731_v33  ;;  %v1345_v33 = vld [vmem:[#allocation19] ss:$0 sm:$0xff] }
 0x302   : > { %1377 = vmatmul.mubr.msk.bf16.vlgmr.msra.gmra.mrb[0].mxu0 %vm687_vm0, %v733_v35 }
 0x303   : > { %1392 = vmatprep.mubr.msk.bf16.mxu0 %vm2114_vm1, %v2113_v15 }
 0x3d5   : > { %v794_v37 = vpop.f32.mrb[0].mxu0 }
 0x3d6   : > { %v795_v38 = vadd.f32 %v1339_v36, %v794_v37  ;;  %v1378_v39 = vpop.f32.mrb[1].mxu0 }
 0x3d7   : > { %v797_v40 = vpop.f32.mrb[2].mxu0 }
 0x3d8   : > { %v798_v41 = vadd.f32 %v1339_v36, %v797_v40  ;;  %v1379_v42 = vpop.f32.mrb[3].mxu0  ;;  %v804_v43 = vsel %vm803_vm2, %v795_v38, 0.0 }
 0x3d9   : > { %805 = vadd.xlane.f32.xlu0 %v804_v43 }
 0x3da   : > { %v807_v44 = vsel %vm803_vm2, %v798_v41, 0.0 }
 0x3db   : > { %808 = vadd.xlane.f32.xlu1 %v807_v44 }
 0x466   : > { %v806_v46 = vpop.xlane.xlu0 %805 }
 0x467   : > { %v811_v47 = vmul.f32 0.0625, %v806_v46 }
 0x468   : > { %v809_v48 = vpop.xlane.xlu1 %808 }
 0x469   : > { %v813_v49 = vsub.f32 %v795_v38, %v811_v47  ;;  %v812_v50 = vmul.f32 0.0625, %v809_v48 }
 0x46b   : > { %v814_v51 = vsub.f32 %v798_v41, %v812_v50  ;;  %v815_v52 = vmul.f32 %v813_v49, %v813_v49 }
 0x46d   : > { %v817_v53 = vsel %vm803_vm2, %v815_v52, 0.0  ;;  %v816_v54 = vmul.f32 %v814_v51, %v814_v51  ;;  %v1586_v52 = vld [vmem:[#allocation24] sm:$0xff]  }
 0x46e   : > { %818 = vadd.xlane.f32.xlu0 %v817_v53  ;;  %1391 = vmatpush3.bf16.msra.mxu0 %v1586_v52 }
 0x46f   : > { %v820_v55 = vsel %vm803_vm2, %v816_v54, 0.0 }
 0x470   : > { %821 = vadd.xlane.f32.xlu1 %v820_v55 }
 0x481   : > { %858 = vperm.xlu1 %1580, %v850_v56  }
 0x484   : > { %853 = vperm.xlu0 %1579, %v849_v57  }
 0x4fb   : > { %v819_v58 = vpop.xlane.xlu0 %818 }
 0x4fc   : > { %v823_v59 = vmul.f32 0.0625, %v819_v58 }
 0x4fd   : > { %v822_v60 = vpop.xlane.xlu1 %821 }
 0x4fe   : > { %v825_v61 = vadd.f32 1e-05, %v823_v59  ;;  %v824_v62 = vmul.f32 0.0625, %v822_v60  ;;  %v1350_v60 = vld [vmem:[#allocation21] ss:$0 sm:$0xff] }
 0x500   : > { %1591 = vrsqrt.f32 %v825_v61  ;;  %v826_v63 = vadd.f32 1e-05, %v824_v62 }
 0x501   : > { %v859_v14 = vpop.permute.xlu1 %858 }
 0x502   : > { %1593 = vrsqrt.f32 %v826_v63 }
 0x503   : > { %v854_v11 = vpop.permute.xlu0 %853 }
 0x50a   : > { %v1592_v2 = vpop.eup %1591 }
 0x50b   : > { %v829_v4 = vmul.f32 %v1592_v2, %v813_v49  ;;  %v1351_v2 = vld [vmem:[#allocation22] ss:$0 sm:$0xff] }
 0x50c   : > { %v1594_v5 = vpop.eup %1593 }
 0x50d   : > { %v837_v7 = vmul.f32 %v1343_v3, %v829_v4  ;;  %v830_v8 = vmul.f32 %v1594_v5, %v814_v51 }
 0x50f   : > { %v845_v9 = vadd.f32 %v1344_v6, %v837_v7  ;;  %v838_v10 = vmul.f32 %v1343_v3, %v830_v8 }
 0x511   : > { %v847_v12 = vmax.f32 %v845_v9, 0.0  ;;  %v846_v13 = vadd.f32 %v1344_v6, %v838_v10  ;;  %v1352_v10 = vld [vmem:[#allocation25] ss:$0 sm:$0xff] }
 0x513   : > { %v861_v16 = vmul.f32 %v854_v11, %v847_v12  ;;  %v848_v17 = vmax.f32 %v846_v13, 0.0 }
 0x515   : > { %865 = vst.msk [vmem:[#allocation2 + $0x8] sm:$0xff] %vm803_vm2, %v861_v16  ;;  %v862_v19 = vmul.f32 %v859_v14, %v848_v17 }
 0x517   : > { %866 = vst.msk [vmem:[#allocation2 + $0x10] sm:$0xff] %vm803_vm2, %v862_v19 }
 0x51c   : > { %v871_v22 = vld [vmem:[#allocation2 + $0x8] sm:$0xff] }
 0x51d   : > { %v867_v25 = vld [vmem:[#allocation2 + $0x6] sm:$0xff] }
 0x51e   : > { %v872_v23 = vld [vmem:[#allocation2 + $0x10] sm:$0xff] }
 0x51f   : > { %v873_v24 = vpack.c.bf16 %v872_v23, %v871_v22  ;;  %v868_v26 = vld [vmem:[#allocation2 + $0xe] sm:$0xff] }
 0x520   : > { %v880_v27 = vld [vmem:[#allocation2 + $0xa] sm:$0xff]  ;;  %v881_v28 = vld [vmem:[#allocation2 + $0x12] sm:$0xff]  ;;  %v869_v29 = vpack.c.bf16 %v868_v26, %v867_v25 }
 0x521   : > { %875 = vrot.lane.b32.xlu1 %v873_v24, %s2116_s20  ;;  %v882_v30 = vpack.c.bf16 %v881_v28, %v880_v27 }
 0x522   : > { %870 = vst.msk [vmem:[#allocation3] sm:$0xff] %vm803_vm2, %v869_v29 }
 0x525   : > { %884 = vrot.lane.b32.xlu1 %v882_v30, %s2117_s24 }
 0x593   : > { %v876_v31 = vpop.permute.xlu1 %875 }
 0x594   : > { %879 = vst.msk [vmem:[#allocation3] sm:$0xff] %vm878_vm3, %v876_v31 }
 0x597   : > { %v885_v15 = vpop.permute.xlu1 %884 }
 0x598   : > { %888 = vst.msk [vmem:[#allocation3] sm:$0xff] %vm887_vm4, %v885_v15 }
 0x59f   : > { %v889_v32 = vld [vmem:[#allocation3] sm:$0xff] }
 0x5a0   : > { %1387 = vmatmul.mubr.msk.bf16.vlgmr.msra.gmra.mrb[0].mxu1 %vm921_vm5, %v889_v32 }
 0x673   : > { %v959_v34 = vpop.f32.mrb[0].mxu1 }
 0x674   : > { %v960_v35 = vadd.f32 %v1345_v33, %v959_v34  ;;  %v1388_v36 = vpop.f32.mrb[1].mxu1 }
 0x675   : > { %v962_v37 = vpop.f32.mrb[2].mxu1 }
 0x676   : > { %v963_v38 = vadd.f32 %v1345_v33, %v962_v37  ;;  %v1389_v39 = vpop.f32.mrb[3].mxu1  ;;  %v968_v40 = vsel %vm803_vm2, %v960_v35, 0.0 }
 0x677   : > { %969 = vadd.xlane.f32.xlu1 %v968_v40 }
 0x678   : > { %v971_v41 = vsel %vm803_vm2, %v963_v38, 0.0 }
 0x679   : > { %972 = vadd.xlane.f32.xlu0 %v971_v41 }
 0x704   : > { %v970_v42 = vpop.xlane.xlu1 %969 }
 0x705   : > { %v974_v43 = vmul.f32 0.0625, %v970_v42 }
 0x706   : > { %v973_v44 = vpop.xlane.xlu0 %972 }
 0x707   : > { %v976_v45 = vsub.f32 %v960_v35, %v974_v43  ;;  %v975_v46 = vmul.f32 0.0625, %v973_v44 }
 0x709   : > { %v977_v47 = vsub.f32 %v963_v38, %v975_v46  ;;  %v978_v48 = vmul.f32 %v976_v45, %v976_v45 }
 0x70b   : > { %v980_v49 = vsel %vm803_vm2, %v978_v48, 0.0  ;;  %v979_v50 = vmul.f32 %v977_v47, %v977_v47 }
 0x70c   : > { %981 = vadd.xlane.f32.xlu1 %v980_v49 }
 0x70d   : > { %v983_v51 = vsel %vm803_vm2, %v979_v50, 0.0 }
 0x710   : > { %984 = vadd.xlane.f32.xlu1 %v983_v51 }
 0x799   : > { %v982_v53 = vpop.xlane.xlu1 %981 }
 0x79a   : > { %v986_v54 = vmul.f32 0.0625, %v982_v53 }
 0x79c   : > { %v988_v55 = vadd.f32 1e-05, %v986_v54 }
 0x79d   : > { %v985_v56 = vpop.xlane.xlu1 %984 }
 0x79e   : > { %1595 = vrsqrt.f32 %v988_v55  ;;  %v987_v57 = vmul.f32 0.0625, %v985_v56 }
 0x7a0   : > { %v989_v58 = vadd.f32 1e-05, %v987_v57 }
 0x7a2   : > { %1597 = vrsqrt.f32 %v989_v58 }
 0x7a8   : > { %v1596_v59 = vpop.eup %1595 }
 0x7a9   : > { %v992_v61 = vmul.f32 %v1596_v59, %v976_v45 }
 0x7ab   : > { %v1000_v62 = vmul.f32 %v1350_v60, %v992_v61 }
 0x7ac   : > { %v1598_v63 = vpop.eup %1597 }
 0x7ad   : > { %v993_v3 = vmul.f32 %v1598_v63, %v977_v47  ;;  %v1008_v5 = vadd.f32 %v1351_v2, %v1000_v62 }
 0x7af   : > { %v1001_v4 = vmul.f32 %v1350_v60, %v993_v3  ;;  %v1010_v7 = vmax.f32 %v1008_v5, 0.0 }
 0x7b1   : > { %v1009_v6 = vadd.f32 %v1351_v2, %v1001_v4 }
 0x7b3   : > { %v1011_v8 = vmax.f32 %v1009_v6, 0.0 }
 0x7b5   : > { %v1012_v9 = vpack.c.bf16 %v1011_v8, %v1010_v7 }
 0x7b7   : > { %1393 = vmatmul.mubr.msk.bf16.vlgmr.msra.gmra.mrb[4].mxu0 %vm803_vm2, %v1012_v9 }
 0x88a   : > { %v1065_v11 = vpop.f32.mrb[4].mxu0 }
 0x88b   : > { %v1066_v12 = vadd.f32 %v1352_v10, %v1065_v11  ;;  %v1394_v13 = vpop.f32.mrb[5].mxu0 }
 0x88c   : > { %v1068_v14 = vpop.f32.mrb[6].mxu0 }
 0x88d   : > { %v1072_v16 = vadd.f32 %v1066_v12, %v2667_v0  ;;  %v1069_v17 = vadd.f32 %v1352_v10, %v1068_v14  ;;  %v1395_v18 = vpop.f32.mrb[7].mxu0 }
 0x88f   : > { %1074 = vst.msk [vmem:[%s681_s26] sm:$0xff] %vm687_vm0, %v1072_v16  ;;  %v1073_v19 = vadd.f32 %v1069_v17, %v2669_v1 }
 0x891   : > { %1075 = vst.msk [vmem:[%s681_s26 + $0x8] sm:$0xff] %vm687_vm0, %v1073_v19 }
 0x892   : > { %2008 = shalt.err (!%p2005_p2)
}
 0x893   : > { %s2009_s0 = scalar_lea.hbm %s2718_s8, 256  ;;  %s2013_s24 = scalar_lea.hbm %s2843_s27, 512 }
 0x894   : > { %p2010_p10 = scmp.ne.s32.totalorder %s2718_s8, %s2009_s0  ;;  %p2014_p7 = scmp.lt.u32.totalorder %s2718_s8, %s2843_s27 }
 0x895   : > { %p2015_p9 = scmp.lt.u32.totalorder %s2013_s24, %s2009_s0  ;;  %p2017_p12 = scmp.lt.u32.totalorder %s2009_s0, %s2718_s8 }
 0x896   : > { %p2011_p11 = pnand %p2010_p10, %p2844_p0 }
 0x897   : > { %p2016_p8 = por %p2015_p9, %p2014_p7 }
 0x898   : > { %p2012_p5 = pneg %p2011_p11 }
 0x899   : > { %p2018_p4 = por %p2017_p12, %p2016_p8 }
 0x89b   : > { %p2019_p13 = pnand %p2018_p4, %p2012_p5 }
 0x89d   : > { %2022 = shalt.err (!%p2019_p13)
}
 0x89e   : > { %s2119_s22 = smov 128   ;;  %s2120_s1 = smov 8  }
 0x89f   : > { %1448 = dma.vmem_to_hbm [thread:$0]  (%p2844_p0), %s2720_s6, 256, %s2718_s8, %s1077_s23, %s2119_s22, %s2119_s22, %s2120_s1  }
 0x8a0 PF: > { %s1105_s17 = sand.u32 1, %s2081_s29   ;;  %p2845_p1 = scmp.ne.s32.totalorder %s2821_s28, 0 }
 0x8a1   : > { %p2846_p3 = scmp.ge.s32.totalorder %s2093_s16, 2  ;;  %s1106_s2 = scalar_lea.sflag [#allocation6], %s1105_s17 }
 0x8a3   : > { %p1495_p6 = pnand %p2846_p3, %p2845_p1 }
 0x8a5   : > { %2076 = dma.done.wait (!%p1495_p6), %s1106_s2, 256  }
 0x8a6   : > { %2078 = vsyncadd (!%p1495_p6), %s1106_s2, 4294967040  ;;  %p36_p2 = scmp.ge.s32.totalorder %s2495_s25, 4   ;;  %s2847_s29 = smov %s2085_s30 }
 0x8a7   : > { %s2848_s30 = smov %s2089_s15  ;;  %s2849_s15 = smov %s2506_s18 }
 0x8a8   : > { %s2850_s16 = smov %s2495_s25  ;;  %38 = sbr.rel (!%p36_p2) target bundleno = 24 (0x18), region = 182 }
 0x8af   :  { %1111 = vsyncpa [#allocation5], 1 }
 0x8b0   :  { %1113 = vsyncpa [#allocation5 + $0x1], 1 }
 0x8b1   :  { %1114 = vsyncpa [#allocation8], 1 }
 0x8b2   :  { %1116 = vsyncpa [#allocation8 + $0x1], 1 }
 0x8b3   :  { %1117 = vsyncpa [#allocation11], 1 }
 0x8b4   :  { %1118 = vsyncpa [#allocation14], 1 }
 0x8b5   :  { %1119 = vsyncpa [#allocation17], 1 }
 0x8b6   :  { %1120 = vsyncpa [#allocation20], 1 }
 0x8b7   :  { %1121 = vsyncpa [#allocation23], 1 }
 0x8b8   :  { %1122 = vsyncpa [#allocation26], 1 }
 0x8b9   :  { %1123 = vsyncpa [#allocation6], 1 }
 0x8ba   :  { %1125 = vsyncpa [#allocation6 + $0x1], 1 }

</bundles_post_ra>
